<compile_context>
chip_gen: v7x
topology: tpu7x:2x2x1
jax: 0.10.0
libtpu: 0.0.40
codegen_flags: <defaults>
</compile_context>

<pallas_src>
import jax
import jax.numpy as jnp
from jax.experimental import pallas as pl
from jax.experimental.pallas import tpu as pltpu


def dcr_kernel(x_ref, w1_ref, w2_ref, b_ref, alpha_ref, out_ref,
               pad_ref, patch_ref):
    """conv3x3(pad=1) -> PReLU -> conv3x3(pad=1) -> PReLU -> + residual."""
    TB, Hp, Wp, C = pad_ref.shape
    H, W = Hp - 2, Wp - 2
    M = TB * H * W

    # Zero only the halo strips (the interior is fully overwritten below).
    # Done every step so the kernel is correct even when the "parallel" batch
    # axis is sharded across TensorCores (each core has its own scratch).
    zrow = jnp.zeros((TB, 1, Wp, C), jnp.float32)
    zcol = jnp.zeros((TB, Hp, 1, C), jnp.float32)
    pad_ref[:, 0:1, :, :] = zrow
    pad_ref[:, Hp - 1:Hp, :, :] = zrow
    pad_ref[:, :, 0:1, :] = zcol
    pad_ref[:, :, Wp - 1:Wp, :] = zcol

    def conv_prelu(w_ref, idx):
        # im2col: stage the 9 shifted (M, C) windows side by side into (M, 9C)
        # (column order (kh, kw, cin) matches the folded weight rows), then do
        # a single K=9C matmul on the MXU with f32 accumulation.
        for t, (kh, kw) in enumerate(
                [(kh, kw) for kh in range(3) for kw in range(3)]):
            patch_ref[:, t * C:(t + 1) * C] = (
                pad_ref[:, kh:kh + H, kw:kw + W, :].reshape(M, C))
        acc = jnp.dot(patch_ref[...], w_ref[...],
                      preferred_element_type=jnp.float32)
        acc = acc + b_ref[idx:idx + 1, :]           # (M, C) + (1, C)
        alpha = alpha_ref[idx]                      # scalar read from SMEM
        return jnp.where(acc >= 0.0, acc, alpha * acc)

    # ---- conv1 + PReLU: stage x into the halo scratch interior ----
    pad_ref[:, 1:1 + H, 1:1 + W, :] = x_ref[...]
    y1 = conv_prelu(w1_ref, 0)

    # ---- conv2 + PReLU: overwrite the interior with y1 (halo stays zero) ----
    pad_ref[:, 1:1 + H, 1:1 + W, :] = y1.reshape(TB, H, W, C)
    y2 = conv_prelu(w2_ref, 1)

    # ---- residual add (re-read x from the ref to keep live ranges short) ----
    out_ref[...] = (y2 + x_ref[...].reshape(M, C)).reshape(TB, H, W, C)


def _pick_batch_block(N, H, W, C, budget_bytes=8 << 20):
    """Largest divisor of N whose per-step VMEM footprint fits the budget."""
    f32 = 4
    best = 1
    for tb in range(1, N + 1):
        if N % tb:
            continue
        scratch = (tb * (H + 2) * (W + 2) * C          # halo scratch
                   + tb * H * W * 9 * C) * f32         # im2col patch
        blocks = 4 * tb * H * W * C * f32              # in+out, double-buffered
        weights = (2 * 2 * 9 * C * C + 2 * 2 * C) * f32
        if scratch + blocks + weights <= budget_bytes:
            best = tb
    return best


def dcr_block(x_nhwc, params, *, batch_block=None):
    """params = (w1 HWIO, b1 (C,), alpha1 scalar, w2 HWIO, b2 (C,), alpha2 scalar)."""
    w1, b1, a1, w2, b2, a2 = params
    N, H, W, C = x_nhwc.shape

    # Fold 3x3 taps + Cin into one contraction dim; row order (kh, kw, cin)
    # matches the im2col column order built inside the kernel.
    w1f = w1.reshape(9 * C, C).astype(jnp.float32)
    w2f = w2.reshape(9 * C, C).astype(jnp.float32)
    b = jnp.stack([b1, b2]).astype(jnp.float32)                  # (2, C)  VMEM
    alphas = jnp.stack([jnp.asarray(a1, jnp.float32),
                        jnp.asarray(a2, jnp.float32)])           # (2,)    SMEM

    tb = _pick_batch_block(N, H, W, C) if batch_block is None else batch_block
    assert N % tb == 0, "batch_block must divide the batch size"

    return pl.pallas_call(
        dcr_kernel,
        out_shape=jax.ShapeDtypeStruct((N, H, W, C), jnp.float32),
        grid_spec=pltpu.PrefetchScalarGridSpec(
            num_scalar_prefetch=0,
            grid=(N // tb,),
            in_specs=[
                pl.BlockSpec((tb, H, W, C), lambda n: (n, 0, 0, 0)),   # x
                pl.BlockSpec((9 * C, C), lambda n: (0, 0)),            # w1 (resident)
                pl.BlockSpec((9 * C, C), lambda n: (0, 0)),            # w2 (resident)
                pl.BlockSpec((2, C), lambda n: (0, 0)),                # biases
                pl.BlockSpec(memory_space=pltpu.MemorySpace.SMEM),     # alphas
            ],
            out_specs=pl.BlockSpec((tb, H, W, C), lambda n: (n, 0, 0, 0)),
            scratch_shapes=[
                pltpu.VMEM((tb, H + 2, W + 2, C), jnp.float32),   # halo scratch
                pltpu.VMEM((tb * H * W, 9 * C), jnp.float32),     # im2col patch
            ],
        ),
        compiler_params=pltpu.CompilerParams(
            dimension_semantics=("parallel",)),   # batch axis is independent
    )(x_nhwc, w1f, w2f, b, alphas)


@jax.jit
def dcr_block_nchw(x_nchw, params):
    """End-to-end (PyTorch NCHW in/out); layout plumbing fuses with the kernel."""
    x_nhwc = jnp.transpose(x_nchw, (0, 2, 3, 1))
    y_nhwc = dcr_block(x_nhwc, params)
    return jnp.transpose(y_nhwc, (0, 3, 1, 2))


def ref_forward(x_nhwc, params):
    """Pure-JAX reference (matches the PyTorch module semantics)."""
    w1, b1, a1, w2, b2, a2 = params

    def conv(x, w, b):
        y = jax.lax.conv_general_dilated(
            x, w, window_strides=(1, 1), padding="SAME",
            dimension_numbers=("NHWC", "HWIO", "NHWC"))
        return y + b[None, None, None, :]

    def prelu(x, a):
        return jnp.where(x >= 0, x, a * x)

    y = prelu(conv(x_nhwc, w1, b1), a1)
    y = prelu(conv(y, w2, b2), a2)
    return y + x_nhwc


if __name__ == "__main__":
    N, C, H, W = 2, 4, 16, 16  # x in PyTorch convention: (N, C, H, W)

    key = jax.random.PRNGKey(0)
    k = jax.random.split(key, 5)
    x_nchw = jax.random.normal(k[0], (N, C, H, W), jnp.float32)

    # Deterministic synthetic parameters (shapes from nn.Conv2d / nn.PReLU):
    # conv weights HWIO (3, 3, Cin, Cout); biases (C,); PReLU default alpha=0.25
    # (nn.PReLU() has a single learnable scalar, num_parameters=1).
    w1 = 0.1 * jax.random.normal(k[1], (3, 3, C, C), jnp.float32)
    b1 = 0.1 * jax.random.normal(k[2], (C,), jnp.float32)
    w2 = 0.1 * jax.random.normal(k[3], (3, 3, C, C), jnp.float32)
    b2 = 0.1 * jax.random.normal(k[4], (C,), jnp.float32)
    a1 = jnp.float32(0.25)
    a2 = jnp.float32(0.25)
    params = (w1, b1, a1, w2, b2, a2)

    out_nchw = jax.block_until_ready(dcr_block_nchw(x_nchw, params))

    x_nhwc = jnp.transpose(x_nchw, (0, 2, 3, 1))
    ref_nchw = jnp.transpose(ref_forward(x_nhwc, params), (0, 3, 1, 2))
    assert out_nchw.shape == (N, C, H, W)
    assert jnp.allclose(out_nchw, ref_nchw, rtol=1e-4, atol=1e-4), "mismatch vs reference"

    print("KERNEL_OK")
</pallas_src>

<mosaic_0001>
module attributes {stable_mosaic.version = 11 : i64} {
  func.func @dcr_kernel(%arg0: i32, %arg1: memref<2x16x16x4xf32, #tpu.memory_space<vmem>>, %arg2: memref<36x4xf32, #tpu.memory_space<vmem>>, %arg3: memref<36x4xf32, #tpu.memory_space<vmem>>, %arg4: memref<2x4xf32, #tpu.memory_space<vmem>>, %arg5: memref<2xf32, #tpu.memory_space<smem>>, %arg6: memref<2x16x16x4xf32, #tpu.memory_space<vmem>>, %arg7: memref<2x18x18x4xf32, #tpu.memory_space<vmem>>, %arg8: memref<512x36xf32, #tpu.memory_space<vmem>>) attributes {dimension_semantics = [#tpu.dimension_semantics<parallel>], iteration_bounds = array<i64: 1>, scalar_prefetch = 0 : i64, scratch_operands = 2 : i64, tpu.core_type = #tpu.core_type<tc>, window_params = [{transform_indices = @transform_0, window_bounds = array<i64: 2, 16, 16, 4>}, {pipeline_mode = #tpu.pipeline_mode<synchronous>, transform_indices = @transform_1, window_bounds = array<i64: 36, 4>}, {pipeline_mode = #tpu.pipeline_mode<synchronous>, transform_indices = @transform_2, window_bounds = array<i64: 36, 4>}, {pipeline_mode = #tpu.pipeline_mode<synchronous>, transform_indices = @transform_3, window_bounds = array<i64: 2, 4>}, {transform_indices = @transform_4, window_bounds = array<i64: 2>}, {transform_indices = @transform_5, window_bounds = array<i64: 2, 16, 16, 4>}]} {
    %cst = arith.constant 0.000000e+00 : f32
    %0 = vector.broadcast %cst : f32 to vector<2x1x18x4xf32>
    %cst_0 = arith.constant 0.000000e+00 : f32
    %1 = vector.broadcast %cst_0 : f32 to vector<2x18x1x4xf32>
    %c0 = arith.constant 0 : index
    %c0_1 = arith.constant 0 : index
    %c0_2 = arith.constant 0 : index
    %c0_3 = arith.constant 0 : index
    %2 = vector.load %arg7[%c0, %c0_1, %c0_2, %c0_3] : memref<2x18x18x4xf32, #tpu.memory_space<vmem>>, vector<2x1x18x4xf32>
    tpu.vector_store %arg7[%c0, %c0_1, %c0_2, %c0_3], %0 {strides = array<i32>} : memref<2x18x18x4xf32, #tpu.memory_space<vmem>>, vector<2x1x18x4xf32>,
    %c0_4 = arith.constant 0 : index
    %c17 = arith.constant 17 : index
    %c0_5 = arith.constant 0 : index
    %c0_6 = arith.constant 0 : index
    %3 = vector.load %arg7[%c0_4, %c17, %c0_5, %c0_6] : memref<2x18x18x4xf32, #tpu.memory_space<vmem>>, vector<2x1x18x4xf32>
    tpu.vector_store %arg7[%c0_4, %c17, %c0_5, %c0_6], %0 {strides = array<i32>} : memref<2x18x18x4xf32, #tpu.memory_space<vmem>>, vector<2x1x18x4xf32>,
    %c0_7 = arith.constant 0 : index
    %c0_8 = arith.constant 0 : index
    %c0_9 = arith.constant 0 : index
    %c0_10 = arith.constant 0 : index
    %4 = vector.load %arg7[%c0_7, %c0_8, %c0_9, %c0_10] : memref<2x18x18x4xf32, #tpu.memory_space<vmem>>, vector<2x18x1x4xf32>
    tpu.vector_store %arg7[%c0_7, %c0_8, %c0_9, %c0_10], %1 {strides = array<i32>} : memref<2x18x18x4xf32, #tpu.memory_space<vmem>>, vector<2x18x1x4xf32>,
    %c0_11 = arith.constant 0 : index
    %c0_12 = arith.constant 0 : index
    %c17_13 = arith.constant 17 : index
    %c0_14 = arith.constant 0 : index
    %5 = vector.load %arg7[%c0_11, %c0_12, %c17_13, %c0_14] : memref<2x18x18x4xf32, #tpu.memory_space<vmem>>, vector<2x18x1x4xf32>
    tpu.vector_store %arg7[%c0_11, %c0_12, %c17_13, %c0_14], %1 {strides = array<i32>} : memref<2x18x18x4xf32, #tpu.memory_space<vmem>>, vector<2x18x1x4xf32>,
    %c0_15 = arith.constant 0 : index
    %c0_16 = arith.constant 0 : index
    %c0_17 = arith.constant 0 : index
    %c0_18 = arith.constant 0 : index
    %6 = vector.load %arg1[%c0_15, %c0_16, %c0_17, %c0_18] : memref<2x16x16x4xf32, #tpu.memory_space<vmem>>, vector<2x16x16x4xf32>
    %c0_19 = arith.constant 0 : index
    %c1 = arith.constant 1 : index
    %c1_20 = arith.constant 1 : index
    %c0_21 = arith.constant 0 : index
    %7 = vector.load %arg7[%c0_19, %c1, %c1_20, %c0_21] : memref<2x18x18x4xf32, #tpu.memory_space<vmem>>, vector<2x16x16x4xf32>
    tpu.vector_store %arg7[%c0_19, %c1, %c1_20, %c0_21], %6 {strides = array<i32>} : memref<2x18x18x4xf32, #tpu.memory_space<vmem>>, vector<2x16x16x4xf32>,
    %c0_22 = arith.constant 0 : index
    %c0_23 = arith.constant 0 : index
    %c0_24 = arith.constant 0 : index
    %c0_25 = arith.constant 0 : index
    %8 = vector.load %arg7[%c0_22, %c0_23, %c0_24, %c0_25] : memref<2x18x18x4xf32, #tpu.memory_space<vmem>>, vector<2x16x16x4xf32>
    %9 = vector.shape_cast %8 : vector<2x16x16x4xf32> to vector<512x4xf32>
    %c0_26 = arith.constant 0 : index
    %c0_27 = arith.constant 0 : index
    %10 = vector.load %arg8[%c0_26, %c0_27] : memref<512x36xf32, #tpu.memory_space<vmem>>, vector<512x4xf32>
    tpu.vector_store %arg8[%c0_26, %c0_27], %9 {strides = array<i32>} : memref<512x36xf32, #tpu.memory_space<vmem>>, vector<512x4xf32>,
    %c0_28 = arith.constant 0 : index
    %c0_29 = arith.constant 0 : index
    %c1_30 = arith.constant 1 : index
    %c0_31 = arith.constant 0 : index
    %11 = vector.load %arg7[%c0_28, %c0_29, %c1_30, %c0_31] : memref<2x18x18x4xf32, #tpu.memory_space<vmem>>, vector<2x16x16x4xf32>
    %12 = vector.shape_cast %11 : vector<2x16x16x4xf32> to vector<512x4xf32>
    %c0_32 = arith.constant 0 : index
    %c4 = arith.constant 4 : index
    %13 = vector.load %arg8[%c0_32, %c4] : memref<512x36xf32, #tpu.memory_space<vmem>>, vector<512x4xf32>
    tpu.vector_store %arg8[%c0_32, %c4], %12 {strides = array<i32>} : memref<512x36xf32, #tpu.memory_space<vmem>>, vector<512x4xf32>,
    %c0_33 = arith.constant 0 : index
    %c0_34 = arith.constant 0 : index
    %c2 = arith.constant 2 : index
    %c0_35 = arith.constant 0 : index
    %14 = vector.load %arg7[%c0_33, %c0_34, %c2, %c0_35] : memref<2x18x18x4xf32, #tpu.memory_space<vmem>>, vector<2x16x16x4xf32>
    %15 = vector.shape_cast %14 : vector<2x16x16x4xf32> to vector<512x4xf32>
    %c0_36 = arith.constant 0 : index
    %c8 = arith.constant 8 : index
    %16 = vector.load %arg8[%c0_36, %c8] : memref<512x36xf32, #tpu.memory_space<vmem>>, vector<512x4xf32>
    tpu.vector_store %arg8[%c0_36, %c8], %15 {strides = array<i32>} : memref<512x36xf32, #tpu.memory_space<vmem>>, vector<512x4xf32>,
    %c0_37 = arith.constant 0 : index
    %c1_38 = arith.constant 1 : index
    %c0_39 = arith.constant 0 : index
    %c0_40 = arith.constant 0 : index
    %17 = vector.load %arg7[%c0_37, %c1_38, %c0_39, %c0_40] : memref<2x18x18x4xf32, #tpu.memory_space<vmem>>, vector<2x16x16x4xf32>
    %18 = vector.shape_cast %17 : vector<2x16x16x4xf32> to vector<512x4xf32>
    %c0_41 = arith.constant 0 : index
    %c12 = arith.constant 12 : index
    %19 = vector.load %arg8[%c0_41, %c12] : memref<512x36xf32, #tpu.memory_space<vmem>>, vector<512x4xf32>
    tpu.vector_store %arg8[%c0_41, %c12], %18 {strides = array<i32>} : memref<512x36xf32, #tpu.memory_space<vmem>>, vector<512x4xf32>,
    %c0_42 = arith.constant 0 : index
    %c1_43 = arith.constant 1 : index
    %c1_44 = arith.constant 1 : index
    %c0_45 = arith.constant 0 : index
    %20 = vector.load %arg7[%c0_42, %c1_43, %c1_44, %c0_45] : memref<2x18x18x4xf32, #tpu.memory_space<vmem>>, vector<2x16x16x4xf32>
    %21 = vector.shape_cast %20 : vector<2x16x16x4xf32> to vector<512x4xf32>
    %c0_46 = arith.constant 0 : index
    %c16 = arith.constant 16 : index
    %22 = vector.load %arg8[%c0_46, %c16] : memref<512x36xf32, #tpu.memory_space<vmem>>, vector<512x4xf32>
    tpu.vector_store %arg8[%c0_46, %c16], %21 {strides = array<i32>} : memref<512x36xf32, #tpu.memory_space<vmem>>, vector<512x4xf32>,
    %c0_47 = arith.constant 0 : index
    %c1_48 = arith.constant 1 : index
    %c2_49 = arith.constant 2 : index
    %c0_50 = arith.constant 0 : index
    %23 = vector.load %arg7[%c0_47, %c1_48, %c2_49, %c0_50] : memref<2x18x18x4xf32, #tpu.memory_space<vmem>>, vector<2x16x16x4xf32>
    %24 = vector.shape_cast %23 : vector<2x16x16x4xf32> to vector<512x4xf32>
    %c0_51 = arith.constant 0 : index
    %c20 = arith.constant 20 : index
    %25 = vector.load %arg8[%c0_51, %c20] : memref<512x36xf32, #tpu.memory_space<vmem>>, vector<512x4xf32>
    tpu.vector_store %arg8[%c0_51, %c20], %24 {strides = array<i32>} : memref<512x36xf32, #tpu.memory_space<vmem>>, vector<512x4xf32>,
    %c0_52 = arith.constant 0 : index
    %c2_53 = arith.constant 2 : index
    %c0_54 = arith.constant 0 : index
    %c0_55 = arith.constant 0 : index
    %26 = vector.load %arg7[%c0_52, %c2_53, %c0_54, %c0_55] : memref<2x18x18x4xf32, #tpu.memory_space<vmem>>, vector<2x16x16x4xf32>
    %27 = vector.shape_cast %26 : vector<2x16x16x4xf32> to vector<512x4xf32>
    %c0_56 = arith.constant 0 : index
    %c24 = arith.constant 24 : index
    %28 = vector.load %arg8[%c0_56, %c24] : memref<512x36xf32, #tpu.memory_space<vmem>>, vector<512x4xf32>
    tpu.vector_store %arg8[%c0_56, %c24], %27 {strides = array<i32>} : memref<512x36xf32, #tpu.memory_space<vmem>>, vector<512x4xf32>,
    %c0_57 = arith.constant 0 : index
    %c2_58 = arith.constant 2 : index
    %c1_59 = arith.constant 1 : index
    %c0_60 = arith.constant 0 : index
    %29 = vector.load %arg7[%c0_57, %c2_58, %c1_59, %c0_60] : memref<2x18x18x4xf32, #tpu.memory_space<vmem>>, vector<2x16x16x4xf32>
    %30 = vector.shape_cast %29 : vector<2x16x16x4xf32> to vector<512x4xf32>
    %c0_61 = arith.constant 0 : index
    %c28 = arith.constant 28 : index
    %31 = vector.load %arg8[%c0_61, %c28] : memref<512x36xf32, #tpu.memory_space<vmem>>, vector<512x4xf32>
    tpu.vector_store %arg8[%c0_61, %c28], %30 {strides = array<i32>} : memref<512x36xf32, #tpu.memory_space<vmem>>, vector<512x4xf32>,
    %c0_62 = arith.constant 0 : index
    %c2_63 = arith.constant 2 : index
    %c2_64 = arith.constant 2 : index
    %c0_65 = arith.constant 0 : index
    %32 = vector.load %arg7[%c0_62, %c2_63, %c2_64, %c0_65] : memref<2x18x18x4xf32, #tpu.memory_space<vmem>>, vector<2x16x16x4xf32>
    %33 = vector.shape_cast %32 : vector<2x16x16x4xf32> to vector<512x4xf32>
    %c0_66 = arith.constant 0 : index
    %c32 = arith.constant 32 : index
    %34 = vector.load %arg8[%c0_66, %c32] : memref<512x36xf32, #tpu.memory_space<vmem>>, vector<512x4xf32>
    tpu.vector_store %arg8[%c0_66, %c32], %33 {strides = array<i32>} : memref<512x36xf32, #tpu.memory_space<vmem>>, vector<512x4xf32>,
    %c0_67 = arith.constant 0 : index
    %c0_68 = arith.constant 0 : index
    %35 = vector.load %arg8[%c0_67, %c0_68] : memref<512x36xf32, #tpu.memory_space<vmem>>, vector<512x36xf32>
    %c0_69 = arith.constant 0 : index
    %c0_70 = arith.constant 0 : index
    %36 = vector.load %arg2[%c0_69, %c0_70] : memref<36x4xf32, #tpu.memory_space<vmem>>, vector<36x4xf32>
    %cst_71 = arith.constant dense<0.000000e+00> : vector<512x4xf32>
    %37 = tpu.matmul %35, %36, %cst_71 {dimension_numbers = #tpu.dot_dimension_numbers<[1], [0], [0], [1], [0, 0, 1, 1], [], []>} : vector<512x36xf32>, vector<36x4xf32>, vector<512x4xf32> -> vector<512x4xf32>
    %c0_72 = arith.constant 0 : index
    %c0_73 = arith.constant 0 : index
    %38 = vector.load %arg4[%c0_72, %c0_73] : memref<2x4xf32, #tpu.memory_space<vmem>>, vector<1x4xf32>
    %39 = vector.broadcast %38 : vector<1x4xf32> to vector<512x4xf32>
    %40 = arith.addf %37, %39 : vector<512x4xf32>
    %c0_74 = arith.constant 0 : index
    %41 = memref.load %arg5[%c0_74] : memref<2xf32, #tpu.memory_space<smem>>
    %cst_75 = arith.constant 0.000000e+00 : f32
    %42 = vector.broadcast %cst_75 : f32 to vector<512x4xf32>
    %43 = arith.cmpf oge, %40, %42 : vector<512x4xf32>
    %44 = vector.broadcast %41 : f32 to vector<512x4xf32>
    %45 = arith.mulf %44, %40 : vector<512x4xf32>
    %46 = arith.select %43, %40, %45 : vector<512x4xi1>, vector<512x4xf32>
    %47 = vector.shape_cast %46 : vector<512x4xf32> to vector<2x16x16x4xf32>
    %c0_76 = arith.constant 0 : index
    %c1_77 = arith.constant 1 : index
    %c1_78 = arith.constant 1 : index
    %c0_79 = arith.constant 0 : index
    %48 = vector.load %arg7[%c0_76, %c1_77, %c1_78, %c0_79] : memref<2x18x18x4xf32, #tpu.memory_space<vmem>>, vector<2x16x16x4xf32>
    tpu.vector_store %arg7[%c0_76, %c1_77, %c1_78, %c0_79], %47 {strides = array<i32>} : memref<2x18x18x4xf32, #tpu.memory_space<vmem>>, vector<2x16x16x4xf32>,
    %c0_80 = arith.constant 0 : index
    %c0_81 = arith.constant 0 : index
    %c0_82 = arith.constant 0 : index
    %c0_83 = arith.constant 0 : index
    %49 = vector.load %arg7[%c0_80, %c0_81, %c0_82, %c0_83] : memref<2x18x18x4xf32, #tpu.memory_space<vmem>>, vector<2x16x16x4xf32>
    %50 = vector.shape_cast %49 : vector<2x16x16x4xf32> to vector<512x4xf32>
    %c0_84 = arith.constant 0 : index
    %c0_85 = arith.constant 0 : index
    %51 = vector.load %arg8[%c0_84, %c0_85] : memref<512x36xf32, #tpu.memory_space<vmem>>, vector<512x4xf32>
    tpu.vector_store %arg8[%c0_84, %c0_85], %50 {strides = array<i32>} : memref<512x36xf32, #tpu.memory_space<vmem>>, vector<512x4xf32>,
    %c0_86 = arith.constant 0 : index
    %c0_87 = arith.constant 0 : index
    %c1_88 = arith.constant 1 : index
    %c0_89 = arith.constant 0 : index
    %52 = vector.load %arg7[%c0_86, %c0_87, %c1_88, %c0_89] : memref<2x18x18x4xf32, #tpu.memory_space<vmem>>, vector<2x16x16x4xf32>
    %53 = vector.shape_cast %52 : vector<2x16x16x4xf32> to vector<512x4xf32>
    %c0_90 = arith.constant 0 : index
    %c4_91 = arith.constant 4 : index
    %54 = vector.load %arg8[%c0_90, %c4_91] : memref<512x36xf32, #tpu.memory_space<vmem>>, vector<512x4xf32>
    tpu.vector_store %arg8[%c0_90, %c4_91], %53 {strides = array<i32>} : memref<512x36xf32, #tpu.memory_space<vmem>>, vector<512x4xf32>,
    %c0_92 = arith.constant 0 : index
    %c0_93 = arith.constant 0 : index
    %c2_94 = arith.constant 2 : index
    %c0_95 = arith.constant 0 : index
    %55 = vector.load %arg7[%c0_92, %c0_93, %c2_94, %c0_95] : memref<2x18x18x4xf32, #tpu.memory_space<vmem>>, vector<2x16x16x4xf32>
    %56 = vector.shape_cast %55 : vector<2x16x16x4xf32> to vector<512x4xf32>
    %c0_96 = arith.constant 0 : index
    %c8_97 = arith.constant 8 : index
    %57 = vector.load %arg8[%c0_96, %c8_97] : memref<512x36xf32, #tpu.memory_space<vmem>>, vector<512x4xf32>
    tpu.vector_store %arg8[%c0_96, %c8_97], %56 {strides = array<i32>} : memref<512x36xf32, #tpu.memory_space<vmem>>, vector<512x4xf32>,
    %c0_98 = arith.constant 0 : index
    %c1_99 = arith.constant 1 : index
    %c0_100 = arith.constant 0 : index
    %c0_101 = arith.constant 0 : index
    %58 = vector.load %arg7[%c0_98, %c1_99, %c0_100, %c0_101] : memref<2x18x18x4xf32, #tpu.memory_space<vmem>>, vector<2x16x16x4xf32>
    %59 = vector.shape_cast %58 : vector<2x16x16x4xf32> to vector<512x4xf32>
    %c0_102 = arith.constant 0 : index
    %c12_103 = arith.constant 12 : index
    %60 = vector.load %arg8[%c0_102, %c12_103] : memref<512x36xf32, #tpu.memory_space<vmem>>, vector<512x4xf32>
    tpu.vector_store %arg8[%c0_102, %c12_103], %59 {strides = array<i32>} : memref<512x36xf32, #tpu.memory_space<vmem>>, vector<512x4xf32>,
    %c0_104 = arith.constant 0 : index
    %c1_105 = arith.constant 1 : index
    %c1_106 = arith.constant 1 : index
    %c0_107 = arith.constant 0 : index
    %61 = vector.load %arg7[%c0_104, %c1_105, %c1_106, %c0_107] : memref<2x18x18x4xf32, #tpu.memory_space<vmem>>, vector<2x16x16x4xf32>
    %62 = vector.shape_cast %61 : vector<2x16x16x4xf32> to vector<512x4xf32>
    %c0_108 = arith.constant 0 : index
    %c16_109 = arith.constant 16 : index
    %63 = vector.load %arg8[%c0_108, %c16_109] : memref<512x36xf32, #tpu.memory_space<vmem>>, vector<512x4xf32>
    tpu.vector_store %arg8[%c0_108, %c16_109], %62 {strides = array<i32>} : memref<512x36xf32, #tpu.memory_space<vmem>>, vector<512x4xf32>,
    %c0_110 = arith.constant 0 : index
    %c1_111 = arith.constant 1 : index
    %c2_112 = arith.constant 2 : index
    %c0_113 = arith.constant 0 : index
    %64 = vector.load %arg7[%c0_110, %c1_111, %c2_112, %c0_113] : memref<2x18x18x4xf32, #tpu.memory_space<vmem>>, vector<2x16x16x4xf32>
    %65 = vector.shape_cast %64 : vector<2x16x16x4xf32> to vector<512x4xf32>
    %c0_114 = arith.constant 0 : index
    %c20_115 = arith.constant 20 : index
    %66 = vector.load %arg8[%c0_114, %c20_115] : memref<512x36xf32, #tpu.memory_space<vmem>>, vector<512x4xf32>
    tpu.vector_store %arg8[%c0_114, %c20_115], %65 {strides = array<i32>} : memref<512x36xf32, #tpu.memory_space<vmem>>, vector<512x4xf32>,
    %c0_116 = arith.constant 0 : index
    %c2_117 = arith.constant 2 : index
    %c0_118 = arith.constant 0 : index
    %c0_119 = arith.constant 0 : index
    %67 = vector.load %arg7[%c0_116, %c2_117, %c0_118, %c0_119] : memref<2x18x18x4xf32, #tpu.memory_space<vmem>>, vector<2x16x16x4xf32>
    %68 = vector.shape_cast %67 : vector<2x16x16x4xf32> to vector<512x4xf32>
    %c0_120 = arith.constant 0 : index
    %c24_121 = arith.constant 24 : index
    %69 = vector.load %arg8[%c0_120, %c24_121] : memref<512x36xf32, #tpu.memory_space<vmem>>, vector<512x4xf32>
    tpu.vector_store %arg8[%c0_120, %c24_121], %68 {strides = array<i32>} : memref<512x36xf32, #tpu.memory_space<vmem>>, vector<512x4xf32>,
    %c0_122 = arith.constant 0 : index
    %c2_123 = arith.constant 2 : index
    %c1_124 = arith.constant 1 : index
    %c0_125 = arith.constant 0 : index
    %70 = vector.load %arg7[%c0_122, %c2_123, %c1_124, %c0_125] : memref<2x18x18x4xf32, #tpu.memory_space<vmem>>, vector<2x16x16x4xf32>
    %71 = vector.shape_cast %70 : vector<2x16x16x4xf32> to vector<512x4xf32>
    %c0_126 = arith.constant 0 : index
    %c28_127 = arith.constant 28 : index
    %72 = vector.load %arg8[%c0_126, %c28_127] : memref<512x36xf32, #tpu.memory_space<vmem>>, vector<512x4xf32>
    tpu.vector_store %arg8[%c0_126, %c28_127], %71 {strides = array<i32>} : memref<512x36xf32, #tpu.memory_space<vmem>>, vector<512x4xf32>,
    %c0_128 = arith.constant 0 : index
    %c2_129 = arith.constant 2 : index
    %c2_130 = arith.constant 2 : index
    %c0_131 = arith.constant 0 : index
    %73 = vector.load %arg7[%c0_128, %c2_129, %c2_130, %c0_131] : memref<2x18x18x4xf32, #tpu.memory_space<vmem>>, vector<2x16x16x4xf32>
    %74 = vector.shape_cast %73 : vector<2x16x16x4xf32> to vector<512x4xf32>
    %c0_132 = arith.constant 0 : index
    %c32_133 = arith.constant 32 : index
    %75 = vector.load %arg8[%c0_132, %c32_133] : memref<512x36xf32, #tpu.memory_space<vmem>>, vector<512x4xf32>
    tpu.vector_store %arg8[%c0_132, %c32_133], %74 {strides = array<i32>} : memref<512x36xf32, #tpu.memory_space<vmem>>, vector<512x4xf32>,
    %c0_134 = arith.constant 0 : index
    %c0_135 = arith.constant 0 : index
    %76 = vector.load %arg8[%c0_134, %c0_135] : memref<512x36xf32, #tpu.memory_space<vmem>>, vector<512x36xf32>
    %c0_136 = arith.constant 0 : index
    %c0_137 = arith.constant 0 : index
    %77 = vector.load %arg3[%c0_136, %c0_137] : memref<36x4xf32, #tpu.memory_space<vmem>>, vector<36x4xf32>
    %cst_138 = arith.constant dense<0.000000e+00> : vector<512x4xf32>
    %78 = tpu.matmul %76, %77, %cst_138 {dimension_numbers = #tpu.dot_dimension_numbers<[1], [0], [0], [1], [0, 0, 1, 1], [], []>} : vector<512x36xf32>, vector<36x4xf32>, vector<512x4xf32> -> vector<512x4xf32>
    %c1_139 = arith.constant 1 : index
    %c0_140 = arith.constant 0 : index
    %79 = vector.load %arg4[%c1_139, %c0_140] : memref<2x4xf32, #tpu.memory_space<vmem>>, vector<1x4xf32>
    %80 = vector.broadcast %79 : vector<1x4xf32> to vector<512x4xf32>
    %81 = arith.addf %78, %80 : vector<512x4xf32>
    %c1_141 = arith.constant 1 : index
    %82 = memref.load %arg5[%c1_141] : memref<2xf32, #tpu.memory_space<smem>>
    %cst_142 = arith.constant 0.000000e+00 : f32
    %83 = vector.broadcast %cst_142 : f32 to vector<512x4xf32>
    %84 = arith.cmpf oge, %81, %83 : vector<512x4xf32>
    %85 = vector.broadcast %82 : f32 to vector<512x4xf32>
    %86 = arith.mulf %85, %81 : vector<512x4xf32>
    %87 = arith.select %84, %81, %86 : vector<512x4xi1>, vector<512x4xf32>
    %c0_143 = arith.constant 0 : index
    %c0_144 = arith.constant 0 : index
    %c0_145 = arith.constant 0 : index
    %c0_146 = arith.constant 0 : index
    %88 = vector.load %arg1[%c0_143, %c0_144, %c0_145, %c0_146] : memref<2x16x16x4xf32, #tpu.memory_space<vmem>>, vector<2x16x16x4xf32>
    %89 = vector.shape_cast %88 : vector<2x16x16x4xf32> to vector<512x4xf32>
    %90 = arith.addf %87, %89 : vector<512x4xf32>
    %91 = vector.shape_cast %90 : vector<512x4xf32> to vector<2x16x16x4xf32>
    %c0_147 = arith.constant 0 : index
    %c0_148 = arith.constant 0 : index
    %c0_149 = arith.constant 0 : index
    %c0_150 = arith.constant 0 : index
    %92 = vector.load %arg6[%c0_147, %c0_148, %c0_149, %c0_150] : memref<2x16x16x4xf32, #tpu.memory_space<vmem>>, vector<2x16x16x4xf32>
    tpu.vector_store %arg6[%c0_147, %c0_148, %c0_149, %c0_150], %91 {strides = array<i32>} : memref<2x16x16x4xf32, #tpu.memory_space<vmem>>, vector<2x16x16x4xf32>,
    return
  }
  func.func @transform_0(%arg0: i32) -> (i32, i32, i32, i32) {
    %c0_i32 = arith.constant 0 : i32
    %c0_i32_0 = arith.constant 0 : i32
    %c0_i32_1 = arith.constant 0 : i32
    %c0_i32_2 = arith.constant 0 : i32
    return %arg0, %c0_i32, %c0_i32_0, %c0_i32_1 : i32, i32, i32, i32
  }
  func.func @transform_1(%arg0: i32) -> (i32, i32) {
    %c0_i32 = arith.constant 0 : i32
    %c0_i32_0 = arith.constant 0 : i32
    %c0_i32_1 = arith.constant 0 : i32
    return %c0_i32, %c0_i32_0 : i32, i32
  }
  func.func @transform_2(%arg0: i32) -> (i32, i32) {
    %c0_i32 = arith.constant 0 : i32
    %c0_i32_0 = arith.constant 0 : i32
    %c0_i32_1 = arith.constant 0 : i32
    return %c0_i32, %c0_i32_0 : i32, i32
  }
  func.func @transform_3(%arg0: i32) -> (i32, i32) {
    %c0_i32 = arith.constant 0 : i32
    %c0_i32_0 = arith.constant 0 : i32
    %c0_i32_1 = arith.constant 0 : i32
    return %c0_i32, %c0_i32_0 : i32, i32
  }
  func.func @transform_4(%arg0: i32) -> i32 {
    %c0_i32 = arith.constant 0 : i32
    %c0_i32_0 = arith.constant 0 : i32
    return %c0_i32 : i32
  }
  func.func @transform_5(%arg0: i32) -> (i32, i32, i32, i32) {
    %c0_i32 = arith.constant 0 : i32
    %c0_i32_0 = arith.constant 0 : i32
    %c0_i32_1 = arith.constant 0 : i32
    %c0_i32_2 = arith.constant 0 : i32
    return %arg0, %c0_i32, %c0_i32_0, %c0_i32_1 : i32, i32, i32, i32
  }
}

</mosaic_0001>

<bundles_post_ra>
// kernel: dcr_block_nchw.1
= control target key start
LH: loop header
LB: loop body
LE: loop exit
PB: predicated region body
PF: predicated region fallthrough
CT: control target
= control target key end

     0   :  { %10 = vsyncpa [#allocation5], 0  ;;  %s13385_s0 = inlined_call_operand.vmem [shape: f32[2,16,16,4], index: 0, kind: input, shape index: {}]   ;;  %s13386_s1 = inlined_call_operand.vmem [shape: f32[36,4], index: 1, kind: input, shape index: {}]   ;;  %s13387_s2 = inlined_call_operand.vmem [shape: f32[36,4], index: 2, kind: input, shape index: {}]   ;;  %s13388_s3 = inlined_call_operand.vmem [shape: f32[2,4], index: 3, kind: input, shape index: {}]   ;;  %s13389_s4 = inlined_call_operand.vmem [shape: f32[2], index: 4, kind: input, shape index: {}]   ;;  %s13390_s5 = inlined_call_operand.vmem [shape: f32[2,16,16,4], index: 5, kind: output, shape index: {}]  }
   0x1   :  { %s25_s20 = sshll.u32 %s13389_s4, 4  ;;  %s26_s20 = int_to_ptr.vmem [resolvable:$true] %s25_s20 }
   0x2   :  { %s9129_s21 = scalar_lea.vmem %s26_s20, 16  ;;  %p9134_p1 = scmp.lt.s32.totalorder %s26_s20, %s26_s20 }
   0x3   :  { %p9130_p0 = scmp.ne.s32.totalorder %s26_s20, %s9129_s21  ;;  %p9135_p2 = scmp.lt.s32.totalorder %s9129_s21, %s9129_s21 }
   0x5   :  { %p9136_p3 = por %p9135_p2, %p9134_p1 }
   0x7   :  { %p9137_p4 = pnand %p9136_p3, %p9130_p0 }
   0x9   :  { %9140 = shalt.err (!%p9137_p4)
}
   0xa   :  { %s9143_s22 = smov [#allocation4]  }
   0xb   :  { %28 = dma.vmem_to_smem %s26_s20, 16, %s9143_s22, [#allocation5]  }
   0xc   :  { %9141 = dma.done.wait [#allocation5], 16  }
   0xd   :  { %9142 = vsyncadd [#allocation5], 4294967280 }
   0xe   :  { %32 = sfence }
   0xf   :  { %vm33_vm0 = vcmask 31744   ;;  %v121_v0 = vld [vmem:[%s13385_s0] sm:$0xff]  ;;  %vm36_vm1 = vcmask 25600   ;;  %v122_v1 = vld [vmem:[%s13385_s0 + $0x8] sm:$0xff]  ;;  %v9144_v2 = vmov 0.0   ;;  %v123_v3 = vld [vmem:[%s13385_s0 + $0x10] sm:$0xff] }
  0x10   :  { %34 = vst.msk [vmem:[#allocation2] sm:$0xff] %vm33_vm0, %v9144_v2  ;;  %35 = vst.msk [vmem:[#allocation2 + $0x8] sm:$0xff] %vm33_vm0, %v9144_v2  ;;  %v124_v4 = vld [vmem:[%s13385_s0 + $0x18] sm:$0xff]  ;;  %v125_v5 = vld [vmem:[%s13385_s0 + $0x20] sm:$0xff]  ;;  %vm48_vm2 = vcmask 24576   ;;  %s9145_s17 = smov 4  }
  0x11   :  { %38 = vst.msk [vmem:[#allocation2 + $0x1b0] sm:$0xff] %vm33_vm0, %v9144_v2  ;;  %39 = vst.msk [vmem:[#allocation2 + $0x1b8] sm:$0xff] %vm33_vm0, %v9144_v2  ;;  %v9229_v6 = vld [vmem:[%s13385_s0 + $0x28] sm:$0xff]  ;;  %v9234_v7 = vld [vmem:[%s13385_s0 + $0x30] sm:$0xff]  ;;  %vm698_vm3 = vcmask 64544   ;;  %s9146_s16 = smov 8  }
  0x12   :  { %42 = vst.msk [vmem:[#allocation2 + $0x198] sm:$0xff] %vm33_vm0, %v9144_v2  ;;  %43 = vst.msk [vmem:[#allocation2 + $0x1a0] sm:$0xff] %vm33_vm0, %v9144_v2  ;;  %v9239_v8 = vld [vmem:[%s13385_s0 + $0x38] sm:$0xff]  ;;  %v129_v9 = vld [vmem:[%s13385_s0 + $0x40] sm:$0xff]  ;;  %vm1083_vm4 = vcmask 97344   ;;  %s9147_s25 = smov 12  }
  0x13   :  { %45 = vst.msk [vmem:[#allocation2 + $0x348] sm:$0xff] %vm33_vm0, %v9144_v2  ;;  %46 = vst.msk [vmem:[#allocation2 + $0x350] sm:$0xff] %vm33_vm0, %v9144_v2  ;;  %v130_v10 = vld [vmem:[%s13385_s0 + $0x48] sm:$0xff]  ;;  %v131_v11 = vld [vmem:[%s13385_s0 + $0x50] sm:$0xff]  ;;  %vm1468_vm5 = vcmask 130144   ;;  %s9148_s26 = smov 16  }
  0x14   :  { %186 = vst.msk [vmem:[#allocation2 + $0x19] sm:$0xff] %vm33_vm0, %v121_v0  ;;  %187 = vst.msk [vmem:[#allocation2 + $0x21] sm:$0xff] %vm33_vm0, %v122_v1  ;;  %v132_v12 = vld [vmem:[%s13385_s0 + $0x58] sm:$0xff]  ;;  %v133_v13 = vld [vmem:[%s13385_s0 + $0x60] sm:$0xff]  ;;  %vm1853_vm6 = vcmask 162944   ;;  %s9149_s27 = smov 20  }
  0x15   :  { %37 = vst.msk [vmem:[#allocation2 + $0x10] sm:$0x3] %vm36_vm1, %v9144_v2  ;;  %40 = vst.msk [vmem:[#allocation2 + $0x1c0] sm:$0x3] %vm36_vm1, %v9144_v2  ;;  %v134_v14 = vld [vmem:[%s13385_s0 + $0x68] sm:$0xff]  ;;  %v135_v15 = vld [vmem:[%s13385_s0 + $0x70] sm:$0xff] }
  0x16   :  { %44 = vst.msk [vmem:[#allocation2 + $0x1a8] sm:$0x3] %vm36_vm1, %v9144_v2  ;;  %47 = vst.msk [vmem:[#allocation2 + $0x358] sm:$0x3] %vm36_vm1, %v9144_v2  ;;  %v136_v16 = vld [vmem:[%s13385_s0 + $0x78] sm:$0xff]  ;;  %v137_v17 = vld [vmem:[%s13385_s0 + $0x80] sm:$0xff] }
  0x17   :  { %188 = vst.msk [vmem:[#allocation2 + $0x31] sm:$0xff] %vm33_vm0, %v123_v3  ;;  %189 = vst.msk [vmem:[#allocation2 + $0x39] sm:$0xff] %vm33_vm0, %v124_v4  ;;  %v138_v18 = vld [vmem:[%s13385_s0 + $0x88] sm:$0xff]  ;;  %v139_v19 = vld [vmem:[%s13385_s0 + $0x90] sm:$0xff]  ;;  %vm2238_vm7 = vcmask 195744   ;;  %s9150_s28 = smov 24  }
  0x18   :  { %190 = vst.msk [vmem:[#allocation2 + $0x49] sm:$0xff] %vm33_vm0, %v125_v5  ;;  %191 = vst.msk [vmem:[#allocation2 + $0x51] sm:$0xff] %vm33_vm0, %v9229_v6  ;;  %v140_v20 = vld [vmem:[%s13385_s0 + $0x98] sm:$0xff]  ;;  %v141_v21 = vld [vmem:[%s13385_s0 + $0xa0] sm:$0xff]  ;;  %vm2624_vm8 = vcmask 228544   ;;  %s9151_s29 = smov 28  }
  0x19   :  { %49 = vst.msk [vmem:[#allocation2] sm:$0x1] %vm48_vm2, %v9144_v2  ;;  %50 = vst.msk [vmem:[#allocation2 + $0x18] sm:$0x1] %vm48_vm2, %v9144_v2  ;;  %v142_v22 = vld [vmem:[%s13385_s0 + $0xa8] sm:$0xff]  ;;  %v143_v23 = vld [vmem:[%s13385_s0 + $0xb0] sm:$0xff] }
  0x1a   :  { %51 = vst.msk [vmem:[#allocation2 + $0x30] sm:$0x1] %vm48_vm2, %v9144_v2  ;;  %52 = vst.msk [vmem:[#allocation2 + $0x48] sm:$0x1] %vm48_vm2, %v9144_v2  ;;  %v378_v24 = vld [vmem:[#allocation2 + $0x1] sm:$0xff]  ;;  %v144_v31 = vld [vmem:[%s13385_s0 + $0xb8] sm:$0xff] }
  0x1b   :  { %53 = vst.msk [vmem:[#allocation2 + $0x60] sm:$0x1] %vm48_vm2, %v9144_v2  ;;  %54 = vst.msk [vmem:[#allocation2 + $0x78] sm:$0x1] %vm48_vm2, %v9144_v2  ;;  %v380_v25 = vld [vmem:[#allocation2 + $0x19] sm:$0xff]  ;;  %506 = vrot.lane.b32.xlu0 %v378_v24, %s9145_s17  ;;  %v381_v27 = vld [vmem:[#allocation2 + $0x21] sm:$0xff] }
  0x1c   :  { %55 = vst.msk [vmem:[#allocation2 + $0x90] sm:$0x1] %vm48_vm2, %v9144_v2  ;;  %56 = vst.msk [vmem:[#allocation2 + $0xa8] sm:$0x1] %vm48_vm2, %v9144_v2  ;;  %510 = vrot.lane.b32.xlu1 %v380_v25, %s9145_s17  ;;  %v379_v26 = vld [vmem:[#allocation2 + $0x9] sm:$0xff]  ;;  %v145_v32 = vld [vmem:[%s13385_s0 + $0xc0] sm:$0xff] }
  0x1d   :  { %57 = vst.msk [vmem:[#allocation2 + $0xc0] sm:$0x1] %vm48_vm2, %v9144_v2  ;;  %58 = vst.msk [vmem:[#allocation2 + $0xd8] sm:$0x1] %vm48_vm2, %v9144_v2  ;;  %v146_v34 = vld [vmem:[%s13385_s0 + $0xc8] sm:$0xff]  ;;  %v147_v35 = vld [vmem:[%s13385_s0 + $0xd0] sm:$0xff] }
  0x1e   :  { %59 = vst.msk [vmem:[#allocation2 + $0xf0] sm:$0x1] %vm48_vm2, %v9144_v2  ;;  %60 = vst.msk [vmem:[#allocation2 + $0x108] sm:$0x1] %vm48_vm2, %v9144_v2  ;;  %v382_v28 = vld [vmem:[#allocation2 + $0x31] sm:$0xff]  ;;  %v383_v29 = vld [vmem:[#allocation2 + $0x39] sm:$0xff] }
  0x1f   :  { %61 = vst.msk [vmem:[#allocation2 + $0x120] sm:$0x1] %vm48_vm2, %v9144_v2  ;;  %62 = vst.msk [vmem:[#allocation2 + $0x138] sm:$0x1] %vm48_vm2, %v9144_v2  ;;  %508 = vrot.lane.b32.xlu0 %v379_v26, %s9145_s17  ;;  %v384_v30 = vld [vmem:[#allocation2 + $0x49] sm:$0xff]  ;;  %v385_v33 = vld [vmem:[#allocation2 + $0x51] sm:$0xff] }
  0x20   :  { %63 = vst.msk [vmem:[#allocation2 + $0x150] sm:$0x1] %vm48_vm2, %v9144_v2  ;;  %64 = vst.msk [vmem:[#allocation2 + $0x168] sm:$0x1] %vm48_vm2, %v9144_v2  ;;  %512 = vrot.lane.b32.xlu1 %v381_v27, %s9145_s17  ;;  %v148_v36 = vld [vmem:[%s13385_s0 + $0xd8] sm:$0xff]  ;;  %v149_v37 = vld [vmem:[%s13385_s0 + $0xe0] sm:$0xff] }
  0x21   :  { %65 = vst.msk [vmem:[#allocation2 + $0x180] sm:$0x1] %vm48_vm2, %v9144_v2  ;;  %66 = vst.msk [vmem:[#allocation2 + $0x198] sm:$0x1] %vm48_vm2, %v9144_v2  ;;  %v150_v38 = vld [vmem:[%s13385_s0 + $0xe8] sm:$0xff]  ;;  %v153_v39 = vld [vmem:[%s13385_s0 + $0x100] sm:$0xff] }
  0x22   :  { %67 = vst.msk [vmem:[#allocation2 + $0x1b0] sm:$0x1] %vm48_vm2, %v9144_v2  ;;  %68 = vst.msk [vmem:[#allocation2 + $0x1c8] sm:$0x1] %vm48_vm2, %v9144_v2  ;;  %v154_v40 = vld [vmem:[%s13385_s0 + $0x108] sm:$0xff]  ;;  %v155_v43 = vld [vmem:[%s13385_s0 + $0x110] sm:$0xff] }
  0x23   :  { %69 = vst.msk [vmem:[#allocation2 + $0x1e0] sm:$0x1] %vm48_vm2, %v9144_v2  ;;  %70 = vst.msk [vmem:[#allocation2 + $0x1f8] sm:$0x1] %vm48_vm2, %v9144_v2  ;;  %514 = vrot.lane.b32.xlu0 %v382_v28, %s9145_s17  ;;  %v156_v44 = vld [vmem:[%s13385_s0 + $0x118] sm:$0xff]  ;;  %v157_v45 = vld [vmem:[%s13385_s0 + $0x120] sm:$0xff] }
  0x24   :  { %71 = vst.msk [vmem:[#allocation2 + $0x210] sm:$0x1] %vm48_vm2, %v9144_v2  ;;  %72 = vst.msk [vmem:[#allocation2 + $0x228] sm:$0x1] %vm48_vm2, %v9144_v2  ;;  %516 = vrot.lane.b32.xlu1 %v383_v29, %s9145_s17  ;;  %v158_v46 = vld [vmem:[%s13385_s0 + $0x128] sm:$0xff]  ;;  %v159_v47 = vld [vmem:[%s13385_s0 + $0x130] sm:$0xff] }
  0x25   :  { %73 = vst.msk [vmem:[#allocation2 + $0x240] sm:$0x1] %vm48_vm2, %v9144_v2  ;;  %74 = vst.msk [vmem:[#allocation2 + $0x258] sm:$0x1] %vm48_vm2, %v9144_v2  ;;  %v250_v48 = vld [vmem:[#allocation2] sm:$0xff]  ;;  %v160_v49 = vld [vmem:[%s13385_s0 + $0x138] sm:$0xff] }
  0x26   :  { %75 = vst.msk [vmem:[#allocation2 + $0x270] sm:$0x1] %vm48_vm2, %v9144_v2  ;;  %76 = vst.msk [vmem:[#allocation2 + $0x288] sm:$0x1] %vm48_vm2, %v9144_v2  ;;  %v161_v50 = vld [vmem:[%s13385_s0 + $0x140] sm:$0xff]  ;;  %v162_v51 = vld [vmem:[%s13385_s0 + $0x148] sm:$0xff] }
  0x27   :  { %77 = vst.msk [vmem:[#allocation2 + $0x2a0] sm:$0x1] %vm48_vm2, %v9144_v2  ;;  %78 = vst.msk [vmem:[#allocation2 + $0x2b8] sm:$0x1] %vm48_vm2, %v9144_v2  ;;  %518 = vrot.lane.b32.xlu0 %v384_v30, %s9145_s17  ;;  %v163_v52 = vld [vmem:[%s13385_s0 + $0x150] sm:$0xff]  ;;  %v164_v53 = vld [vmem:[%s13385_s0 + $0x158] sm:$0xff] }
  0x28   :  { %79 = vst.msk [vmem:[#allocation2 + $0x2d0] sm:$0x1] %vm48_vm2, %v9144_v2  ;;  %80 = vst.msk [vmem:[#allocation2 + $0x2e8] sm:$0x1] %vm48_vm2, %v9144_v2  ;;  %520 = vrot.lane.b32.xlu1 %v385_v33, %s9145_s17  ;;  %v165_v54 = vld [vmem:[%s13385_s0 + $0x160] sm:$0xff]  ;;  %v166_v55 = vld [vmem:[%s13385_s0 + $0x168] sm:$0xff] }
  0x29   :  { %81 = vst.msk [vmem:[#allocation2 + $0x300] sm:$0x1] %vm48_vm2, %v9144_v2  ;;  %82 = vst.msk [vmem:[#allocation2 + $0x318] sm:$0x1] %vm48_vm2, %v9144_v2  ;;  %v167_v56 = vld [vmem:[%s13385_s0 + $0x170] sm:$0xff]  ;;  %v168_v59 = vld [vmem:[%s13385_s0 + $0x178] sm:$0xff] }
  0x2a   :  { %83 = vst.msk [vmem:[#allocation2 + $0x330] sm:$0x1] %vm48_vm2, %v9144_v2  ;;  %84 = vst.msk [vmem:[#allocation2 + $0x348] sm:$0x1] %vm48_vm2, %v9144_v2  ;;  %v169_v60 = vld [vmem:[%s13385_s0 + $0x180] sm:$0xff]  ;;  %v170_v0 = vld [vmem:[%s13385_s0 + $0x188] sm:$0xff] }
  0x2b   :  { %85 = vst.msk [vmem:[#allocation2 + $0x11] sm:$0x1] %vm48_vm2, %v9144_v2  ;;  %86 = vst.msk [vmem:[#allocation2 + $0x29] sm:$0x1] %vm48_vm2, %v9144_v2  ;;  %v171_v1 = vld [vmem:[%s13385_s0 + $0x190] sm:$0xff]  ;;  %v172_v3 = vld [vmem:[%s13385_s0 + $0x198] sm:$0xff] }
  0x2c   :  { %87 = vst.msk [vmem:[#allocation2 + $0x41] sm:$0x1] %vm48_vm2, %v9144_v2  ;;  %88 = vst.msk [vmem:[#allocation2 + $0x59] sm:$0x1] %vm48_vm2, %v9144_v2  ;;  %v173_v4 = vld [vmem:[%s13385_s0 + $0x1a0] sm:$0xff]  ;;  %v174_v5 = vld [vmem:[%s13385_s0 + $0x1a8] sm:$0xff] }
  0x2d   :  { %89 = vst.msk [vmem:[#allocation2 + $0x71] sm:$0x1] %vm48_vm2, %v9144_v2  ;;  %90 = vst.msk [vmem:[#allocation2 + $0x89] sm:$0x1] %vm48_vm2, %v9144_v2  ;;  %v175_v6 = vld [vmem:[%s13385_s0 + $0x1b0] sm:$0xff]  ;;  %vm3009_vm9 = vcmask 261344  }
  0x2e   :  { %91 = vst.msk [vmem:[#allocation2 + $0xa1] sm:$0x1] %vm48_vm2, %v9144_v2  ;;  %92 = vst.msk [vmem:[#allocation2 + $0xb9] sm:$0x1] %vm48_vm2, %v9144_v2  ;;  %vm3726_vm10 = vcmask 1043456   ;;  %vm3394_vm11 = vcmask 294144  }
  0x2f   :  { %93 = vst.msk [vmem:[#allocation2 + $0xd1] sm:$0x1] %vm48_vm2, %v9144_v2  ;;  %94 = vst.msk [vmem:[#allocation2 + $0xe9] sm:$0x1] %vm48_vm2, %v9144_v2  ;;  %vm3533_vm12 = vcmask 293888   ;;  %s4115_s15 = sld [smem:[#allocation4]] }
  0x30   :  { %95 = vst.msk [vmem:[#allocation2 + $0x101] sm:$0x1] %vm48_vm2, %v9144_v2  ;;  %96 = vst.msk [vmem:[#allocation2 + $0x119] sm:$0x1] %vm48_vm2, %v9144_v2 }
  0x31   :  { %97 = vst.msk [vmem:[#allocation2 + $0x131] sm:$0x1] %vm48_vm2, %v9144_v2  ;;  %98 = vst.msk [vmem:[#allocation2 + $0x149] sm:$0x1] %vm48_vm2, %v9144_v2 }
  0x32   :  { %99 = vst.msk [vmem:[#allocation2 + $0x161] sm:$0x1] %vm48_vm2, %v9144_v2  ;;  %100 = vst.msk [vmem:[#allocation2 + $0x179] sm:$0x1] %vm48_vm2, %v9144_v2 }
  0x33   :  { %101 = vst.msk [vmem:[#allocation2 + $0x191] sm:$0x1] %vm48_vm2, %v9144_v2  ;;  %102 = vst.msk [vmem:[#allocation2 + $0x1a9] sm:$0x1] %vm48_vm2, %v9144_v2 }
  0x34   :  { %103 = vst.msk [vmem:[#allocation2 + $0x1c1] sm:$0x1] %vm48_vm2, %v9144_v2  ;;  %104 = vst.msk [vmem:[#allocation2 + $0x1d9] sm:$0x1] %vm48_vm2, %v9144_v2 }
  0x35   :  { %105 = vst.msk [vmem:[#allocation2 + $0x1f1] sm:$0x1] %vm48_vm2, %v9144_v2  ;;  %106 = vst.msk [vmem:[#allocation2 + $0x209] sm:$0x1] %vm48_vm2, %v9144_v2 }
  0x36   :  { %107 = vst.msk [vmem:[#allocation2 + $0x221] sm:$0x1] %vm48_vm2, %v9144_v2  ;;  %108 = vst.msk [vmem:[#allocation2 + $0x239] sm:$0x1] %vm48_vm2, %v9144_v2 }
  0x37   :  { %109 = vst.msk [vmem:[#allocation2 + $0x251] sm:$0x1] %vm48_vm2, %v9144_v2  ;;  %110 = vst.msk [vmem:[#allocation2 + $0x269] sm:$0x1] %vm48_vm2, %v9144_v2 }
  0x38   :  { %111 = vst.msk [vmem:[#allocation2 + $0x281] sm:$0x1] %vm48_vm2, %v9144_v2  ;;  %112 = vst.msk [vmem:[#allocation2 + $0x299] sm:$0x1] %vm48_vm2, %v9144_v2 }
  0x39   :  { %113 = vst.msk [vmem:[#allocation2 + $0x2b1] sm:$0x1] %vm48_vm2, %v9144_v2  ;;  %114 = vst.msk [vmem:[#allocation2 + $0x2c9] sm:$0x1] %vm48_vm2, %v9144_v2 }
  0x3a   :  { %115 = vst.msk [vmem:[#allocation2 + $0x2e1] sm:$0x1] %vm48_vm2, %v9144_v2  ;;  %116 = vst.msk [vmem:[#allocation2 + $0x2f9] sm:$0x1] %vm48_vm2, %v9144_v2 }
  0x3b   :  { %117 = vst.msk [vmem:[#allocation2 + $0x311] sm:$0x1] %vm48_vm2, %v9144_v2  ;;  %118 = vst.msk [vmem:[#allocation2 + $0x329] sm:$0x1] %vm48_vm2, %v9144_v2 }
  0x3c   :  { %119 = vst.msk [vmem:[#allocation2 + $0x341] sm:$0x1] %vm48_vm2, %v9144_v2  ;;  %120 = vst.msk [vmem:[#allocation2 + $0x359] sm:$0x1] %vm48_vm2, %v9144_v2 }
  0x3d   :  { %192 = vst.msk [vmem:[#allocation2 + $0x61] sm:$0xff] %vm33_vm0, %v9234_v7  ;;  %193 = vst.msk [vmem:[#allocation2 + $0x69] sm:$0xff] %vm33_vm0, %v9239_v8  ;;  %v176_v7 = vld [vmem:[%s13385_s0 + $0x1b8] sm:$0xff] }
  0x3e   :  { %194 = vst.msk [vmem:[#allocation2 + $0x79] sm:$0xff] %vm33_vm0, %v129_v9  ;;  %195 = vst.msk [vmem:[#allocation2 + $0x81] sm:$0xff] %vm33_vm0, %v130_v10  ;;  %v9590_v8 = vld [vmem:[#allocation2 + $0x18] sm:$0xff]  ;;  %v177_v9 = vld [vmem:[%s13385_s0 + $0x1c0] sm:$0xff] }
  0x3f   :  { %196 = vst.msk [vmem:[#allocation2 + $0x91] sm:$0xff] %vm33_vm0, %v131_v11  ;;  %197 = vst.msk [vmem:[#allocation2 + $0x99] sm:$0xff] %vm33_vm0, %v132_v12  ;;  %v178_v11 = vld [vmem:[%s13385_s0 + $0x1c8] sm:$0xff] }
  0x40   :  { %198 = vst.msk [vmem:[#allocation2 + $0xa9] sm:$0xff] %vm33_vm0, %v133_v13  ;;  %199 = vst.msk [vmem:[#allocation2 + $0xb1] sm:$0xff] %vm33_vm0, %v134_v14  ;;  %v251_v12 = vld [vmem:[#allocation2 + $0x8] sm:$0xff]  ;;  %v9601_v13 = vld [vmem:[#allocation2 + $0x20] sm:$0xff] }
  0x41   :  { %200 = vst.msk [vmem:[#allocation2 + $0xc1] sm:$0xff] %vm33_vm0, %v135_v15  ;;  %201 = vst.msk [vmem:[#allocation2 + $0xc9] sm:$0xff] %vm33_vm0, %v136_v16  ;;  %v179_v15 = vld [vmem:[%s13385_s0 + $0x1d0] sm:$0xff]  ;;  %v180_v16 = vld [vmem:[%s13385_s0 + $0x1d8] sm:$0xff] }
  0x42   :  { %202 = vst.msk [vmem:[#allocation2 + $0xd9] sm:$0xff] %vm33_vm0, %v137_v17  ;;  %203 = vst.msk [vmem:[#allocation2 + $0xe1] sm:$0xff] %vm33_vm0, %v138_v18  ;;  %v9617_v17 = vld [vmem:[#allocation2 + $0x30] sm:$0xff]  ;;  %v9619_v18 = vld [vmem:[#allocation2 + $0x38] sm:$0xff] }
  0x43   :  { %204 = vst.msk [vmem:[#allocation2 + $0xf1] sm:$0xff] %vm33_vm0, %v139_v19  ;;  %205 = vst.msk [vmem:[#allocation2 + $0xf9] sm:$0xff] %vm33_vm0, %v140_v20  ;;  %v181_v19 = vld [vmem:[%s13385_s0 + $0x1e0] sm:$0xff]  ;;  %v182_v20 = vld [vmem:[%s13385_s0 + $0x1e8] sm:$0xff] }
  0x44   :  { %206 = vst.msk [vmem:[#allocation2 + $0x109] sm:$0xff] %vm33_vm0, %v141_v21  ;;  %207 = vst.msk [vmem:[#allocation2 + $0x111] sm:$0xff] %vm33_vm0, %v142_v22  ;;  %v386_v41 = vld [vmem:[#allocation2 + $0x61] sm:$0xff]  ;;  %v387_v42 = vld [vmem:[#allocation2 + $0x69] sm:$0xff] }
  0x45   :  { %208 = vst.msk [vmem:[#allocation2 + $0x121] sm:$0xff] %vm33_vm0, %v143_v23  ;;  %209 = vst.msk [vmem:[#allocation2 + $0x129] sm:$0xff] %vm33_vm0, %v144_v31  ;;  %522 = vrot.lane.b32.xlu0 %v386_v41, %s9145_s17  ;;  %524 = vrot.lane.b32.xlu1 %v387_v42, %s9145_s17  ;;  %v388_v57 = vld [vmem:[#allocation2 + $0x79] sm:$0xff]  ;;  %v389_v58 = vld [vmem:[#allocation2 + $0x81] sm:$0xff] }
  0x46   :  { %210 = vst.msk [vmem:[#allocation2 + $0x139] sm:$0xff] %vm33_vm0, %v145_v32  ;;  %211 = vst.msk [vmem:[#allocation2 + $0x141] sm:$0xff] %vm33_vm0, %v146_v34  ;;  %v390_v61 = vld [vmem:[#allocation2 + $0x91] sm:$0xff]  ;;  %v391_v62 = vld [vmem:[#allocation2 + $0x99] sm:$0xff] }
  0x47   :  { %212 = vst.msk [vmem:[#allocation2 + $0x151] sm:$0xff] %vm33_vm0, %v147_v35  ;;  %213 = vst.msk [vmem:[#allocation2 + $0x159] sm:$0xff] %vm33_vm0, %v148_v36  ;;  %v392_v63 = vld [vmem:[#allocation2 + $0xa9] sm:$0xff]  ;;  %v393_v2 = vld [vmem:[#allocation2 + $0xb1] sm:$0xff] }
  0x48   :  { %214 = vst.msk [vmem:[#allocation2 + $0x169] sm:$0xff] %vm33_vm0, %v149_v37  ;;  %215 = vst.msk [vmem:[#allocation2 + $0x171] sm:$0xff] %vm33_vm0, %v150_v38  ;;  %v394_v10 = vld [vmem:[#allocation2 + $0xc1] sm:$0xff]  ;;  %v395_v14 = vld [vmem:[#allocation2 + $0xc9] sm:$0xff] }
  0x49   :  { %218 = vst.msk [vmem:[#allocation2 + $0x1c9] sm:$0xff] %vm33_vm0, %v153_v39  ;;  %219 = vst.msk [vmem:[#allocation2 + $0x1d1] sm:$0xff] %vm33_vm0, %v154_v40  ;;  %526 = vrot.lane.b32.xlu0 %v388_v57, %s9145_s17  ;;  %528 = vrot.lane.b32.xlu1 %v389_v58, %s9145_s17  ;;  %v9632_v21 = vld [vmem:[#allocation2 + $0x48] sm:$0xff]  ;;  %v9634_v22 = vld [vmem:[#allocation2 + $0x50] sm:$0xff] }
  0x4a   :  { %220 = vst.msk [vmem:[#allocation2 + $0x1e1] sm:$0xff] %vm33_vm0, %v155_v43  ;;  %221 = vst.msk [vmem:[#allocation2 + $0x1e9] sm:$0xff] %vm33_vm0, %v156_v44  ;;  %v396_v23 = vld [vmem:[#allocation2 + $0xd9] sm:$0xff]  ;;  %v397_v24 = vld [vmem:[#allocation2 + $0xe1] sm:$0xff] }
  0x4b   :  { %222 = vst.msk [vmem:[#allocation2 + $0x1f9] sm:$0xff] %vm33_vm0, %v157_v45  ;;  %223 = vst.msk [vmem:[#allocation2 + $0x201] sm:$0xff] %vm33_vm0, %v158_v46  ;;  %v9643_v25 = vld [vmem:[#allocation2 + $0x60] sm:$0xff]  ;;  %v9645_v26 = vld [vmem:[#allocation2 + $0x68] sm:$0xff] }
  0x4c   :  { %224 = vst.msk [vmem:[#allocation2 + $0x211] sm:$0xff] %vm33_vm0, %v159_v47  ;;  %314 = vst.msk [vmem:[#allocation3] sm:$0xff] %vm33_vm0, %v250_v48  ;;  %v9653_v27 = vld [vmem:[#allocation2 + $0x78] sm:$0xff]  ;;  %v9657_v30 = vld [vmem:[#allocation2 + $0x80] sm:$0xff] }
  0x4d   :  { %225 = vst.msk [vmem:[#allocation2 + $0x219] sm:$0xff] %vm33_vm0, %v160_v49  ;;  %226 = vst.msk [vmem:[#allocation2 + $0x229] sm:$0xff] %vm33_vm0, %v161_v50  ;;  %530 = vrot.lane.b32.xlu0 %v390_v61, %s9145_s17  ;;  %532 = vrot.lane.b32.xlu1 %v391_v62, %s9145_s17  ;;  %v398_v28 = vld [vmem:[#allocation2 + $0xf1] sm:$0xff]  ;;  %v399_v29 = vld [vmem:[#allocation2 + $0xf9] sm:$0xff] }
  0x4e   :  { %227 = vst.msk [vmem:[#allocation2 + $0x231] sm:$0xff] %vm33_vm0, %v162_v51  ;;  %228 = vst.msk [vmem:[#allocation2 + $0x241] sm:$0xff] %vm33_vm0, %v163_v52  ;;  %v9661_v31 = vld [vmem:[#allocation2 + $0x90] sm:$0xff]  ;;  %v9665_v32 = vld [vmem:[#allocation2 + $0x98] sm:$0xff] }
  0x4f   :  { %229 = vst.msk [vmem:[#allocation2 + $0x249] sm:$0xff] %vm33_vm0, %v164_v53  ;;  %230 = vst.msk [vmem:[#allocation2 + $0x259] sm:$0xff] %vm33_vm0, %v165_v54  ;;  %v400_v33 = vld [vmem:[#allocation2 + $0x109] sm:$0xff]  ;;  %v401_v36 = vld [vmem:[#allocation2 + $0x111] sm:$0xff] }
  0x50   :  { %231 = vst.msk [vmem:[#allocation2 + $0x261] sm:$0xff] %vm33_vm0, %v166_v55  ;;  %232 = vst.msk [vmem:[#allocation2 + $0x271] sm:$0xff] %vm33_vm0, %v167_v56  ;;  %v9671_v34 = vld [vmem:[#allocation2 + $0xa8] sm:$0xff]  ;;  %v9673_v35 = vld [vmem:[#allocation2 + $0xb0] sm:$0xff] }
  0x51   :  { %233 = vst.msk [vmem:[#allocation2 + $0x279] sm:$0xff] %vm33_vm0, %v168_v59  ;;  %234 = vst.msk [vmem:[#allocation2 + $0x289] sm:$0xff] %vm33_vm0, %v169_v60  ;;  %534 = vrot.lane.b32.xlu0 %v392_v63, %s9145_s17  ;;  %536 = vrot.lane.b32.xlu1 %v393_v2, %s9145_s17  ;;  %v9679_v37 = vld [vmem:[#allocation2 + $0xc0] sm:$0xff]  ;;  %v9681_v38 = vld [vmem:[#allocation2 + $0xc8] sm:$0xff] }
  0x52   :  { %235 = vst.msk [vmem:[#allocation2 + $0x291] sm:$0xff] %vm33_vm0, %v170_v0  ;;  %236 = vst.msk [vmem:[#allocation2 + $0x2a1] sm:$0xff] %vm33_vm0, %v171_v1  ;;  %v9687_v39 = vld [vmem:[#allocation2 + $0xd8] sm:$0xff]  ;;  %v9691_v40 = vld [vmem:[#allocation2 + $0xe0] sm:$0xff] }
  0x53   :  { %237 = vst.msk [vmem:[#allocation2 + $0x2a9] sm:$0xff] %vm33_vm0, %v172_v3  ;;  %238 = vst.msk [vmem:[#allocation2 + $0x2b9] sm:$0xff] %vm33_vm0, %v173_v4  ;;  %v402_v41 = vld [vmem:[#allocation2 + $0x121] sm:$0xff]  ;;  %v9697_v42 = vld [vmem:[#allocation2 + $0xf0] sm:$0xff] }
  0x54   :  { %239 = vst.msk [vmem:[#allocation2 + $0x2c1] sm:$0xff] %vm33_vm0, %v174_v5  ;;  %240 = vst.msk [vmem:[#allocation2 + $0x2d1] sm:$0xff] %vm33_vm0, %v175_v6  ;;  %v9699_v43 = vld [vmem:[#allocation2 + $0xf8] sm:$0xff]  ;;  %v403_v44 = vld [vmem:[#allocation2 + $0x129] sm:$0xff] }
  0x55   :  { %241 = vst.msk [vmem:[#allocation2 + $0x2d9] sm:$0xff] %vm33_vm0, %v176_v7  ;;  %316 = vst.msk [vmem:[#allocation3 + $0x10] sm:$0xff] %vm33_vm0, %v9590_v8  ;;  %538 = vrot.lane.b32.xlu0 %v394_v10, %s9145_s17  ;;  %540 = vrot.lane.b32.xlu1 %v395_v14, %s9145_s17  ;;  %v9705_v45 = vld [vmem:[#allocation2 + $0x108] sm:$0xff]  ;;  %v9707_v46 = vld [vmem:[#allocation2 + $0x110] sm:$0xff] }
  0x56   :  { %242 = vst.msk [vmem:[#allocation2 + $0x2e9] sm:$0xff] %vm33_vm0, %v177_v9  ;;  %243 = vst.msk [vmem:[#allocation2 + $0x2f1] sm:$0xff] %vm33_vm0, %v178_v11  ;;  %v9713_v47 = vld [vmem:[#allocation2 + $0x120] sm:$0xff]  ;;  %v9717_v48 = vld [vmem:[#allocation2 + $0x128] sm:$0xff] }
  0x57   :  { %315 = vst.msk [vmem:[#allocation3 + $0x8] sm:$0xff] %vm33_vm0, %v251_v12  ;;  %317 = vst.msk [vmem:[#allocation3 + $0x18] sm:$0xff] %vm33_vm0, %v9601_v13  ;;  %v404_v49 = vld [vmem:[#allocation2 + $0x139] sm:$0xff]  ;;  %v405_v52 = vld [vmem:[#allocation2 + $0x141] sm:$0xff] }
  0x58   :  { %244 = vst.msk [vmem:[#allocation2 + $0x301] sm:$0xff] %vm33_vm0, %v179_v15  ;;  %245 = vst.msk [vmem:[#allocation2 + $0x309] sm:$0xff] %vm33_vm0, %v180_v16  ;;  %v9723_v50 = vld [vmem:[#allocation2 + $0x138] sm:$0xff]  ;;  %v9725_v51 = vld [vmem:[#allocation2 + $0x140] sm:$0xff] }
  0x59   :  { %318 = vst.msk [vmem:[#allocation3 + $0x20] sm:$0xff] %vm33_vm0, %v9617_v17  ;;  %319 = vst.msk [vmem:[#allocation3 + $0x28] sm:$0xff] %vm33_vm0, %v9619_v18  ;;  %542 = vrot.lane.b32.xlu0 %v396_v23, %s9145_s17  ;;  %544 = vrot.lane.b32.xlu1 %v397_v24, %s9145_s17  ;;  %v9731_v53 = vld [vmem:[#allocation2 + $0x150] sm:$0xff]  ;;  %v9733_v54 = vld [vmem:[#allocation2 + $0x158] sm:$0xff] }
  0x5a   :  { %246 = vst.msk [vmem:[#allocation2 + $0x319] sm:$0xff] %vm33_vm0, %v181_v19  ;;  %247 = vst.msk [vmem:[#allocation2 + $0x321] sm:$0xff] %vm33_vm0, %v182_v20  ;;  %v9739_v55 = vld [vmem:[#allocation2 + $0x168] sm:$0xff]  ;;  %v9743_v56 = vld [vmem:[#allocation2 + $0x170] sm:$0xff] }
  0x5b   :  { %320 = vst.msk [vmem:[#allocation3 + $0x30] sm:$0xff] %vm33_vm0, %v9632_v21  ;;  %321 = vst.msk [vmem:[#allocation3 + $0x38] sm:$0xff] %vm33_vm0, %v9634_v22  ;;  %v282_v57 = vld [vmem:[#allocation2 + $0x1b0] sm:$0xff]  ;;  %v283_v58 = vld [vmem:[#allocation2 + $0x1b8] sm:$0xff] }
  0x5c   :  { %322 = vst.msk [vmem:[#allocation3 + $0x40] sm:$0xff] %vm33_vm0, %v9643_v25  ;;  %323 = vst.msk [vmem:[#allocation3 + $0x48] sm:$0xff] %vm33_vm0, %v9645_v26  ;;  %v406_v59 = vld [vmem:[#allocation2 + $0x151] sm:$0xff]  ;;  %v407_v60 = vld [vmem:[#allocation2 + $0x159] sm:$0xff] }
  0x5d   :  { %324 = vst.msk [vmem:[#allocation3 + $0x50] sm:$0xff] %vm33_vm0, %v9653_v27  ;;  %325 = vst.msk [vmem:[#allocation3 + $0x58] sm:$0xff] %vm33_vm0, %v9657_v30  ;;  %546 = vrot.lane.b32.xlu0 %v398_v28, %s9145_s17  ;;  %548 = vrot.lane.b32.xlu1 %v399_v29, %s9145_s17  ;;  %v9751_v61 = vld [vmem:[#allocation2 + $0x1c8] sm:$0xff]  ;;  %v9755_v62 = vld [vmem:[#allocation2 + $0x1d0] sm:$0xff] }
  0x5e   :  { %326 = vst.msk [vmem:[#allocation3 + $0x60] sm:$0xff] %vm33_vm0, %v9661_v31  ;;  %327 = vst.msk [vmem:[#allocation3 + $0x68] sm:$0xff] %vm33_vm0, %v9665_v32  ;;  %v9761_v63 = vld [vmem:[#allocation2 + $0x1e0] sm:$0xff]  ;;  %v408_v0 = vld [vmem:[#allocation2 + $0x169] sm:$0xff] }
  0x5f   :  { %328 = vst.msk [vmem:[#allocation3 + $0x70] sm:$0xff] %vm33_vm0, %v9671_v34  ;;  %329 = vst.msk [vmem:[#allocation3 + $0x78] sm:$0xff] %vm33_vm0, %v9673_v35  ;;  %v409_v1 = vld [vmem:[#allocation2 + $0x171] sm:$0xff]  ;;  %v9765_v2 = vld [vmem:[#allocation2 + $0x1e8] sm:$0xff] }
  0x60   :  { %330 = vst.msk [vmem:[#allocation3 + $0x80] sm:$0xff] %vm33_vm0, %v9679_v37  ;;  %331 = vst.msk [vmem:[#allocation3 + $0x88] sm:$0xff] %vm33_vm0, %v9681_v38  ;;  %v9771_v3 = vld [vmem:[#allocation2 + $0x1f8] sm:$0xff]  ;;  %v9775_v6 = vld [vmem:[#allocation2 + $0x200] sm:$0xff] }
  0x61   :  { %332 = vst.msk [vmem:[#allocation3 + $0x90] sm:$0xff] %vm33_vm0, %v9687_v39  ;;  %550 = vrot.lane.b32.xlu0 %v400_v33, %s9145_s17  ;;  %552 = vrot.lane.b32.xlu1 %v401_v36, %s9145_s17  ;;  %333 = vst.msk [vmem:[#allocation3 + $0x98] sm:$0xff] %vm33_vm0, %v9691_v40  ;;  %v410_v4 = vld [vmem:[#allocation2 + $0x1b1] sm:$0xff]  ;;  %v411_v5 = vld [vmem:[#allocation2 + $0x1b9] sm:$0xff] }
  0x62   :  { %334 = vst.msk [vmem:[#allocation3 + $0xa0] sm:$0xff] %vm33_vm0, %v9697_v42  ;;  %335 = vst.msk [vmem:[#allocation3 + $0xa8] sm:$0xff] %vm33_vm0, %v9699_v43  ;;  %v9781_v7 = vld [vmem:[#allocation2 + $0x210] sm:$0xff]  ;;  %v9785_v11 = vld [vmem:[#allocation2 + $0x218] sm:$0xff] }
  0x63   :  { %336 = vst.msk [vmem:[#allocation3 + $0xb0] sm:$0xff] %vm33_vm0, %v9705_v45  ;;  %337 = vst.msk [vmem:[#allocation3 + $0xb8] sm:$0xff] %vm33_vm0, %v9707_v46  ;;  %v412_v9 = vld [vmem:[#allocation2 + $0x1c9] sm:$0xff]  ;;  %v413_v10 = vld [vmem:[#allocation2 + $0x1d1] sm:$0xff] }
  0x64   :  { %338 = vst.msk [vmem:[#allocation3 + $0xc0] sm:$0xff] %vm33_vm0, %v9713_v47  ;;  %339 = vst.msk [vmem:[#allocation3 + $0xc8] sm:$0xff] %vm33_vm0, %v9717_v48  ;;  %v9791_v12 = vld [vmem:[#allocation2 + $0x228] sm:$0xff]  ;;  %v9795_v16 = vld [vmem:[#allocation2 + $0x230] sm:$0xff] }
  0x65   :  { %554 = vrot.lane.b32.xlu0 %v402_v41, %s9145_s17  ;;  %556 = vrot.lane.b32.xlu1 %v403_v44, %s9145_s17  ;;  %340 = vst.msk [vmem:[#allocation3 + $0xd0] sm:$0xff] %vm33_vm0, %v9723_v50  ;;  %341 = vst.msk [vmem:[#allocation3 + $0xd8] sm:$0xff] %vm33_vm0, %v9725_v51  ;;  %v414_v14 = vld [vmem:[#allocation2 + $0x1e1] sm:$0xff]  ;;  %v415_v15 = vld [vmem:[#allocation2 + $0x1e9] sm:$0xff] }
  0x66   :  { %342 = vst.msk [vmem:[#allocation3 + $0xe0] sm:$0xff] %vm33_vm0, %v9731_v53  ;;  %343 = vst.msk [vmem:[#allocation3 + $0xe8] sm:$0xff] %vm33_vm0, %v9733_v54  ;;  %v9801_v19 = vld [vmem:[#allocation2 + $0x240] sm:$0xff]  ;;  %v9805_v24 = vld [vmem:[#allocation2 + $0x248] sm:$0xff] }
  0x67   :  { %344 = vst.msk [vmem:[#allocation3 + $0xf0] sm:$0xff] %vm33_vm0, %v9739_v55  ;;  %345 = vst.msk [vmem:[#allocation3 + $0xf8] sm:$0xff] %vm33_vm0, %v9743_v56  ;;  %v416_v20 = vld [vmem:[#allocation2 + $0x1f9] sm:$0xff]  ;;  %v417_v23 = vld [vmem:[#allocation2 + $0x201] sm:$0xff] }
  0x68   :  { %346 = vst.msk [vmem:[#allocation3 + $0x100] sm:$0xff] %vm33_vm0, %v282_v57  ;;  %347 = vst.msk [vmem:[#allocation3 + $0x108] sm:$0xff] %vm33_vm0, %v283_v58  ;;  %v9811_v28 = vld [vmem:[#allocation2 + $0x258] sm:$0xff]  ;;  %v9815_v36 = vld [vmem:[#allocation2 + $0x260] sm:$0xff] }
  0x69   :  { %558 = vrot.lane.b32.xlu0 %v404_v49, %s9145_s17  ;;  %560 = vrot.lane.b32.xlu1 %v405_v52, %s9145_s17  ;;  %348 = vst.msk [vmem:[#allocation3 + $0x110] sm:$0xff] %vm33_vm0, %v9751_v61  ;;  %349 = vst.msk [vmem:[#allocation3 + $0x118] sm:$0xff] %vm33_vm0, %v9755_v62  ;;  %v418_v29 = vld [vmem:[#allocation2 + $0x211] sm:$0xff]  ;;  %v419_v33 = vld [vmem:[#allocation2 + $0x219] sm:$0xff] }
  0x6a   :  { %350 = vst.msk [vmem:[#allocation3 + $0x120] sm:$0xff] %vm33_vm0, %v9761_v63  ;;  %351 = vst.msk [vmem:[#allocation3 + $0x128] sm:$0xff] %vm33_vm0, %v9765_v2  ;;  %v9821_v41 = vld [vmem:[#allocation2 + $0x270] sm:$0xff]  ;;  %v9825_v52 = vld [vmem:[#allocation2 + $0x278] sm:$0xff] }
  0x6b   :  { %352 = vst.msk [vmem:[#allocation3 + $0x130] sm:$0xff] %vm33_vm0, %v9771_v3  ;;  %353 = vst.msk [vmem:[#allocation3 + $0x138] sm:$0xff] %vm33_vm0, %v9775_v6  ;;  %v420_v44 = vld [vmem:[#allocation2 + $0x229] sm:$0xff]  ;;  %v421_v49 = vld [vmem:[#allocation2 + $0x231] sm:$0xff] }
  0x6c   :  { %354 = vst.msk [vmem:[#allocation3 + $0x140] sm:$0xff] %vm33_vm0, %v9781_v7  ;;  %355 = vst.msk [vmem:[#allocation3 + $0x148] sm:$0xff] %vm33_vm0, %v9785_v11  ;;  %v9831_v57 = vld [vmem:[#allocation2 + $0x288] sm:$0xff] }
  0x6d   :  { %562 = vrot.lane.b32.xlu0 %v406_v59, %s9145_s17  ;;  %564 = vrot.lane.b32.xlu1 %v407_v60, %s9145_s17  ;;  %356 = vst.msk [vmem:[#allocation3 + $0x150] sm:$0xff] %vm33_vm0, %v9791_v12  ;;  %357 = vst.msk [vmem:[#allocation3 + $0x158] sm:$0xff] %vm33_vm0, %v9795_v16  ;;  %v422_v58 = vld [vmem:[#allocation2 + $0x241] sm:$0xff]  ;;  %v423_v59 = vld [vmem:[#allocation2 + $0x249] sm:$0xff] }
  0x6e   :  { %358 = vst.msk [vmem:[#allocation3 + $0x160] sm:$0xff] %vm33_vm0, %v9801_v19  ;;  %359 = vst.msk [vmem:[#allocation3 + $0x168] sm:$0xff] %vm33_vm0, %v9805_v24  ;;  %v9835_v60 = vld [vmem:[#allocation2 + $0x290] sm:$0xff] }
  0x6f   :  { %360 = vst.msk [vmem:[#allocation3 + $0x170] sm:$0xff] %vm33_vm0, %v9811_v28  ;;  %361 = vst.msk [vmem:[#allocation3 + $0x178] sm:$0xff] %vm33_vm0, %v9815_v36 }
  0x70   :  { %362 = vst.msk [vmem:[#allocation3 + $0x180] sm:$0xff] %vm33_vm0, %v9821_v41  ;;  %363 = vst.msk [vmem:[#allocation3 + $0x188] sm:$0xff] %vm33_vm0, %v9825_v52 }
  0x71   :  { %566 = vrot.lane.b32.xlu0 %v408_v0, %s9145_s17  ;;  %568 = vrot.lane.b32.xlu1 %v409_v1, %s9145_s17  ;;  %364 = vst.msk [vmem:[#allocation3 + $0x190] sm:$0xff] %vm33_vm0, %v9831_v57  ;;  %365 = vst.msk [vmem:[#allocation3 + $0x198] sm:$0xff] %vm33_vm0, %v9835_v60  ;;  %v9841_v0 = vld [vmem:[#allocation2 + $0x2a0] sm:$0xff] }
  0x72   :  { %v424_v1 = vld [vmem:[#allocation2 + $0x259] sm:$0xff]  ;;  %366 = vst.msk [vmem:[#allocation3 + $0x1a0] sm:$0xff] %vm33_vm0, %v9841_v0 }
  0x75   :  { %570 = vrot.lane.b32.xlu0 %v410_v4, %s9145_s17  ;;  %572 = vrot.lane.b32.xlu1 %v411_v5, %s9145_s17  ;;  %v425_v4 = vld [vmem:[#allocation2 + $0x261] sm:$0xff] }
  0x76   :  { %v9845_v5 = vld [vmem:[#allocation2 + $0x2a8] sm:$0xff] }
  0x77   :  { %367 = vst.msk [vmem:[#allocation3 + $0x1a8] sm:$0xff] %vm33_vm0, %v9845_v5 }
  0x79   :  { %574 = vrot.lane.b32.xlu0 %v412_v9, %s9145_s17  ;;  %576 = vrot.lane.b32.xlu1 %v413_v10, %s9145_s17  ;;  %v9851_v9 = vld [vmem:[#allocation2 + $0x2b8] sm:$0xff] }
  0x7a   :  { %v426_v10 = vld [vmem:[#allocation2 + $0x271] sm:$0xff]  ;;  %368 = vst.msk [vmem:[#allocation3 + $0x1b0] sm:$0xff] %vm33_vm0, %v9851_v9 }
  0x7d   :  { %578 = vrot.lane.b32.xlu0 %v414_v14, %s9145_s17  ;;  %580 = vrot.lane.b32.xlu1 %v415_v15, %s9145_s17  ;;  %v427_v14 = vld [vmem:[#allocation2 + $0x279] sm:$0xff] }
  0x7e   :  { %v9855_v15 = vld [vmem:[#allocation2 + $0x2c0] sm:$0xff] }
  0x7f   :  { %369 = vst.msk [vmem:[#allocation3 + $0x1b8] sm:$0xff] %vm33_vm0, %v9855_v15 }
  0x81   :  { %582 = vrot.lane.b32.xlu0 %v416_v20, %s9145_s17  ;;  %584 = vrot.lane.b32.xlu1 %v417_v23, %s9145_s17  ;;  %v9861_v20 = vld [vmem:[#allocation2 + $0x2d0] sm:$0xff] }
  0x82   :  { %v428_v23 = vld [vmem:[#allocation2 + $0x289] sm:$0xff]  ;;  %370 = vst.msk [vmem:[#allocation3 + $0x1c0] sm:$0xff] %vm33_vm0, %v9861_v20 }
  0x85   :  { %586 = vrot.lane.b32.xlu0 %v418_v29, %s9145_s17  ;;  %588 = vrot.lane.b32.xlu1 %v419_v33, %s9145_s17  ;;  %v429_v29 = vld [vmem:[#allocation2 + $0x291] sm:$0xff] }
  0x86   :  { %v9865_v33 = vld [vmem:[#allocation2 + $0x2d8] sm:$0xff] }
  0x87   :  { %371 = vst.msk [vmem:[#allocation3 + $0x1c8] sm:$0xff] %vm33_vm0, %v9865_v33 }
  0x89   :  { %590 = vrot.lane.b32.xlu0 %v420_v44, %s9145_s17  ;;  %592 = vrot.lane.b32.xlu1 %v421_v49, %s9145_s17  ;;  %v9871_v44 = vld [vmem:[#allocation2 + $0x2e8] sm:$0xff] }
  0x8a   :  { %13407 = vst [vmem:[#allocation7_spill] sm:$0xff] %v9871_v44  ;;  %v430_v49 = vld [vmem:[#allocation2 + $0x2a1] sm:$0xff]  ;;  %372 = vst.msk [vmem:[#allocation3 + $0x1d0] sm:$0xff] %vm33_vm0, %v9871_v44 }
  0x8d   :  { %594 = vrot.lane.b32.xlu0 %v422_v58, %s9145_s17  ;;  %596 = vrot.lane.b32.xlu1 %v423_v59, %s9145_s17  ;;  %v431_v58 = vld [vmem:[#allocation2 + $0x2a9] sm:$0xff] }
  0x8e   :  { %v9875_v59 = vld [vmem:[#allocation2 + $0x2f0] sm:$0xff] }
  0x8f   :  { %13408 = vst [vmem:[#allocation8_spill] sm:$0xff] %v9875_v59  ;;  %373 = vst.msk [vmem:[#allocation3 + $0x1d8] sm:$0xff] %vm33_vm0, %v9875_v59  ;;  %v439_v59 = vld [vmem:[#allocation2 + $0x309] sm:$0xff] }
  0x91   :  { %598 = vrot.lane.b32.xlu0 %v424_v1, %s9145_s17  ;;  %600 = vrot.lane.b32.xlu1 %v425_v4, %s9145_s17  ;;  %v9881_v1 = vld [vmem:[#allocation2 + $0x300] sm:$0xff] }
  0x92   :  { %13409 = vst [vmem:[#allocation9_spill] sm:$0xff] %v9881_v1  ;;  %v432_v4 = vld [vmem:[#allocation2 + $0x2b9] sm:$0xff]  ;;  %374 = vst.msk [vmem:[#allocation3 + $0x1e0] sm:$0xff] %vm33_vm0, %v9881_v1  ;;  %v511_v1 = vpop.permute.xlu1 %510 }
  0x93   :  { %701 = vst.msk [vmem:[#allocation3 + $0x10] sm:$0xff] %vm698_vm3, %v511_v1 }
  0x95   :  { %602 = vrot.lane.b32.xlu0 %v426_v10, %s9145_s17  ;;  %604 = vrot.lane.b32.xlu1 %v427_v14, %s9145_s17  ;;  %v433_v10 = vld [vmem:[#allocation2 + $0x2c1] sm:$0xff] }
  0x96   :  { %v9885_v14 = vld [vmem:[#allocation2 + $0x308] sm:$0xff]  ;;  %v513_v44 = vpop.permute.xlu1 %512 }
  0x97   :  { %13410 = vst [vmem:[#allocation10_spill] sm:$0xff] %v9885_v14  ;;  %375 = vst.msk [vmem:[#allocation3 + $0x1e8] sm:$0xff] %vm33_vm0, %v9885_v14  ;;  %v437_v14 = vld [vmem:[#allocation2 + $0x2f1] sm:$0xff] }
  0x98   :  { %702 = vst.msk [vmem:[#allocation3 + $0x18] sm:$0xff] %vm698_vm3, %v513_v44 }
  0x99   :  { %606 = vrot.lane.b32.xlu0 %v428_v23, %s9145_s17  ;;  %608 = vrot.lane.b32.xlu1 %v429_v29, %s9145_s17  ;;  %v9891_v23 = vld [vmem:[#allocation2 + $0x318] sm:$0xff] }
  0x9a   :  { %13411 = vst [vmem:[#allocation11_spill] sm:$0xff] %v9891_v23  ;;  %v434_v29 = vld [vmem:[#allocation2 + $0x2d1] sm:$0xff]  ;;  %376 = vst.msk [vmem:[#allocation3 + $0x1f0] sm:$0xff] %vm33_vm0, %v9891_v23  ;;  %v438_v23 = vld [vmem:[#allocation2 + $0x301] sm:$0xff]  ;;  %v517_v1 = vpop.permute.xlu1 %516 }
  0x9b   :  { %704 = vst.msk [vmem:[#allocation3 + $0x28] sm:$0xff] %vm698_vm3, %v517_v1 }
  0x9d   :  { %610 = vrot.lane.b32.xlu0 %v430_v49, %s9145_s17  ;;  %612 = vrot.lane.b32.xlu1 %v431_v58, %s9145_s17  ;;  %v435_v49 = vld [vmem:[#allocation2 + $0x2d9] sm:$0xff] }
  0x9e   :  { %v9895_v58 = vld [vmem:[#allocation2 + $0x320] sm:$0xff]  ;;  %v521_v44 = vpop.permute.xlu1 %520 }
  0x9f   :  { %13412 = vst [vmem:[#allocation12_spill] sm:$0xff] %v9895_v58  ;;  %377 = vst.msk [vmem:[#allocation3 + $0x1f8] sm:$0xff] %vm33_vm0, %v9895_v58 }
  0xa0   :  { %706 = vst.msk [vmem:[#allocation3 + $0x38] sm:$0xff] %vm698_vm3, %v521_v44 }
  0xa1   :  { %614 = vrot.lane.b32.xlu0 %v432_v4, %s9145_s17  ;;  %616 = vrot.lane.b32.xlu1 %v433_v10, %s9145_s17  ;;  %v436_v4 = vld [vmem:[#allocation2 + $0x2e9] sm:$0xff]  ;;  %v507_v10 = vpop.permute.xlu0 %506 }
  0xa2   :  { %699 = vst.msk [vmem:[#allocation3] sm:$0xff] %vm698_vm3, %v507_v10 }
  0xa5   :  { %618 = vrot.lane.b32.xlu0 %v434_v29, %s9145_s17  ;;  %620 = vrot.lane.b32.xlu1 %v435_v49, %s9145_s17  ;;  %v509_v58 = vpop.permute.xlu0 %508  ;;  %v440_v29 = vld [vmem:[#allocation2 + $0x319] sm:$0xff]  ;;  %v441_v49 = vld [vmem:[#allocation2 + $0x321] sm:$0xff] }
  0xa6   :  { %700 = vst.msk [vmem:[#allocation3 + $0x8] sm:$0xff] %vm698_vm3, %v509_v58  ;;  %v764_v58 = vld [vmem:[#allocation2 + $0xa] sm:$0xff] }
  0xa9   :  { %622 = vrot.lane.b32.xlu0 %v436_v4, %s9145_s17  ;;  %624 = vrot.lane.b32.xlu1 %v437_v14, %s9145_s17  ;;  %v515_v10 = vpop.permute.xlu0 %514  ;;  %v763_v14 = vld [vmem:[#allocation2 + $0x2] sm:$0xff] }
  0xaa   :  { %703 = vst.msk [vmem:[#allocation3 + $0x20] sm:$0xff] %vm698_vm3, %v515_v10 }
  0xad   :  { %626 = vrot.lane.b32.xlu0 %v438_v23, %s9145_s17  ;;  %628 = vrot.lane.b32.xlu1 %v439_v59, %s9145_s17  ;;  %v519_v4 = vpop.permute.xlu0 %518  ;;  %v765_v59 = vld [vmem:[#allocation2 + $0x1a] sm:$0xff]  ;;  %v766_v23 = vld [vmem:[#allocation2 + $0x22] sm:$0xff] }
  0xae   :  { %705 = vst.msk [vmem:[#allocation3 + $0x30] sm:$0xff] %vm698_vm3, %v519_v4 }
  0xb1   :  { %630 = vrot.lane.b32.xlu0 %v440_v29, %s9145_s17  ;;  %632 = vrot.lane.b32.xlu1 %v441_v49, %s9145_s17  ;;  %v767_v29 = vld [vmem:[#allocation2 + $0x32] sm:$0xff]  ;;  %v768_v49 = vld [vmem:[#allocation2 + $0x3a] sm:$0xff] }
  0xb5   :  { %891 = vrot.lane.b32.xlu0 %v763_v14, %s9146_s16  ;;  %893 = vrot.lane.b32.xlu1 %v764_v58, %s9146_s16  ;;  %v769_v14 = vld [vmem:[#allocation2 + $0x4a] sm:$0xff]  ;;  %v770_v58 = vld [vmem:[#allocation2 + $0x52] sm:$0xff] }
  0xb7   :  { %v523_v10 = vpop.permute.xlu0 %522  ;;  %v525_v1 = vpop.permute.xlu1 %524 }
  0xb8   :  { %707 = vst.msk [vmem:[#allocation3 + $0x40] sm:$0xff] %vm698_vm3, %v523_v10  ;;  %708 = vst.msk [vmem:[#allocation3 + $0x48] sm:$0xff] %vm698_vm3, %v525_v1 }
  0xb9   :  { %895 = vrot.lane.b32.xlu0 %v765_v59, %s9146_s16  ;;  %897 = vrot.lane.b32.xlu1 %v766_v23, %s9146_s16  ;;  %v771_v59 = vld [vmem:[#allocation2 + $0x62] sm:$0xff]  ;;  %v772_v23 = vld [vmem:[#allocation2 + $0x6a] sm:$0xff] }
  0xbb   :  { %v527_v4 = vpop.permute.xlu0 %526  ;;  %v529_v44 = vpop.permute.xlu1 %528 }
  0xbc   :  { %709 = vst.msk [vmem:[#allocation3 + $0x50] sm:$0xff] %vm698_vm3, %v527_v4  ;;  %710 = vst.msk [vmem:[#allocation3 + $0x58] sm:$0xff] %vm698_vm3, %v529_v44 }
  0xbd   :  { %899 = vrot.lane.b32.xlu0 %v767_v29, %s9146_s16  ;;  %901 = vrot.lane.b32.xlu1 %v768_v49, %s9146_s16  ;;  %v773_v29 = vld [vmem:[#allocation2 + $0x7a] sm:$0xff]  ;;  %v774_v49 = vld [vmem:[#allocation2 + $0x82] sm:$0xff] }
  0xbf   :  { %v531_v10 = vpop.permute.xlu0 %530  ;;  %v533_v1 = vpop.permute.xlu1 %532 }
  0xc0   :  { %711 = vst.msk [vmem:[#allocation3 + $0x60] sm:$0xff] %vm698_vm3, %v531_v10  ;;  %712 = vst.msk [vmem:[#allocation3 + $0x68] sm:$0xff] %vm698_vm3, %v533_v1 }
  0xc1   :  { %903 = vrot.lane.b32.xlu0 %v769_v14, %s9146_s16  ;;  %905 = vrot.lane.b32.xlu1 %v770_v58, %s9146_s16  ;;  %v775_v14 = vld [vmem:[#allocation2 + $0x92] sm:$0xff]  ;;  %v776_v58 = vld [vmem:[#allocation2 + $0x9a] sm:$0xff] }
  0xc3   :  { %v535_v4 = vpop.permute.xlu0 %534  ;;  %v537_v44 = vpop.permute.xlu1 %536 }
  0xc4   :  { %713 = vst.msk [vmem:[#allocation3 + $0x70] sm:$0xff] %vm698_vm3, %v535_v4  ;;  %714 = vst.msk [vmem:[#allocation3 + $0x78] sm:$0xff] %vm698_vm3, %v537_v44 }
  0xc5   :  { %907 = vrot.lane.b32.xlu0 %v771_v59, %s9146_s16  ;;  %909 = vrot.lane.b32.xlu1 %v772_v23, %s9146_s16  ;;  %v777_v59 = vld [vmem:[#allocation2 + $0xaa] sm:$0xff]  ;;  %v778_v23 = vld [vmem:[#allocation2 + $0xb2] sm:$0xff] }
  0xc7   :  { %v539_v10 = vpop.permute.xlu0 %538  ;;  %v541_v1 = vpop.permute.xlu1 %540 }
  0xc8   :  { %715 = vst.msk [vmem:[#allocation3 + $0x80] sm:$0xff] %vm698_vm3, %v539_v10  ;;  %716 = vst.msk [vmem:[#allocation3 + $0x88] sm:$0xff] %vm698_vm3, %v541_v1 }
  0xc9   :  { %911 = vrot.lane.b32.xlu0 %v773_v29, %s9146_s16  ;;  %913 = vrot.lane.b32.xlu1 %v774_v49, %s9146_s16  ;;  %v779_v29 = vld [vmem:[#allocation2 + $0xc2] sm:$0xff]  ;;  %v780_v49 = vld [vmem:[#allocation2 + $0xca] sm:$0xff] }
  0xcb   :  { %v543_v4 = vpop.permute.xlu0 %542  ;;  %v545_v44 = vpop.permute.xlu1 %544 }
  0xcc   :  { %717 = vst.msk [vmem:[#allocation3 + $0x90] sm:$0xff] %vm698_vm3, %v543_v4  ;;  %718 = vst.msk [vmem:[#allocation3 + $0x98] sm:$0xff] %vm698_vm3, %v545_v44 }
  0xcd   :  { %915 = vrot.lane.b32.xlu0 %v775_v14, %s9146_s16  ;;  %917 = vrot.lane.b32.xlu1 %v776_v58, %s9146_s16  ;;  %v781_v14 = vld [vmem:[#allocation2 + $0xda] sm:$0xff]  ;;  %v782_v58 = vld [vmem:[#allocation2 + $0xe2] sm:$0xff] }
  0xcf   :  { %v547_v10 = vpop.permute.xlu0 %546  ;;  %v549_v1 = vpop.permute.xlu1 %548 }
  0xd0   :  { %719 = vst.msk [vmem:[#allocation3 + $0xa0] sm:$0xff] %vm698_vm3, %v547_v10  ;;  %720 = vst.msk [vmem:[#allocation3 + $0xa8] sm:$0xff] %vm698_vm3, %v549_v1 }
  0xd1   :  { %919 = vrot.lane.b32.xlu0 %v777_v59, %s9146_s16  ;;  %921 = vrot.lane.b32.xlu1 %v778_v23, %s9146_s16  ;;  %v783_v59 = vld [vmem:[#allocation2 + $0xf2] sm:$0xff]  ;;  %v784_v23 = vld [vmem:[#allocation2 + $0xfa] sm:$0xff] }
  0xd3   :  { %v551_v4 = vpop.permute.xlu0 %550  ;;  %v553_v44 = vpop.permute.xlu1 %552 }
  0xd4   :  { %721 = vst.msk [vmem:[#allocation3 + $0xb0] sm:$0xff] %vm698_vm3, %v551_v4  ;;  %722 = vst.msk [vmem:[#allocation3 + $0xb8] sm:$0xff] %vm698_vm3, %v553_v44 }
  0xd5   :  { %923 = vrot.lane.b32.xlu0 %v779_v29, %s9146_s16  ;;  %925 = vrot.lane.b32.xlu1 %v780_v49, %s9146_s16  ;;  %v785_v29 = vld [vmem:[#allocation2 + $0x10a] sm:$0xff]  ;;  %v786_v49 = vld [vmem:[#allocation2 + $0x112] sm:$0xff] }
  0xd7   :  { %v555_v10 = vpop.permute.xlu0 %554  ;;  %v557_v1 = vpop.permute.xlu1 %556 }
  0xd8   :  { %723 = vst.msk [vmem:[#allocation3 + $0xc0] sm:$0xff] %vm698_vm3, %v555_v10  ;;  %724 = vst.msk [vmem:[#allocation3 + $0xc8] sm:$0xff] %vm698_vm3, %v557_v1 }
  0xd9   :  { %927 = vrot.lane.b32.xlu0 %v781_v14, %s9146_s16  ;;  %929 = vrot.lane.b32.xlu1 %v782_v58, %s9146_s16  ;;  %v787_v14 = vld [vmem:[#allocation2 + $0x122] sm:$0xff]  ;;  %v788_v58 = vld [vmem:[#allocation2 + $0x12a] sm:$0xff] }
  0xdb   :  { %v559_v4 = vpop.permute.xlu0 %558  ;;  %v561_v44 = vpop.permute.xlu1 %560 }
  0xdc   :  { %725 = vst.msk [vmem:[#allocation3 + $0xd0] sm:$0xff] %vm698_vm3, %v559_v4  ;;  %726 = vst.msk [vmem:[#allocation3 + $0xd8] sm:$0xff] %vm698_vm3, %v561_v44 }
  0xdd   :  { %931 = vrot.lane.b32.xlu0 %v783_v59, %s9146_s16  ;;  %933 = vrot.lane.b32.xlu1 %v784_v23, %s9146_s16  ;;  %v789_v59 = vld [vmem:[#allocation2 + $0x13a] sm:$0xff]  ;;  %v790_v23 = vld [vmem:[#allocation2 + $0x142] sm:$0xff] }
  0xdf   :  { %v563_v10 = vpop.permute.xlu0 %562  ;;  %v565_v1 = vpop.permute.xlu1 %564 }
  0xe0   :  { %727 = vst.msk [vmem:[#allocation3 + $0xe0] sm:$0xff] %vm698_vm3, %v563_v10  ;;  %728 = vst.msk [vmem:[#allocation3 + $0xe8] sm:$0xff] %vm698_vm3, %v565_v1 }
  0xe1   :  { %935 = vrot.lane.b32.xlu0 %v785_v29, %s9146_s16  ;;  %937 = vrot.lane.b32.xlu1 %v786_v49, %s9146_s16  ;;  %v151_v29 = vld [vmem:[%s13385_s0 + $0xf0] sm:$0xff]  ;;  %v152_v49 = vld [vmem:[%s13385_s0 + $0xf8] sm:$0xff] }
  0xe2   :  { %216 = vst.msk [vmem:[#allocation2 + $0x181] sm:$0xff] %vm33_vm0, %v151_v29  ;;  %217 = vst.msk [vmem:[#allocation2 + $0x189] sm:$0xff] %vm33_vm0, %v152_v49  ;;  %v795_v29 = vld [vmem:[#allocation2 + $0x1b2] sm:$0xff]  ;;  %v796_v49 = vld [vmem:[#allocation2 + $0x1ba] sm:$0xff] }
  0xe3   :  { %v567_v4 = vpop.permute.xlu0 %566  ;;  %v569_v44 = vpop.permute.xlu1 %568 }
  0xe4   :  { %729 = vst.msk [vmem:[#allocation3 + $0xf0] sm:$0xff] %vm698_vm3, %v567_v4  ;;  %730 = vst.msk [vmem:[#allocation3 + $0xf8] sm:$0xff] %vm698_vm3, %v569_v44 }
  0xe5   :  { %939 = vrot.lane.b32.xlu0 %v787_v14, %s9146_s16  ;;  %941 = vrot.lane.b32.xlu1 %v788_v58, %s9146_s16  ;;  %v791_v14 = vld [vmem:[#allocation2 + $0x152] sm:$0xff]  ;;  %v792_v58 = vld [vmem:[#allocation2 + $0x15a] sm:$0xff] }
  0xe7   :  { %v571_v10 = vpop.permute.xlu0 %570  ;;  %v573_v1 = vpop.permute.xlu1 %572 }
  0xe8   :  { %731 = vst.msk [vmem:[#allocation3 + $0x100] sm:$0xff] %vm698_vm3, %v571_v10  ;;  %732 = vst.msk [vmem:[#allocation3 + $0x108] sm:$0xff] %vm698_vm3, %v573_v1 }
  0xe9   :  { %943 = vrot.lane.b32.xlu0 %v789_v59, %s9146_s16  ;;  %945 = vrot.lane.b32.xlu1 %v790_v23, %s9146_s16  ;;  %v793_v59 = vld [vmem:[#allocation2 + $0x16a] sm:$0xff]  ;;  %v794_v23 = vld [vmem:[#allocation2 + $0x172] sm:$0xff] }
  0xeb   :  { %v575_v4 = vpop.permute.xlu0 %574  ;;  %v577_v44 = vpop.permute.xlu1 %576 }
  0xec   :  { %733 = vst.msk [vmem:[#allocation3 + $0x110] sm:$0xff] %vm698_vm3, %v575_v4  ;;  %734 = vst.msk [vmem:[#allocation3 + $0x118] sm:$0xff] %vm698_vm3, %v577_v44 }
  0xed   :  { %947 = vrot.lane.b32.xlu0 %v791_v14, %s9146_s16  ;;  %949 = vrot.lane.b32.xlu1 %v792_v58, %s9146_s16  ;;  %v797_v14 = vld [vmem:[#allocation2 + $0x1ca] sm:$0xff]  ;;  %v798_v58 = vld [vmem:[#allocation2 + $0x1d2] sm:$0xff] }
  0xef   :  { %v579_v10 = vpop.permute.xlu0 %578  ;;  %v581_v1 = vpop.permute.xlu1 %580 }
  0xf0   :  { %735 = vst.msk [vmem:[#allocation3 + $0x120] sm:$0xff] %vm698_vm3, %v579_v10  ;;  %736 = vst.msk [vmem:[#allocation3 + $0x128] sm:$0xff] %vm698_vm3, %v581_v1 }
  0xf1   :  { %951 = vrot.lane.b32.xlu0 %v793_v59, %s9146_s16  ;;  %953 = vrot.lane.b32.xlu1 %v794_v23, %s9146_s16  ;;  %v799_v59 = vld [vmem:[#allocation2 + $0x1e2] sm:$0xff]  ;;  %v800_v23 = vld [vmem:[#allocation2 + $0x1ea] sm:$0xff] }
  0xf3   :  { %v583_v4 = vpop.permute.xlu0 %582  ;;  %v585_v44 = vpop.permute.xlu1 %584 }
  0xf4   :  { %737 = vst.msk [vmem:[#allocation3 + $0x130] sm:$0xff] %vm698_vm3, %v583_v4  ;;  %738 = vst.msk [vmem:[#allocation3 + $0x138] sm:$0xff] %vm698_vm3, %v585_v44 }
  0xf5   :  { %955 = vrot.lane.b32.xlu0 %v795_v29, %s9146_s16  ;;  %957 = vrot.lane.b32.xlu1 %v796_v49, %s9146_s16  ;;  %v801_v29 = vld [vmem:[#allocation2 + $0x1fa] sm:$0xff]  ;;  %v802_v49 = vld [vmem:[#allocation2 + $0x202] sm:$0xff] }
  0xf7   :  { %v587_v10 = vpop.permute.xlu0 %586  ;;  %v589_v1 = vpop.permute.xlu1 %588 }
  0xf8   :  { %739 = vst.msk [vmem:[#allocation3 + $0x140] sm:$0xff] %vm698_vm3, %v587_v10  ;;  %740 = vst.msk [vmem:[#allocation3 + $0x148] sm:$0xff] %vm698_vm3, %v589_v1 }
  0xf9   :  { %959 = vrot.lane.b32.xlu0 %v797_v14, %s9146_s16  ;;  %961 = vrot.lane.b32.xlu1 %v798_v58, %s9146_s16  ;;  %v803_v14 = vld [vmem:[#allocation2 + $0x212] sm:$0xff]  ;;  %v804_v58 = vld [vmem:[#allocation2 + $0x21a] sm:$0xff] }
  0xfb   :  { %v591_v4 = vpop.permute.xlu0 %590  ;;  %v593_v44 = vpop.permute.xlu1 %592 }
  0xfc   :  { %741 = vst.msk [vmem:[#allocation3 + $0x150] sm:$0xff] %vm698_vm3, %v591_v4  ;;  %742 = vst.msk [vmem:[#allocation3 + $0x158] sm:$0xff] %vm698_vm3, %v593_v44 }
  0xfd   :  { %963 = vrot.lane.b32.xlu0 %v799_v59, %s9146_s16  ;;  %965 = vrot.lane.b32.xlu1 %v800_v23, %s9146_s16  ;;  %v805_v59 = vld [vmem:[#allocation2 + $0x22a] sm:$0xff]  ;;  %v806_v23 = vld [vmem:[#allocation2 + $0x232] sm:$0xff] }
  0xff   :  { %v595_v10 = vpop.permute.xlu0 %594  ;;  %v597_v1 = vpop.permute.xlu1 %596 }
 0x100   :  { %743 = vst.msk [vmem:[#allocation3 + $0x160] sm:$0xff] %vm698_vm3, %v595_v10  ;;  %744 = vst.msk [vmem:[#allocation3 + $0x168] sm:$0xff] %vm698_vm3, %v597_v1 }
 0x101   :  { %967 = vrot.lane.b32.xlu0 %v801_v29, %s9146_s16  ;;  %969 = vrot.lane.b32.xlu1 %v802_v49, %s9146_s16  ;;  %v807_v29 = vld [vmem:[#allocation2 + $0x242] sm:$0xff]  ;;  %v808_v49 = vld [vmem:[#allocation2 + $0x24a] sm:$0xff] }
 0x103   :  { %v599_v4 = vpop.permute.xlu0 %598  ;;  %v601_v44 = vpop.permute.xlu1 %600 }
 0x104   :  { %745 = vst.msk [vmem:[#allocation3 + $0x170] sm:$0xff] %vm698_vm3, %v599_v4  ;;  %746 = vst.msk [vmem:[#allocation3 + $0x178] sm:$0xff] %vm698_vm3, %v601_v44 }
 0x105   :  { %971 = vrot.lane.b32.xlu0 %v803_v14, %s9146_s16  ;;  %973 = vrot.lane.b32.xlu1 %v804_v58, %s9146_s16  ;;  %v809_v14 = vld [vmem:[#allocation2 + $0x25a] sm:$0xff]  ;;  %v810_v58 = vld [vmem:[#allocation2 + $0x262] sm:$0xff] }
 0x107   :  { %v603_v10 = vpop.permute.xlu0 %602  ;;  %v605_v1 = vpop.permute.xlu1 %604 }
 0x108   :  { %747 = vst.msk [vmem:[#allocation3 + $0x180] sm:$0xff] %vm698_vm3, %v603_v10  ;;  %748 = vst.msk [vmem:[#allocation3 + $0x188] sm:$0xff] %vm698_vm3, %v605_v1 }
 0x109   :  { %975 = vrot.lane.b32.xlu0 %v805_v59, %s9146_s16  ;;  %977 = vrot.lane.b32.xlu1 %v806_v23, %s9146_s16  ;;  %v811_v59 = vld [vmem:[#allocation2 + $0x272] sm:$0xff]  ;;  %v812_v23 = vld [vmem:[#allocation2 + $0x27a] sm:$0xff] }
 0x10b   :  { %v607_v4 = vpop.permute.xlu0 %606  ;;  %v609_v44 = vpop.permute.xlu1 %608 }
 0x10c   :  { %749 = vst.msk [vmem:[#allocation3 + $0x190] sm:$0xff] %vm698_vm3, %v607_v4  ;;  %750 = vst.msk [vmem:[#allocation3 + $0x198] sm:$0xff] %vm698_vm3, %v609_v44 }
 0x10d   :  { %979 = vrot.lane.b32.xlu0 %v807_v29, %s9146_s16  ;;  %981 = vrot.lane.b32.xlu1 %v808_v49, %s9146_s16  ;;  %v813_v29 = vld [vmem:[#allocation2 + $0x28a] sm:$0xff]  ;;  %v814_v49 = vld [vmem:[#allocation2 + $0x292] sm:$0xff] }
 0x10f   :  { %v611_v10 = vpop.permute.xlu0 %610  ;;  %v613_v1 = vpop.permute.xlu1 %612 }
 0x110   :  { %751 = vst.msk [vmem:[#allocation3 + $0x1a0] sm:$0xff] %vm698_vm3, %v611_v10  ;;  %752 = vst.msk [vmem:[#allocation3 + $0x1a8] sm:$0xff] %vm698_vm3, %v613_v1 }
 0x111   :  { %983 = vrot.lane.b32.xlu0 %v809_v14, %s9146_s16  ;;  %985 = vrot.lane.b32.xlu1 %v810_v58, %s9146_s16  ;;  %v815_v14 = vld [vmem:[#allocation2 + $0x2a2] sm:$0xff]  ;;  %v816_v58 = vld [vmem:[#allocation2 + $0x2aa] sm:$0xff] }
 0x113   :  { %v615_v4 = vpop.permute.xlu0 %614  ;;  %v617_v44 = vpop.permute.xlu1 %616 }
 0x114   :  { %753 = vst.msk [vmem:[#allocation3 + $0x1b0] sm:$0xff] %vm698_vm3, %v615_v4  ;;  %754 = vst.msk [vmem:[#allocation3 + $0x1b8] sm:$0xff] %vm698_vm3, %v617_v44 }
 0x115   :  { %987 = vrot.lane.b32.xlu0 %v811_v59, %s9146_s16  ;;  %989 = vrot.lane.b32.xlu1 %v812_v23, %s9146_s16  ;;  %v817_v59 = vld [vmem:[#allocation2 + $0x2ba] sm:$0xff]  ;;  %v818_v23 = vld [vmem:[#allocation2 + $0x2c2] sm:$0xff] }
 0x117   :  { %v619_v10 = vpop.permute.xlu0 %618  ;;  %v621_v1 = vpop.permute.xlu1 %620 }
 0x118   :  { %755 = vst.msk [vmem:[#allocation3 + $0x1c0] sm:$0xff] %vm698_vm3, %v619_v10  ;;  %756 = vst.msk [vmem:[#allocation3 + $0x1c8] sm:$0xff] %vm698_vm3, %v621_v1 }
 0x119   :  { %991 = vrot.lane.b32.xlu0 %v813_v29, %s9146_s16  ;;  %993 = vrot.lane.b32.xlu1 %v814_v49, %s9146_s16  ;;  %v819_v29 = vld [vmem:[#allocation2 + $0x2d2] sm:$0xff]  ;;  %v820_v49 = vld [vmem:[#allocation2 + $0x2da] sm:$0xff] }
 0x11b   :  { %v623_v4 = vpop.permute.xlu0 %622  ;;  %v625_v44 = vpop.permute.xlu1 %624 }
 0x11c   :  { %757 = vst.msk [vmem:[#allocation3 + $0x1d0] sm:$0xff] %vm698_vm3, %v623_v4  ;;  %758 = vst.msk [vmem:[#allocation3 + $0x1d8] sm:$0xff] %vm698_vm3, %v625_v44 }
 0x11d   :  { %995 = vrot.lane.b32.xlu0 %v815_v14, %s9146_s16  ;;  %997 = vrot.lane.b32.xlu1 %v816_v58, %s9146_s16  ;;  %v821_v14 = vld [vmem:[#allocation2 + $0x2ea] sm:$0xff]  ;;  %v822_v58 = vld [vmem:[#allocation2 + $0x2f2] sm:$0xff] }
 0x11f   :  { %v627_v10 = vpop.permute.xlu0 %626  ;;  %v629_v1 = vpop.permute.xlu1 %628 }
 0x120   :  { %759 = vst.msk [vmem:[#allocation3 + $0x1e0] sm:$0xff] %vm698_vm3, %v627_v10  ;;  %760 = vst.msk [vmem:[#allocation3 + $0x1e8] sm:$0xff] %vm698_vm3, %v629_v1 }
 0x121   :  { %999 = vrot.lane.b32.xlu0 %v817_v59, %s9146_s16  ;;  %1001 = vrot.lane.b32.xlu1 %v818_v23, %s9146_s16  ;;  %v183_v59 = vld [vmem:[%s13385_s0 + $0x1f0] sm:$0xff]  ;;  %v184_v23 = vld [vmem:[%s13385_s0 + $0x1f8] sm:$0xff] }
 0x122   :  { %248 = vst.msk [vmem:[#allocation2 + $0x331] sm:$0xff] %vm33_vm0, %v183_v59  ;;  %249 = vst.msk [vmem:[#allocation2 + $0x339] sm:$0xff] %vm33_vm0, %v184_v23 }
 0x123   :  { %v631_v4 = vpop.permute.xlu0 %630  ;;  %v633_v44 = vpop.permute.xlu1 %632 }
 0x124   :  { %761 = vst.msk [vmem:[#allocation3 + $0x1f0] sm:$0xff] %vm698_vm3, %v631_v4  ;;  %762 = vst.msk [vmem:[#allocation3 + $0x1f8] sm:$0xff] %vm698_vm3, %v633_v44 }
 0x125   :  { %1003 = vrot.lane.b32.xlu0 %v819_v29, %s9146_s16  ;;  %1005 = vrot.lane.b32.xlu1 %v820_v49, %s9146_s16  ;;  %v823_v29 = vld [vmem:[#allocation2 + $0x302] sm:$0xff]  ;;  %v824_v49 = vld [vmem:[#allocation2 + $0x30a] sm:$0xff] }
 0x127   :  { %v892_v10 = vpop.permute.xlu0 %891  ;;  %v894_v1 = vpop.permute.xlu1 %893 }
 0x128   :  { %1084 = vst.msk [vmem:[#allocation3] sm:$0xff] %vm1083_vm4, %v892_v10  ;;  %1085 = vst.msk [vmem:[#allocation3 + $0x8] sm:$0xff] %vm1083_vm4, %v894_v1 }
 0x129   :  { %1007 = vrot.lane.b32.xlu0 %v821_v14, %s9146_s16  ;;  %1009 = vrot.lane.b32.xlu1 %v822_v58, %s9146_s16  ;;  %v825_v14 = vld [vmem:[#allocation2 + $0x31a] sm:$0xff]  ;;  %v826_v58 = vld [vmem:[#allocation2 + $0x322] sm:$0xff] }
 0x12b   :  { %v896_v4 = vpop.permute.xlu0 %895  ;;  %v898_v44 = vpop.permute.xlu1 %897 }
 0x12c   :  { %1086 = vst.msk [vmem:[#allocation3 + $0x10] sm:$0xff] %vm1083_vm4, %v896_v4  ;;  %1087 = vst.msk [vmem:[#allocation3 + $0x18] sm:$0xff] %vm1083_vm4, %v898_v44 }
 0x12d   :  { %1011 = vrot.lane.b32.xlu0 %v823_v29, %s9146_s16  ;;  %1013 = vrot.lane.b32.xlu1 %v824_v49, %s9146_s16 }
 0x12f   :  { %v900_v10 = vpop.permute.xlu0 %899  ;;  %v902_v1 = vpop.permute.xlu1 %901 }
 0x130   :  { %1088 = vst.msk [vmem:[#allocation3 + $0x20] sm:$0xff] %vm1083_vm4, %v900_v10  ;;  %1089 = vst.msk [vmem:[#allocation3 + $0x28] sm:$0xff] %vm1083_vm4, %v902_v1 }
 0x131   :  { %1015 = vrot.lane.b32.xlu0 %v825_v14, %s9146_s16  ;;  %1017 = vrot.lane.b32.xlu1 %v826_v58, %s9146_s16 }
 0x133   :  { %v904_v59 = vpop.permute.xlu0 %903  ;;  %v906_v23 = vpop.permute.xlu1 %905 }
 0x134   :  { %1090 = vst.msk [vmem:[#allocation3 + $0x30] sm:$0xff] %vm1083_vm4, %v904_v59  ;;  %1091 = vst.msk [vmem:[#allocation3 + $0x38] sm:$0xff] %vm1083_vm4, %v906_v23 }
 0x135   :  { %1276 = vrot.lane.b32.xlu0 %v9590_v8, %s9147_s25  ;;  %1278 = vrot.lane.b32.xlu1 %v9601_v13, %s9147_s25 }
 0x137   :  { %v908_v29 = vpop.permute.xlu0 %907  ;;  %v910_v49 = vpop.permute.xlu1 %909 }
 0x138   :  { %1092 = vst.msk [vmem:[#allocation3 + $0x40] sm:$0xff] %vm1083_vm4, %v908_v29  ;;  %1093 = vst.msk [vmem:[#allocation3 + $0x48] sm:$0xff] %vm1083_vm4, %v910_v49 }
 0x139   :  { %1280 = vrot.lane.b32.xlu0 %v9617_v17, %s9147_s25  ;;  %1282 = vrot.lane.b32.xlu1 %v9619_v18, %s9147_s25 }
 0x13b   :  { %v912_v4 = vpop.permute.xlu0 %911  ;;  %v914_v44 = vpop.permute.xlu1 %913 }
 0x13c   :  { %1094 = vst.msk [vmem:[#allocation3 + $0x50] sm:$0xff] %vm1083_vm4, %v912_v4  ;;  %1095 = vst.msk [vmem:[#allocation3 + $0x58] sm:$0xff] %vm1083_vm4, %v914_v44  ;;  %v13417_v4 = vld [vmem:[#allocation11_spill] sm:$0xff]  ;;  %v13418_v44 = vld [vmem:[#allocation12_spill] sm:$0xff] }
 0x13d   :  { %1284 = vrot.lane.b32.xlu0 %v9632_v21, %s9147_s25  ;;  %1286 = vrot.lane.b32.xlu1 %v9634_v22, %s9147_s25 }
 0x13f   :  { %v916_v8 = vpop.permute.xlu0 %915  ;;  %v918_v13 = vpop.permute.xlu1 %917 }
 0x140   :  { %1096 = vst.msk [vmem:[#allocation3 + $0x60] sm:$0xff] %vm1083_vm4, %v916_v8  ;;  %1097 = vst.msk [vmem:[#allocation3 + $0x68] sm:$0xff] %vm1083_vm4, %v918_v13  ;;  %v1210_v8 = vld [vmem:[#allocation2 + $0x330] sm:$0xff]  ;;  %v1211_v13 = vld [vmem:[#allocation2 + $0x338] sm:$0xff] }
 0x141   :  { %1288 = vrot.lane.b32.xlu0 %v9643_v25, %s9147_s25  ;;  %1290 = vrot.lane.b32.xlu1 %v9645_v26, %s9147_s25 }
 0x143   :  { %v920_v17 = vpop.permute.xlu0 %919  ;;  %v922_v18 = vpop.permute.xlu1 %921 }
 0x144   :  { %1098 = vst.msk [vmem:[#allocation3 + $0x70] sm:$0xff] %vm1083_vm4, %v920_v17  ;;  %1099 = vst.msk [vmem:[#allocation3 + $0x78] sm:$0xff] %vm1083_vm4, %v922_v18 }
 0x145   :  { %1292 = vrot.lane.b32.xlu0 %v9653_v27, %s9147_s25  ;;  %1294 = vrot.lane.b32.xlu1 %v9657_v30, %s9147_s25 }
 0x147   :  { %v924_v21 = vpop.permute.xlu0 %923  ;;  %v926_v22 = vpop.permute.xlu1 %925 }
 0x148   :  { %1100 = vst.msk [vmem:[#allocation3 + $0x80] sm:$0xff] %vm1083_vm4, %v924_v21  ;;  %1101 = vst.msk [vmem:[#allocation3 + $0x88] sm:$0xff] %vm1083_vm4, %v926_v22  ;;  %v1533_v21 = vld [vmem:[#allocation2 + $0x19] sm:$0xff]  ;;  %v1534_v22 = vld [vmem:[#allocation2 + $0x21] sm:$0xff] }
 0x149   :  { %1296 = vrot.lane.b32.xlu0 %v9661_v31, %s9147_s25  ;;  %1298 = vrot.lane.b32.xlu1 %v9665_v32, %s9147_s25 }
 0x14b   :  { %v928_v25 = vpop.permute.xlu0 %927  ;;  %v930_v26 = vpop.permute.xlu1 %929 }
 0x14c   :  { %1102 = vst.msk [vmem:[#allocation3 + $0x90] sm:$0xff] %vm1083_vm4, %v928_v25  ;;  %1103 = vst.msk [vmem:[#allocation3 + $0x98] sm:$0xff] %vm1083_vm4, %v930_v26 }
 0x14d   :  { %1300 = vrot.lane.b32.xlu0 %v9671_v34, %s9147_s25  ;;  %1302 = vrot.lane.b32.xlu1 %v9673_v35, %s9147_s25 }
 0x14f   :  { %v932_v27 = vpop.permute.xlu0 %931  ;;  %v934_v30 = vpop.permute.xlu1 %933 }
 0x150   :  { %1104 = vst.msk [vmem:[#allocation3 + $0xa0] sm:$0xff] %vm1083_vm4, %v932_v27  ;;  %1105 = vst.msk [vmem:[#allocation3 + $0xa8] sm:$0xff] %vm1083_vm4, %v934_v30  ;;  %v1535_v27 = vld [vmem:[#allocation2 + $0x31] sm:$0xff]  ;;  %v1536_v30 = vld [vmem:[#allocation2 + $0x39] sm:$0xff] }
 0x151   :  { %1304 = vrot.lane.b32.xlu0 %v9679_v37, %s9147_s25  ;;  %1306 = vrot.lane.b32.xlu1 %v9681_v38, %s9147_s25 }
 0x153   :  { %v936_v31 = vpop.permute.xlu0 %935  ;;  %v938_v32 = vpop.permute.xlu1 %937 }
 0x154   :  { %1106 = vst.msk [vmem:[#allocation3 + $0xb0] sm:$0xff] %vm1083_vm4, %v936_v31  ;;  %1107 = vst.msk [vmem:[#allocation3 + $0xb8] sm:$0xff] %vm1083_vm4, %v938_v32 }
 0x155   :  { %1308 = vrot.lane.b32.xlu0 %v9687_v39, %s9147_s25  ;;  %1310 = vrot.lane.b32.xlu1 %v9691_v40, %s9147_s25 }
 0x157   :  { %v940_v34 = vpop.permute.xlu0 %939  ;;  %v942_v35 = vpop.permute.xlu1 %941 }
 0x158   :  { %1108 = vst.msk [vmem:[#allocation3 + $0xc0] sm:$0xff] %vm1083_vm4, %v940_v34  ;;  %1109 = vst.msk [vmem:[#allocation3 + $0xc8] sm:$0xff] %vm1083_vm4, %v942_v35  ;;  %v1537_v34 = vld [vmem:[#allocation2 + $0x49] sm:$0xff]  ;;  %v1538_v35 = vld [vmem:[#allocation2 + $0x51] sm:$0xff] }
 0x159   :  { %1312 = vrot.lane.b32.xlu0 %v9697_v42, %s9147_s25  ;;  %1314 = vrot.lane.b32.xlu1 %v9699_v43, %s9147_s25 }
 0x15b   :  { %v944_v37 = vpop.permute.xlu0 %943  ;;  %v946_v38 = vpop.permute.xlu1 %945 }
 0x15c   :  { %1110 = vst.msk [vmem:[#allocation3 + $0xd0] sm:$0xff] %vm1083_vm4, %v944_v37  ;;  %1111 = vst.msk [vmem:[#allocation3 + $0xd8] sm:$0xff] %vm1083_vm4, %v946_v38 }
 0x15d   :  { %1316 = vrot.lane.b32.xlu0 %v9705_v45, %s9147_s25  ;;  %1318 = vrot.lane.b32.xlu1 %v9707_v46, %s9147_s25 }
 0x15f   :  { %v948_v39 = vpop.permute.xlu0 %947  ;;  %v950_v40 = vpop.permute.xlu1 %949 }
 0x160   :  { %1112 = vst.msk [vmem:[#allocation3 + $0xe0] sm:$0xff] %vm1083_vm4, %v948_v39  ;;  %1113 = vst.msk [vmem:[#allocation3 + $0xe8] sm:$0xff] %vm1083_vm4, %v950_v40  ;;  %v1539_v39 = vld [vmem:[#allocation2 + $0x61] sm:$0xff]  ;;  %v1540_v40 = vld [vmem:[#allocation2 + $0x69] sm:$0xff] }
 0x161   :  { %1320 = vrot.lane.b32.xlu0 %v9713_v47, %s9147_s25  ;;  %1322 = vrot.lane.b32.xlu1 %v9717_v48, %s9147_s25 }
 0x163   :  { %v952_v42 = vpop.permute.xlu0 %951  ;;  %v954_v43 = vpop.permute.xlu1 %953 }
 0x164   :  { %1114 = vst.msk [vmem:[#allocation3 + $0xf0] sm:$0xff] %vm1083_vm4, %v952_v42  ;;  %1115 = vst.msk [vmem:[#allocation3 + $0xf8] sm:$0xff] %vm1083_vm4, %v954_v43 }
 0x165   :  { %1324 = vrot.lane.b32.xlu0 %v9723_v50, %s9147_s25  ;;  %1326 = vrot.lane.b32.xlu1 %v9725_v51, %s9147_s25  ;;  %v1178_v50 = vld [vmem:[#allocation2 + $0x180] sm:$0xff]  ;;  %v1179_v51 = vld [vmem:[#allocation2 + $0x188] sm:$0xff] }
 0x167   :  { %v956_v45 = vpop.permute.xlu0 %955  ;;  %v958_v46 = vpop.permute.xlu1 %957 }
 0x168   :  { %1116 = vst.msk [vmem:[#allocation3 + $0x100] sm:$0xff] %vm1083_vm4, %v956_v45  ;;  %1117 = vst.msk [vmem:[#allocation3 + $0x108] sm:$0xff] %vm1083_vm4, %v958_v46  ;;  %v1541_v45 = vld [vmem:[#allocation2 + $0x79] sm:$0xff]  ;;  %v1542_v46 = vld [vmem:[#allocation2 + $0x81] sm:$0xff] }
 0x169   :  { %1328 = vrot.lane.b32.xlu0 %v9731_v53, %s9147_s25  ;;  %1330 = vrot.lane.b32.xlu1 %v9733_v54, %s9147_s25 }
 0x16b   :  { %v960_v47 = vpop.permute.xlu0 %959  ;;  %v962_v48 = vpop.permute.xlu1 %961 }
 0x16c   :  { %1118 = vst.msk [vmem:[#allocation3 + $0x110] sm:$0xff] %vm1083_vm4, %v960_v47  ;;  %1119 = vst.msk [vmem:[#allocation3 + $0x118] sm:$0xff] %vm1083_vm4, %v962_v48 }
 0x16d   :  { %1332 = vrot.lane.b32.xlu0 %v9739_v55, %s9147_s25  ;;  %1334 = vrot.lane.b32.xlu1 %v9743_v56, %s9147_s25 }
 0x16f   :  { %v964_v14 = vpop.permute.xlu0 %963  ;;  %v966_v58 = vpop.permute.xlu1 %965 }
 0x170   :  { %1120 = vst.msk [vmem:[#allocation3 + $0x120] sm:$0xff] %vm1083_vm4, %v964_v14  ;;  %1121 = vst.msk [vmem:[#allocation3 + $0x128] sm:$0xff] %vm1083_vm4, %v966_v58 }
 0x171   :  { %1336 = vrot.lane.b32.xlu0 %v1178_v50, %s9147_s25  ;;  %1338 = vrot.lane.b32.xlu1 %v1179_v51, %s9147_s25  ;;  %v1543_v50 = vld [vmem:[#allocation2 + $0x91] sm:$0xff]  ;;  %v1544_v51 = vld [vmem:[#allocation2 + $0x99] sm:$0xff] }
 0x173   :  { %v968_v53 = vpop.permute.xlu0 %967  ;;  %v970_v54 = vpop.permute.xlu1 %969 }
 0x174   :  { %1122 = vst.msk [vmem:[#allocation3 + $0x130] sm:$0xff] %vm1083_vm4, %v968_v53  ;;  %1123 = vst.msk [vmem:[#allocation3 + $0x138] sm:$0xff] %vm1083_vm4, %v970_v54  ;;  %v1545_v53 = vld [vmem:[#allocation2 + $0xa9] sm:$0xff]  ;;  %v1546_v54 = vld [vmem:[#allocation2 + $0xb1] sm:$0xff] }
 0x175   :  { %1340 = vrot.lane.b32.xlu0 %v9751_v61, %s9147_s25  ;;  %1342 = vrot.lane.b32.xlu1 %v9755_v62, %s9147_s25 }
 0x177   :  { %v972_v55 = vpop.permute.xlu0 %971  ;;  %v974_v56 = vpop.permute.xlu1 %973 }
 0x178   :  { %1124 = vst.msk [vmem:[#allocation3 + $0x140] sm:$0xff] %vm1083_vm4, %v972_v55  ;;  %1125 = vst.msk [vmem:[#allocation3 + $0x148] sm:$0xff] %vm1083_vm4, %v974_v56 }
 0x179   :  { %1344 = vrot.lane.b32.xlu0 %v9761_v63, %s9147_s25  ;;  %1346 = vrot.lane.b32.xlu1 %v9765_v2, %s9147_s25 }
 0x17b   :  { %v976_v10 = vpop.permute.xlu0 %975  ;;  %v978_v1 = vpop.permute.xlu1 %977 }
 0x17c   :  { %1126 = vst.msk [vmem:[#allocation3 + $0x150] sm:$0xff] %vm1083_vm4, %v976_v10  ;;  %1127 = vst.msk [vmem:[#allocation3 + $0x158] sm:$0xff] %vm1083_vm4, %v978_v1  ;;  %v1547_v10 = vld [vmem:[#allocation2 + $0xc1] sm:$0xff]  ;;  %v1548_v1 = vld [vmem:[#allocation2 + $0xc9] sm:$0xff] }
 0x17d   :  { %1348 = vrot.lane.b32.xlu0 %v9771_v3, %s9147_s25  ;;  %1350 = vrot.lane.b32.xlu1 %v9775_v6, %s9147_s25 }
 0x17f   :  { %v980_v61 = vpop.permute.xlu0 %979  ;;  %v982_v62 = vpop.permute.xlu1 %981 }
 0x180   :  { %1128 = vst.msk [vmem:[#allocation3 + $0x160] sm:$0xff] %vm1083_vm4, %v980_v61  ;;  %1129 = vst.msk [vmem:[#allocation3 + $0x168] sm:$0xff] %vm1083_vm4, %v982_v62 }
 0x181   :  { %1352 = vrot.lane.b32.xlu0 %v9781_v7, %s9147_s25  ;;  %1354 = vrot.lane.b32.xlu1 %v9785_v11, %s9147_s25 }
 0x183   :  { %v984_v63 = vpop.permute.xlu0 %983  ;;  %v986_v2 = vpop.permute.xlu1 %985 }
 0x184   :  { %1130 = vst.msk [vmem:[#allocation3 + $0x170] sm:$0xff] %vm1083_vm4, %v984_v63  ;;  %1131 = vst.msk [vmem:[#allocation3 + $0x178] sm:$0xff] %vm1083_vm4, %v986_v2  ;;  %v1549_v63 = vld [vmem:[#allocation2 + $0xd9] sm:$0xff]  ;;  %v1550_v2 = vld [vmem:[#allocation2 + $0xe1] sm:$0xff] }
 0x185   :  { %1356 = vrot.lane.b32.xlu0 %v9791_v12, %s9147_s25  ;;  %1358 = vrot.lane.b32.xlu1 %v9795_v16, %s9147_s25 }
 0x187   :  { %v988_v3 = vpop.permute.xlu0 %987  ;;  %v990_v6 = vpop.permute.xlu1 %989 }
 0x188   :  { %1132 = vst.msk [vmem:[#allocation3 + $0x180] sm:$0xff] %vm1083_vm4, %v988_v3  ;;  %1133 = vst.msk [vmem:[#allocation3 + $0x188] sm:$0xff] %vm1083_vm4, %v990_v6 }
 0x189   :  { %1360 = vrot.lane.b32.xlu0 %v9801_v19, %s9147_s25  ;;  %1362 = vrot.lane.b32.xlu1 %v9805_v24, %s9147_s25 }
 0x18b   :  { %v992_v7 = vpop.permute.xlu0 %991  ;;  %v994_v11 = vpop.permute.xlu1 %993 }
 0x18c   :  { %1134 = vst.msk [vmem:[#allocation3 + $0x190] sm:$0xff] %vm1083_vm4, %v992_v7  ;;  %1135 = vst.msk [vmem:[#allocation3 + $0x198] sm:$0xff] %vm1083_vm4, %v994_v11  ;;  %v1551_v7 = vld [vmem:[#allocation2 + $0xf1] sm:$0xff]  ;;  %v1552_v11 = vld [vmem:[#allocation2 + $0xf9] sm:$0xff] }
 0x18d   :  { %1364 = vrot.lane.b32.xlu0 %v9811_v28, %s9147_s25  ;;  %1366 = vrot.lane.b32.xlu1 %v9815_v36, %s9147_s25 }
 0x18f   :  { %v996_v12 = vpop.permute.xlu0 %995  ;;  %v998_v16 = vpop.permute.xlu1 %997 }
 0x190   :  { %1136 = vst.msk [vmem:[#allocation3 + $0x1a0] sm:$0xff] %vm1083_vm4, %v996_v12  ;;  %1137 = vst.msk [vmem:[#allocation3 + $0x1a8] sm:$0xff] %vm1083_vm4, %v998_v16 }
 0x191   :  { %1368 = vrot.lane.b32.xlu0 %v9821_v41, %s9147_s25  ;;  %1370 = vrot.lane.b32.xlu1 %v9825_v52, %s9147_s25 }
 0x193   :  { %v1000_v19 = vpop.permute.xlu0 %999  ;;  %v1002_v24 = vpop.permute.xlu1 %1001 }
 0x194   :  { %1138 = vst.msk [vmem:[#allocation3 + $0x1b0] sm:$0xff] %vm1083_vm4, %v1000_v19  ;;  %1139 = vst.msk [vmem:[#allocation3 + $0x1b8] sm:$0xff] %vm1083_vm4, %v1002_v24  ;;  %v1553_v19 = vld [vmem:[#allocation2 + $0x109] sm:$0xff]  ;;  %v1554_v24 = vld [vmem:[#allocation2 + $0x111] sm:$0xff] }
 0x195   :  { %1372 = vrot.lane.b32.xlu0 %v9831_v57, %s9147_s25  ;;  %1374 = vrot.lane.b32.xlu1 %v9835_v60, %s9147_s25 }
 0x197   :  { %v1004_v28 = vpop.permute.xlu0 %1003  ;;  %v1006_v36 = vpop.permute.xlu1 %1005 }
 0x198   :  { %1140 = vst.msk [vmem:[#allocation3 + $0x1c0] sm:$0xff] %vm1083_vm4, %v1004_v28  ;;  %1141 = vst.msk [vmem:[#allocation3 + $0x1c8] sm:$0xff] %vm1083_vm4, %v1006_v36 }
 0x199   :  { %1376 = vrot.lane.b32.xlu0 %v9841_v0, %s9147_s25  ;;  %1378 = vrot.lane.b32.xlu1 %v9845_v5, %s9147_s25 }
 0x19b   :  { %v1008_v41 = vpop.permute.xlu0 %1007  ;;  %v1010_v52 = vpop.permute.xlu1 %1009 }
 0x19c   :  { %1142 = vst.msk [vmem:[#allocation3 + $0x1d0] sm:$0xff] %vm1083_vm4, %v1008_v41  ;;  %1143 = vst.msk [vmem:[#allocation3 + $0x1d8] sm:$0xff] %vm1083_vm4, %v1010_v52  ;;  %v1555_v41 = vld [vmem:[#allocation2 + $0x121] sm:$0xff]  ;;  %v1556_v52 = vld [vmem:[#allocation2 + $0x129] sm:$0xff] }
 0x19d   :  { %1380 = vrot.lane.b32.xlu0 %v9851_v9, %s9147_s25  ;;  %1382 = vrot.lane.b32.xlu1 %v9855_v15, %s9147_s25  ;;  %v13413_v9 = vld [vmem:[#allocation7_spill] sm:$0xff]  ;;  %v13414_v15 = vld [vmem:[#allocation8_spill] sm:$0xff] }
 0x19f   :  { %v1012_v57 = vpop.permute.xlu0 %1011  ;;  %v1014_v60 = vpop.permute.xlu1 %1013 }
 0x1a0   :  { %1144 = vst.msk [vmem:[#allocation3 + $0x1e0] sm:$0xff] %vm1083_vm4, %v1012_v57  ;;  %1145 = vst.msk [vmem:[#allocation3 + $0x1e8] sm:$0xff] %vm1083_vm4, %v1014_v60 }
 0x1a1   :  { %1384 = vrot.lane.b32.xlu0 %v9861_v20, %s9147_s25  ;;  %1386 = vrot.lane.b32.xlu1 %v9865_v33, %s9147_s25  ;;  %v13415_v20 = vld [vmem:[#allocation9_spill] sm:$0xff]  ;;  %v13416_v33 = vld [vmem:[#allocation10_spill] sm:$0xff] }
 0x1a3   :  { %v1016_v0 = vpop.permute.xlu0 %1015  ;;  %v1018_v5 = vpop.permute.xlu1 %1017 }
 0x1a4   :  { %1146 = vst.msk [vmem:[#allocation3 + $0x1f0] sm:$0xff] %vm1083_vm4, %v1016_v0  ;;  %1147 = vst.msk [vmem:[#allocation3 + $0x1f8] sm:$0xff] %vm1083_vm4, %v1018_v5  ;;  %v1557_v0 = vld [vmem:[#allocation2 + $0x139] sm:$0xff]  ;;  %v1558_v5 = vld [vmem:[#allocation2 + $0x141] sm:$0xff] }
 0x1a5   :  { %1388 = vrot.lane.b32.xlu0 %v13413_v9, %s9147_s25  ;;  %1390 = vrot.lane.b32.xlu1 %v13414_v15, %s9147_s25 }
 0x1a7   :  { %v1277_v59 = vpop.permute.xlu0 %1276  ;;  %v1279_v23 = vpop.permute.xlu1 %1278 }
 0x1a8   :  { %1469 = vst.msk [vmem:[#allocation3] sm:$0xff] %vm1468_vm5, %v1277_v59  ;;  %1470 = vst.msk [vmem:[#allocation3 + $0x8] sm:$0xff] %vm1468_vm5, %v1279_v23  ;;  %v1559_v59 = vld [vmem:[#allocation2 + $0x151] sm:$0xff]  ;;  %v1560_v23 = vld [vmem:[#allocation2 + $0x159] sm:$0xff] }
 0x1a9   :  { %1392 = vrot.lane.b32.xlu0 %v13415_v20, %s9147_s25  ;;  %1394 = vrot.lane.b32.xlu1 %v13416_v33, %s9147_s25 }
 0x1ab   :  { %v1281_v29 = vpop.permute.xlu0 %1280  ;;  %v1283_v49 = vpop.permute.xlu1 %1282 }
 0x1ac   :  { %1471 = vst.msk [vmem:[#allocation3 + $0x10] sm:$0xff] %vm1468_vm5, %v1281_v29  ;;  %1472 = vst.msk [vmem:[#allocation3 + $0x18] sm:$0xff] %vm1468_vm5, %v1283_v49  ;;  %v1561_v29 = vld [vmem:[#allocation2 + $0x169] sm:$0xff]  ;;  %v1562_v49 = vld [vmem:[#allocation2 + $0x171] sm:$0xff] }
 0x1ad   :  { %1396 = vrot.lane.b32.xlu0 %v13417_v4, %s9147_s25  ;;  %1398 = vrot.lane.b32.xlu1 %v13418_v44, %s9147_s25 }
 0x1af   :  { %v1285_v17 = vpop.permute.xlu0 %1284  ;;  %v1287_v18 = vpop.permute.xlu1 %1286 }
 0x1b0   :  { %1473 = vst.msk [vmem:[#allocation3 + $0x20] sm:$0xff] %vm1468_vm5, %v1285_v17  ;;  %1474 = vst.msk [vmem:[#allocation3 + $0x28] sm:$0xff] %vm1468_vm5, %v1287_v18 }
 0x1b1   :  { %1400 = vrot.lane.b32.xlu0 %v1210_v8, %s9147_s25  ;;  %1402 = vrot.lane.b32.xlu1 %v1211_v13, %s9147_s25  ;;  %v1563_v8 = vld [vmem:[#allocation2 + $0x181] sm:$0xff]  ;;  %v1564_v13 = vld [vmem:[#allocation2 + $0x189] sm:$0xff] }
 0x1b3   :  { %v1289_v25 = vpop.permute.xlu0 %1288  ;;  %v1291_v26 = vpop.permute.xlu1 %1290 }
 0x1b4   :  { %1475 = vst.msk [vmem:[#allocation3 + $0x30] sm:$0xff] %vm1468_vm5, %v1289_v25  ;;  %1476 = vst.msk [vmem:[#allocation3 + $0x38] sm:$0xff] %vm1468_vm5, %v1291_v26 }
 0x1b5   :  { %1661 = vrot.lane.b32.xlu0 %v1533_v21, %s9148_s26  ;;  %1663 = vrot.lane.b32.xlu1 %v1534_v22, %s9148_s26  ;;  %v1565_v21 = vld [vmem:[#allocation2 + $0x1c9] sm:$0xff]  ;;  %v1566_v22 = vld [vmem:[#allocation2 + $0x1d1] sm:$0xff] }
 0x1b7   :  { %v1293_v31 = vpop.permute.xlu0 %1292  ;;  %v1295_v32 = vpop.permute.xlu1 %1294 }
 0x1b8   :  { %1477 = vst.msk [vmem:[#allocation3 + $0x40] sm:$0xff] %vm1468_vm5, %v1293_v31  ;;  %1478 = vst.msk [vmem:[#allocation3 + $0x48] sm:$0xff] %vm1468_vm5, %v1295_v32 }
 0x1b9   :  { %1665 = vrot.lane.b32.xlu0 %v1535_v27, %s9148_s26  ;;  %1667 = vrot.lane.b32.xlu1 %v1536_v30, %s9148_s26  ;;  %v1567_v27 = vld [vmem:[#allocation2 + $0x1e1] sm:$0xff]  ;;  %v1568_v30 = vld [vmem:[#allocation2 + $0x1e9] sm:$0xff] }
 0x1bb   :  { %v1297_v37 = vpop.permute.xlu0 %1296  ;;  %v1299_v38 = vpop.permute.xlu1 %1298 }
 0x1bc   :  { %1479 = vst.msk [vmem:[#allocation3 + $0x50] sm:$0xff] %vm1468_vm5, %v1297_v37  ;;  %1480 = vst.msk [vmem:[#allocation3 + $0x58] sm:$0xff] %vm1468_vm5, %v1299_v38 }
 0x1bd   :  { %1669 = vrot.lane.b32.xlu0 %v1537_v34, %s9148_s26  ;;  %1671 = vrot.lane.b32.xlu1 %v1538_v35, %s9148_s26  ;;  %v1569_v34 = vld [vmem:[#allocation2 + $0x1f9] sm:$0xff]  ;;  %v1570_v35 = vld [vmem:[#allocation2 + $0x201] sm:$0xff] }
 0x1bf   :  { %v1301_v42 = vpop.permute.xlu0 %1300  ;;  %v1303_v43 = vpop.permute.xlu1 %1302 }
 0x1c0   :  { %1481 = vst.msk [vmem:[#allocation3 + $0x60] sm:$0xff] %vm1468_vm5, %v1301_v42  ;;  %1482 = vst.msk [vmem:[#allocation3 + $0x68] sm:$0xff] %vm1468_vm5, %v1303_v43 }
 0x1c1   :  { %1673 = vrot.lane.b32.xlu0 %v1539_v39, %s9148_s26  ;;  %1675 = vrot.lane.b32.xlu1 %v1540_v40, %s9148_s26  ;;  %v1571_v39 = vld [vmem:[#allocation2 + $0x211] sm:$0xff]  ;;  %v1572_v40 = vld [vmem:[#allocation2 + $0x219] sm:$0xff] }
 0x1c3   :  { %v1305_v47 = vpop.permute.xlu0 %1304  ;;  %v1307_v48 = vpop.permute.xlu1 %1306 }
 0x1c4   :  { %1483 = vst.msk [vmem:[#allocation3 + $0x70] sm:$0xff] %vm1468_vm5, %v1305_v47  ;;  %1484 = vst.msk [vmem:[#allocation3 + $0x78] sm:$0xff] %vm1468_vm5, %v1307_v48 }
 0x1c5   :  { %1677 = vrot.lane.b32.xlu0 %v1541_v45, %s9148_s26  ;;  %1679 = vrot.lane.b32.xlu1 %v1542_v46, %s9148_s26  ;;  %v1573_v45 = vld [vmem:[#allocation2 + $0x229] sm:$0xff]  ;;  %v1574_v46 = vld [vmem:[#allocation2 + $0x231] sm:$0xff] }
 0x1c7   :  { %v1309_v14 = vpop.permute.xlu0 %1308  ;;  %v1311_v58 = vpop.permute.xlu1 %1310 }
 0x1c8   :  { %1485 = vst.msk [vmem:[#allocation3 + $0x80] sm:$0xff] %vm1468_vm5, %v1309_v14  ;;  %1486 = vst.msk [vmem:[#allocation3 + $0x88] sm:$0xff] %vm1468_vm5, %v1311_v58 }
 0x1c9   :  { %1681 = vrot.lane.b32.xlu0 %v1543_v50, %s9148_s26  ;;  %1683 = vrot.lane.b32.xlu1 %v1544_v51, %s9148_s26  ;;  %v1575_v50 = vld [vmem:[#allocation2 + $0x241] sm:$0xff]  ;;  %v1576_v51 = vld [vmem:[#allocation2 + $0x249] sm:$0xff] }
 0x1cb   :  { %v1313_v55 = vpop.permute.xlu0 %1312  ;;  %v1315_v56 = vpop.permute.xlu1 %1314 }
 0x1cc   :  { %1487 = vst.msk [vmem:[#allocation3 + $0x90] sm:$0xff] %vm1468_vm5, %v1313_v55  ;;  %1488 = vst.msk [vmem:[#allocation3 + $0x98] sm:$0xff] %vm1468_vm5, %v1315_v56 }
 0x1cd   :  { %1685 = vrot.lane.b32.xlu0 %v1545_v53, %s9148_s26  ;;  %1687 = vrot.lane.b32.xlu1 %v1546_v54, %s9148_s26  ;;  %v1577_v53 = vld [vmem:[#allocation2 + $0x259] sm:$0xff]  ;;  %v1578_v54 = vld [vmem:[#allocation2 + $0x261] sm:$0xff] }
 0x1cf   :  { %v1317_v61 = vpop.permute.xlu0 %1316  ;;  %v1319_v62 = vpop.permute.xlu1 %1318 }
 0x1d0   :  { %1489 = vst.msk [vmem:[#allocation3 + $0xa0] sm:$0xff] %vm1468_vm5, %v1317_v61  ;;  %1490 = vst.msk [vmem:[#allocation3 + $0xa8] sm:$0xff] %vm1468_vm5, %v1319_v62 }
 0x1d1   :  { %1689 = vrot.lane.b32.xlu0 %v1547_v10, %s9148_s26  ;;  %1691 = vrot.lane.b32.xlu1 %v1548_v1, %s9148_s26  ;;  %v1579_v10 = vld [vmem:[#allocation2 + $0x271] sm:$0xff]  ;;  %v1580_v1 = vld [vmem:[#allocation2 + $0x279] sm:$0xff] }
 0x1d3   :  { %v1321_v3 = vpop.permute.xlu0 %1320  ;;  %v1323_v6 = vpop.permute.xlu1 %1322 }
 0x1d4   :  { %1491 = vst.msk [vmem:[#allocation3 + $0xb0] sm:$0xff] %vm1468_vm5, %v1321_v3  ;;  %1492 = vst.msk [vmem:[#allocation3 + $0xb8] sm:$0xff] %vm1468_vm5, %v1323_v6 }
 0x1d5   :  { %1693 = vrot.lane.b32.xlu0 %v1549_v63, %s9148_s26  ;;  %1695 = vrot.lane.b32.xlu1 %v1550_v2, %s9148_s26  ;;  %v1581_v63 = vld [vmem:[#allocation2 + $0x289] sm:$0xff]  ;;  %v1582_v2 = vld [vmem:[#allocation2 + $0x291] sm:$0xff] }
 0x1d7   :  { %v1325_v12 = vpop.permute.xlu0 %1324  ;;  %v1327_v16 = vpop.permute.xlu1 %1326 }
 0x1d8   :  { %1493 = vst.msk [vmem:[#allocation3 + $0xc0] sm:$0xff] %vm1468_vm5, %v1325_v12  ;;  %1494 = vst.msk [vmem:[#allocation3 + $0xc8] sm:$0xff] %vm1468_vm5, %v1327_v16 }
 0x1d9   :  { %1697 = vrot.lane.b32.xlu0 %v1551_v7, %s9148_s26  ;;  %1699 = vrot.lane.b32.xlu1 %v1552_v11, %s9148_s26  ;;  %v1583_v7 = vld [vmem:[#allocation2 + $0x2a1] sm:$0xff]  ;;  %v1584_v11 = vld [vmem:[#allocation2 + $0x2a9] sm:$0xff] }
 0x1db   :  { %v1329_v28 = vpop.permute.xlu0 %1328  ;;  %v1331_v36 = vpop.permute.xlu1 %1330 }
 0x1dc   :  { %1495 = vst.msk [vmem:[#allocation3 + $0xd0] sm:$0xff] %vm1468_vm5, %v1329_v28  ;;  %1496 = vst.msk [vmem:[#allocation3 + $0xd8] sm:$0xff] %vm1468_vm5, %v1331_v36 }
 0x1dd   :  { %1701 = vrot.lane.b32.xlu0 %v1553_v19, %s9148_s26  ;;  %1703 = vrot.lane.b32.xlu1 %v1554_v24, %s9148_s26  ;;  %v1585_v19 = vld [vmem:[#allocation2 + $0x2b9] sm:$0xff]  ;;  %v1586_v24 = vld [vmem:[#allocation2 + $0x2c1] sm:$0xff] }
 0x1df   :  { %v1333_v57 = vpop.permute.xlu0 %1332  ;;  %v1335_v60 = vpop.permute.xlu1 %1334 }
 0x1e0   :  { %1497 = vst.msk [vmem:[#allocation3 + $0xe0] sm:$0xff] %vm1468_vm5, %v1333_v57  ;;  %1498 = vst.msk [vmem:[#allocation3 + $0xe8] sm:$0xff] %vm1468_vm5, %v1335_v60 }
 0x1e1   :  { %1705 = vrot.lane.b32.xlu0 %v1555_v41, %s9148_s26  ;;  %1707 = vrot.lane.b32.xlu1 %v1556_v52, %s9148_s26  ;;  %v1587_v41 = vld [vmem:[#allocation2 + $0x2d1] sm:$0xff]  ;;  %v1588_v52 = vld [vmem:[#allocation2 + $0x2d9] sm:$0xff] }
 0x1e3   :  { %v1337_v9 = vpop.permute.xlu0 %1336  ;;  %v1339_v15 = vpop.permute.xlu1 %1338 }
 0x1e4   :  { %1499 = vst.msk [vmem:[#allocation3 + $0xf0] sm:$0xff] %vm1468_vm5, %v1337_v9  ;;  %1500 = vst.msk [vmem:[#allocation3 + $0xf8] sm:$0xff] %vm1468_vm5, %v1339_v15 }
 0x1e5   :  { %1709 = vrot.lane.b32.xlu0 %v1557_v0, %s9148_s26  ;;  %1711 = vrot.lane.b32.xlu1 %v1558_v5, %s9148_s26  ;;  %v1589_v0 = vld [vmem:[#allocation2 + $0x2e9] sm:$0xff]  ;;  %v1590_v5 = vld [vmem:[#allocation2 + $0x2f1] sm:$0xff] }
 0x1e7   :  { %v1341_v20 = vpop.permute.xlu0 %1340  ;;  %v1343_v33 = vpop.permute.xlu1 %1342 }
 0x1e8   :  { %1501 = vst.msk [vmem:[#allocation3 + $0x100] sm:$0xff] %vm1468_vm5, %v1341_v20  ;;  %1502 = vst.msk [vmem:[#allocation3 + $0x108] sm:$0xff] %vm1468_vm5, %v1343_v33 }
 0x1e9   :  { %1713 = vrot.lane.b32.xlu0 %v1559_v59, %s9148_s26  ;;  %1715 = vrot.lane.b32.xlu1 %v1560_v23, %s9148_s26  ;;  %v1591_v59 = vld [vmem:[#allocation2 + $0x301] sm:$0xff]  ;;  %v1592_v23 = vld [vmem:[#allocation2 + $0x309] sm:$0xff] }
 0x1eb   :  { %v1345_v4 = vpop.permute.xlu0 %1344  ;;  %v1347_v44 = vpop.permute.xlu1 %1346 }
 0x1ec   :  { %1503 = vst.msk [vmem:[#allocation3 + $0x110] sm:$0xff] %vm1468_vm5, %v1345_v4  ;;  %1504 = vst.msk [vmem:[#allocation3 + $0x118] sm:$0xff] %vm1468_vm5, %v1347_v44 }
 0x1ed   :  { %1717 = vrot.lane.b32.xlu0 %v1561_v29, %s9148_s26  ;;  %1719 = vrot.lane.b32.xlu1 %v1562_v49, %s9148_s26  ;;  %v1593_v29 = vld [vmem:[#allocation2 + $0x319] sm:$0xff]  ;;  %v1594_v49 = vld [vmem:[#allocation2 + $0x321] sm:$0xff] }
 0x1ef   :  { %v1349_v17 = vpop.permute.xlu0 %1348  ;;  %v1351_v18 = vpop.permute.xlu1 %1350 }
 0x1f0   :  { %1505 = vst.msk [vmem:[#allocation3 + $0x120] sm:$0xff] %vm1468_vm5, %v1349_v17  ;;  %1506 = vst.msk [vmem:[#allocation3 + $0x128] sm:$0xff] %vm1468_vm5, %v1351_v18 }
 0x1f1   :  { %1721 = vrot.lane.b32.xlu0 %v1563_v8, %s9148_s26  ;;  %1723 = vrot.lane.b32.xlu1 %v1564_v13, %s9148_s26  ;;  %v1595_v8 = vld [vmem:[#allocation2 + $0x331] sm:$0xff]  ;;  %v1596_v13 = vld [vmem:[#allocation2 + $0x339] sm:$0xff] }
 0x1f3   :  { %v1353_v25 = vpop.permute.xlu0 %1352  ;;  %v1355_v26 = vpop.permute.xlu1 %1354 }
 0x1f4   :  { %1507 = vst.msk [vmem:[#allocation3 + $0x130] sm:$0xff] %vm1468_vm5, %v1353_v25  ;;  %1508 = vst.msk [vmem:[#allocation3 + $0x138] sm:$0xff] %vm1468_vm5, %v1355_v26 }
 0x1f5   :  { %1725 = vrot.lane.b32.xlu0 %v1565_v21, %s9148_s26  ;;  %1727 = vrot.lane.b32.xlu1 %v1566_v22, %s9148_s26  ;;  %v1918_v21 = vld [vmem:[#allocation2 + $0x1a] sm:$0xff]  ;;  %v1919_v22 = vld [vmem:[#allocation2 + $0x22] sm:$0xff] }
 0x1f7   :  { %v1357_v31 = vpop.permute.xlu0 %1356  ;;  %v1359_v32 = vpop.permute.xlu1 %1358 }
 0x1f8   :  { %1509 = vst.msk [vmem:[#allocation3 + $0x140] sm:$0xff] %vm1468_vm5, %v1357_v31  ;;  %1510 = vst.msk [vmem:[#allocation3 + $0x148] sm:$0xff] %vm1468_vm5, %v1359_v32 }
 0x1f9   :  { %1729 = vrot.lane.b32.xlu0 %v1567_v27, %s9148_s26  ;;  %1731 = vrot.lane.b32.xlu1 %v1568_v30, %s9148_s26  ;;  %v1920_v27 = vld [vmem:[#allocation2 + $0x32] sm:$0xff]  ;;  %v1921_v30 = vld [vmem:[#allocation2 + $0x3a] sm:$0xff] }
 0x1fb   :  { %v1361_v37 = vpop.permute.xlu0 %1360  ;;  %v1363_v38 = vpop.permute.xlu1 %1362 }
 0x1fc   :  { %1511 = vst.msk [vmem:[#allocation3 + $0x150] sm:$0xff] %vm1468_vm5, %v1361_v37  ;;  %1512 = vst.msk [vmem:[#allocation3 + $0x158] sm:$0xff] %vm1468_vm5, %v1363_v38 }
 0x1fd   :  { %1733 = vrot.lane.b32.xlu0 %v1569_v34, %s9148_s26  ;;  %1735 = vrot.lane.b32.xlu1 %v1570_v35, %s9148_s26  ;;  %v1922_v34 = vld [vmem:[#allocation2 + $0x4a] sm:$0xff]  ;;  %v1923_v35 = vld [vmem:[#allocation2 + $0x52] sm:$0xff] }
 0x1ff   :  { %v1365_v42 = vpop.permute.xlu0 %1364  ;;  %v1367_v43 = vpop.permute.xlu1 %1366 }
 0x200   :  { %1513 = vst.msk [vmem:[#allocation3 + $0x160] sm:$0xff] %vm1468_vm5, %v1365_v42  ;;  %1514 = vst.msk [vmem:[#allocation3 + $0x168] sm:$0xff] %vm1468_vm5, %v1367_v43 }
 0x201   :  { %1737 = vrot.lane.b32.xlu0 %v1571_v39, %s9148_s26  ;;  %1739 = vrot.lane.b32.xlu1 %v1572_v40, %s9148_s26  ;;  %v1924_v39 = vld [vmem:[#allocation2 + $0x62] sm:$0xff]  ;;  %v1925_v40 = vld [vmem:[#allocation2 + $0x6a] sm:$0xff] }
 0x203   :  { %v1369_v47 = vpop.permute.xlu0 %1368  ;;  %v1371_v48 = vpop.permute.xlu1 %1370 }
 0x204   :  { %1515 = vst.msk [vmem:[#allocation3 + $0x170] sm:$0xff] %vm1468_vm5, %v1369_v47  ;;  %1516 = vst.msk [vmem:[#allocation3 + $0x178] sm:$0xff] %vm1468_vm5, %v1371_v48 }
 0x205   :  { %1741 = vrot.lane.b32.xlu0 %v1573_v45, %s9148_s26  ;;  %1743 = vrot.lane.b32.xlu1 %v1574_v46, %s9148_s26  ;;  %v1926_v45 = vld [vmem:[#allocation2 + $0x7a] sm:$0xff]  ;;  %v1927_v46 = vld [vmem:[#allocation2 + $0x82] sm:$0xff] }
 0x207   :  { %v1373_v14 = vpop.permute.xlu0 %1372  ;;  %v1375_v58 = vpop.permute.xlu1 %1374 }
 0x208   :  { %1517 = vst.msk [vmem:[#allocation3 + $0x180] sm:$0xff] %vm1468_vm5, %v1373_v14  ;;  %1518 = vst.msk [vmem:[#allocation3 + $0x188] sm:$0xff] %vm1468_vm5, %v1375_v58 }
 0x209   :  { %1745 = vrot.lane.b32.xlu0 %v1575_v50, %s9148_s26  ;;  %1747 = vrot.lane.b32.xlu1 %v1576_v51, %s9148_s26  ;;  %v1928_v50 = vld [vmem:[#allocation2 + $0x92] sm:$0xff]  ;;  %v1929_v51 = vld [vmem:[#allocation2 + $0x9a] sm:$0xff] }
 0x20b   :  { %v1377_v55 = vpop.permute.xlu0 %1376  ;;  %v1379_v56 = vpop.permute.xlu1 %1378 }
 0x20c   :  { %1519 = vst.msk [vmem:[#allocation3 + $0x190] sm:$0xff] %vm1468_vm5, %v1377_v55  ;;  %1520 = vst.msk [vmem:[#allocation3 + $0x198] sm:$0xff] %vm1468_vm5, %v1379_v56 }
 0x20d   :  { %1749 = vrot.lane.b32.xlu0 %v1577_v53, %s9148_s26  ;;  %1751 = vrot.lane.b32.xlu1 %v1578_v54, %s9148_s26  ;;  %v1930_v53 = vld [vmem:[#allocation2 + $0xaa] sm:$0xff]  ;;  %v1931_v54 = vld [vmem:[#allocation2 + $0xb2] sm:$0xff] }
 0x20f   :  { %v1381_v61 = vpop.permute.xlu0 %1380  ;;  %v1383_v62 = vpop.permute.xlu1 %1382 }
 0x210   :  { %1521 = vst.msk [vmem:[#allocation3 + $0x1a0] sm:$0xff] %vm1468_vm5, %v1381_v61  ;;  %1522 = vst.msk [vmem:[#allocation3 + $0x1a8] sm:$0xff] %vm1468_vm5, %v1383_v62 }
 0x211   :  { %1753 = vrot.lane.b32.xlu0 %v1579_v10, %s9148_s26  ;;  %1755 = vrot.lane.b32.xlu1 %v1580_v1, %s9148_s26  ;;  %v1932_v10 = vld [vmem:[#allocation2 + $0xc2] sm:$0xff]  ;;  %v1933_v1 = vld [vmem:[#allocation2 + $0xca] sm:$0xff] }
 0x213   :  { %v1385_v3 = vpop.permute.xlu0 %1384  ;;  %v1387_v6 = vpop.permute.xlu1 %1386 }
 0x214   :  { %1523 = vst.msk [vmem:[#allocation3 + $0x1b0] sm:$0xff] %vm1468_vm5, %v1385_v3  ;;  %1524 = vst.msk [vmem:[#allocation3 + $0x1b8] sm:$0xff] %vm1468_vm5, %v1387_v6 }
 0x215   :  { %1757 = vrot.lane.b32.xlu0 %v1581_v63, %s9148_s26  ;;  %1759 = vrot.lane.b32.xlu1 %v1582_v2, %s9148_s26  ;;  %v1934_v63 = vld [vmem:[#allocation2 + $0xda] sm:$0xff]  ;;  %v1935_v2 = vld [vmem:[#allocation2 + $0xe2] sm:$0xff] }
 0x217   :  { %v1389_v12 = vpop.permute.xlu0 %1388  ;;  %v1391_v16 = vpop.permute.xlu1 %1390 }
 0x218   :  { %1525 = vst.msk [vmem:[#allocation3 + $0x1c0] sm:$0xff] %vm1468_vm5, %v1389_v12  ;;  %1526 = vst.msk [vmem:[#allocation3 + $0x1c8] sm:$0xff] %vm1468_vm5, %v1391_v16 }
 0x219   :  { %1761 = vrot.lane.b32.xlu0 %v1583_v7, %s9148_s26  ;;  %1763 = vrot.lane.b32.xlu1 %v1584_v11, %s9148_s26  ;;  %v1936_v7 = vld [vmem:[#allocation2 + $0xf2] sm:$0xff]  ;;  %v1937_v11 = vld [vmem:[#allocation2 + $0xfa] sm:$0xff] }
 0x21b   :  { %v1393_v28 = vpop.permute.xlu0 %1392  ;;  %v1395_v36 = vpop.permute.xlu1 %1394 }
 0x21c   :  { %1527 = vst.msk [vmem:[#allocation3 + $0x1d0] sm:$0xff] %vm1468_vm5, %v1393_v28  ;;  %1528 = vst.msk [vmem:[#allocation3 + $0x1d8] sm:$0xff] %vm1468_vm5, %v1395_v36 }
 0x21d   :  { %1765 = vrot.lane.b32.xlu0 %v1585_v19, %s9148_s26  ;;  %1767 = vrot.lane.b32.xlu1 %v1586_v24, %s9148_s26  ;;  %v1938_v19 = vld [vmem:[#allocation2 + $0x10a] sm:$0xff]  ;;  %v1939_v24 = vld [vmem:[#allocation2 + $0x112] sm:$0xff] }
 0x21f   :  { %v1397_v57 = vpop.permute.xlu0 %1396  ;;  %v1399_v60 = vpop.permute.xlu1 %1398 }
 0x220   :  { %1529 = vst.msk [vmem:[#allocation3 + $0x1e0] sm:$0xff] %vm1468_vm5, %v1397_v57  ;;  %1530 = vst.msk [vmem:[#allocation3 + $0x1e8] sm:$0xff] %vm1468_vm5, %v1399_v60 }
 0x221   :  { %1769 = vrot.lane.b32.xlu0 %v1587_v41, %s9148_s26  ;;  %1771 = vrot.lane.b32.xlu1 %v1588_v52, %s9148_s26  ;;  %v1940_v41 = vld [vmem:[#allocation2 + $0x122] sm:$0xff]  ;;  %v1941_v52 = vld [vmem:[#allocation2 + $0x12a] sm:$0xff] }
 0x223   :  { %v1401_v9 = vpop.permute.xlu0 %1400  ;;  %v1403_v15 = vpop.permute.xlu1 %1402 }
 0x224   :  { %1531 = vst.msk [vmem:[#allocation3 + $0x1f0] sm:$0xff] %vm1468_vm5, %v1401_v9  ;;  %1532 = vst.msk [vmem:[#allocation3 + $0x1f8] sm:$0xff] %vm1468_vm5, %v1403_v15 }
 0x225   :  { %1773 = vrot.lane.b32.xlu0 %v1589_v0, %s9148_s26  ;;  %1775 = vrot.lane.b32.xlu1 %v1590_v5, %s9148_s26  ;;  %v1942_v0 = vld [vmem:[#allocation2 + $0x13a] sm:$0xff]  ;;  %v1943_v5 = vld [vmem:[#allocation2 + $0x142] sm:$0xff] }
 0x227   :  { %v1662_v20 = vpop.permute.xlu0 %1661  ;;  %v1664_v33 = vpop.permute.xlu1 %1663 }
 0x228   :  { %1854 = vst.msk [vmem:[#allocation3] sm:$0xff] %vm1853_vm6, %v1662_v20  ;;  %1855 = vst.msk [vmem:[#allocation3 + $0x8] sm:$0xff] %vm1853_vm6, %v1664_v33 }
 0x229   :  { %1777 = vrot.lane.b32.xlu0 %v1591_v59, %s9148_s26  ;;  %1779 = vrot.lane.b32.xlu1 %v1592_v23, %s9148_s26  ;;  %v1944_v59 = vld [vmem:[#allocation2 + $0x152] sm:$0xff]  ;;  %v1945_v23 = vld [vmem:[#allocation2 + $0x15a] sm:$0xff] }
 0x22b   :  { %v1666_v4 = vpop.permute.xlu0 %1665  ;;  %v1668_v44 = vpop.permute.xlu1 %1667 }
 0x22c   :  { %1856 = vst.msk [vmem:[#allocation3 + $0x10] sm:$0xff] %vm1853_vm6, %v1666_v4  ;;  %1857 = vst.msk [vmem:[#allocation3 + $0x18] sm:$0xff] %vm1853_vm6, %v1668_v44 }
 0x22d   :  { %1781 = vrot.lane.b32.xlu0 %v1593_v29, %s9148_s26  ;;  %1783 = vrot.lane.b32.xlu1 %v1594_v49, %s9148_s26  ;;  %v1946_v29 = vld [vmem:[#allocation2 + $0x16a] sm:$0xff]  ;;  %v1947_v49 = vld [vmem:[#allocation2 + $0x172] sm:$0xff] }
 0x22f   :  { %v1670_v17 = vpop.permute.xlu0 %1669  ;;  %v1672_v18 = vpop.permute.xlu1 %1671 }
 0x230   :  { %1858 = vst.msk [vmem:[#allocation3 + $0x20] sm:$0xff] %vm1853_vm6, %v1670_v17  ;;  %1859 = vst.msk [vmem:[#allocation3 + $0x28] sm:$0xff] %vm1853_vm6, %v1672_v18 }
 0x231   :  { %1785 = vrot.lane.b32.xlu0 %v1595_v8, %s9148_s26  ;;  %1787 = vrot.lane.b32.xlu1 %v1596_v13, %s9148_s26  ;;  %v1948_v8 = vld [vmem:[#allocation2 + $0x182] sm:$0xff]  ;;  %v1949_v13 = vld [vmem:[#allocation2 + $0x18a] sm:$0xff] }
 0x233   :  { %v1674_v25 = vpop.permute.xlu0 %1673  ;;  %v1676_v26 = vpop.permute.xlu1 %1675 }
 0x234   :  { %1860 = vst.msk [vmem:[#allocation3 + $0x30] sm:$0xff] %vm1853_vm6, %v1674_v25  ;;  %1861 = vst.msk [vmem:[#allocation3 + $0x38] sm:$0xff] %vm1853_vm6, %v1676_v26 }
 0x235   :  { %2046 = vrot.lane.b32.xlu0 %v1918_v21, %s9149_s27  ;;  %2048 = vrot.lane.b32.xlu1 %v1919_v22, %s9149_s27  ;;  %v1950_v21 = vld [vmem:[#allocation2 + $0x1ca] sm:$0xff]  ;;  %v1951_v22 = vld [vmem:[#allocation2 + $0x1d2] sm:$0xff] }
 0x237   :  { %v1678_v31 = vpop.permute.xlu0 %1677  ;;  %v1680_v32 = vpop.permute.xlu1 %1679 }
 0x238   :  { %1862 = vst.msk [vmem:[#allocation3 + $0x40] sm:$0xff] %vm1853_vm6, %v1678_v31  ;;  %1863 = vst.msk [vmem:[#allocation3 + $0x48] sm:$0xff] %vm1853_vm6, %v1680_v32 }
 0x239   :  { %2050 = vrot.lane.b32.xlu0 %v1920_v27, %s9149_s27  ;;  %2052 = vrot.lane.b32.xlu1 %v1921_v30, %s9149_s27  ;;  %v1952_v27 = vld [vmem:[#allocation2 + $0x1e2] sm:$0xff]  ;;  %v1953_v30 = vld [vmem:[#allocation2 + $0x1ea] sm:$0xff] }
 0x23b   :  { %v1682_v37 = vpop.permute.xlu0 %1681  ;;  %v1684_v38 = vpop.permute.xlu1 %1683 }
 0x23c   :  { %1864 = vst.msk [vmem:[#allocation3 + $0x50] sm:$0xff] %vm1853_vm6, %v1682_v37  ;;  %1865 = vst.msk [vmem:[#allocation3 + $0x58] sm:$0xff] %vm1853_vm6, %v1684_v38 }
 0x23d   :  { %2054 = vrot.lane.b32.xlu0 %v1922_v34, %s9149_s27  ;;  %2056 = vrot.lane.b32.xlu1 %v1923_v35, %s9149_s27  ;;  %v1954_v34 = vld [vmem:[#allocation2 + $0x1fa] sm:$0xff]  ;;  %v1955_v35 = vld [vmem:[#allocation2 + $0x202] sm:$0xff] }
 0x23f   :  { %v1686_v42 = vpop.permute.xlu0 %1685  ;;  %v1688_v43 = vpop.permute.xlu1 %1687 }
 0x240   :  { %1866 = vst.msk [vmem:[#allocation3 + $0x60] sm:$0xff] %vm1853_vm6, %v1686_v42  ;;  %1867 = vst.msk [vmem:[#allocation3 + $0x68] sm:$0xff] %vm1853_vm6, %v1688_v43 }
 0x241   :  { %2058 = vrot.lane.b32.xlu0 %v1924_v39, %s9149_s27  ;;  %2060 = vrot.lane.b32.xlu1 %v1925_v40, %s9149_s27  ;;  %v1956_v39 = vld [vmem:[#allocation2 + $0x212] sm:$0xff]  ;;  %v1957_v40 = vld [vmem:[#allocation2 + $0x21a] sm:$0xff] }
 0x243   :  { %v1690_v47 = vpop.permute.xlu0 %1689  ;;  %v1692_v48 = vpop.permute.xlu1 %1691 }
 0x244   :  { %1868 = vst.msk [vmem:[#allocation3 + $0x70] sm:$0xff] %vm1853_vm6, %v1690_v47  ;;  %1869 = vst.msk [vmem:[#allocation3 + $0x78] sm:$0xff] %vm1853_vm6, %v1692_v48 }
 0x245   :  { %2062 = vrot.lane.b32.xlu0 %v1926_v45, %s9149_s27  ;;  %2064 = vrot.lane.b32.xlu1 %v1927_v46, %s9149_s27  ;;  %v1958_v45 = vld [vmem:[#allocation2 + $0x22a] sm:$0xff]  ;;  %v1959_v46 = vld [vmem:[#allocation2 + $0x232] sm:$0xff] }
 0x247   :  { %v1694_v14 = vpop.permute.xlu0 %1693  ;;  %v1696_v58 = vpop.permute.xlu1 %1695 }
 0x248   :  { %1870 = vst.msk [vmem:[#allocation3 + $0x80] sm:$0xff] %vm1853_vm6, %v1694_v14  ;;  %1871 = vst.msk [vmem:[#allocation3 + $0x88] sm:$0xff] %vm1853_vm6, %v1696_v58 }
 0x249   :  { %2066 = vrot.lane.b32.xlu0 %v1928_v50, %s9149_s27  ;;  %2068 = vrot.lane.b32.xlu1 %v1929_v51, %s9149_s27  ;;  %v1960_v50 = vld [vmem:[#allocation2 + $0x242] sm:$0xff]  ;;  %v1961_v51 = vld [vmem:[#allocation2 + $0x24a] sm:$0xff] }
 0x24b   :  { %v1698_v55 = vpop.permute.xlu0 %1697  ;;  %v1700_v56 = vpop.permute.xlu1 %1699 }
 0x24c   :  { %1872 = vst.msk [vmem:[#allocation3 + $0x90] sm:$0xff] %vm1853_vm6, %v1698_v55  ;;  %1873 = vst.msk [vmem:[#allocation3 + $0x98] sm:$0xff] %vm1853_vm6, %v1700_v56 }
 0x24d   :  { %2070 = vrot.lane.b32.xlu0 %v1930_v53, %s9149_s27  ;;  %2072 = vrot.lane.b32.xlu1 %v1931_v54, %s9149_s27  ;;  %v1962_v53 = vld [vmem:[#allocation2 + $0x25a] sm:$0xff]  ;;  %v1963_v54 = vld [vmem:[#allocation2 + $0x262] sm:$0xff] }
 0x24f   :  { %v1702_v61 = vpop.permute.xlu0 %1701  ;;  %v1704_v62 = vpop.permute.xlu1 %1703 }
 0x250   :  { %1874 = vst.msk [vmem:[#allocation3 + $0xa0] sm:$0xff] %vm1853_vm6, %v1702_v61  ;;  %1875 = vst.msk [vmem:[#allocation3 + $0xa8] sm:$0xff] %vm1853_vm6, %v1704_v62 }
 0x251   :  { %2074 = vrot.lane.b32.xlu0 %v1932_v10, %s9149_s27  ;;  %2076 = vrot.lane.b32.xlu1 %v1933_v1, %s9149_s27  ;;  %v1964_v10 = vld [vmem:[#allocation2 + $0x272] sm:$0xff]  ;;  %v1965_v1 = vld [vmem:[#allocation2 + $0x27a] sm:$0xff] }
 0x253   :  { %v1706_v3 = vpop.permute.xlu0 %1705  ;;  %v1708_v6 = vpop.permute.xlu1 %1707 }
 0x254   :  { %1876 = vst.msk [vmem:[#allocation3 + $0xb0] sm:$0xff] %vm1853_vm6, %v1706_v3  ;;  %1877 = vst.msk [vmem:[#allocation3 + $0xb8] sm:$0xff] %vm1853_vm6, %v1708_v6 }
 0x255   :  { %2078 = vrot.lane.b32.xlu0 %v1934_v63, %s9149_s27  ;;  %2080 = vrot.lane.b32.xlu1 %v1935_v2, %s9149_s27  ;;  %v1966_v63 = vld [vmem:[#allocation2 + $0x28a] sm:$0xff]  ;;  %v1967_v2 = vld [vmem:[#allocation2 + $0x292] sm:$0xff] }
 0x257   :  { %v1710_v12 = vpop.permute.xlu0 %1709  ;;  %v1712_v16 = vpop.permute.xlu1 %1711 }
 0x258   :  { %1878 = vst.msk [vmem:[#allocation3 + $0xc0] sm:$0xff] %vm1853_vm6, %v1710_v12  ;;  %1879 = vst.msk [vmem:[#allocation3 + $0xc8] sm:$0xff] %vm1853_vm6, %v1712_v16 }
 0x259   :  { %2082 = vrot.lane.b32.xlu0 %v1936_v7, %s9149_s27  ;;  %2084 = vrot.lane.b32.xlu1 %v1937_v11, %s9149_s27  ;;  %v1968_v7 = vld [vmem:[#allocation2 + $0x2a2] sm:$0xff]  ;;  %v1969_v11 = vld [vmem:[#allocation2 + $0x2aa] sm:$0xff] }
 0x25b   :  { %v1714_v28 = vpop.permute.xlu0 %1713  ;;  %v1716_v36 = vpop.permute.xlu1 %1715 }
 0x25c   :  { %1880 = vst.msk [vmem:[#allocation3 + $0xd0] sm:$0xff] %vm1853_vm6, %v1714_v28  ;;  %1881 = vst.msk [vmem:[#allocation3 + $0xd8] sm:$0xff] %vm1853_vm6, %v1716_v36 }
 0x25d   :  { %2086 = vrot.lane.b32.xlu0 %v1938_v19, %s9149_s27  ;;  %2088 = vrot.lane.b32.xlu1 %v1939_v24, %s9149_s27  ;;  %v1970_v19 = vld [vmem:[#allocation2 + $0x2ba] sm:$0xff]  ;;  %v1971_v24 = vld [vmem:[#allocation2 + $0x2c2] sm:$0xff] }
 0x25f   :  { %v1718_v57 = vpop.permute.xlu0 %1717  ;;  %v1720_v60 = vpop.permute.xlu1 %1719 }
 0x260   :  { %1882 = vst.msk [vmem:[#allocation3 + $0xe0] sm:$0xff] %vm1853_vm6, %v1718_v57  ;;  %1883 = vst.msk [vmem:[#allocation3 + $0xe8] sm:$0xff] %vm1853_vm6, %v1720_v60 }
 0x261   :  { %2090 = vrot.lane.b32.xlu0 %v1940_v41, %s9149_s27  ;;  %2092 = vrot.lane.b32.xlu1 %v1941_v52, %s9149_s27  ;;  %v1972_v41 = vld [vmem:[#allocation2 + $0x2d2] sm:$0xff]  ;;  %v1973_v52 = vld [vmem:[#allocation2 + $0x2da] sm:$0xff] }
 0x263   :  { %v1722_v9 = vpop.permute.xlu0 %1721  ;;  %v1724_v15 = vpop.permute.xlu1 %1723 }
 0x264   :  { %1884 = vst.msk [vmem:[#allocation3 + $0xf0] sm:$0xff] %vm1853_vm6, %v1722_v9  ;;  %1885 = vst.msk [vmem:[#allocation3 + $0xf8] sm:$0xff] %vm1853_vm6, %v1724_v15 }
 0x265   :  { %2094 = vrot.lane.b32.xlu0 %v1942_v0, %s9149_s27  ;;  %2096 = vrot.lane.b32.xlu1 %v1943_v5, %s9149_s27  ;;  %v1974_v0 = vld [vmem:[#allocation2 + $0x2ea] sm:$0xff]  ;;  %v1975_v5 = vld [vmem:[#allocation2 + $0x2f2] sm:$0xff] }
 0x267   :  { %v1726_v20 = vpop.permute.xlu0 %1725  ;;  %v1728_v33 = vpop.permute.xlu1 %1727 }
 0x268   :  { %1886 = vst.msk [vmem:[#allocation3 + $0x100] sm:$0xff] %vm1853_vm6, %v1726_v20  ;;  %1887 = vst.msk [vmem:[#allocation3 + $0x108] sm:$0xff] %vm1853_vm6, %v1728_v33 }
 0x269   :  { %2098 = vrot.lane.b32.xlu0 %v1944_v59, %s9149_s27  ;;  %2100 = vrot.lane.b32.xlu1 %v1945_v23, %s9149_s27  ;;  %v1976_v59 = vld [vmem:[#allocation2 + $0x302] sm:$0xff]  ;;  %v1977_v23 = vld [vmem:[#allocation2 + $0x30a] sm:$0xff] }
 0x26b   :  { %v1730_v4 = vpop.permute.xlu0 %1729  ;;  %v1732_v44 = vpop.permute.xlu1 %1731 }
 0x26c   :  { %1888 = vst.msk [vmem:[#allocation3 + $0x110] sm:$0xff] %vm1853_vm6, %v1730_v4  ;;  %1889 = vst.msk [vmem:[#allocation3 + $0x118] sm:$0xff] %vm1853_vm6, %v1732_v44 }
 0x26d   :  { %2102 = vrot.lane.b32.xlu0 %v1946_v29, %s9149_s27  ;;  %2104 = vrot.lane.b32.xlu1 %v1947_v49, %s9149_s27  ;;  %v1978_v29 = vld [vmem:[#allocation2 + $0x31a] sm:$0xff]  ;;  %v1979_v49 = vld [vmem:[#allocation2 + $0x322] sm:$0xff] }
 0x26f   :  { %v1734_v17 = vpop.permute.xlu0 %1733  ;;  %v1736_v18 = vpop.permute.xlu1 %1735 }
 0x270   :  { %1890 = vst.msk [vmem:[#allocation3 + $0x120] sm:$0xff] %vm1853_vm6, %v1734_v17  ;;  %1891 = vst.msk [vmem:[#allocation3 + $0x128] sm:$0xff] %vm1853_vm6, %v1736_v18 }
 0x271   :  { %2106 = vrot.lane.b32.xlu0 %v1948_v8, %s9149_s27  ;;  %2108 = vrot.lane.b32.xlu1 %v1949_v13, %s9149_s27  ;;  %v1980_v8 = vld [vmem:[#allocation2 + $0x332] sm:$0xff]  ;;  %v1981_v13 = vld [vmem:[#allocation2 + $0x33a] sm:$0xff] }
 0x273   :  { %v1738_v25 = vpop.permute.xlu0 %1737  ;;  %v1740_v26 = vpop.permute.xlu1 %1739 }
 0x274   :  { %1892 = vst.msk [vmem:[#allocation3 + $0x130] sm:$0xff] %vm1853_vm6, %v1738_v25  ;;  %1893 = vst.msk [vmem:[#allocation3 + $0x138] sm:$0xff] %vm1853_vm6, %v1740_v26 }
 0x275   :  { %2110 = vrot.lane.b32.xlu0 %v1950_v21, %s9149_s27  ;;  %2112 = vrot.lane.b32.xlu1 %v1951_v22, %s9149_s27  ;;  %v2304_v21 = vld [vmem:[#allocation2 + $0x30] sm:$0xff]  ;;  %v2305_v22 = vld [vmem:[#allocation2 + $0x38] sm:$0xff] }
 0x277   :  { %v1742_v31 = vpop.permute.xlu0 %1741  ;;  %v1744_v32 = vpop.permute.xlu1 %1743 }
 0x278   :  { %1894 = vst.msk [vmem:[#allocation3 + $0x140] sm:$0xff] %vm1853_vm6, %v1742_v31  ;;  %1895 = vst.msk [vmem:[#allocation3 + $0x148] sm:$0xff] %vm1853_vm6, %v1744_v32 }
 0x279   :  { %2114 = vrot.lane.b32.xlu0 %v1952_v27, %s9149_s27  ;;  %2116 = vrot.lane.b32.xlu1 %v1953_v30, %s9149_s27  ;;  %v2306_v27 = vld [vmem:[#allocation2 + $0x48] sm:$0xff]  ;;  %v2307_v30 = vld [vmem:[#allocation2 + $0x50] sm:$0xff] }
 0x27b   :  { %v1746_v37 = vpop.permute.xlu0 %1745  ;;  %v1748_v38 = vpop.permute.xlu1 %1747 }
 0x27c   :  { %1896 = vst.msk [vmem:[#allocation3 + $0x150] sm:$0xff] %vm1853_vm6, %v1746_v37  ;;  %1897 = vst.msk [vmem:[#allocation3 + $0x158] sm:$0xff] %vm1853_vm6, %v1748_v38 }
 0x27d   :  { %2118 = vrot.lane.b32.xlu0 %v1954_v34, %s9149_s27  ;;  %2120 = vrot.lane.b32.xlu1 %v1955_v35, %s9149_s27  ;;  %v2308_v34 = vld [vmem:[#allocation2 + $0x60] sm:$0xff]  ;;  %v2309_v35 = vld [vmem:[#allocation2 + $0x68] sm:$0xff] }
 0x27f   :  { %v1750_v42 = vpop.permute.xlu0 %1749  ;;  %v1752_v43 = vpop.permute.xlu1 %1751 }
 0x280   :  { %1898 = vst.msk [vmem:[#allocation3 + $0x160] sm:$0xff] %vm1853_vm6, %v1750_v42  ;;  %1899 = vst.msk [vmem:[#allocation3 + $0x168] sm:$0xff] %vm1853_vm6, %v1752_v43 }
 0x281   :  { %2122 = vrot.lane.b32.xlu0 %v1956_v39, %s9149_s27  ;;  %2124 = vrot.lane.b32.xlu1 %v1957_v40, %s9149_s27  ;;  %v2310_v39 = vld [vmem:[#allocation2 + $0x78] sm:$0xff]  ;;  %v2311_v40 = vld [vmem:[#allocation2 + $0x80] sm:$0xff] }
 0x283   :  { %v1754_v47 = vpop.permute.xlu0 %1753  ;;  %v1756_v48 = vpop.permute.xlu1 %1755 }
 0x284   :  { %1900 = vst.msk [vmem:[#allocation3 + $0x170] sm:$0xff] %vm1853_vm6, %v1754_v47  ;;  %1901 = vst.msk [vmem:[#allocation3 + $0x178] sm:$0xff] %vm1853_vm6, %v1756_v48 }
 0x285   :  { %2126 = vrot.lane.b32.xlu0 %v1958_v45, %s9149_s27  ;;  %2128 = vrot.lane.b32.xlu1 %v1959_v46, %s9149_s27  ;;  %v2312_v45 = vld [vmem:[#allocation2 + $0x90] sm:$0xff]  ;;  %v2313_v46 = vld [vmem:[#allocation2 + $0x98] sm:$0xff] }
 0x287   :  { %v1758_v14 = vpop.permute.xlu0 %1757  ;;  %v1760_v58 = vpop.permute.xlu1 %1759 }
 0x288   :  { %1902 = vst.msk [vmem:[#allocation3 + $0x180] sm:$0xff] %vm1853_vm6, %v1758_v14  ;;  %1903 = vst.msk [vmem:[#allocation3 + $0x188] sm:$0xff] %vm1853_vm6, %v1760_v58 }
 0x289   :  { %2130 = vrot.lane.b32.xlu0 %v1960_v50, %s9149_s27  ;;  %2132 = vrot.lane.b32.xlu1 %v1961_v51, %s9149_s27  ;;  %v2314_v50 = vld [vmem:[#allocation2 + $0xa8] sm:$0xff]  ;;  %v2315_v51 = vld [vmem:[#allocation2 + $0xb0] sm:$0xff] }
 0x28b   :  { %v1762_v55 = vpop.permute.xlu0 %1761  ;;  %v1764_v56 = vpop.permute.xlu1 %1763 }
 0x28c   :  { %1904 = vst.msk [vmem:[#allocation3 + $0x190] sm:$0xff] %vm1853_vm6, %v1762_v55  ;;  %1905 = vst.msk [vmem:[#allocation3 + $0x198] sm:$0xff] %vm1853_vm6, %v1764_v56 }
 0x28d   :  { %2134 = vrot.lane.b32.xlu0 %v1962_v53, %s9149_s27  ;;  %2136 = vrot.lane.b32.xlu1 %v1963_v54, %s9149_s27  ;;  %v2316_v53 = vld [vmem:[#allocation2 + $0xc0] sm:$0xff]  ;;  %v2317_v54 = vld [vmem:[#allocation2 + $0xc8] sm:$0xff] }
 0x28f   :  { %v1766_v61 = vpop.permute.xlu0 %1765  ;;  %v1768_v62 = vpop.permute.xlu1 %1767 }
 0x290   :  { %1906 = vst.msk [vmem:[#allocation3 + $0x1a0] sm:$0xff] %vm1853_vm6, %v1766_v61  ;;  %1907 = vst.msk [vmem:[#allocation3 + $0x1a8] sm:$0xff] %vm1853_vm6, %v1768_v62 }
 0x291   :  { %2138 = vrot.lane.b32.xlu0 %v1964_v10, %s9149_s27  ;;  %2140 = vrot.lane.b32.xlu1 %v1965_v1, %s9149_s27  ;;  %v2318_v10 = vld [vmem:[#allocation2 + $0xd8] sm:$0xff]  ;;  %v2319_v1 = vld [vmem:[#allocation2 + $0xe0] sm:$0xff] }
 0x293   :  { %v1770_v3 = vpop.permute.xlu0 %1769  ;;  %v1772_v6 = vpop.permute.xlu1 %1771 }
 0x294   :  { %1908 = vst.msk [vmem:[#allocation3 + $0x1b0] sm:$0xff] %vm1853_vm6, %v1770_v3  ;;  %1909 = vst.msk [vmem:[#allocation3 + $0x1b8] sm:$0xff] %vm1853_vm6, %v1772_v6 }
 0x295   :  { %2142 = vrot.lane.b32.xlu0 %v1966_v63, %s9149_s27  ;;  %2144 = vrot.lane.b32.xlu1 %v1967_v2, %s9149_s27  ;;  %v2320_v63 = vld [vmem:[#allocation2 + $0xf0] sm:$0xff]  ;;  %v2321_v2 = vld [vmem:[#allocation2 + $0xf8] sm:$0xff] }
 0x297   :  { %v1774_v12 = vpop.permute.xlu0 %1773  ;;  %v1776_v16 = vpop.permute.xlu1 %1775 }
 0x298   :  { %1910 = vst.msk [vmem:[#allocation3 + $0x1c0] sm:$0xff] %vm1853_vm6, %v1774_v12  ;;  %1911 = vst.msk [vmem:[#allocation3 + $0x1c8] sm:$0xff] %vm1853_vm6, %v1776_v16 }
 0x299   :  { %2146 = vrot.lane.b32.xlu0 %v1968_v7, %s9149_s27  ;;  %2148 = vrot.lane.b32.xlu1 %v1969_v11, %s9149_s27  ;;  %v2322_v7 = vld [vmem:[#allocation2 + $0x108] sm:$0xff]  ;;  %v2323_v11 = vld [vmem:[#allocation2 + $0x110] sm:$0xff] }
 0x29b   :  { %v1778_v28 = vpop.permute.xlu0 %1777  ;;  %v1780_v36 = vpop.permute.xlu1 %1779 }
 0x29c   :  { %1912 = vst.msk [vmem:[#allocation3 + $0x1d0] sm:$0xff] %vm1853_vm6, %v1778_v28  ;;  %1913 = vst.msk [vmem:[#allocation3 + $0x1d8] sm:$0xff] %vm1853_vm6, %v1780_v36 }
 0x29d   :  { %2150 = vrot.lane.b32.xlu0 %v1970_v19, %s9149_s27  ;;  %2152 = vrot.lane.b32.xlu1 %v1971_v24, %s9149_s27  ;;  %v2324_v19 = vld [vmem:[#allocation2 + $0x120] sm:$0xff]  ;;  %v2325_v24 = vld [vmem:[#allocation2 + $0x128] sm:$0xff] }
 0x29f   :  { %v1782_v57 = vpop.permute.xlu0 %1781  ;;  %v1784_v60 = vpop.permute.xlu1 %1783 }
 0x2a0   :  { %1914 = vst.msk [vmem:[#allocation3 + $0x1e0] sm:$0xff] %vm1853_vm6, %v1782_v57  ;;  %1915 = vst.msk [vmem:[#allocation3 + $0x1e8] sm:$0xff] %vm1853_vm6, %v1784_v60 }
 0x2a1   :  { %2154 = vrot.lane.b32.xlu0 %v1972_v41, %s9149_s27  ;;  %2156 = vrot.lane.b32.xlu1 %v1973_v52, %s9149_s27  ;;  %v2326_v41 = vld [vmem:[#allocation2 + $0x138] sm:$0xff]  ;;  %v2327_v52 = vld [vmem:[#allocation2 + $0x140] sm:$0xff] }
 0x2a3   :  { %v1786_v9 = vpop.permute.xlu0 %1785  ;;  %v1788_v15 = vpop.permute.xlu1 %1787 }
 0x2a4   :  { %1916 = vst.msk [vmem:[#allocation3 + $0x1f0] sm:$0xff] %vm1853_vm6, %v1786_v9  ;;  %1917 = vst.msk [vmem:[#allocation3 + $0x1f8] sm:$0xff] %vm1853_vm6, %v1788_v15 }
 0x2a5   :  { %2158 = vrot.lane.b32.xlu0 %v1974_v0, %s9149_s27  ;;  %2160 = vrot.lane.b32.xlu1 %v1975_v5, %s9149_s27  ;;  %v2328_v0 = vld [vmem:[#allocation2 + $0x150] sm:$0xff]  ;;  %v2329_v5 = vld [vmem:[#allocation2 + $0x158] sm:$0xff] }
 0x2a7   :  { %v2047_v20 = vpop.permute.xlu0 %2046  ;;  %v2049_v33 = vpop.permute.xlu1 %2048 }
 0x2a8   :  { %2239 = vst.msk [vmem:[#allocation3] sm:$0xff] %vm2238_vm7, %v2047_v20  ;;  %2240 = vst.msk [vmem:[#allocation3 + $0x8] sm:$0xff] %vm2238_vm7, %v2049_v33 }
 0x2a9   :  { %2162 = vrot.lane.b32.xlu0 %v1976_v59, %s9149_s27  ;;  %2164 = vrot.lane.b32.xlu1 %v1977_v23, %s9149_s27  ;;  %v2330_v59 = vld [vmem:[#allocation2 + $0x168] sm:$0xff]  ;;  %v2331_v23 = vld [vmem:[#allocation2 + $0x170] sm:$0xff] }
 0x2ab   :  { %v2051_v4 = vpop.permute.xlu0 %2050  ;;  %v2053_v44 = vpop.permute.xlu1 %2052 }
 0x2ac   :  { %2241 = vst.msk [vmem:[#allocation3 + $0x10] sm:$0xff] %vm2238_vm7, %v2051_v4  ;;  %2242 = vst.msk [vmem:[#allocation3 + $0x18] sm:$0xff] %vm2238_vm7, %v2053_v44 }
 0x2ad   :  { %2166 = vrot.lane.b32.xlu0 %v1978_v29, %s9149_s27  ;;  %2168 = vrot.lane.b32.xlu1 %v1979_v49, %s9149_s27  ;;  %v2332_v29 = vld [vmem:[#allocation2 + $0x180] sm:$0xff]  ;;  %v2333_v49 = vld [vmem:[#allocation2 + $0x188] sm:$0xff] }
 0x2af   :  { %v2055_v17 = vpop.permute.xlu0 %2054  ;;  %v2057_v18 = vpop.permute.xlu1 %2056 }
 0x2b0   :  { %2243 = vst.msk [vmem:[#allocation3 + $0x20] sm:$0xff] %vm2238_vm7, %v2055_v17  ;;  %2244 = vst.msk [vmem:[#allocation3 + $0x28] sm:$0xff] %vm2238_vm7, %v2057_v18 }
 0x2b1   :  { %2170 = vrot.lane.b32.xlu0 %v1980_v8, %s9149_s27  ;;  %2172 = vrot.lane.b32.xlu1 %v1981_v13, %s9149_s27  ;;  %v2334_v8 = vld [vmem:[#allocation2 + $0x198] sm:$0xff]  ;;  %v2335_v13 = vld [vmem:[#allocation2 + $0x1a0] sm:$0xff] }
 0x2b3   :  { %v2059_v25 = vpop.permute.xlu0 %2058  ;;  %v2061_v26 = vpop.permute.xlu1 %2060 }
 0x2b4   :  { %2245 = vst.msk [vmem:[#allocation3 + $0x30] sm:$0xff] %vm2238_vm7, %v2059_v25  ;;  %2246 = vst.msk [vmem:[#allocation3 + $0x38] sm:$0xff] %vm2238_vm7, %v2061_v26 }
 0x2b5   :  { %2432 = vrot.lane.b32.xlu0 %v2304_v21, %s9150_s28  ;;  %2434 = vrot.lane.b32.xlu1 %v2305_v22, %s9150_s28  ;;  %v2336_v21 = vld [vmem:[#allocation2 + $0x1e0] sm:$0xff]  ;;  %v2337_v22 = vld [vmem:[#allocation2 + $0x1e8] sm:$0xff] }
 0x2b7   :  { %v2063_v31 = vpop.permute.xlu0 %2062  ;;  %v2065_v32 = vpop.permute.xlu1 %2064 }
 0x2b8   :  { %2247 = vst.msk [vmem:[#allocation3 + $0x40] sm:$0xff] %vm2238_vm7, %v2063_v31  ;;  %2248 = vst.msk [vmem:[#allocation3 + $0x48] sm:$0xff] %vm2238_vm7, %v2065_v32 }
 0x2b9   :  { %2436 = vrot.lane.b32.xlu0 %v2306_v27, %s9150_s28  ;;  %2438 = vrot.lane.b32.xlu1 %v2307_v30, %s9150_s28  ;;  %v2338_v27 = vld [vmem:[#allocation2 + $0x1f8] sm:$0xff]  ;;  %v2339_v30 = vld [vmem:[#allocation2 + $0x200] sm:$0xff] }
 0x2bb   :  { %v2067_v37 = vpop.permute.xlu0 %2066  ;;  %v2069_v38 = vpop.permute.xlu1 %2068 }
 0x2bc   :  { %2249 = vst.msk [vmem:[#allocation3 + $0x50] sm:$0xff] %vm2238_vm7, %v2067_v37  ;;  %2250 = vst.msk [vmem:[#allocation3 + $0x58] sm:$0xff] %vm2238_vm7, %v2069_v38 }
 0x2bd   :  { %2440 = vrot.lane.b32.xlu0 %v2308_v34, %s9150_s28  ;;  %2442 = vrot.lane.b32.xlu1 %v2309_v35, %s9150_s28  ;;  %v2340_v34 = vld [vmem:[#allocation2 + $0x210] sm:$0xff]  ;;  %v2341_v35 = vld [vmem:[#allocation2 + $0x218] sm:$0xff] }
 0x2bf   :  { %v2071_v42 = vpop.permute.xlu0 %2070  ;;  %v2073_v43 = vpop.permute.xlu1 %2072 }
 0x2c0   :  { %2251 = vst.msk [vmem:[#allocation3 + $0x60] sm:$0xff] %vm2238_vm7, %v2071_v42  ;;  %2252 = vst.msk [vmem:[#allocation3 + $0x68] sm:$0xff] %vm2238_vm7, %v2073_v43 }
 0x2c1   :  { %2444 = vrot.lane.b32.xlu0 %v2310_v39, %s9150_s28  ;;  %2446 = vrot.lane.b32.xlu1 %v2311_v40, %s9150_s28  ;;  %v2342_v39 = vld [vmem:[#allocation2 + $0x228] sm:$0xff]  ;;  %v2343_v40 = vld [vmem:[#allocation2 + $0x230] sm:$0xff] }
 0x2c3   :  { %v2075_v47 = vpop.permute.xlu0 %2074  ;;  %v2077_v48 = vpop.permute.xlu1 %2076 }
 0x2c4   :  { %2253 = vst.msk [vmem:[#allocation3 + $0x70] sm:$0xff] %vm2238_vm7, %v2075_v47  ;;  %2254 = vst.msk [vmem:[#allocation3 + $0x78] sm:$0xff] %vm2238_vm7, %v2077_v48 }
 0x2c5   :  { %2448 = vrot.lane.b32.xlu0 %v2312_v45, %s9150_s28  ;;  %2450 = vrot.lane.b32.xlu1 %v2313_v46, %s9150_s28  ;;  %v2344_v45 = vld [vmem:[#allocation2 + $0x240] sm:$0xff]  ;;  %v2345_v46 = vld [vmem:[#allocation2 + $0x248] sm:$0xff] }
 0x2c7   :  { %v2079_v14 = vpop.permute.xlu0 %2078  ;;  %v2081_v58 = vpop.permute.xlu1 %2080 }
 0x2c8   :  { %2255 = vst.msk [vmem:[#allocation3 + $0x80] sm:$0xff] %vm2238_vm7, %v2079_v14  ;;  %2256 = vst.msk [vmem:[#allocation3 + $0x88] sm:$0xff] %vm2238_vm7, %v2081_v58 }
 0x2c9   :  { %2452 = vrot.lane.b32.xlu0 %v2314_v50, %s9150_s28  ;;  %2454 = vrot.lane.b32.xlu1 %v2315_v51, %s9150_s28  ;;  %v2346_v50 = vld [vmem:[#allocation2 + $0x258] sm:$0xff]  ;;  %v2347_v51 = vld [vmem:[#allocation2 + $0x260] sm:$0xff] }
 0x2cb   :  { %v2083_v55 = vpop.permute.xlu0 %2082  ;;  %v2085_v56 = vpop.permute.xlu1 %2084 }
 0x2cc   :  { %2257 = vst.msk [vmem:[#allocation3 + $0x90] sm:$0xff] %vm2238_vm7, %v2083_v55  ;;  %2258 = vst.msk [vmem:[#allocation3 + $0x98] sm:$0xff] %vm2238_vm7, %v2085_v56 }
 0x2cd   :  { %2456 = vrot.lane.b32.xlu0 %v2316_v53, %s9150_s28  ;;  %2458 = vrot.lane.b32.xlu1 %v2317_v54, %s9150_s28  ;;  %v2348_v53 = vld [vmem:[#allocation2 + $0x270] sm:$0xff]  ;;  %v2349_v54 = vld [vmem:[#allocation2 + $0x278] sm:$0xff] }
 0x2cf   :  { %v2087_v61 = vpop.permute.xlu0 %2086  ;;  %v2089_v62 = vpop.permute.xlu1 %2088 }
 0x2d0   :  { %2259 = vst.msk [vmem:[#allocation3 + $0xa0] sm:$0xff] %vm2238_vm7, %v2087_v61  ;;  %2260 = vst.msk [vmem:[#allocation3 + $0xa8] sm:$0xff] %vm2238_vm7, %v2089_v62 }
 0x2d1   :  { %2460 = vrot.lane.b32.xlu0 %v2318_v10, %s9150_s28  ;;  %2462 = vrot.lane.b32.xlu1 %v2319_v1, %s9150_s28  ;;  %v2350_v10 = vld [vmem:[#allocation2 + $0x288] sm:$0xff]  ;;  %v2351_v1 = vld [vmem:[#allocation2 + $0x290] sm:$0xff] }
 0x2d3   :  { %v2091_v3 = vpop.permute.xlu0 %2090  ;;  %v2093_v6 = vpop.permute.xlu1 %2092 }
 0x2d4   :  { %2261 = vst.msk [vmem:[#allocation3 + $0xb0] sm:$0xff] %vm2238_vm7, %v2091_v3  ;;  %2262 = vst.msk [vmem:[#allocation3 + $0xb8] sm:$0xff] %vm2238_vm7, %v2093_v6 }
 0x2d5   :  { %2464 = vrot.lane.b32.xlu0 %v2320_v63, %s9150_s28  ;;  %2466 = vrot.lane.b32.xlu1 %v2321_v2, %s9150_s28  ;;  %v2352_v63 = vld [vmem:[#allocation2 + $0x2a0] sm:$0xff]  ;;  %v2353_v2 = vld [vmem:[#allocation2 + $0x2a8] sm:$0xff] }
 0x2d7   :  { %v2095_v12 = vpop.permute.xlu0 %2094  ;;  %v2097_v16 = vpop.permute.xlu1 %2096 }
 0x2d8   :  { %2263 = vst.msk [vmem:[#allocation3 + $0xc0] sm:$0xff] %vm2238_vm7, %v2095_v12  ;;  %2264 = vst.msk [vmem:[#allocation3 + $0xc8] sm:$0xff] %vm2238_vm7, %v2097_v16 }
 0x2d9   :  { %2468 = vrot.lane.b32.xlu0 %v2322_v7, %s9150_s28  ;;  %2470 = vrot.lane.b32.xlu1 %v2323_v11, %s9150_s28  ;;  %v2354_v7 = vld [vmem:[#allocation2 + $0x2b8] sm:$0xff]  ;;  %v2355_v11 = vld [vmem:[#allocation2 + $0x2c0] sm:$0xff] }
 0x2db   :  { %v2099_v28 = vpop.permute.xlu0 %2098  ;;  %v2101_v36 = vpop.permute.xlu1 %2100 }
 0x2dc   :  { %2265 = vst.msk [vmem:[#allocation3 + $0xd0] sm:$0xff] %vm2238_vm7, %v2099_v28  ;;  %2266 = vst.msk [vmem:[#allocation3 + $0xd8] sm:$0xff] %vm2238_vm7, %v2101_v36 }
 0x2dd   :  { %2472 = vrot.lane.b32.xlu0 %v2324_v19, %s9150_s28  ;;  %2474 = vrot.lane.b32.xlu1 %v2325_v24, %s9150_s28  ;;  %v2356_v19 = vld [vmem:[#allocation2 + $0x2d0] sm:$0xff]  ;;  %v2357_v24 = vld [vmem:[#allocation2 + $0x2d8] sm:$0xff] }
 0x2df   :  { %v2103_v57 = vpop.permute.xlu0 %2102  ;;  %v2105_v60 = vpop.permute.xlu1 %2104 }
 0x2e0   :  { %2267 = vst.msk [vmem:[#allocation3 + $0xe0] sm:$0xff] %vm2238_vm7, %v2103_v57  ;;  %2268 = vst.msk [vmem:[#allocation3 + $0xe8] sm:$0xff] %vm2238_vm7, %v2105_v60 }
 0x2e1   :  { %2476 = vrot.lane.b32.xlu0 %v2326_v41, %s9150_s28  ;;  %2478 = vrot.lane.b32.xlu1 %v2327_v52, %s9150_s28  ;;  %v2358_v41 = vld [vmem:[#allocation2 + $0x2e8] sm:$0xff]  ;;  %v2359_v52 = vld [vmem:[#allocation2 + $0x2f0] sm:$0xff] }
 0x2e3   :  { %v2107_v9 = vpop.permute.xlu0 %2106  ;;  %v2109_v15 = vpop.permute.xlu1 %2108 }
 0x2e4   :  { %2269 = vst.msk [vmem:[#allocation3 + $0xf0] sm:$0xff] %vm2238_vm7, %v2107_v9  ;;  %2270 = vst.msk [vmem:[#allocation3 + $0xf8] sm:$0xff] %vm2238_vm7, %v2109_v15 }
 0x2e5   :  { %2480 = vrot.lane.b32.xlu0 %v2328_v0, %s9150_s28  ;;  %2482 = vrot.lane.b32.xlu1 %v2329_v5, %s9150_s28  ;;  %v2360_v0 = vld [vmem:[#allocation2 + $0x300] sm:$0xff]  ;;  %v2361_v5 = vld [vmem:[#allocation2 + $0x308] sm:$0xff] }
 0x2e7   :  { %v2111_v20 = vpop.permute.xlu0 %2110  ;;  %v2113_v33 = vpop.permute.xlu1 %2112 }
 0x2e8   :  { %2271 = vst.msk [vmem:[#allocation3 + $0x100] sm:$0xff] %vm2238_vm7, %v2111_v20  ;;  %2272 = vst.msk [vmem:[#allocation3 + $0x108] sm:$0xff] %vm2238_vm7, %v2113_v33 }
 0x2e9   :  { %2484 = vrot.lane.b32.xlu0 %v2330_v59, %s9150_s28  ;;  %2486 = vrot.lane.b32.xlu1 %v2331_v23, %s9150_s28  ;;  %v2362_v59 = vld [vmem:[#allocation2 + $0x318] sm:$0xff]  ;;  %v2363_v23 = vld [vmem:[#allocation2 + $0x320] sm:$0xff] }
 0x2eb   :  { %v2115_v4 = vpop.permute.xlu0 %2114  ;;  %v2117_v44 = vpop.permute.xlu1 %2116 }
 0x2ec   :  { %2273 = vst.msk [vmem:[#allocation3 + $0x110] sm:$0xff] %vm2238_vm7, %v2115_v4  ;;  %2274 = vst.msk [vmem:[#allocation3 + $0x118] sm:$0xff] %vm2238_vm7, %v2117_v44 }
 0x2ed   :  { %2488 = vrot.lane.b32.xlu0 %v2332_v29, %s9150_s28  ;;  %2490 = vrot.lane.b32.xlu1 %v2333_v49, %s9150_s28  ;;  %v2364_v29 = vld [vmem:[#allocation2 + $0x330] sm:$0xff]  ;;  %v2365_v49 = vld [vmem:[#allocation2 + $0x338] sm:$0xff] }
 0x2ef   :  { %v2119_v17 = vpop.permute.xlu0 %2118  ;;  %v2121_v18 = vpop.permute.xlu1 %2120 }
 0x2f0   :  { %2275 = vst.msk [vmem:[#allocation3 + $0x120] sm:$0xff] %vm2238_vm7, %v2119_v17  ;;  %2276 = vst.msk [vmem:[#allocation3 + $0x128] sm:$0xff] %vm2238_vm7, %v2121_v18 }
 0x2f1   :  { %2492 = vrot.lane.b32.xlu0 %v2334_v8, %s9150_s28  ;;  %2494 = vrot.lane.b32.xlu1 %v2335_v13, %s9150_s28  ;;  %v2366_v8 = vld [vmem:[#allocation2 + $0x348] sm:$0xff]  ;;  %v2367_v13 = vld [vmem:[#allocation2 + $0x350] sm:$0xff] }
 0x2f3   :  { %v2123_v25 = vpop.permute.xlu0 %2122  ;;  %v2125_v26 = vpop.permute.xlu1 %2124 }
 0x2f4   :  { %2277 = vst.msk [vmem:[#allocation3 + $0x130] sm:$0xff] %vm2238_vm7, %v2123_v25  ;;  %2278 = vst.msk [vmem:[#allocation3 + $0x138] sm:$0xff] %vm2238_vm7, %v2125_v26 }
 0x2f5   :  { %2496 = vrot.lane.b32.xlu0 %v2336_v21, %s9150_s28  ;;  %2498 = vrot.lane.b32.xlu1 %v2337_v22, %s9150_s28  ;;  %v2689_v21 = vld [vmem:[#allocation2 + $0x31] sm:$0xff]  ;;  %v2690_v22 = vld [vmem:[#allocation2 + $0x39] sm:$0xff] }
 0x2f7   :  { %v2127_v31 = vpop.permute.xlu0 %2126  ;;  %v2129_v32 = vpop.permute.xlu1 %2128 }
 0x2f8   :  { %2279 = vst.msk [vmem:[#allocation3 + $0x140] sm:$0xff] %vm2238_vm7, %v2127_v31  ;;  %2280 = vst.msk [vmem:[#allocation3 + $0x148] sm:$0xff] %vm2238_vm7, %v2129_v32 }
 0x2f9   :  { %2500 = vrot.lane.b32.xlu0 %v2338_v27, %s9150_s28  ;;  %2502 = vrot.lane.b32.xlu1 %v2339_v30, %s9150_s28  ;;  %v2691_v27 = vld [vmem:[#allocation2 + $0x49] sm:$0xff]  ;;  %v2692_v30 = vld [vmem:[#allocation2 + $0x51] sm:$0xff] }
 0x2fb   :  { %v2131_v37 = vpop.permute.xlu0 %2130  ;;  %v2133_v38 = vpop.permute.xlu1 %2132 }
 0x2fc   :  { %2281 = vst.msk [vmem:[#allocation3 + $0x150] sm:$0xff] %vm2238_vm7, %v2131_v37  ;;  %2282 = vst.msk [vmem:[#allocation3 + $0x158] sm:$0xff] %vm2238_vm7, %v2133_v38 }
 0x2fd   :  { %2504 = vrot.lane.b32.xlu0 %v2340_v34, %s9150_s28  ;;  %2506 = vrot.lane.b32.xlu1 %v2341_v35, %s9150_s28  ;;  %v2693_v34 = vld [vmem:[#allocation2 + $0x61] sm:$0xff]  ;;  %v2694_v35 = vld [vmem:[#allocation2 + $0x69] sm:$0xff] }
 0x2ff   :  { %v2135_v42 = vpop.permute.xlu0 %2134  ;;  %v2137_v43 = vpop.permute.xlu1 %2136 }
 0x300   :  { %2283 = vst.msk [vmem:[#allocation3 + $0x160] sm:$0xff] %vm2238_vm7, %v2135_v42  ;;  %2284 = vst.msk [vmem:[#allocation3 + $0x168] sm:$0xff] %vm2238_vm7, %v2137_v43 }
 0x301   :  { %2508 = vrot.lane.b32.xlu0 %v2342_v39, %s9150_s28  ;;  %2510 = vrot.lane.b32.xlu1 %v2343_v40, %s9150_s28  ;;  %v2695_v39 = vld [vmem:[#allocation2 + $0x79] sm:$0xff]  ;;  %v2696_v40 = vld [vmem:[#allocation2 + $0x81] sm:$0xff] }
 0x303   :  { %v2139_v47 = vpop.permute.xlu0 %2138  ;;  %v2141_v48 = vpop.permute.xlu1 %2140 }
 0x304   :  { %2285 = vst.msk [vmem:[#allocation3 + $0x170] sm:$0xff] %vm2238_vm7, %v2139_v47  ;;  %2286 = vst.msk [vmem:[#allocation3 + $0x178] sm:$0xff] %vm2238_vm7, %v2141_v48 }
 0x305   :  { %2512 = vrot.lane.b32.xlu0 %v2344_v45, %s9150_s28  ;;  %2514 = vrot.lane.b32.xlu1 %v2345_v46, %s9150_s28  ;;  %v2697_v45 = vld [vmem:[#allocation2 + $0x91] sm:$0xff]  ;;  %v2698_v46 = vld [vmem:[#allocation2 + $0x99] sm:$0xff] }
 0x307   :  { %v2143_v14 = vpop.permute.xlu0 %2142  ;;  %v2145_v58 = vpop.permute.xlu1 %2144 }
 0x308   :  { %2287 = vst.msk [vmem:[#allocation3 + $0x180] sm:$0xff] %vm2238_vm7, %v2143_v14  ;;  %2288 = vst.msk [vmem:[#allocation3 + $0x188] sm:$0xff] %vm2238_vm7, %v2145_v58 }
 0x309   :  { %2516 = vrot.lane.b32.xlu0 %v2346_v50, %s9150_s28  ;;  %2518 = vrot.lane.b32.xlu1 %v2347_v51, %s9150_s28  ;;  %v2699_v50 = vld [vmem:[#allocation2 + $0xa9] sm:$0xff]  ;;  %v2700_v51 = vld [vmem:[#allocation2 + $0xb1] sm:$0xff] }
 0x30b   :  { %v2147_v55 = vpop.permute.xlu0 %2146  ;;  %v2149_v56 = vpop.permute.xlu1 %2148 }
 0x30c   :  { %2289 = vst.msk [vmem:[#allocation3 + $0x190] sm:$0xff] %vm2238_vm7, %v2147_v55  ;;  %2290 = vst.msk [vmem:[#allocation3 + $0x198] sm:$0xff] %vm2238_vm7, %v2149_v56 }
 0x30d   :  { %2520 = vrot.lane.b32.xlu0 %v2348_v53, %s9150_s28  ;;  %2522 = vrot.lane.b32.xlu1 %v2349_v54, %s9150_s28  ;;  %v2701_v53 = vld [vmem:[#allocation2 + $0xc1] sm:$0xff]  ;;  %v2702_v54 = vld [vmem:[#allocation2 + $0xc9] sm:$0xff] }
 0x30f   :  { %v2151_v61 = vpop.permute.xlu0 %2150  ;;  %v2153_v62 = vpop.permute.xlu1 %2152 }
 0x310   :  { %2291 = vst.msk [vmem:[#allocation3 + $0x1a0] sm:$0xff] %vm2238_vm7, %v2151_v61  ;;  %2292 = vst.msk [vmem:[#allocation3 + $0x1a8] sm:$0xff] %vm2238_vm7, %v2153_v62 }
 0x311   :  { %2524 = vrot.lane.b32.xlu0 %v2350_v10, %s9150_s28  ;;  %2526 = vrot.lane.b32.xlu1 %v2351_v1, %s9150_s28  ;;  %v2703_v10 = vld [vmem:[#allocation2 + $0xd9] sm:$0xff]  ;;  %v2704_v1 = vld [vmem:[#allocation2 + $0xe1] sm:$0xff] }
 0x313   :  { %v2155_v3 = vpop.permute.xlu0 %2154  ;;  %v2157_v6 = vpop.permute.xlu1 %2156 }
 0x314   :  { %2293 = vst.msk [vmem:[#allocation3 + $0x1b0] sm:$0xff] %vm2238_vm7, %v2155_v3  ;;  %2294 = vst.msk [vmem:[#allocation3 + $0x1b8] sm:$0xff] %vm2238_vm7, %v2157_v6 }
 0x315   :  { %2528 = vrot.lane.b32.xlu0 %v2352_v63, %s9150_s28  ;;  %2530 = vrot.lane.b32.xlu1 %v2353_v2, %s9150_s28  ;;  %v2705_v63 = vld [vmem:[#allocation2 + $0xf1] sm:$0xff]  ;;  %v2706_v2 = vld [vmem:[#allocation2 + $0xf9] sm:$0xff] }
 0x317   :  { %v2159_v12 = vpop.permute.xlu0 %2158  ;;  %v2161_v16 = vpop.permute.xlu1 %2160 }
 0x318   :  { %2295 = vst.msk [vmem:[#allocation3 + $0x1c0] sm:$0xff] %vm2238_vm7, %v2159_v12  ;;  %2296 = vst.msk [vmem:[#allocation3 + $0x1c8] sm:$0xff] %vm2238_vm7, %v2161_v16 }
 0x319   :  { %2532 = vrot.lane.b32.xlu0 %v2354_v7, %s9150_s28  ;;  %2534 = vrot.lane.b32.xlu1 %v2355_v11, %s9150_s28  ;;  %v2707_v7 = vld [vmem:[#allocation2 + $0x109] sm:$0xff]  ;;  %v2708_v11 = vld [vmem:[#allocation2 + $0x111] sm:$0xff] }
 0x31b   :  { %v2163_v28 = vpop.permute.xlu0 %2162  ;;  %v2165_v36 = vpop.permute.xlu1 %2164 }
 0x31c   :  { %2297 = vst.msk [vmem:[#allocation3 + $0x1d0] sm:$0xff] %vm2238_vm7, %v2163_v28  ;;  %2298 = vst.msk [vmem:[#allocation3 + $0x1d8] sm:$0xff] %vm2238_vm7, %v2165_v36 }
 0x31d   :  { %2536 = vrot.lane.b32.xlu0 %v2356_v19, %s9150_s28  ;;  %2538 = vrot.lane.b32.xlu1 %v2357_v24, %s9150_s28  ;;  %v2709_v19 = vld [vmem:[#allocation2 + $0x121] sm:$0xff]  ;;  %v2710_v24 = vld [vmem:[#allocation2 + $0x129] sm:$0xff] }
 0x31f   :  { %v2167_v57 = vpop.permute.xlu0 %2166  ;;  %v2169_v60 = vpop.permute.xlu1 %2168 }
 0x320   :  { %2299 = vst.msk [vmem:[#allocation3 + $0x1e0] sm:$0xff] %vm2238_vm7, %v2167_v57  ;;  %2300 = vst.msk [vmem:[#allocation3 + $0x1e8] sm:$0xff] %vm2238_vm7, %v2169_v60 }
 0x321   :  { %2540 = vrot.lane.b32.xlu0 %v2358_v41, %s9150_s28  ;;  %2542 = vrot.lane.b32.xlu1 %v2359_v52, %s9150_s28  ;;  %v2711_v41 = vld [vmem:[#allocation2 + $0x139] sm:$0xff]  ;;  %v2712_v52 = vld [vmem:[#allocation2 + $0x141] sm:$0xff] }
 0x323   :  { %v2171_v9 = vpop.permute.xlu0 %2170  ;;  %v2173_v15 = vpop.permute.xlu1 %2172 }
 0x324   :  { %2301 = vst.msk [vmem:[#allocation3 + $0x1f0] sm:$0xff] %vm2238_vm7, %v2171_v9  ;;  %2302 = vst.msk [vmem:[#allocation3 + $0x1f8] sm:$0xff] %vm2238_vm7, %v2173_v15 }
 0x325   :  { %2544 = vrot.lane.b32.xlu0 %v2360_v0, %s9150_s28  ;;  %2546 = vrot.lane.b32.xlu1 %v2361_v5, %s9150_s28  ;;  %v2713_v0 = vld [vmem:[#allocation2 + $0x151] sm:$0xff]  ;;  %v2714_v5 = vld [vmem:[#allocation2 + $0x159] sm:$0xff] }
 0x327   :  { %v2433_v20 = vpop.permute.xlu0 %2432  ;;  %v2435_v33 = vpop.permute.xlu1 %2434 }
 0x328   :  { %2625 = vst.msk [vmem:[#allocation3] sm:$0xff] %vm2624_vm8, %v2433_v20  ;;  %2626 = vst.msk [vmem:[#allocation3 + $0x8] sm:$0xff] %vm2624_vm8, %v2435_v33 }
 0x329   :  { %2548 = vrot.lane.b32.xlu0 %v2362_v59, %s9150_s28  ;;  %2550 = vrot.lane.b32.xlu1 %v2363_v23, %s9150_s28  ;;  %v2715_v59 = vld [vmem:[#allocation2 + $0x169] sm:$0xff]  ;;  %v2716_v23 = vld [vmem:[#allocation2 + $0x171] sm:$0xff] }
 0x32b   :  { %v2437_v4 = vpop.permute.xlu0 %2436  ;;  %v2439_v44 = vpop.permute.xlu1 %2438 }
 0x32c   :  { %2627 = vst.msk [vmem:[#allocation3 + $0x10] sm:$0xff] %vm2624_vm8, %v2437_v4  ;;  %2628 = vst.msk [vmem:[#allocation3 + $0x18] sm:$0xff] %vm2624_vm8, %v2439_v44 }
 0x32d   :  { %2552 = vrot.lane.b32.xlu0 %v2364_v29, %s9150_s28  ;;  %2554 = vrot.lane.b32.xlu1 %v2365_v49, %s9150_s28  ;;  %v2717_v29 = vld [vmem:[#allocation2 + $0x181] sm:$0xff]  ;;  %v2718_v49 = vld [vmem:[#allocation2 + $0x189] sm:$0xff] }
 0x32f   :  { %v2441_v17 = vpop.permute.xlu0 %2440  ;;  %v2443_v18 = vpop.permute.xlu1 %2442 }
 0x330   :  { %2629 = vst.msk [vmem:[#allocation3 + $0x20] sm:$0xff] %vm2624_vm8, %v2441_v17  ;;  %2630 = vst.msk [vmem:[#allocation3 + $0x28] sm:$0xff] %vm2624_vm8, %v2443_v18 }
 0x331   :  { %2556 = vrot.lane.b32.xlu0 %v2366_v8, %s9150_s28  ;;  %2558 = vrot.lane.b32.xlu1 %v2367_v13, %s9150_s28  ;;  %v2719_v8 = vld [vmem:[#allocation2 + $0x199] sm:$0xff]  ;;  %v2720_v13 = vld [vmem:[#allocation2 + $0x1a1] sm:$0xff] }
 0x333   :  { %v2445_v25 = vpop.permute.xlu0 %2444  ;;  %v2447_v26 = vpop.permute.xlu1 %2446 }
 0x334   :  { %2631 = vst.msk [vmem:[#allocation3 + $0x30] sm:$0xff] %vm2624_vm8, %v2445_v25  ;;  %2632 = vst.msk [vmem:[#allocation3 + $0x38] sm:$0xff] %vm2624_vm8, %v2447_v26 }
 0x335   :  { %2817 = vrot.lane.b32.xlu0 %v2689_v21, %s9151_s29  ;;  %2819 = vrot.lane.b32.xlu1 %v2690_v22, %s9151_s29  ;;  %v2721_v21 = vld [vmem:[#allocation2 + $0x1e1] sm:$0xff]  ;;  %v2722_v22 = vld [vmem:[#allocation2 + $0x1e9] sm:$0xff] }
 0x337   :  { %v2449_v31 = vpop.permute.xlu0 %2448  ;;  %v2451_v32 = vpop.permute.xlu1 %2450 }
 0x338   :  { %2633 = vst.msk [vmem:[#allocation3 + $0x40] sm:$0xff] %vm2624_vm8, %v2449_v31  ;;  %2634 = vst.msk [vmem:[#allocation3 + $0x48] sm:$0xff] %vm2624_vm8, %v2451_v32 }
 0x339   :  { %2821 = vrot.lane.b32.xlu0 %v2691_v27, %s9151_s29  ;;  %2823 = vrot.lane.b32.xlu1 %v2692_v30, %s9151_s29  ;;  %v2723_v27 = vld [vmem:[#allocation2 + $0x1f9] sm:$0xff]  ;;  %v2724_v30 = vld [vmem:[#allocation2 + $0x201] sm:$0xff] }
 0x33b   :  { %v2453_v37 = vpop.permute.xlu0 %2452  ;;  %v2455_v38 = vpop.permute.xlu1 %2454 }
 0x33c   :  { %2635 = vst.msk [vmem:[#allocation3 + $0x50] sm:$0xff] %vm2624_vm8, %v2453_v37  ;;  %2636 = vst.msk [vmem:[#allocation3 + $0x58] sm:$0xff] %vm2624_vm8, %v2455_v38 }
 0x33d   :  { %2825 = vrot.lane.b32.xlu0 %v2693_v34, %s9151_s29  ;;  %2827 = vrot.lane.b32.xlu1 %v2694_v35, %s9151_s29  ;;  %v2725_v34 = vld [vmem:[#allocation2 + $0x211] sm:$0xff]  ;;  %v2726_v35 = vld [vmem:[#allocation2 + $0x219] sm:$0xff] }
 0x33f   :  { %v2457_v42 = vpop.permute.xlu0 %2456  ;;  %v2459_v43 = vpop.permute.xlu1 %2458 }
 0x340   :  { %2637 = vst.msk [vmem:[#allocation3 + $0x60] sm:$0xff] %vm2624_vm8, %v2457_v42  ;;  %2638 = vst.msk [vmem:[#allocation3 + $0x68] sm:$0xff] %vm2624_vm8, %v2459_v43 }
 0x341   :  { %2829 = vrot.lane.b32.xlu0 %v2695_v39, %s9151_s29  ;;  %2831 = vrot.lane.b32.xlu1 %v2696_v40, %s9151_s29  ;;  %v2727_v39 = vld [vmem:[#allocation2 + $0x229] sm:$0xff]  ;;  %v2728_v40 = vld [vmem:[#allocation2 + $0x231] sm:$0xff] }
 0x343   :  { %v2461_v47 = vpop.permute.xlu0 %2460  ;;  %v2463_v48 = vpop.permute.xlu1 %2462 }
 0x344   :  { %2639 = vst.msk [vmem:[#allocation3 + $0x70] sm:$0xff] %vm2624_vm8, %v2461_v47  ;;  %2640 = vst.msk [vmem:[#allocation3 + $0x78] sm:$0xff] %vm2624_vm8, %v2463_v48 }
 0x345   :  { %2833 = vrot.lane.b32.xlu0 %v2697_v45, %s9151_s29  ;;  %2835 = vrot.lane.b32.xlu1 %v2698_v46, %s9151_s29  ;;  %v2729_v45 = vld [vmem:[#allocation2 + $0x241] sm:$0xff]  ;;  %v2730_v46 = vld [vmem:[#allocation2 + $0x249] sm:$0xff] }
 0x347   :  { %v2465_v14 = vpop.permute.xlu0 %2464  ;;  %v2467_v58 = vpop.permute.xlu1 %2466 }
 0x348   :  { %2641 = vst.msk [vmem:[#allocation3 + $0x80] sm:$0xff] %vm2624_vm8, %v2465_v14  ;;  %2642 = vst.msk [vmem:[#allocation3 + $0x88] sm:$0xff] %vm2624_vm8, %v2467_v58 }
 0x349   :  { %2837 = vrot.lane.b32.xlu0 %v2699_v50, %s9151_s29  ;;  %2839 = vrot.lane.b32.xlu1 %v2700_v51, %s9151_s29  ;;  %v2731_v50 = vld [vmem:[#allocation2 + $0x259] sm:$0xff]  ;;  %v2732_v51 = vld [vmem:[#allocation2 + $0x261] sm:$0xff] }
 0x34b   :  { %v2469_v55 = vpop.permute.xlu0 %2468  ;;  %v2471_v56 = vpop.permute.xlu1 %2470 }
 0x34c   :  { %2643 = vst.msk [vmem:[#allocation3 + $0x90] sm:$0xff] %vm2624_vm8, %v2469_v55  ;;  %2644 = vst.msk [vmem:[#allocation3 + $0x98] sm:$0xff] %vm2624_vm8, %v2471_v56 }
 0x34d   :  { %2841 = vrot.lane.b32.xlu0 %v2701_v53, %s9151_s29  ;;  %2843 = vrot.lane.b32.xlu1 %v2702_v54, %s9151_s29  ;;  %v2733_v53 = vld [vmem:[#allocation2 + $0x271] sm:$0xff]  ;;  %v2734_v54 = vld [vmem:[#allocation2 + $0x279] sm:$0xff] }
 0x34f   :  { %v2473_v61 = vpop.permute.xlu0 %2472  ;;  %v2475_v62 = vpop.permute.xlu1 %2474 }
 0x350   :  { %2645 = vst.msk [vmem:[#allocation3 + $0xa0] sm:$0xff] %vm2624_vm8, %v2473_v61  ;;  %2646 = vst.msk [vmem:[#allocation3 + $0xa8] sm:$0xff] %vm2624_vm8, %v2475_v62 }
 0x351   :  { %2845 = vrot.lane.b32.xlu0 %v2703_v10, %s9151_s29  ;;  %2847 = vrot.lane.b32.xlu1 %v2704_v1, %s9151_s29  ;;  %v2735_v10 = vld [vmem:[#allocation2 + $0x289] sm:$0xff]  ;;  %v2736_v1 = vld [vmem:[#allocation2 + $0x291] sm:$0xff] }
 0x353   :  { %v2477_v3 = vpop.permute.xlu0 %2476  ;;  %v2479_v6 = vpop.permute.xlu1 %2478 }
 0x354   :  { %2647 = vst.msk [vmem:[#allocation3 + $0xb0] sm:$0xff] %vm2624_vm8, %v2477_v3  ;;  %2648 = vst.msk [vmem:[#allocation3 + $0xb8] sm:$0xff] %vm2624_vm8, %v2479_v6 }
 0x355   :  { %2849 = vrot.lane.b32.xlu0 %v2705_v63, %s9151_s29  ;;  %2851 = vrot.lane.b32.xlu1 %v2706_v2, %s9151_s29  ;;  %v2737_v63 = vld [vmem:[#allocation2 + $0x2a1] sm:$0xff]  ;;  %v2738_v2 = vld [vmem:[#allocation2 + $0x2a9] sm:$0xff] }
 0x357   :  { %v2481_v12 = vpop.permute.xlu0 %2480  ;;  %v2483_v16 = vpop.permute.xlu1 %2482 }
 0x358   :  { %2649 = vst.msk [vmem:[#allocation3 + $0xc0] sm:$0xff] %vm2624_vm8, %v2481_v12  ;;  %2650 = vst.msk [vmem:[#allocation3 + $0xc8] sm:$0xff] %vm2624_vm8, %v2483_v16 }
 0x359   :  { %2853 = vrot.lane.b32.xlu0 %v2707_v7, %s9151_s29  ;;  %2855 = vrot.lane.b32.xlu1 %v2708_v11, %s9151_s29  ;;  %v2739_v7 = vld [vmem:[#allocation2 + $0x2b9] sm:$0xff]  ;;  %v2740_v11 = vld [vmem:[#allocation2 + $0x2c1] sm:$0xff] }
 0x35b   :  { %v2485_v28 = vpop.permute.xlu0 %2484  ;;  %v2487_v36 = vpop.permute.xlu1 %2486 }
 0x35c   :  { %2651 = vst.msk [vmem:[#allocation3 + $0xd0] sm:$0xff] %vm2624_vm8, %v2485_v28  ;;  %2652 = vst.msk [vmem:[#allocation3 + $0xd8] sm:$0xff] %vm2624_vm8, %v2487_v36 }
 0x35d   :  { %2857 = vrot.lane.b32.xlu0 %v2709_v19, %s9151_s29  ;;  %2859 = vrot.lane.b32.xlu1 %v2710_v24, %s9151_s29  ;;  %v2741_v19 = vld [vmem:[#allocation2 + $0x2d1] sm:$0xff]  ;;  %v2742_v24 = vld [vmem:[#allocation2 + $0x2d9] sm:$0xff] }
 0x35f   :  { %v2489_v57 = vpop.permute.xlu0 %2488  ;;  %v2491_v60 = vpop.permute.xlu1 %2490 }
 0x360   :  { %2653 = vst.msk [vmem:[#allocation3 + $0xe0] sm:$0xff] %vm2624_vm8, %v2489_v57  ;;  %2654 = vst.msk [vmem:[#allocation3 + $0xe8] sm:$0xff] %vm2624_vm8, %v2491_v60 }
 0x361   :  { %2861 = vrot.lane.b32.xlu0 %v2711_v41, %s9151_s29  ;;  %2863 = vrot.lane.b32.xlu1 %v2712_v52, %s9151_s29  ;;  %v2743_v41 = vld [vmem:[#allocation2 + $0x2e9] sm:$0xff]  ;;  %v2744_v52 = vld [vmem:[#allocation2 + $0x2f1] sm:$0xff] }
 0x363   :  { %v2493_v9 = vpop.permute.xlu0 %2492  ;;  %v2495_v15 = vpop.permute.xlu1 %2494 }
 0x364   :  { %2655 = vst.msk [vmem:[#allocation3 + $0xf0] sm:$0xff] %vm2624_vm8, %v2493_v9  ;;  %2656 = vst.msk [vmem:[#allocation3 + $0xf8] sm:$0xff] %vm2624_vm8, %v2495_v15 }
 0x365   :  { %2865 = vrot.lane.b32.xlu0 %v2713_v0, %s9151_s29  ;;  %2867 = vrot.lane.b32.xlu1 %v2714_v5, %s9151_s29  ;;  %v2745_v0 = vld [vmem:[#allocation2 + $0x301] sm:$0xff]  ;;  %v2746_v5 = vld [vmem:[#allocation2 + $0x309] sm:$0xff] }
 0x367   :  { %v2497_v20 = vpop.permute.xlu0 %2496  ;;  %v2499_v33 = vpop.permute.xlu1 %2498 }
 0x368   :  { %2657 = vst.msk [vmem:[#allocation3 + $0x100] sm:$0xff] %vm2624_vm8, %v2497_v20  ;;  %2658 = vst.msk [vmem:[#allocation3 + $0x108] sm:$0xff] %vm2624_vm8, %v2499_v33  ;;  %v2747_v33 = vld [vmem:[#allocation2 + $0x319] sm:$0xff] }
 0x369   :  { %2869 = vrot.lane.b32.xlu0 %v2715_v59, %s9151_s29  ;;  %2871 = vrot.lane.b32.xlu1 %v2716_v23, %s9151_s29  ;;  %v3523_v59 = vld [vmem:[%s13386_s1] sm:$0xff]  ;;  %v3524_v23 = vld [vmem:[%s13386_s1 + $0x8] sm:$0xff] }
 0x36a   :  { %v9101_v20 = vpack.c.bf16 %v3524_v23, %v3523_v59  ;;  %v3097_v59 = vld [vmem:[#allocation2 + $0x142] sm:$0xff] }
 0x36b   :  { %v2501_v4 = vpop.permute.xlu0 %2500  ;;  %v2503_v44 = vpop.permute.xlu1 %2502 }
 0x36c   :  { %2659 = vst.msk [vmem:[#allocation3 + $0x110] sm:$0xff] %vm2624_vm8, %v2501_v4  ;;  %2660 = vst.msk [vmem:[#allocation3 + $0x118] sm:$0xff] %vm2624_vm8, %v2503_v44  ;;  %9102 = vmatprep.subr.bf16.mxu0 %v9101_v20  ;;  %v3525_v44 = vld [vmem:[%s13386_s1 + $0x10] sm:$0xff] }
 0x36d   :  { %2873 = vrot.lane.b32.xlu0 %v2717_v29, %s9151_s29  ;;  %2875 = vrot.lane.b32.xlu1 %v2718_v49, %s9151_s29  ;;  %v2748_v29 = vld [vmem:[#allocation2 + $0x321] sm:$0xff] }
 0x36e   :  { %9104 = vmatpush3.bf16.msra.mxu0 %v9101_v20 }
 0x36f   :  { %v2505_v17 = vpop.permute.xlu0 %2504  ;;  %v2507_v18 = vpop.permute.xlu1 %2506 }
 0x370   :  { %2661 = vst.msk [vmem:[#allocation3 + $0x120] sm:$0xff] %vm2624_vm8, %v2505_v17  ;;  %2662 = vst.msk [vmem:[#allocation3 + $0x128] sm:$0xff] %vm2624_vm8, %v2507_v18  ;;  %v2749_v17 = vld [vmem:[#allocation2 + $0x331] sm:$0xff]  ;;  %v2750_v18 = vld [vmem:[#allocation2 + $0x339] sm:$0xff] }
 0x371   :  { %2877 = vrot.lane.b32.xlu0 %v2719_v8, %s9151_s29  ;;  %2879 = vrot.lane.b32.xlu1 %v2720_v13, %s9151_s29  ;;  %v3526_v8 = vld [vmem:[%s13386_s1 + $0x18] sm:$0xff] }
 0x372   :  { %v9105_v13 = vpack.c.bf16 %v3526_v8, %v3525_v44  ;;  %v3100_v44 = vld [vmem:[#allocation2 + $0x16a] sm:$0xff]  ;;  %v3101_v8 = vld [vmem:[#allocation2 + $0x172] sm:$0xff] }
 0x373   :  { %v2509_v25 = vpop.permute.xlu0 %2508  ;;  %v2511_v26 = vpop.permute.xlu1 %2510 }
 0x374   :  { %2663 = vst.msk [vmem:[#allocation3 + $0x130] sm:$0xff] %vm2624_vm8, %v2509_v25  ;;  %2664 = vst.msk [vmem:[#allocation3 + $0x138] sm:$0xff] %vm2624_vm8, %v2511_v26  ;;  %9106 = vmatprep.subr.bf16.mxu0 %v9105_v13  ;;  %v3527_v25 = vld [vmem:[%s13386_s1 + $0x20] sm:$0xf]  ;;  %v2751_v26 = vld [vmem:[#allocation2 + $0x349] sm:$0xff]  ;;  %s9152_s1 = smov 32  }
 0x375   :  { %2881 = vrot.lane.b32.xlu0 %v2721_v21, %s9151_s29  ;;  %2883 = vrot.lane.b32.xlu1 %v2722_v22, %s9151_s29 }
 0x376   :  { %9108 = vmatpush3.bf16.msra.mxu0 %v9105_v13 }
 0x377   :  { %v2513_v31 = vpop.permute.xlu0 %2512  ;;  %v2515_v32 = vpop.permute.xlu1 %2514  ;;  %8897 = vmatprep.subr.msk.mxu0 %vm3726_vm10, %v3527_v25 }
 0x378   :  { %2665 = vst.msk [vmem:[#allocation3 + $0x140] sm:$0xff] %vm2624_vm8, %v2513_v31  ;;  %2666 = vst.msk [vmem:[#allocation3 + $0x148] sm:$0xff] %vm2624_vm8, %v2515_v32  ;;  %v3074_v32 = vld [vmem:[#allocation2 + $0x32] sm:$0xff] }
 0x379   :  { %2885 = vrot.lane.b32.xlu0 %v2723_v27, %s9151_s29  ;;  %2887 = vrot.lane.b32.xlu1 %v2724_v30, %s9151_s29  ;;  %v2752_v27 = vld [vmem:[#allocation2 + $0x351] sm:$0xff] }
 0x37a   :  { %8898 = vmatpush3.msk.msra.mxu0 %vm3726_vm10, %v3527_v25 }
 0x37b   :  { %v2517_v37 = vpop.permute.xlu0 %2516  ;;  %v2519_v38 = vpop.permute.xlu1 %2518 }
 0x37c   :  { %2667 = vst.msk [vmem:[#allocation3 + $0x150] sm:$0xff] %vm2624_vm8, %v2517_v37  ;;  %2668 = vst.msk [vmem:[#allocation3 + $0x158] sm:$0xff] %vm2624_vm8, %v2519_v38  ;;  %v3076_v38 = vld [vmem:[#allocation2 + $0x4a] sm:$0xff] }
 0x37d   :  { %2889 = vrot.lane.b32.xlu0 %v2725_v34, %s9151_s29  ;;  %2891 = vrot.lane.b32.xlu1 %v2726_v35, %s9151_s29  ;;  %v3075_v34 = vld [vmem:[#allocation2 + $0x3a] sm:$0xff] }
 0x37f   :  { %v2521_v42 = vpop.permute.xlu0 %2520  ;;  %v2523_v43 = vpop.permute.xlu1 %2522 }
 0x380   :  { %2669 = vst.msk [vmem:[#allocation3 + $0x160] sm:$0xff] %vm2624_vm8, %v2521_v42  ;;  %2670 = vst.msk [vmem:[#allocation3 + $0x168] sm:$0xff] %vm2624_vm8, %v2523_v43  ;;  %v3078_v43 = vld [vmem:[#allocation2 + $0x62] sm:$0xff] }
 0x381   :  { %2893 = vrot.lane.b32.xlu0 %v2727_v39, %s9151_s29  ;;  %2895 = vrot.lane.b32.xlu1 %v2728_v40, %s9151_s29  ;;  %v3077_v39 = vld [vmem:[#allocation2 + $0x52] sm:$0xff] }
 0x383   :  { %v2525_v47 = vpop.permute.xlu0 %2524  ;;  %v2527_v48 = vpop.permute.xlu1 %2526 }
 0x384   :  { %2671 = vst.msk [vmem:[#allocation3 + $0x170] sm:$0xff] %vm2624_vm8, %v2525_v47  ;;  %2672 = vst.msk [vmem:[#allocation3 + $0x178] sm:$0xff] %vm2624_vm8, %v2527_v48  ;;  %v3080_v48 = vld [vmem:[#allocation2 + $0x7a] sm:$0xff] }
 0x385   :  { %2897 = vrot.lane.b32.xlu0 %v2729_v45, %s9151_s29  ;;  %2899 = vrot.lane.b32.xlu1 %v2730_v46, %s9151_s29  ;;  %v3079_v45 = vld [vmem:[#allocation2 + $0x6a] sm:$0xff] }
 0x387   :  { %v2529_v14 = vpop.permute.xlu0 %2528  ;;  %v2531_v58 = vpop.permute.xlu1 %2530 }
 0x388   :  { %2673 = vst.msk [vmem:[#allocation3 + $0x180] sm:$0xff] %vm2624_vm8, %v2529_v14  ;;  %2674 = vst.msk [vmem:[#allocation3 + $0x188] sm:$0xff] %vm2624_vm8, %v2531_v58  ;;  %v3082_v58 = vld [vmem:[#allocation2 + $0x92] sm:$0xff] }
 0x389   :  { %2901 = vrot.lane.b32.xlu0 %v2731_v50, %s9151_s29  ;;  %2903 = vrot.lane.b32.xlu1 %v2732_v51, %s9151_s29  ;;  %v3081_v50 = vld [vmem:[#allocation2 + $0x82] sm:$0xff] }
 0x38b   :  { %v2533_v55 = vpop.permute.xlu0 %2532  ;;  %v2535_v56 = vpop.permute.xlu1 %2534 }
 0x38c   :  { %2675 = vst.msk [vmem:[#allocation3 + $0x190] sm:$0xff] %vm2624_vm8, %v2533_v55  ;;  %2676 = vst.msk [vmem:[#allocation3 + $0x198] sm:$0xff] %vm2624_vm8, %v2535_v56  ;;  %v3084_v56 = vld [vmem:[#allocation2 + $0xaa] sm:$0xff] }
 0x38d   :  { %2905 = vrot.lane.b32.xlu0 %v2733_v53, %s9151_s29  ;;  %2907 = vrot.lane.b32.xlu1 %v2734_v54, %s9151_s29  ;;  %v3083_v53 = vld [vmem:[#allocation2 + $0x9a] sm:$0xff] }
 0x38f   :  { %v2537_v61 = vpop.permute.xlu0 %2536  ;;  %v2539_v62 = vpop.permute.xlu1 %2538 }
 0x390   :  { %2677 = vst.msk [vmem:[#allocation3 + $0x1a0] sm:$0xff] %vm2624_vm8, %v2537_v61  ;;  %2678 = vst.msk [vmem:[#allocation3 + $0x1a8] sm:$0xff] %vm2624_vm8, %v2539_v62  ;;  %v3086_v62 = vld [vmem:[#allocation2 + $0xc2] sm:$0xff] }
 0x391   :  { %2909 = vrot.lane.b32.xlu0 %v2735_v10, %s9151_s29  ;;  %2911 = vrot.lane.b32.xlu1 %v2736_v1, %s9151_s29  ;;  %v3085_v10 = vld [vmem:[#allocation2 + $0xb2] sm:$0xff] }
 0x393   :  { %v2541_v3 = vpop.permute.xlu0 %2540  ;;  %v2543_v6 = vpop.permute.xlu1 %2542 }
 0x394   :  { %2679 = vst.msk [vmem:[#allocation3 + $0x1b0] sm:$0xff] %vm2624_vm8, %v2541_v3  ;;  %2680 = vst.msk [vmem:[#allocation3 + $0x1b8] sm:$0xff] %vm2624_vm8, %v2543_v6  ;;  %v3088_v6 = vld [vmem:[#allocation2 + $0xda] sm:$0xff] }
 0x395   :  { %2913 = vrot.lane.b32.xlu0 %v2737_v63, %s9151_s29  ;;  %2915 = vrot.lane.b32.xlu1 %v2738_v2, %s9151_s29  ;;  %v3087_v63 = vld [vmem:[#allocation2 + $0xca] sm:$0xff] }
 0x397   :  { %v2545_v12 = vpop.permute.xlu0 %2544  ;;  %v2547_v16 = vpop.permute.xlu1 %2546 }
 0x398   :  { %2681 = vst.msk [vmem:[#allocation3 + $0x1c0] sm:$0xff] %vm2624_vm8, %v2545_v12  ;;  %2682 = vst.msk [vmem:[#allocation3 + $0x1c8] sm:$0xff] %vm2624_vm8, %v2547_v16  ;;  %v3090_v16 = vld [vmem:[#allocation2 + $0xf2] sm:$0xff] }
 0x399   :  { %2917 = vrot.lane.b32.xlu0 %v2739_v7, %s9151_s29  ;;  %2919 = vrot.lane.b32.xlu1 %v2740_v11, %s9151_s29  ;;  %v3089_v7 = vld [vmem:[#allocation2 + $0xe2] sm:$0xff] }
 0x39b   :  { %v2549_v28 = vpop.permute.xlu0 %2548  ;;  %v2551_v36 = vpop.permute.xlu1 %2550 }
 0x39c   :  { %2683 = vst.msk [vmem:[#allocation3 + $0x1d0] sm:$0xff] %vm2624_vm8, %v2549_v28  ;;  %2684 = vst.msk [vmem:[#allocation3 + $0x1d8] sm:$0xff] %vm2624_vm8, %v2551_v36  ;;  %v3092_v36 = vld [vmem:[#allocation2 + $0x10a] sm:$0xff] }
 0x39d   :  { %2921 = vrot.lane.b32.xlu0 %v2741_v19, %s9151_s29  ;;  %2923 = vrot.lane.b32.xlu1 %v2742_v24, %s9151_s29  ;;  %v3091_v19 = vld [vmem:[#allocation2 + $0xfa] sm:$0xff] }
 0x39f   :  { %v2553_v57 = vpop.permute.xlu0 %2552  ;;  %v2555_v60 = vpop.permute.xlu1 %2554 }
 0x3a0   :  { %2685 = vst.msk [vmem:[#allocation3 + $0x1e0] sm:$0xff] %vm2624_vm8, %v2553_v57  ;;  %2686 = vst.msk [vmem:[#allocation3 + $0x1e8] sm:$0xff] %vm2624_vm8, %v2555_v60  ;;  %v3094_v60 = vld [vmem:[#allocation2 + $0x122] sm:$0xff] }
 0x3a1   :  { %2925 = vrot.lane.b32.xlu0 %v2743_v41, %s9151_s29  ;;  %2927 = vrot.lane.b32.xlu1 %v2744_v52, %s9151_s29  ;;  %v3093_v41 = vld [vmem:[#allocation2 + $0x112] sm:$0xff] }
 0x3a3   :  { %v2557_v9 = vpop.permute.xlu0 %2556  ;;  %v2559_v15 = vpop.permute.xlu1 %2558 }
 0x3a4   :  { %2687 = vst.msk [vmem:[#allocation3 + $0x1f0] sm:$0xff] %vm2624_vm8, %v2557_v9  ;;  %2688 = vst.msk [vmem:[#allocation3 + $0x1f8] sm:$0xff] %vm2624_vm8, %v2559_v15  ;;  %v3096_v15 = vld [vmem:[#allocation2 + $0x13a] sm:$0xff] }
 0x3a5   :  { %2929 = vrot.lane.b32.xlu0 %v2745_v0, %s9151_s29  ;;  %2931 = vrot.lane.b32.xlu1 %v2746_v5, %s9151_s29  ;;  %v3095_v0 = vld [vmem:[#allocation2 + $0x12a] sm:$0xff] }
 0x3a7   :  { %v2818_v49 = vpop.permute.xlu0 %2817  ;;  %v2820_v4 = vpop.permute.xlu1 %2819 }
 0x3a8   :  { %3010 = vst.msk [vmem:[#allocation3] sm:$0xff] %vm3009_vm9, %v2818_v49  ;;  %3011 = vst.msk [vmem:[#allocation3 + $0x8] sm:$0xff] %vm3009_vm9, %v2820_v4 }
 0x3a9   :  { %2933 = vrot.lane.b32.xlu0 %v2747_v33, %s9151_s29  ;;  %2935 = vrot.lane.b32.xlu1 %v2748_v29, %s9151_s29  ;;  %v3098_v33 = vld [vmem:[#allocation2 + $0x152] sm:$0xff]  ;;  %v3099_v29 = vld [vmem:[#allocation2 + $0x15a] sm:$0xff] }
 0x3ab   :  { %v2822_v21 = vpop.permute.xlu0 %2821  ;;  %v2824_v22 = vpop.permute.xlu1 %2823 }
 0x3ac   :  { %3012 = vst.msk [vmem:[#allocation3 + $0x10] sm:$0xff] %vm3009_vm9, %v2822_v21  ;;  %3013 = vst.msk [vmem:[#allocation3 + $0x18] sm:$0xff] %vm3009_vm9, %v2824_v22  ;;  %v3103_v21 = vld [vmem:[#allocation2 + $0x18a] sm:$0xff] }
 0x3ad   :  { %2937 = vrot.lane.b32.xlu0 %v2749_v17, %s9151_s29  ;;  %2939 = vrot.lane.b32.xlu1 %v2750_v18, %s9151_s29  ;;  %v3102_v18 = vld [vmem:[#allocation2 + $0x182] sm:$0xff] }
 0x3af   :  { %v2826_v30 = vpop.permute.xlu0 %2825  ;;  %v2828_v31 = vpop.permute.xlu1 %2827 }
 0x3b0   :  { %3014 = vst.msk [vmem:[#allocation3 + $0x20] sm:$0xff] %vm3009_vm9, %v2826_v30  ;;  %3015 = vst.msk [vmem:[#allocation3 + $0x28] sm:$0xff] %vm3009_vm9, %v2828_v31 }
 0x3b1   :  { %2941 = vrot.lane.b32.xlu0 %v2751_v26, %s9151_s29  ;;  %2943 = vrot.lane.b32.xlu1 %v2752_v27, %s9151_s29  ;;  %v3104_v26 = vld [vmem:[#allocation2 + $0x19a] sm:$0xff]  ;;  %v3105_v27 = vld [vmem:[#allocation2 + $0x1a2] sm:$0xff] }
 0x3b3   :  { %v2830_v35 = vpop.permute.xlu0 %2829  ;;  %v2832_v37 = vpop.permute.xlu1 %2831 }
 0x3b4   :  { %3016 = vst.msk [vmem:[#allocation3 + $0x30] sm:$0xff] %vm3009_vm9, %v2830_v35  ;;  %3017 = vst.msk [vmem:[#allocation3 + $0x38] sm:$0xff] %vm3009_vm9, %v2832_v37 }
 0x3b5   :  { %3202 = vrot.lane.b32.xlu0 %v3074_v32, %s9152_s1  ;;  %3204 = vrot.lane.b32.xlu1 %v3075_v34, %s9152_s1  ;;  %v3106_v32 = vld [vmem:[#allocation2 + $0x1e2] sm:$0xff]  ;;  %v3107_v34 = vld [vmem:[#allocation2 + $0x1ea] sm:$0xff] }
 0x3b7   :  { %v2834_v40 = vpop.permute.xlu0 %2833  ;;  %v2836_v42 = vpop.permute.xlu1 %2835 }
 0x3b8   :  { %3018 = vst.msk [vmem:[#allocation3 + $0x40] sm:$0xff] %vm3009_vm9, %v2834_v40  ;;  %3019 = vst.msk [vmem:[#allocation3 + $0x48] sm:$0xff] %vm3009_vm9, %v2836_v42 }
 0x3b9   :  { %3206 = vrot.lane.b32.xlu0 %v3076_v38, %s9152_s1  ;;  %3208 = vrot.lane.b32.xlu1 %v3077_v39, %s9152_s1  ;;  %v3108_v38 = vld [vmem:[#allocation2 + $0x1fa] sm:$0xff]  ;;  %v3109_v39 = vld [vmem:[#allocation2 + $0x202] sm:$0xff] }
 0x3bb   :  { %v2838_v46 = vpop.permute.xlu0 %2837  ;;  %v2840_v47 = vpop.permute.xlu1 %2839 }
 0x3bc   :  { %3020 = vst.msk [vmem:[#allocation3 + $0x50] sm:$0xff] %vm3009_vm9, %v2838_v46  ;;  %3021 = vst.msk [vmem:[#allocation3 + $0x58] sm:$0xff] %vm3009_vm9, %v2840_v47 }
 0x3bd   :  { %3210 = vrot.lane.b32.xlu0 %v3078_v43, %s9152_s1  ;;  %3212 = vrot.lane.b32.xlu1 %v3079_v45, %s9152_s1  ;;  %v3110_v43 = vld [vmem:[#allocation2 + $0x212] sm:$0xff]  ;;  %v3111_v45 = vld [vmem:[#allocation2 + $0x21a] sm:$0xff] }
 0x3bf   :  { %v2842_v51 = vpop.permute.xlu0 %2841  ;;  %v2844_v14 = vpop.permute.xlu1 %2843 }
 0x3c0   :  { %3022 = vst.msk [vmem:[#allocation3 + $0x60] sm:$0xff] %vm3009_vm9, %v2842_v51  ;;  %3023 = vst.msk [vmem:[#allocation3 + $0x68] sm:$0xff] %vm3009_vm9, %v2844_v14 }
 0x3c1   :  { %3214 = vrot.lane.b32.xlu0 %v3080_v48, %s9152_s1  ;;  %3216 = vrot.lane.b32.xlu1 %v3081_v50, %s9152_s1  ;;  %v3112_v48 = vld [vmem:[#allocation2 + $0x22a] sm:$0xff]  ;;  %v3113_v50 = vld [vmem:[#allocation2 + $0x232] sm:$0xff] }
 0x3c3   :  { %v2846_v54 = vpop.permute.xlu0 %2845  ;;  %v2848_v55 = vpop.permute.xlu1 %2847 }
 0x3c4   :  { %3024 = vst.msk [vmem:[#allocation3 + $0x70] sm:$0xff] %vm3009_vm9, %v2846_v54  ;;  %3025 = vst.msk [vmem:[#allocation3 + $0x78] sm:$0xff] %vm3009_vm9, %v2848_v55 }
 0x3c5   :  { %3218 = vrot.lane.b32.xlu0 %v3082_v58, %s9152_s1  ;;  %3220 = vrot.lane.b32.xlu1 %v3083_v53, %s9152_s1  ;;  %v3114_v58 = vld [vmem:[#allocation2 + $0x242] sm:$0xff]  ;;  %v3115_v53 = vld [vmem:[#allocation2 + $0x24a] sm:$0xff] }
 0x3c7   :  { %v2850_v1 = vpop.permute.xlu0 %2849  ;;  %v2852_v61 = vpop.permute.xlu1 %2851 }
 0x3c8   :  { %3026 = vst.msk [vmem:[#allocation3 + $0x80] sm:$0xff] %vm3009_vm9, %v2850_v1  ;;  %3027 = vst.msk [vmem:[#allocation3 + $0x88] sm:$0xff] %vm3009_vm9, %v2852_v61 }
 0x3c9   :  { %3222 = vrot.lane.b32.xlu0 %v3084_v56, %s9152_s1  ;;  %3224 = vrot.lane.b32.xlu1 %v3085_v10, %s9152_s1  ;;  %v3116_v56 = vld [vmem:[#allocation2 + $0x25a] sm:$0xff]  ;;  %v3117_v10 = vld [vmem:[#allocation2 + $0x262] sm:$0xff] }
 0x3cb   :  { %v2854_v2 = vpop.permute.xlu0 %2853  ;;  %v2856_v3 = vpop.permute.xlu1 %2855 }
 0x3cc   :  { %3028 = vst.msk [vmem:[#allocation3 + $0x90] sm:$0xff] %vm3009_vm9, %v2854_v2  ;;  %3029 = vst.msk [vmem:[#allocation3 + $0x98] sm:$0xff] %vm3009_vm9, %v2856_v3 }
 0x3cd   :  { %3226 = vrot.lane.b32.xlu0 %v3086_v62, %s9152_s1  ;;  %3228 = vrot.lane.b32.xlu1 %v3087_v63, %s9152_s1  ;;  %v3118_v62 = vld [vmem:[#allocation2 + $0x272] sm:$0xff]  ;;  %v3119_v63 = vld [vmem:[#allocation2 + $0x27a] sm:$0xff] }
 0x3cf   :  { %v2858_v11 = vpop.permute.xlu0 %2857  ;;  %v2860_v12 = vpop.permute.xlu1 %2859 }
 0x3d0   :  { %3030 = vst.msk [vmem:[#allocation3 + $0xa0] sm:$0xff] %vm3009_vm9, %v2858_v11  ;;  %3031 = vst.msk [vmem:[#allocation3 + $0xa8] sm:$0xff] %vm3009_vm9, %v2860_v12 }
 0x3d1   :  { %3230 = vrot.lane.b32.xlu0 %v3088_v6, %s9152_s1  ;;  %3232 = vrot.lane.b32.xlu1 %v3089_v7, %s9152_s1  ;;  %v3120_v6 = vld [vmem:[#allocation2 + $0x28a] sm:$0xff]  ;;  %v3121_v7 = vld [vmem:[#allocation2 + $0x292] sm:$0xff] }
 0x3d3   :  { %v2862_v24 = vpop.permute.xlu0 %2861  ;;  %v2864_v28 = vpop.permute.xlu1 %2863 }
 0x3d4   :  { %3032 = vst.msk [vmem:[#allocation3 + $0xb0] sm:$0xff] %vm3009_vm9, %v2862_v24  ;;  %3033 = vst.msk [vmem:[#allocation3 + $0xb8] sm:$0xff] %vm3009_vm9, %v2864_v28 }
 0x3d5   :  { %3234 = vrot.lane.b32.xlu0 %v3090_v16, %s9152_s1  ;;  %3236 = vrot.lane.b32.xlu1 %v3091_v19, %s9152_s1  ;;  %v3122_v16 = vld [vmem:[#allocation2 + $0x2a2] sm:$0xff]  ;;  %v3123_v19 = vld [vmem:[#allocation2 + $0x2aa] sm:$0xff] }
 0x3d7   :  { %v2866_v52 = vpop.permute.xlu0 %2865  ;;  %v2868_v57 = vpop.permute.xlu1 %2867 }
 0x3d8   :  { %3034 = vst.msk [vmem:[#allocation3 + $0xc0] sm:$0xff] %vm3009_vm9, %v2866_v52  ;;  %3035 = vst.msk [vmem:[#allocation3 + $0xc8] sm:$0xff] %vm3009_vm9, %v2868_v57 }
 0x3d9   :  { %3238 = vrot.lane.b32.xlu0 %v3092_v36, %s9152_s1  ;;  %3240 = vrot.lane.b32.xlu1 %v3093_v41, %s9152_s1  ;;  %v3124_v36 = vld [vmem:[#allocation2 + $0x2ba] sm:$0xff]  ;;  %v3125_v41 = vld [vmem:[#allocation2 + $0x2c2] sm:$0xff] }
 0x3db   :  { %v2870_v5 = vpop.permute.xlu0 %2869  ;;  %v2872_v9 = vpop.permute.xlu1 %2871 }
 0x3dc   :  { %3036 = vst.msk [vmem:[#allocation3 + $0xd0] sm:$0xff] %vm3009_vm9, %v2870_v5  ;;  %3037 = vst.msk [vmem:[#allocation3 + $0xd8] sm:$0xff] %vm3009_vm9, %v2872_v9 }
 0x3dd   :  { %3242 = vrot.lane.b32.xlu0 %v3094_v60, %s9152_s1  ;;  %3244 = vrot.lane.b32.xlu1 %v3095_v0, %s9152_s1  ;;  %v3126_v60 = vld [vmem:[#allocation2 + $0x2d2] sm:$0xff]  ;;  %v3127_v0 = vld [vmem:[#allocation2 + $0x2da] sm:$0xff] }
 0x3df   :  { %v2874_v23 = vpop.permute.xlu0 %2873  ;;  %v2876_v20 = vpop.permute.xlu1 %2875 }
 0x3e0   :  { %3038 = vst.msk [vmem:[#allocation3 + $0xe0] sm:$0xff] %vm3009_vm9, %v2874_v23  ;;  %3039 = vst.msk [vmem:[#allocation3 + $0xe8] sm:$0xff] %vm3009_vm9, %v2876_v20 }
 0x3e1   :  { %3246 = vrot.lane.b32.xlu0 %v3096_v15, %s9152_s1  ;;  %3248 = vrot.lane.b32.xlu1 %v3097_v59, %s9152_s1  ;;  %v3128_v15 = vld [vmem:[#allocation2 + $0x2ea] sm:$0xff]  ;;  %v3129_v59 = vld [vmem:[#allocation2 + $0x2f2] sm:$0xff] }
 0x3e3   :  { %v2878_v49 = vpop.permute.xlu0 %2877  ;;  %v2880_v4 = vpop.permute.xlu1 %2879 }
 0x3e4   :  { %3040 = vst.msk [vmem:[#allocation3 + $0xf0] sm:$0xff] %vm3009_vm9, %v2878_v49  ;;  %3041 = vst.msk [vmem:[#allocation3 + $0xf8] sm:$0xff] %vm3009_vm9, %v2880_v4 }
 0x3e5   :  { %3250 = vrot.lane.b32.xlu0 %v3098_v33, %s9152_s1  ;;  %3252 = vrot.lane.b32.xlu1 %v3099_v29, %s9152_s1  ;;  %v3130_v33 = vld [vmem:[#allocation2 + $0x302] sm:$0xff]  ;;  %v3131_v29 = vld [vmem:[#allocation2 + $0x30a] sm:$0xff] }
 0x3e7   :  { %v2882_v13 = vpop.permute.xlu0 %2881  ;;  %v2884_v17 = vpop.permute.xlu1 %2883 }
 0x3e8   :  { %3042 = vst.msk [vmem:[#allocation3 + $0x100] sm:$0xff] %vm3009_vm9, %v2882_v13  ;;  %3043 = vst.msk [vmem:[#allocation3 + $0x108] sm:$0xff] %vm3009_vm9, %v2884_v17 }
 0x3e9   :  { %3254 = vrot.lane.b32.xlu0 %v3100_v44, %s9152_s1  ;;  %3256 = vrot.lane.b32.xlu1 %v3101_v8, %s9152_s1  ;;  %v3132_v44 = vld [vmem:[#allocation2 + $0x31a] sm:$0xff]  ;;  %v3133_v8 = vld [vmem:[#allocation2 + $0x322] sm:$0xff] }
 0x3eb   :  { %v2886_v22 = vpop.permute.xlu0 %2885  ;;  %v2888_v25 = vpop.permute.xlu1 %2887 }
 0x3ec   :  { %3044 = vst.msk [vmem:[#allocation3 + $0x110] sm:$0xff] %vm3009_vm9, %v2886_v22  ;;  %3045 = vst.msk [vmem:[#allocation3 + $0x118] sm:$0xff] %vm3009_vm9, %v2888_v25 }
 0x3ed   :  { %3258 = vrot.lane.b32.xlu0 %v3102_v18, %s9152_s1  ;;  %3260 = vrot.lane.b32.xlu1 %v3103_v21, %s9152_s1  ;;  %v3134_v18 = vld [vmem:[#allocation2 + $0x332] sm:$0xff]  ;;  %v3135_v21 = vld [vmem:[#allocation2 + $0x33a] sm:$0xff] }
 0x3ef   :  { %v2890_v30 = vpop.permute.xlu0 %2889  ;;  %v2892_v31 = vpop.permute.xlu1 %2891 }
 0x3f0   :  { %3046 = vst.msk [vmem:[#allocation3 + $0x120] sm:$0xff] %vm3009_vm9, %v2890_v30  ;;  %3047 = vst.msk [vmem:[#allocation3 + $0x128] sm:$0xff] %vm3009_vm9, %v2892_v31 }
 0x3f1   :  { %3262 = vrot.lane.b32.xlu0 %v3104_v26, %s9152_s1  ;;  %3264 = vrot.lane.b32.xlu1 %v3105_v27, %s9152_s1 }
 0x3f3   :  { %v2894_v35 = vpop.permute.xlu0 %2893  ;;  %v2896_v37 = vpop.permute.xlu1 %2895 }
 0x3f4   :  { %3048 = vst.msk [vmem:[#allocation3 + $0x130] sm:$0xff] %vm3009_vm9, %v2894_v35  ;;  %3049 = vst.msk [vmem:[#allocation3 + $0x138] sm:$0xff] %vm3009_vm9, %v2896_v37 }
 0x3f5   :  { %3266 = vrot.lane.b32.xlu0 %v3106_v32, %s9152_s1  ;;  %3268 = vrot.lane.b32.xlu1 %v3107_v34, %s9152_s1 }
 0x3f7   :  { %v2898_v40 = vpop.permute.xlu0 %2897  ;;  %v2900_v42 = vpop.permute.xlu1 %2899 }
 0x3f8   :  { %3050 = vst.msk [vmem:[#allocation3 + $0x140] sm:$0xff] %vm3009_vm9, %v2898_v40  ;;  %3051 = vst.msk [vmem:[#allocation3 + $0x148] sm:$0xff] %vm3009_vm9, %v2900_v42 }
 0x3f9   :  { %3270 = vrot.lane.b32.xlu0 %v3108_v38, %s9152_s1  ;;  %3272 = vrot.lane.b32.xlu1 %v3109_v39, %s9152_s1 }
 0x3fb   :  { %v2902_v46 = vpop.permute.xlu0 %2901  ;;  %v2904_v47 = vpop.permute.xlu1 %2903 }
 0x3fc   :  { %3052 = vst.msk [vmem:[#allocation3 + $0x150] sm:$0xff] %vm3009_vm9, %v2902_v46  ;;  %3053 = vst.msk [vmem:[#allocation3 + $0x158] sm:$0xff] %vm3009_vm9, %v2904_v47 }
 0x3fd   :  { %3274 = vrot.lane.b32.xlu0 %v3110_v43, %s9152_s1  ;;  %3276 = vrot.lane.b32.xlu1 %v3111_v45, %s9152_s1 }
 0x3ff   :  { %v2906_v51 = vpop.permute.xlu0 %2905  ;;  %v2908_v14 = vpop.permute.xlu1 %2907 }
 0x400   :  { %3054 = vst.msk [vmem:[#allocation3 + $0x160] sm:$0xff] %vm3009_vm9, %v2906_v51  ;;  %3055 = vst.msk [vmem:[#allocation3 + $0x168] sm:$0xff] %vm3009_vm9, %v2908_v14 }
 0x401   :  { %3278 = vrot.lane.b32.xlu0 %v3112_v48, %s9152_s1  ;;  %3280 = vrot.lane.b32.xlu1 %v3113_v50, %s9152_s1 }
 0x403   :  { %v2910_v54 = vpop.permute.xlu0 %2909  ;;  %v2912_v55 = vpop.permute.xlu1 %2911 }
 0x404   :  { %3056 = vst.msk [vmem:[#allocation3 + $0x170] sm:$0xff] %vm3009_vm9, %v2910_v54  ;;  %3057 = vst.msk [vmem:[#allocation3 + $0x178] sm:$0xff] %vm3009_vm9, %v2912_v55 }
 0x405   :  { %3282 = vrot.lane.b32.xlu0 %v3114_v58, %s9152_s1  ;;  %3284 = vrot.lane.b32.xlu1 %v3115_v53, %s9152_s1 }
 0x407   :  { %v2914_v1 = vpop.permute.xlu0 %2913  ;;  %v2916_v61 = vpop.permute.xlu1 %2915 }
 0x408   :  { %3058 = vst.msk [vmem:[#allocation3 + $0x180] sm:$0xff] %vm3009_vm9, %v2914_v1  ;;  %3059 = vst.msk [vmem:[#allocation3 + $0x188] sm:$0xff] %vm3009_vm9, %v2916_v61 }
 0x409   :  { %3286 = vrot.lane.b32.xlu0 %v3116_v56, %s9152_s1  ;;  %3288 = vrot.lane.b32.xlu1 %v3117_v10, %s9152_s1 }
 0x40b   :  { %v2918_v2 = vpop.permute.xlu0 %2917  ;;  %v2920_v3 = vpop.permute.xlu1 %2919 }
 0x40c   :  { %3060 = vst.msk [vmem:[#allocation3 + $0x190] sm:$0xff] %vm3009_vm9, %v2918_v2  ;;  %3061 = vst.msk [vmem:[#allocation3 + $0x198] sm:$0xff] %vm3009_vm9, %v2920_v3 }
 0x40d   :  { %3290 = vrot.lane.b32.xlu0 %v3118_v62, %s9152_s1  ;;  %3292 = vrot.lane.b32.xlu1 %v3119_v63, %s9152_s1 }
 0x40f   :  { %v2922_v11 = vpop.permute.xlu0 %2921  ;;  %v2924_v12 = vpop.permute.xlu1 %2923 }
 0x410   :  { %3062 = vst.msk [vmem:[#allocation3 + $0x1a0] sm:$0xff] %vm3009_vm9, %v2922_v11  ;;  %3063 = vst.msk [vmem:[#allocation3 + $0x1a8] sm:$0xff] %vm3009_vm9, %v2924_v12 }
 0x411   :  { %3294 = vrot.lane.b32.xlu0 %v3120_v6, %s9152_s1  ;;  %3296 = vrot.lane.b32.xlu1 %v3121_v7, %s9152_s1 }
 0x413   :  { %v2926_v24 = vpop.permute.xlu0 %2925  ;;  %v2928_v28 = vpop.permute.xlu1 %2927 }
 0x414   :  { %3064 = vst.msk [vmem:[#allocation3 + $0x1b0] sm:$0xff] %vm3009_vm9, %v2926_v24  ;;  %3065 = vst.msk [vmem:[#allocation3 + $0x1b8] sm:$0xff] %vm3009_vm9, %v2928_v28 }
 0x415   :  { %3298 = vrot.lane.b32.xlu0 %v3122_v16, %s9152_s1  ;;  %3300 = vrot.lane.b32.xlu1 %v3123_v19, %s9152_s1 }
 0x417   :  { %v2930_v52 = vpop.permute.xlu0 %2929  ;;  %v2932_v57 = vpop.permute.xlu1 %2931 }
 0x418   :  { %3066 = vst.msk [vmem:[#allocation3 + $0x1c0] sm:$0xff] %vm3009_vm9, %v2930_v52  ;;  %3067 = vst.msk [vmem:[#allocation3 + $0x1c8] sm:$0xff] %vm3009_vm9, %v2932_v57 }
 0x419   :  { %3302 = vrot.lane.b32.xlu0 %v3124_v36, %s9152_s1  ;;  %3304 = vrot.lane.b32.xlu1 %v3125_v41, %s9152_s1 }
 0x41b   :  { %v2934_v5 = vpop.permute.xlu0 %2933  ;;  %v2936_v9 = vpop.permute.xlu1 %2935 }
 0x41c   :  { %3068 = vst.msk [vmem:[#allocation3 + $0x1d0] sm:$0xff] %vm3009_vm9, %v2934_v5  ;;  %3069 = vst.msk [vmem:[#allocation3 + $0x1d8] sm:$0xff] %vm3009_vm9, %v2936_v9 }
 0x41d   :  { %3306 = vrot.lane.b32.xlu0 %v3126_v60, %s9152_s1  ;;  %3308 = vrot.lane.b32.xlu1 %v3127_v0, %s9152_s1 }
 0x41f   :  { %v2938_v23 = vpop.permute.xlu0 %2937  ;;  %v2940_v20 = vpop.permute.xlu1 %2939 }
 0x420   :  { %3070 = vst.msk [vmem:[#allocation3 + $0x1e0] sm:$0xff] %vm3009_vm9, %v2938_v23  ;;  %3071 = vst.msk [vmem:[#allocation3 + $0x1e8] sm:$0xff] %vm3009_vm9, %v2940_v20 }
 0x421   :  { %3310 = vrot.lane.b32.xlu0 %v3128_v15, %s9152_s1  ;;  %3312 = vrot.lane.b32.xlu1 %v3129_v59, %s9152_s1 }
 0x423   :  { %v2942_v49 = vpop.permute.xlu0 %2941  ;;  %v2944_v4 = vpop.permute.xlu1 %2943 }
 0x424   :  { %3072 = vst.msk [vmem:[#allocation3 + $0x1f0] sm:$0xff] %vm3009_vm9, %v2942_v49  ;;  %3073 = vst.msk [vmem:[#allocation3 + $0x1f8] sm:$0xff] %vm3009_vm9, %v2944_v4 }
 0x425   :  { %3314 = vrot.lane.b32.xlu0 %v3130_v33, %s9152_s1  ;;  %3316 = vrot.lane.b32.xlu1 %v3131_v29, %s9152_s1 }
 0x427   :  { %v3203_v13 = vpop.permute.xlu0 %3202  ;;  %v3205_v17 = vpop.permute.xlu1 %3204 }
 0x428   :  { %3395 = vst.msk [vmem:[#allocation3] sm:$0xff] %vm3394_vm11, %v3203_v13  ;;  %3396 = vst.msk [vmem:[#allocation3 + $0x8] sm:$0xff] %vm3394_vm11, %v3205_v17 }
 0x429   :  { %3318 = vrot.lane.b32.xlu0 %v3132_v44, %s9152_s1  ;;  %3320 = vrot.lane.b32.xlu1 %v3133_v8, %s9152_s1 }
 0x42b   :  { %v3207_v22 = vpop.permute.xlu0 %3206  ;;  %v3209_v25 = vpop.permute.xlu1 %3208 }
 0x42c   :  { %3397 = vst.msk [vmem:[#allocation3 + $0x10] sm:$0xff] %vm3394_vm11, %v3207_v22  ;;  %3398 = vst.msk [vmem:[#allocation3 + $0x18] sm:$0xff] %vm3394_vm11, %v3209_v25 }
 0x42d   :  { %3322 = vrot.lane.b32.xlu0 %v3134_v18, %s9152_s1  ;;  %3324 = vrot.lane.b32.xlu1 %v3135_v21, %s9152_s1 }
 0x42f   :  { %v3211_v26 = vpop.permute.xlu0 %3210  ;;  %v3213_v27 = vpop.permute.xlu1 %3212  ;;  %v3459_v30 = vld [vmem:[#allocation3] sm:$0xff]  ;;  %v3460_v31 = vld [vmem:[#allocation3 + $0x8] sm:$0xff] }
 0x430   :  { %3399 = vst.msk [vmem:[#allocation3 + $0x20] sm:$0xff] %vm3394_vm11, %v3211_v26  ;;  %3400 = vst.msk [vmem:[#allocation3 + $0x28] sm:$0xff] %vm3394_vm11, %v3213_v27  ;;  %8899 = vmatprep.mubr.msk.f32.mxu0 %vm3533_vm12, %v3459_v30 }
 0x431   :  { %8900 = vmatmul.mubr.msk.f32.vlgmr.msra.gmra.mrb[0].mxu0 %vm3533_vm12, %v3460_v31 }
 0x433   :  { %v3215_v32 = vpop.permute.xlu0 %3214  ;;  %v3217_v34 = vpop.permute.xlu1 %3216  ;;  %v3461_v35 = vld [vmem:[#allocation3 + $0x10] sm:$0xff]  ;;  %v3462_v37 = vld [vmem:[#allocation3 + $0x18] sm:$0xff] }
 0x434   :  { %3401 = vst.msk [vmem:[#allocation3 + $0x30] sm:$0xff] %vm3394_vm11, %v3215_v32  ;;  %3402 = vst.msk [vmem:[#allocation3 + $0x38] sm:$0xff] %vm3394_vm11, %v3217_v34  ;;  %8902 = vmatprep.mubr.msk.f32.mxu0 %vm3533_vm12, %v3461_v35 }
 0x435   :  { %8903 = vmatmul.mubr.msk.f32.gmra.mrb[2].mxu0 %vm3533_vm12, %v3462_v37 }
 0x437   :  { %v3219_v38 = vpop.permute.xlu0 %3218  ;;  %v3221_v39 = vpop.permute.xlu1 %3220  ;;  %v3463_v40 = vld [vmem:[#allocation3 + $0x20] sm:$0xff]  ;;  %v3464_v42 = vld [vmem:[#allocation3 + $0x28] sm:$0xff] }
 0x438   :  { %3403 = vst.msk [vmem:[#allocation3 + $0x40] sm:$0xff] %vm3394_vm11, %v3219_v38  ;;  %3404 = vst.msk [vmem:[#allocation3 + $0x48] sm:$0xff] %vm3394_vm11, %v3221_v39  ;;  %8905 = vmatprep.mubr.msk.f32.mxu0 %vm3533_vm12, %v3463_v40 }
 0x439   :  { %8906 = vmatmul.mubr.msk.f32.gmra.mrb[4].mxu0 %vm3533_vm12, %v3464_v42 }
 0x43b   :  { %v3223_v43 = vpop.permute.xlu0 %3222  ;;  %v3225_v45 = vpop.permute.xlu1 %3224  ;;  %v3465_v46 = vld [vmem:[#allocation3 + $0x30] sm:$0xff]  ;;  %v3466_v47 = vld [vmem:[#allocation3 + $0x38] sm:$0xff] }
 0x43c   :  { %3405 = vst.msk [vmem:[#allocation3 + $0x50] sm:$0xff] %vm3394_vm11, %v3223_v43  ;;  %3406 = vst.msk [vmem:[#allocation3 + $0x58] sm:$0xff] %vm3394_vm11, %v3225_v45  ;;  %8908 = vmatprep.mubr.msk.f32.mxu0 %vm3533_vm12, %v3465_v46 }
 0x43d   :  { %8909 = vmatmul.mubr.msk.f32.gmra.mrb[6].mxu0 %vm3533_vm12, %v3466_v47 }
 0x43f   :  { %v3227_v48 = vpop.permute.xlu0 %3226  ;;  %v3229_v50 = vpop.permute.xlu1 %3228  ;;  %v3467_v51 = vld [vmem:[#allocation3 + $0x40] sm:$0xff]  ;;  %v3468_v14 = vld [vmem:[#allocation3 + $0x48] sm:$0xff] }
 0x440   :  { %3407 = vst.msk [vmem:[#allocation3 + $0x60] sm:$0xff] %vm3394_vm11, %v3227_v48  ;;  %3408 = vst.msk [vmem:[#allocation3 + $0x68] sm:$0xff] %vm3394_vm11, %v3229_v50  ;;  %8911 = vmatprep.mubr.msk.f32.mxu0 %vm3533_vm12, %v3467_v51 }
 0x441   :  { %8912 = vmatmul.mubr.msk.f32.gmra.mrb[8].mxu0 %vm3533_vm12, %v3468_v14 }
 0x443   :  { %v3231_v58 = vpop.permute.xlu0 %3230  ;;  %v3233_v53 = vpop.permute.xlu1 %3232  ;;  %v3469_v54 = vld [vmem:[#allocation3 + $0x50] sm:$0xff]  ;;  %v3470_v55 = vld [vmem:[#allocation3 + $0x58] sm:$0xff] }
 0x444   :  { %3409 = vst.msk [vmem:[#allocation3 + $0x70] sm:$0xff] %vm3394_vm11, %v3231_v58  ;;  %3410 = vst.msk [vmem:[#allocation3 + $0x78] sm:$0xff] %vm3394_vm11, %v3233_v53  ;;  %8914 = vmatprep.mubr.msk.f32.mxu0 %vm3533_vm12, %v3469_v54 }
 0x445   :  { %8915 = vmatmul.mubr.msk.f32.gmra.mrb[10].mxu0 %vm3533_vm12, %v3470_v55 }
 0x447   :  { %v3235_v56 = vpop.permute.xlu0 %3234  ;;  %v3237_v10 = vpop.permute.xlu1 %3236  ;;  %v3471_v1 = vld [vmem:[#allocation3 + $0x60] sm:$0xff]  ;;  %v3472_v61 = vld [vmem:[#allocation3 + $0x68] sm:$0xff] }
 0x448   :  { %3411 = vst.msk [vmem:[#allocation3 + $0x80] sm:$0xff] %vm3394_vm11, %v3235_v56  ;;  %3412 = vst.msk [vmem:[#allocation3 + $0x88] sm:$0xff] %vm3394_vm11, %v3237_v10  ;;  %8917 = vmatprep.mubr.msk.f32.mxu0 %vm3533_vm12, %v3471_v1 }
 0x449   :  { %8918 = vmatmul.mubr.msk.f32.gmra.mrb[12].mxu0 %vm3533_vm12, %v3472_v61 }
 0x44b   :  { %v3239_v62 = vpop.permute.xlu0 %3238  ;;  %v3241_v63 = vpop.permute.xlu1 %3240  ;;  %v3473_v2 = vld [vmem:[#allocation3 + $0x70] sm:$0xff]  ;;  %v3474_v3 = vld [vmem:[#allocation3 + $0x78] sm:$0xff] }
 0x44c   :  { %3413 = vst.msk [vmem:[#allocation3 + $0x90] sm:$0xff] %vm3394_vm11, %v3239_v62  ;;  %3414 = vst.msk [vmem:[#allocation3 + $0x98] sm:$0xff] %vm3394_vm11, %v3241_v63  ;;  %8920 = vmatprep.mubr.msk.f32.mxu0 %vm3533_vm12, %v3473_v2  ;;  %v3136_v62 = vld [vmem:[#allocation2 + $0x34a] sm:$0xff]  ;;  %v3137_v63 = vld [vmem:[#allocation2 + $0x352] sm:$0xff] }
 0x44d   :  { %8921 = vmatmul.mubr.msk.f32.gmra.mrb[14].mxu0 %vm3533_vm12, %v3474_v3  ;;  %3326 = vrot.lane.b32.xlu0 %v3136_v62, %s9152_s1 }
 0x44e   :  { %3328 = vrot.lane.b32.xlu1 %v3137_v63, %s9152_s1 }
 0x44f   :  { %v3243_v6 = vpop.permute.xlu0 %3242  ;;  %v3245_v7 = vpop.permute.xlu1 %3244  ;;  %v3475_v11 = vld [vmem:[#allocation3 + $0x80] sm:$0xff]  ;;  %v3476_v12 = vld [vmem:[#allocation3 + $0x88] sm:$0xff] }
 0x450   :  { %3415 = vst.msk [vmem:[#allocation3 + $0xa0] sm:$0xff] %vm3394_vm11, %v3243_v6  ;;  %3416 = vst.msk [vmem:[#allocation3 + $0xa8] sm:$0xff] %vm3394_vm11, %v3245_v7  ;;  %8923 = vmatprep.mubr.msk.f32.mxu0 %vm3533_vm12, %v3475_v11  ;;  %v4502_v11 = vld [vmem:[#allocation2 + $0x9] sm:$0xff] }
 0x451   :  { %8924 = vmatmul.mubr.msk.f32.gmra.mrb[16].mxu0 %vm3533_vm12, %v3476_v12  ;;  %v4501_v12 = vld [vmem:[#allocation2 + $0x1] sm:$0xff] }
 0x452   :  { %4631 = vrot.lane.b32.xlu1 %v4502_v11, %s9145_s17  ;;  %4629 = vrot.lane.b32.xlu0 %v4501_v12, %s9145_s17 }
 0x453   :  { %v3247_v16 = vpop.permute.xlu0 %3246  ;;  %v3249_v19 = vpop.permute.xlu1 %3248  ;;  %v3477_v24 = vld [vmem:[#allocation3 + $0x90] sm:$0xff]  ;;  %v3478_v28 = vld [vmem:[#allocation3 + $0x98] sm:$0xff] }
 0x454   :  { %3417 = vst.msk [vmem:[#allocation3 + $0xb0] sm:$0xff] %vm3394_vm11, %v3247_v16  ;;  %3418 = vst.msk [vmem:[#allocation3 + $0xb8] sm:$0xff] %vm3394_vm11, %v3249_v19  ;;  %8926 = vmatprep.mubr.msk.f32.mxu0 %vm3533_vm12, %v3477_v24 }
 0x455   :  { %8927 = vmatmul.mubr.msk.f32.gmra.mrb[18].mxu0 %vm3533_vm12, %v3478_v28 }
 0x457   :  { %v3251_v36 = vpop.permute.xlu0 %3250  ;;  %v3253_v41 = vpop.permute.xlu1 %3252  ;;  %v3479_v52 = vld [vmem:[#allocation3 + $0xa0] sm:$0xff]  ;;  %v3480_v57 = vld [vmem:[#allocation3 + $0xa8] sm:$0xff] }
 0x458   :  { %3419 = vst.msk [vmem:[#allocation3 + $0xc0] sm:$0xff] %vm3394_vm11, %v3251_v36  ;;  %3420 = vst.msk [vmem:[#allocation3 + $0xc8] sm:$0xff] %vm3394_vm11, %v3253_v41  ;;  %8929 = vmatprep.mubr.msk.f32.mxu0 %vm3533_vm12, %v3479_v52 }
 0x459   :  { %8930 = vmatmul.mubr.msk.f32.gmra.mrb[20].mxu0 %vm3533_vm12, %v3480_v57 }
 0x45b   :  { %v3255_v60 = vpop.permute.xlu0 %3254  ;;  %v3257_v0 = vpop.permute.xlu1 %3256  ;;  %v3481_v5 = vld [vmem:[#allocation3 + $0xb0] sm:$0xff]  ;;  %v3482_v9 = vld [vmem:[#allocation3 + $0xb8] sm:$0xff] }
 0x45c   :  { %3421 = vst.msk [vmem:[#allocation3 + $0xd0] sm:$0xff] %vm3394_vm11, %v3255_v60  ;;  %3422 = vst.msk [vmem:[#allocation3 + $0xd8] sm:$0xff] %vm3394_vm11, %v3257_v0  ;;  %8932 = vmatprep.mubr.msk.f32.mxu0 %vm3533_vm12, %v3481_v5 }
 0x45d   :  { %8933 = vmatmul.mubr.msk.f32.gmra.mrb[22].mxu0 %vm3533_vm12, %v3482_v9 }
 0x45f   :  { %v3259_v15 = vpop.permute.xlu0 %3258  ;;  %v3261_v59 = vpop.permute.xlu1 %3260  ;;  %v3483_v23 = vld [vmem:[#allocation3 + $0xc0] sm:$0xff]  ;;  %v3484_v20 = vld [vmem:[#allocation3 + $0xc8] sm:$0xff] }
 0x460   :  { %3423 = vst.msk [vmem:[#allocation3 + $0xe0] sm:$0xff] %vm3394_vm11, %v3259_v15  ;;  %3424 = vst.msk [vmem:[#allocation3 + $0xe8] sm:$0xff] %vm3394_vm11, %v3261_v59  ;;  %8935 = vmatprep.mubr.msk.f32.mxu0 %vm3533_vm12, %v3483_v23 }
 0x461   :  { %8936 = vmatmul.mubr.msk.f32.gmra.mrb[24].mxu0 %vm3533_vm12, %v3484_v20 }
 0x463   :  { %v3263_v33 = vpop.permute.xlu0 %3262  ;;  %v3265_v29 = vpop.permute.xlu1 %3264  ;;  %v3485_v49 = vld [vmem:[#allocation3 + $0xd0] sm:$0xff]  ;;  %v3486_v4 = vld [vmem:[#allocation3 + $0xd8] sm:$0xff] }
 0x464   :  { %3425 = vst.msk [vmem:[#allocation3 + $0xf0] sm:$0xff] %vm3394_vm11, %v3263_v33  ;;  %3426 = vst.msk [vmem:[#allocation3 + $0xf8] sm:$0xff] %vm3394_vm11, %v3265_v29  ;;  %8938 = vmatprep.mubr.msk.f32.mxu0 %vm3533_vm12, %v3485_v49 }
 0x465   :  { %8939 = vmatmul.mubr.msk.f32.gmra.mrb[26].mxu0 %vm3533_vm12, %v3486_v4 }
 0x467   :  { %v3267_v44 = vpop.permute.xlu0 %3266  ;;  %v3269_v8 = vpop.permute.xlu1 %3268  ;;  %v3487_v13 = vld [vmem:[#allocation3 + $0xe0] sm:$0xff]  ;;  %v3488_v17 = vld [vmem:[#allocation3 + $0xe8] sm:$0xff] }
 0x468   :  { %3427 = vst.msk [vmem:[#allocation3 + $0x100] sm:$0xff] %vm3394_vm11, %v3267_v44  ;;  %3428 = vst.msk [vmem:[#allocation3 + $0x108] sm:$0xff] %vm3394_vm11, %v3269_v8  ;;  %8941 = vmatprep.mubr.msk.f32.mxu0 %vm3533_vm12, %v3487_v13 }
 0x469   :  { %8942 = vmatmul.mubr.msk.f32.gmra.mrb[28].mxu0 %vm3533_vm12, %v3488_v17 }
 0x46b   :  { %v3271_v18 = vpop.permute.xlu0 %3270  ;;  %v3273_v21 = vpop.permute.xlu1 %3272  ;;  %v3489_v22 = vld [vmem:[#allocation3 + $0xf0] sm:$0xff]  ;;  %v3490_v25 = vld [vmem:[#allocation3 + $0xf8] sm:$0xff] }
 0x46c   :  { %3429 = vst.msk [vmem:[#allocation3 + $0x110] sm:$0xff] %vm3394_vm11, %v3271_v18  ;;  %3430 = vst.msk [vmem:[#allocation3 + $0x118] sm:$0xff] %vm3394_vm11, %v3273_v21  ;;  %8944 = vmatprep.mubr.msk.f32.mxu0 %vm3533_vm12, %v3489_v22  ;;  %v4373_v22 = vld [vmem:[#allocation2] sm:$0xff] }
 0x46d   :  { %8945 = vmatmul.mubr.msk.f32.gmra.mrb[30].mxu0 %vm3533_vm12, %v3490_v25  ;;  %v4374_v25 = vld [vmem:[#allocation2 + $0x8] sm:$0xff]  ;;  %4437 = vst.msk [vmem:[#allocation3] sm:$0xff] %vm33_vm0, %v4373_v22 }
 0x46e   :  { %4438 = vst.msk [vmem:[#allocation3 + $0x8] sm:$0xff] %vm33_vm0, %v4374_v25 }
 0x46f   :  { %v3275_v26 = vpop.permute.xlu0 %3274  ;;  %v3277_v27 = vpop.permute.xlu1 %3276  ;;  %v3491_v30 = vld [vmem:[#allocation3 + $0x100] sm:$0xff]  ;;  %v3492_v31 = vld [vmem:[#allocation3 + $0x108] sm:$0xff] }
 0x470   :  { %3431 = vst.msk [vmem:[#allocation3 + $0x120] sm:$0xff] %vm3394_vm11, %v3275_v26  ;;  %3432 = vst.msk [vmem:[#allocation3 + $0x128] sm:$0xff] %vm3394_vm11, %v3277_v27  ;;  %8947 = vmatprep.mubr.msk.f32.mxu0 %vm3533_vm12, %v3491_v30  ;;  %v11028_v27 = vld [vmem:[%s13388_s3] ss:$0 sm:$0xff] }
 0x471   :  { %8948 = vmatmul.mubr.msk.f32.gmra.mrb[32].mxu0 %vm3533_vm12, %v3492_v31 }
 0x473   :  { %v3279_v32 = vpop.permute.xlu0 %3278  ;;  %v3281_v34 = vpop.permute.xlu1 %3280  ;;  %v3493_v35 = vld [vmem:[#allocation3 + $0x110] sm:$0xff]  ;;  %v3494_v37 = vld [vmem:[#allocation3 + $0x118] sm:$0xff] }
 0x474   :  { %3433 = vst.msk [vmem:[#allocation3 + $0x130] sm:$0xff] %vm3394_vm11, %v3279_v32  ;;  %3434 = vst.msk [vmem:[#allocation3 + $0x138] sm:$0xff] %vm3394_vm11, %v3281_v34  ;;  %8950 = vmatprep.mubr.msk.f32.mxu0 %vm3533_vm12, %v3493_v35  ;;  %v11034_v35 = vstv %s4115_s15 }
 0x475   :  { %8951 = vmatmul.mubr.msk.f32.gmra.mrb[34].mxu0 %vm3533_vm12, %v3494_v37 }
 0x477   :  { %v3283_v38 = vpop.permute.xlu0 %3282  ;;  %v3285_v39 = vpop.permute.xlu1 %3284  ;;  %v3495_v40 = vld [vmem:[#allocation3 + $0x120] sm:$0xff]  ;;  %v3496_v42 = vld [vmem:[#allocation3 + $0x128] sm:$0xff] }
 0x478   :  { %3435 = vst.msk [vmem:[#allocation3 + $0x140] sm:$0xff] %vm3394_vm11, %v3283_v38  ;;  %3436 = vst.msk [vmem:[#allocation3 + $0x148] sm:$0xff] %vm3394_vm11, %v3285_v39  ;;  %8953 = vmatprep.mubr.msk.f32.mxu0 %vm3533_vm12, %v3495_v40 }
 0x479   :  { %8954 = vmatmul.mubr.msk.f32.gmra.mrb[36].mxu0 %vm3533_vm12, %v3496_v42 }
 0x47b   :  { %v3287_v43 = vpop.permute.xlu0 %3286  ;;  %v3289_v45 = vpop.permute.xlu1 %3288  ;;  %v3497_v46 = vld [vmem:[#allocation3 + $0x130] sm:$0xff]  ;;  %v3498_v47 = vld [vmem:[#allocation3 + $0x138] sm:$0xff] }
 0x47c   :  { %3437 = vst.msk [vmem:[#allocation3 + $0x150] sm:$0xff] %vm3394_vm11, %v3287_v43  ;;  %3438 = vst.msk [vmem:[#allocation3 + $0x158] sm:$0xff] %vm3394_vm11, %v3289_v45  ;;  %8956 = vmatprep.mubr.msk.f32.mxu0 %vm3533_vm12, %v3497_v46 }
 0x47d   :  { %8957 = vmatmul.mubr.msk.f32.gmra.mrb[38].mxu0 %vm3533_vm12, %v3498_v47 }
 0x47f   :  { %v3291_v48 = vpop.permute.xlu0 %3290  ;;  %v3293_v50 = vpop.permute.xlu1 %3292  ;;  %v3499_v51 = vld [vmem:[#allocation3 + $0x140] sm:$0xff]  ;;  %v3500_v14 = vld [vmem:[#allocation3 + $0x148] sm:$0xff] }
 0x480   :  { %3439 = vst.msk [vmem:[#allocation3 + $0x160] sm:$0xff] %vm3394_vm11, %v3291_v48  ;;  %3440 = vst.msk [vmem:[#allocation3 + $0x168] sm:$0xff] %vm3394_vm11, %v3293_v50  ;;  %8959 = vmatprep.mubr.msk.f32.mxu0 %vm3533_vm12, %v3499_v51 }
 0x481   :  { %8960 = vmatmul.mubr.msk.f32.gmra.mrb[40].mxu0 %vm3533_vm12, %v3500_v14 }
 0x483   :  { %v3295_v58 = vpop.permute.xlu0 %3294  ;;  %v3297_v53 = vpop.permute.xlu1 %3296  ;;  %v3501_v54 = vld [vmem:[#allocation3 + $0x150] sm:$0xff]  ;;  %v3502_v55 = vld [vmem:[#allocation3 + $0x158] sm:$0xff] }
 0x484   :  { %3441 = vst.msk [vmem:[#allocation3 + $0x170] sm:$0xff] %vm3394_vm11, %v3295_v58  ;;  %3442 = vst.msk [vmem:[#allocation3 + $0x178] sm:$0xff] %vm3394_vm11, %v3297_v53  ;;  %8962 = vmatprep.mubr.msk.f32.mxu0 %vm3533_vm12, %v3501_v54 }
 0x485   :  { %8963 = vmatmul.mubr.msk.f32.gmra.mrb[42].mxu0 %vm3533_vm12, %v3502_v55 }
 0x487   :  { %v3299_v56 = vpop.permute.xlu0 %3298  ;;  %v3301_v10 = vpop.permute.xlu1 %3300  ;;  %v3503_v1 = vld [vmem:[#allocation3 + $0x160] sm:$0xff]  ;;  %v3504_v61 = vld [vmem:[#allocation3 + $0x168] sm:$0xff] }
 0x488   :  { %3443 = vst.msk [vmem:[#allocation3 + $0x180] sm:$0xff] %vm3394_vm11, %v3299_v56  ;;  %3444 = vst.msk [vmem:[#allocation3 + $0x188] sm:$0xff] %vm3394_vm11, %v3301_v10  ;;  %8965 = vmatprep.mubr.msk.f32.mxu0 %vm3533_vm12, %v3503_v1 }
 0x489   :  { %8966 = vmatmul.mubr.msk.f32.gmra.mrb[44].mxu0 %vm3533_vm12, %v3504_v61 }
 0x48b   :  { %v3303_v2 = vpop.permute.xlu0 %3302  ;;  %v3305_v3 = vpop.permute.xlu1 %3304  ;;  %v3505_v6 = vld [vmem:[#allocation3 + $0x170] sm:$0xff]  ;;  %v3506_v7 = vld [vmem:[#allocation3 + $0x178] sm:$0xff] }
 0x48c   :  { %3445 = vst.msk [vmem:[#allocation3 + $0x190] sm:$0xff] %vm3394_vm11, %v3303_v2  ;;  %3446 = vst.msk [vmem:[#allocation3 + $0x198] sm:$0xff] %vm3394_vm11, %v3305_v3  ;;  %8968 = vmatprep.mubr.msk.f32.mxu0 %vm3533_vm12, %v3505_v6 }
 0x48d   :  { %8969 = vmatmul.mubr.msk.f32.gmra.mrb[46].mxu0 %vm3533_vm12, %v3506_v7 }
 0x48f   :  { %v3307_v16 = vpop.permute.xlu0 %3306  ;;  %v3309_v19 = vpop.permute.xlu1 %3308  ;;  %v3507_v24 = vld [vmem:[#allocation3 + $0x180] sm:$0xff]  ;;  %v3508_v28 = vld [vmem:[#allocation3 + $0x188] sm:$0xff] }
 0x490   :  { %3447 = vst.msk [vmem:[#allocation3 + $0x1a0] sm:$0xff] %vm3394_vm11, %v3307_v16  ;;  %3448 = vst.msk [vmem:[#allocation3 + $0x1a8] sm:$0xff] %vm3394_vm11, %v3309_v19  ;;  %8971 = vmatprep.mubr.msk.f32.mxu0 %vm3533_vm12, %v3507_v24 }
 0x491   :  { %8972 = vmatmul.mubr.msk.f32.gmra.mrb[48].mxu0 %vm3533_vm12, %v3508_v28 }
 0x493   :  { %v3311_v36 = vpop.permute.xlu0 %3310  ;;  %v3313_v41 = vpop.permute.xlu1 %3312  ;;  %v3509_v52 = vld [vmem:[#allocation3 + $0x190] sm:$0xff]  ;;  %v3510_v57 = vld [vmem:[#allocation3 + $0x198] sm:$0xff] }
 0x494   :  { %3449 = vst.msk [vmem:[#allocation3 + $0x1b0] sm:$0xff] %vm3394_vm11, %v3311_v36  ;;  %3450 = vst.msk [vmem:[#allocation3 + $0x1b8] sm:$0xff] %vm3394_vm11, %v3313_v41  ;;  %8974 = vmatprep.mubr.msk.f32.mxu0 %vm3533_vm12, %v3509_v52 }
 0x495   :  { %8975 = vmatmul.mubr.msk.f32.gmra.mrb[50].mxu0 %vm3533_vm12, %v3510_v57 }
 0x497   :  { %v3315_v60 = vpop.permute.xlu0 %3314  ;;  %v3317_v0 = vpop.permute.xlu1 %3316  ;;  %v3511_v5 = vld [vmem:[#allocation3 + $0x1a0] sm:$0xff]  ;;  %v3512_v9 = vld [vmem:[#allocation3 + $0x1a8] sm:$0xff] }
 0x498   :  { %3451 = vst.msk [vmem:[#allocation3 + $0x1c0] sm:$0xff] %vm3394_vm11, %v3315_v60  ;;  %3452 = vst.msk [vmem:[#allocation3 + $0x1c8] sm:$0xff] %vm3394_vm11, %v3317_v0  ;;  %8977 = vmatprep.mubr.msk.f32.mxu0 %vm3533_vm12, %v3511_v5 }
 0x499   :  { %8978 = vmatmul.mubr.msk.f32.gmra.mrb[52].mxu0 %vm3533_vm12, %v3512_v9 }
 0x49b   :  { %v3319_v15 = vpop.permute.xlu0 %3318  ;;  %v3321_v59 = vpop.permute.xlu1 %3320  ;;  %v3513_v23 = vld [vmem:[#allocation3 + $0x1b0] sm:$0xff]  ;;  %v3514_v20 = vld [vmem:[#allocation3 + $0x1b8] sm:$0xff] }
 0x49c   :  { %3453 = vst.msk [vmem:[#allocation3 + $0x1d0] sm:$0xff] %vm3394_vm11, %v3319_v15  ;;  %3454 = vst.msk [vmem:[#allocation3 + $0x1d8] sm:$0xff] %vm3394_vm11, %v3321_v59  ;;  %8980 = vmatprep.mubr.msk.f32.mxu0 %vm3533_vm12, %v3513_v23 }
 0x49d   :  { %8981 = vmatmul.mubr.msk.f32.gmra.mrb[54].mxu0 %vm3533_vm12, %v3514_v20 }
 0x49f   :  { %v3323_v33 = vpop.permute.xlu0 %3322  ;;  %v3325_v29 = vpop.permute.xlu1 %3324  ;;  %v3515_v49 = vld [vmem:[#allocation3 + $0x1c0] sm:$0xff]  ;;  %v3516_v4 = vld [vmem:[#allocation3 + $0x1c8] sm:$0xff] }
 0x4a0   :  { %3455 = vst.msk [vmem:[#allocation3 + $0x1e0] sm:$0xff] %vm3394_vm11, %v3323_v33  ;;  %3456 = vst.msk [vmem:[#allocation3 + $0x1e8] sm:$0xff] %vm3394_vm11, %v3325_v29  ;;  %8983 = vmatprep.mubr.msk.f32.mxu0 %vm3533_vm12, %v3515_v49 }
 0x4a1   :  { %8984 = vmatmul.mubr.msk.f32.gmra.mrb[56].mxu0 %vm3533_vm12, %v3516_v4 }
 0x4a3   :  { %v3517_v44 = vld [vmem:[#allocation3 + $0x1d0] sm:$0xff]  ;;  %v3518_v8 = vld [vmem:[#allocation3 + $0x1d8] sm:$0xff] }
 0x4a4   :  { %8986 = vmatprep.mubr.msk.f32.mxu0 %vm3533_vm12, %v3517_v44 }
 0x4a5   :  { %8987 = vmatmul.mubr.msk.f32.gmra.mrb[58].mxu0 %vm3533_vm12, %v3518_v8 }
 0x4a7   :  { %v3519_v13 = vld [vmem:[#allocation3 + $0x1e0] sm:$0xff]  ;;  %v3520_v17 = vld [vmem:[#allocation3 + $0x1e8] sm:$0xff] }
 0x4a8   :  { %8989 = vmatprep.mubr.msk.f32.mxu0 %vm3533_vm12, %v3519_v13 }
 0x4a9   :  { %8990 = vmatmul.mubr.msk.f32.gmra.mrb[60].mxu0 %vm3533_vm12, %v3520_v17 }
 0x4bf   :  { %v3327_v18 = vpop.permute.xlu0 %3326 }
 0x4c0   :  { %3457 = vst.msk [vmem:[#allocation3 + $0x1f0] sm:$0xff] %vm3394_vm11, %v3327_v18  ;;  %v3329_v21 = vpop.permute.xlu1 %3328 }
 0x4c1   :  { %3458 = vst.msk [vmem:[#allocation3 + $0x1f8] sm:$0xff] %vm3394_vm11, %v3329_v21 }
 0x4c4   :  { %v4630_v26 = vpop.permute.xlu0 %4629  ;;  %v4632_v30 = vpop.permute.xlu1 %4631 }
 0x4c5   :  { %4821 = vst.msk [vmem:[#allocation3] sm:$0xff] %vm698_vm3, %v4630_v26  ;;  %4822 = vst.msk [vmem:[#allocation3 + $0x8] sm:$0xff] %vm698_vm3, %v4632_v30 }
 0x4c7   :  { %v3521_v31 = vld [vmem:[#allocation3 + $0x1f0] sm:$0xff] }
 0x4c8   :  { %8992 = vmatprep.mubr.msk.f32.mxu0 %vm3533_vm12, %v3521_v31  ;;  %v3522_v32 = vld [vmem:[#allocation3 + $0x1f8] sm:$0xff] }
 0x4c9   :  { %8993 = vmatmul.mubr.msk.f32.gmra.mrb[62].mxu0 %vm3533_vm12, %v3522_v32 }
 0x504   :  { %v8901_v34 = vpop.f32.mrb[0].mxu0 }
 0x505   :  { %v3802_v37 = vadd.f32 %v8901_v34, %v11028_v27  ;;  %v3796_v38 = vpop.f32.mrb[1].mxu0 }
 0x506   :  { %v3797_v39 = vadd.f32 %v11028_v27, %v3796_v38 }
 0x507   :  { %vm4117_vm13 = vcmp.ge.f32.partialorder %v3802_v37, 0.0  ;;  %v4182_v40 = vmul.f32 %v11034_v35, %v3802_v37 }
 0x508   :  { %vm4116_vm14 = vcmp.ge.f32.partialorder %v3797_v39, 0.0  ;;  %v4181_v42 = vmul.f32 %v11034_v35, %v3797_v39  ;;  %v8904_v43 = vpop.f32.mrb[2].mxu0 }
 0x509   :  { %v4246_v45 = vsel %vm4117_vm13, %v3802_v37, %v4182_v40  ;;  %v3812_v46 = vadd.f32 %v8904_v43, %v11028_v27  ;;  %v3806_v47 = vpop.f32.mrb[3].mxu0 }
 0x50a   :  { %4310 = vst.msk [vmem:[#allocation2 + $0x21] sm:$0xff] %vm33_vm0, %v4246_v45  ;;  %v4245_v48 = vsel %vm4116_vm14, %v3797_v39, %v4181_v42  ;;  %v3807_v50 = vadd.f32 %v11028_v27, %v3806_v47 }
 0x50b   :  { %4309 = vst.msk [vmem:[#allocation2 + $0x19] sm:$0xff] %vm33_vm0, %v4245_v48  ;;  %vm4119_vm15 = vcmp.ge.f32.partialorder %v3812_v46, 0.0  ;;  %v4184_v51 = vmul.f32 %v11034_v35, %v3812_v46 }
 0x50c   :  { %vm4118_vm1 = vcmp.ge.f32.partialorder %v3807_v50, 0.0  ;;  %v4183_v14 = vmul.f32 %v11034_v35, %v3807_v50  ;;  %v8907_v58 = vpop.f32.mrb[4].mxu0 }
 0x50d   :  { %v4248_v53 = vsel %vm4119_vm15, %v3812_v46, %v4184_v51  ;;  %v3822_v54 = vadd.f32 %v8907_v58, %v11028_v27  ;;  %v3816_v55 = vpop.f32.mrb[5].mxu0 }
 0x50e   :  { %4312 = vst.msk [vmem:[#allocation2 + $0x39] sm:$0xff] %vm33_vm0, %v4248_v53  ;;  %v4247_v56 = vsel %vm4118_vm1, %v3807_v50, %v4183_v14  ;;  %v3817_v10 = vadd.f32 %v11028_v27, %v3816_v55 }
 0x50f   :  { %4311 = vst.msk [vmem:[#allocation2 + $0x31] sm:$0xff] %vm33_vm0, %v4247_v56  ;;  %vm4121_vm2 = vcmp.ge.f32.partialorder %v3822_v54, 0.0  ;;  %v4186_v1 = vmul.f32 %v11034_v35, %v3822_v54 }
 0x510   :  { %vm4120_vm13 = vcmp.ge.f32.partialorder %v3817_v10, 0.0  ;;  %v4185_v61 = vmul.f32 %v11034_v35, %v3817_v10  ;;  %v8910_v62 = vpop.f32.mrb[6].mxu0 }
 0x511   :  { %v4250_v63 = vsel %vm4121_vm2, %v3822_v54, %v4186_v1  ;;  %v3832_v2 = vadd.f32 %v8910_v62, %v11028_v27  ;;  %v3826_v3 = vpop.f32.mrb[7].mxu0  ;;  %v4504_v6 = vld [vmem:[#allocation2 + $0x21] sm:$0xff] }
 0x512   :  { %4314 = vst.msk [vmem:[#allocation2 + $0x51] sm:$0xff] %vm33_vm0, %v4250_v63  ;;  %v4249_v7 = vsel %vm4120_vm13, %v3817_v10, %v4185_v61  ;;  %v3827_v11 = vadd.f32 %v11028_v27, %v3826_v3  ;;  %4635 = vrot.lane.b32.xlu1 %v4504_v6, %s9145_s17  ;;  %v4503_v12 = vld [vmem:[#allocation2 + $0x19] sm:$0xff] }
 0x513   :  { %v11057_v16 = vld [vmem:[#allocation2 + $0x20] sm:$0xff]  ;;  %v11059_v19 = vld [vmem:[#allocation2 + $0x18] sm:$0xff]  ;;  %4313 = vst.msk [vmem:[#allocation2 + $0x49] sm:$0xff] %vm33_vm0, %v4249_v7  ;;  %vm4123_vm14 = vcmp.ge.f32.partialorder %v3832_v2, 0.0  ;;  %v4188_v24 = vmul.f32 %v11034_v35, %v3832_v2  ;;  %4633 = vrot.lane.b32.xlu0 %v4503_v12, %s9145_s17 }
 0x514   :  { %4440 = vst.msk [vmem:[#allocation3 + $0x18] sm:$0xff] %vm33_vm0, %v11057_v16  ;;  %4439 = vst.msk [vmem:[#allocation3 + $0x10] sm:$0xff] %vm33_vm0, %v11059_v19  ;;  %vm4122_vm15 = vcmp.ge.f32.partialorder %v3827_v11, 0.0  ;;  %v4187_v28 = vmul.f32 %v11034_v35, %v3827_v11  ;;  %v8913_v36 = vpop.f32.mrb[8].mxu0 }
 0x515   :  { %v4252_v41 = vsel %vm4123_vm14, %v3832_v2, %v4188_v24  ;;  %v3842_v52 = vadd.f32 %v8913_v36, %v11028_v27  ;;  %v3836_v57 = vpop.f32.mrb[9].mxu0  ;;  %v4506_v60 = vld [vmem:[#allocation2 + $0x39] sm:$0xff] }
 0x516   :  { %4316 = vst.msk [vmem:[#allocation2 + $0x69] sm:$0xff] %vm33_vm0, %v4252_v41  ;;  %v4251_v0 = vsel %vm4122_vm15, %v3827_v11, %v4187_v28  ;;  %v3837_v5 = vadd.f32 %v11028_v27, %v3836_v57  ;;  %4639 = vrot.lane.b32.xlu1 %v4506_v60, %s9145_s17  ;;  %v4505_v9 = vld [vmem:[#allocation2 + $0x31] sm:$0xff] }
 0x517   :  { %v11073_v15 = vld [vmem:[#allocation2 + $0x38] sm:$0xff]  ;;  %v11075_v59 = vld [vmem:[#allocation2 + $0x30] sm:$0xff]  ;;  %4315 = vst.msk [vmem:[#allocation2 + $0x61] sm:$0xff] %vm33_vm0, %v4251_v0  ;;  %vm4125_vm1 = vcmp.ge.f32.partialorder %v3842_v52, 0.0  ;;  %v4190_v23 = vmul.f32 %v11034_v35, %v3842_v52  ;;  %4637 = vrot.lane.b32.xlu0 %v4505_v9, %s9145_s17 }
 0x518   :  { %4442 = vst.msk [vmem:[#allocation3 + $0x28] sm:$0xff] %vm33_vm0, %v11073_v15  ;;  %4441 = vst.msk [vmem:[#allocation3 + $0x20] sm:$0xff] %vm33_vm0, %v11075_v59  ;;  %vm4124_vm2 = vcmp.ge.f32.partialorder %v3837_v5, 0.0  ;;  %v4189_v20 = vmul.f32 %v11034_v35, %v3837_v5  ;;  %v8916_v33 = vpop.f32.mrb[10].mxu0 }
 0x519   :  { %v4254_v29 = vsel %vm4125_vm1, %v3842_v52, %v4190_v23  ;;  %v3852_v49 = vadd.f32 %v8916_v33, %v11028_v27  ;;  %v3846_v4 = vpop.f32.mrb[11].mxu0  ;;  %v4508_v44 = vld [vmem:[#allocation2 + $0x51] sm:$0xff] }
 0x51a   :  { %4318 = vst.msk [vmem:[#allocation2 + $0x81] sm:$0xff] %vm33_vm0, %v4254_v29  ;;  %v4253_v8 = vsel %vm4124_vm2, %v3837_v5, %v4189_v20  ;;  %v3847_v13 = vadd.f32 %v11028_v27, %v3846_v4  ;;  %4643 = vrot.lane.b32.xlu1 %v4508_v44, %s9145_s17  ;;  %v4507_v17 = vld [vmem:[#allocation2 + $0x49] sm:$0xff] }
 0x51b   :  { %v11089_v18 = vld [vmem:[#allocation2 + $0x50] sm:$0xff]  ;;  %v11091_v21 = vld [vmem:[#allocation2 + $0x48] sm:$0xff]  ;;  %4317 = vst.msk [vmem:[#allocation2 + $0x79] sm:$0xff] %vm33_vm0, %v4253_v8  ;;  %vm4127_vm13 = vcmp.ge.f32.partialorder %v3852_v49, 0.0  ;;  %v4192_v22 = vmul.f32 %v11034_v35, %v3852_v49  ;;  %4641 = vrot.lane.b32.xlu0 %v4507_v17, %s9145_s17 }
 0x51c   :  { %4444 = vst.msk [vmem:[#allocation3 + $0x38] sm:$0xff] %vm33_vm0, %v11089_v18  ;;  %4443 = vst.msk [vmem:[#allocation3 + $0x30] sm:$0xff] %vm33_vm0, %v11091_v21  ;;  %vm4126_vm14 = vcmp.ge.f32.partialorder %v3847_v13, 0.0  ;;  %v4191_v25 = vmul.f32 %v11034_v35, %v3847_v13  ;;  %v8919_v26 = vpop.f32.mrb[12].mxu0 }
 0x51d   :  { %v4256_v30 = vsel %vm4127_vm13, %v3852_v49, %v4192_v22  ;;  %v3862_v31 = vadd.f32 %v8919_v26, %v11028_v27  ;;  %v3856_v32 = vpop.f32.mrb[13].mxu0  ;;  %v4510_v34 = vld [vmem:[#allocation2 + $0x69] sm:$0xff] }
 0x51e   :  { %4320 = vst.msk [vmem:[#allocation2 + $0x99] sm:$0xff] %vm33_vm0, %v4256_v30  ;;  %v4255_v37 = vsel %vm4126_vm14, %v3847_v13, %v4191_v25  ;;  %v3857_v38 = vadd.f32 %v11028_v27, %v3856_v32  ;;  %4647 = vrot.lane.b32.xlu1 %v4510_v34, %s9145_s17  ;;  %v4509_v39 = vld [vmem:[#allocation2 + $0x61] sm:$0xff] }
 0x51f   :  { %v11105_v40 = vld [vmem:[#allocation2 + $0x68] sm:$0xff]  ;;  %v11107_v42 = vld [vmem:[#allocation2 + $0x60] sm:$0xff]  ;;  %4319 = vst.msk [vmem:[#allocation2 + $0x91] sm:$0xff] %vm33_vm0, %v4255_v37  ;;  %vm4129_vm15 = vcmp.ge.f32.partialorder %v3862_v31, 0.0  ;;  %v4194_v43 = vmul.f32 %v11034_v35, %v3862_v31  ;;  %4645 = vrot.lane.b32.xlu0 %v4509_v39, %s9145_s17 }
 0x520   :  { %4446 = vst.msk [vmem:[#allocation3 + $0x48] sm:$0xff] %vm33_vm0, %v11105_v40  ;;  %4445 = vst.msk [vmem:[#allocation3 + $0x40] sm:$0xff] %vm33_vm0, %v11107_v42  ;;  %vm4128_vm1 = vcmp.ge.f32.partialorder %v3857_v38, 0.0  ;;  %v4193_v45 = vmul.f32 %v11034_v35, %v3857_v38  ;;  %v8922_v46 = vpop.f32.mrb[14].mxu0 }
 0x521   :  { %v4258_v47 = vsel %vm4129_vm15, %v3862_v31, %v4194_v43  ;;  %v3872_v48 = vadd.f32 %v8922_v46, %v11028_v27  ;;  %v3866_v50 = vpop.f32.mrb[15].mxu0  ;;  %v4512_v51 = vld [vmem:[#allocation2 + $0x81] sm:$0xff] }
 0x522   :  { %4322 = vst.msk [vmem:[#allocation2 + $0xb1] sm:$0xff] %vm33_vm0, %v4258_v47  ;;  %v4257_v14 = vsel %vm4128_vm1, %v3857_v38, %v4193_v45  ;;  %v3867_v58 = vadd.f32 %v11028_v27, %v3866_v50  ;;  %4651 = vrot.lane.b32.xlu1 %v4512_v51, %s9145_s17  ;;  %v4511_v53 = vld [vmem:[#allocation2 + $0x79] sm:$0xff] }
 0x523   :  { %v11121_v54 = vld [vmem:[#allocation2 + $0x80] sm:$0xff]  ;;  %v11123_v55 = vld [vmem:[#allocation2 + $0x78] sm:$0xff]  ;;  %4321 = vst.msk [vmem:[#allocation2 + $0xa9] sm:$0xff] %vm33_vm0, %v4257_v14  ;;  %vm4131_vm2 = vcmp.ge.f32.partialorder %v3872_v48, 0.0  ;;  %v4196_v56 = vmul.f32 %v11034_v35, %v3872_v48  ;;  %4649 = vrot.lane.b32.xlu0 %v4511_v53, %s9145_s17 }
 0x524   :  { %4448 = vst.msk [vmem:[#allocation3 + $0x58] sm:$0xff] %vm33_vm0, %v11121_v54  ;;  %4447 = vst.msk [vmem:[#allocation3 + $0x50] sm:$0xff] %vm33_vm0, %v11123_v55  ;;  %vm4130_vm13 = vcmp.ge.f32.partialorder %v3867_v58, 0.0  ;;  %v4195_v10 = vmul.f32 %v11034_v35, %v3867_v58  ;;  %v8925_v1 = vpop.f32.mrb[16].mxu0 }
 0x525   :  { %v4260_v61 = vsel %vm4131_vm2, %v3872_v48, %v4196_v56  ;;  %v3882_v62 = vadd.f32 %v8925_v1, %v11028_v27  ;;  %v3876_v63 = vpop.f32.mrb[17].mxu0  ;;  %v4514_v2 = vld [vmem:[#allocation2 + $0x99] sm:$0xff] }
 0x526   :  { %4324 = vst.msk [vmem:[#allocation2 + $0xc9] sm:$0xff] %vm33_vm0, %v4260_v61  ;;  %v4259_v3 = vsel %vm4130_vm13, %v3867_v58, %v4195_v10  ;;  %v3877_v6 = vadd.f32 %v11028_v27, %v3876_v63  ;;  %4655 = vrot.lane.b32.xlu1 %v4514_v2, %s9145_s17  ;;  %v4513_v7 = vld [vmem:[#allocation2 + $0x91] sm:$0xff] }
 0x527   :  { %v11137_v11 = vld [vmem:[#allocation2 + $0x98] sm:$0xff]  ;;  %v11139_v12 = vld [vmem:[#allocation2 + $0x90] sm:$0xff]  ;;  %4323 = vst.msk [vmem:[#allocation2 + $0xc1] sm:$0xff] %vm33_vm0, %v4259_v3  ;;  %vm4133_vm14 = vcmp.ge.f32.partialorder %v3882_v62, 0.0  ;;  %v4198_v24 = vmul.f32 %v11034_v35, %v3882_v62  ;;  %4653 = vrot.lane.b32.xlu0 %v4513_v7, %s9145_s17 }
 0x528   :  { %4450 = vst.msk [vmem:[#allocation3 + $0x68] sm:$0xff] %vm33_vm0, %v11137_v11  ;;  %4449 = vst.msk [vmem:[#allocation3 + $0x60] sm:$0xff] %vm33_vm0, %v11139_v12  ;;  %vm4132_vm15 = vcmp.ge.f32.partialorder %v3877_v6, 0.0  ;;  %v4197_v28 = vmul.f32 %v11034_v35, %v3877_v6  ;;  %v8928_v36 = vpop.f32.mrb[18].mxu0 }
 0x529   :  { %v4262_v41 = vsel %vm4133_vm14, %v3882_v62, %v4198_v24  ;;  %v3892_v52 = vadd.f32 %v8928_v36, %v11028_v27  ;;  %v3886_v57 = vpop.f32.mrb[19].mxu0  ;;  %v4516_v60 = vld [vmem:[#allocation2 + $0xb1] sm:$0xff] }
 0x52a   :  { %4326 = vst.msk [vmem:[#allocation2 + $0xe1] sm:$0xff] %vm33_vm0, %v4262_v41  ;;  %v4261_v0 = vsel %vm4132_vm15, %v3877_v6, %v4197_v28  ;;  %v3887_v5 = vadd.f32 %v11028_v27, %v3886_v57  ;;  %4659 = vrot.lane.b32.xlu1 %v4516_v60, %s9145_s17  ;;  %v4515_v9 = vld [vmem:[#allocation2 + $0xa9] sm:$0xff] }
 0x52b   :  { %v11153_v23 = vld [vmem:[#allocation2 + $0xb0] sm:$0xff]  ;;  %v11155_v20 = vld [vmem:[#allocation2 + $0xa8] sm:$0xff]  ;;  %4325 = vst.msk [vmem:[#allocation2 + $0xd9] sm:$0xff] %vm33_vm0, %v4261_v0  ;;  %vm4135_vm1 = vcmp.ge.f32.partialorder %v3892_v52, 0.0  ;;  %v4200_v33 = vmul.f32 %v11034_v35, %v3892_v52  ;;  %4657 = vrot.lane.b32.xlu0 %v4515_v9, %s9145_s17 }
 0x52c   :  { %4452 = vst.msk [vmem:[#allocation3 + $0x78] sm:$0xff] %vm33_vm0, %v11153_v23  ;;  %4451 = vst.msk [vmem:[#allocation3 + $0x70] sm:$0xff] %vm33_vm0, %v11155_v20  ;;  %vm4134_vm2 = vcmp.ge.f32.partialorder %v3887_v5, 0.0  ;;  %v4199_v29 = vmul.f32 %v11034_v35, %v3887_v5  ;;  %v8931_v49 = vpop.f32.mrb[20].mxu0 }
 0x52d   :  { %v4264_v4 = vsel %vm4135_vm1, %v3892_v52, %v4200_v33  ;;  %v3902_v44 = vadd.f32 %v8931_v49, %v11028_v27  ;;  %v3896_v8 = vpop.f32.mrb[21].mxu0  ;;  %v4518_v13 = vld [vmem:[#allocation2 + $0xc9] sm:$0xff] }
 0x52e   :  { %4328 = vst.msk [vmem:[#allocation2 + $0xf9] sm:$0xff] %vm33_vm0, %v4264_v4  ;;  %v4263_v17 = vsel %vm4134_vm2, %v3887_v5, %v4199_v29  ;;  %v3897_v22 = vadd.f32 %v11028_v27, %v3896_v8  ;;  %4663 = vrot.lane.b32.xlu1 %v4518_v13, %s9145_s17  ;;  %v4517_v25 = vld [vmem:[#allocation2 + $0xc1] sm:$0xff] }
 0x52f   :  { %v11169_v26 = vld [vmem:[#allocation2 + $0xc8] sm:$0xff]  ;;  %v11171_v30 = vld [vmem:[#allocation2 + $0xc0] sm:$0xff]  ;;  %4327 = vst.msk [vmem:[#allocation2 + $0xf1] sm:$0xff] %vm33_vm0, %v4263_v17  ;;  %vm4137_vm13 = vcmp.ge.f32.partialorder %v3902_v44, 0.0  ;;  %v4202_v31 = vmul.f32 %v11034_v35, %v3902_v44  ;;  %4661 = vrot.lane.b32.xlu0 %v4517_v25, %s9145_s17 }
 0x530   :  { %4454 = vst.msk [vmem:[#allocation3 + $0x88] sm:$0xff] %vm33_vm0, %v11169_v26  ;;  %4453 = vst.msk [vmem:[#allocation3 + $0x80] sm:$0xff] %vm33_vm0, %v11171_v30  ;;  %vm4136_vm14 = vcmp.ge.f32.partialorder %v3897_v22, 0.0  ;;  %v4201_v32 = vmul.f32 %v11034_v35, %v3897_v22  ;;  %v8934_v34 = vpop.f32.mrb[22].mxu0 }
 0x531   :  { %v4266_v37 = vsel %vm4137_vm13, %v3902_v44, %v4202_v31  ;;  %v3912_v38 = vadd.f32 %v8934_v34, %v11028_v27  ;;  %v3906_v39 = vpop.f32.mrb[23].mxu0  ;;  %v4520_v43 = vld [vmem:[#allocation2 + $0xe1] sm:$0xff] }
 0x532   :  { %4330 = vst.msk [vmem:[#allocation2 + $0x111] sm:$0xff] %vm33_vm0, %v4266_v37  ;;  %v4265_v45 = vsel %vm4136_vm14, %v3897_v22, %v4201_v32  ;;  %v3907_v46 = vadd.f32 %v11028_v27, %v3906_v39  ;;  %4667 = vrot.lane.b32.xlu1 %v4520_v43, %s9145_s17  ;;  %v4519_v47 = vld [vmem:[#allocation2 + $0xd9] sm:$0xff] }
 0x533   :  { %v11185_v48 = vld [vmem:[#allocation2 + $0xe0] sm:$0xff]  ;;  %v11187_v50 = vld [vmem:[#allocation2 + $0xd8] sm:$0xff]  ;;  %4329 = vst.msk [vmem:[#allocation2 + $0x109] sm:$0xff] %vm33_vm0, %v4265_v45  ;;  %vm4139_vm15 = vcmp.ge.f32.partialorder %v3912_v38, 0.0  ;;  %v4204_v51 = vmul.f32 %v11034_v35, %v3912_v38  ;;  %4665 = vrot.lane.b32.xlu0 %v4519_v47, %s9145_s17 }
 0x534   :  { %4456 = vst.msk [vmem:[#allocation3 + $0x98] sm:$0xff] %vm33_vm0, %v11185_v48  ;;  %4455 = vst.msk [vmem:[#allocation3 + $0x90] sm:$0xff] %vm33_vm0, %v11187_v50  ;;  %vm4138_vm1 = vcmp.ge.f32.partialorder %v3907_v46, 0.0  ;;  %v4203_v14 = vmul.f32 %v11034_v35, %v3907_v46  ;;  %v8937_v58 = vpop.f32.mrb[24].mxu0  ;;  %v4406_v37 = vld [vmem:[#allocation2 + $0x1b8] sm:$0xff] }
 0x535   :  { %v4268_v53 = vsel %vm4139_vm15, %v3912_v38, %v4204_v51  ;;  %v3922_v56 = vadd.f32 %v8937_v58, %v11028_v27  ;;  %v3916_v10 = vpop.f32.mrb[25].mxu0  ;;  %v4522_v1 = vld [vmem:[#allocation2 + $0xf9] sm:$0xff]  ;;  %4470 = vst.msk [vmem:[#allocation3 + $0x108] sm:$0xff] %vm33_vm0, %v4406_v37  ;;  %v4405_v51 = vld [vmem:[#allocation2 + $0x1b0] sm:$0xff] }
 0x536   :  { %4332 = vst.msk [vmem:[#allocation2 + $0x129] sm:$0xff] %vm33_vm0, %v4268_v53  ;;  %v4267_v61 = vsel %vm4138_vm1, %v3907_v46, %v4203_v14  ;;  %v3917_v62 = vadd.f32 %v11028_v27, %v3916_v10  ;;  %4671 = vrot.lane.b32.xlu1 %v4522_v1, %s9145_s17  ;;  %v4521_v63 = vld [vmem:[#allocation2 + $0xf1] sm:$0xff]  ;;  %4469 = vst.msk [vmem:[#allocation3 + $0x100] sm:$0xff] %vm33_vm0, %v4405_v51  ;;  %v4534_v37 = vld [vmem:[#allocation2 + $0x1b9] sm:$0xff] }
 0x537   :  { %v11201_v2 = vld [vmem:[#allocation2 + $0xf8] sm:$0xff]  ;;  %v11203_v3 = vld [vmem:[#allocation2 + $0xf0] sm:$0xff]  ;;  %4331 = vst.msk [vmem:[#allocation2 + $0x121] sm:$0xff] %vm33_vm0, %v4267_v61  ;;  %vm4141_vm2 = vcmp.ge.f32.partialorder %v3922_v56, 0.0  ;;  %v4206_v6 = vmul.f32 %v11034_v35, %v3922_v56  ;;  %4669 = vrot.lane.b32.xlu0 %v4521_v63, %s9145_s17 }
 0x538   :  { %4458 = vst.msk [vmem:[#allocation3 + $0xa8] sm:$0xff] %vm33_vm0, %v11201_v2  ;;  %4457 = vst.msk [vmem:[#allocation3 + $0xa0] sm:$0xff] %vm33_vm0, %v11203_v3  ;;  %vm4140_vm13 = vcmp.ge.f32.partialorder %v3917_v62, 0.0  ;;  %v4205_v7 = vmul.f32 %v11034_v35, %v3917_v62  ;;  %v8940_v24 = vpop.f32.mrb[26].mxu0 }
 0x539   :  { %v4270_v28 = vsel %vm4141_vm2, %v3922_v56, %v4206_v6  ;;  %v3932_v36 = vadd.f32 %v8940_v24, %v11028_v27  ;;  %v3926_v41 = vpop.f32.mrb[27].mxu0  ;;  %v4524_v52 = vld [vmem:[#allocation2 + $0x111] sm:$0xff] }
 0x53a   :  { %4334 = vst.msk [vmem:[#allocation2 + $0x141] sm:$0xff] %vm33_vm0, %v4270_v28  ;;  %v4269_v57 = vsel %vm4140_vm13, %v3917_v62, %v4205_v7  ;;  %v3927_v60 = vadd.f32 %v11028_v27, %v3926_v41  ;;  %4675 = vrot.lane.b32.xlu1 %v4524_v52, %s9145_s17  ;;  %v4523_v0 = vld [vmem:[#allocation2 + $0x109] sm:$0xff] }
 0x53b   :  { %v11217_v5 = vld [vmem:[#allocation2 + $0x110] sm:$0xff]  ;;  %v11219_v9 = vld [vmem:[#allocation2 + $0x108] sm:$0xff]  ;;  %4333 = vst.msk [vmem:[#allocation2 + $0x139] sm:$0xff] %vm33_vm0, %v4269_v57  ;;  %vm4143_vm14 = vcmp.ge.f32.partialorder %v3932_v36, 0.0  ;;  %v4208_v33 = vmul.f32 %v11034_v35, %v3932_v36  ;;  %4673 = vrot.lane.b32.xlu0 %v4523_v0, %s9145_s17 }
 0x53c   :  { %4460 = vst.msk [vmem:[#allocation3 + $0xb8] sm:$0xff] %vm33_vm0, %v11217_v5  ;;  %4459 = vst.msk [vmem:[#allocation3 + $0xb0] sm:$0xff] %vm33_vm0, %v11219_v9  ;;  %vm4142_vm15 = vcmp.ge.f32.partialorder %v3927_v60, 0.0  ;;  %v4207_v29 = vmul.f32 %v11034_v35, %v3927_v60  ;;  %v8943_v49 = vpop.f32.mrb[28].mxu0 }
 0x53d   :  { %v4272_v4 = vsel %vm4143_vm14, %v3932_v36, %v4208_v33  ;;  %v3942_v44 = vadd.f32 %v8943_v49, %v11028_v27  ;;  %v3936_v8 = vpop.f32.mrb[29].mxu0  ;;  %v4526_v13 = vld [vmem:[#allocation2 + $0x129] sm:$0xff] }
 0x53e   :  { %4336 = vst.msk [vmem:[#allocation2 + $0x159] sm:$0xff] %vm33_vm0, %v4272_v4  ;;  %v4271_v17 = vsel %vm4142_vm15, %v3927_v60, %v4207_v29  ;;  %v3937_v22 = vadd.f32 %v11028_v27, %v3936_v8  ;;  %4679 = vrot.lane.b32.xlu1 %v4526_v13, %s9145_s17  ;;  %v4525_v25 = vld [vmem:[#allocation2 + $0x121] sm:$0xff] }
 0x53f   :  { %v11233_v31 = vld [vmem:[#allocation2 + $0x128] sm:$0xff]  ;;  %v11235_v32 = vld [vmem:[#allocation2 + $0x120] sm:$0xff]  ;;  %4335 = vst.msk [vmem:[#allocation2 + $0x151] sm:$0xff] %vm33_vm0, %v4271_v17  ;;  %vm4145_vm1 = vcmp.ge.f32.partialorder %v3942_v44, 0.0  ;;  %v4210_v34 = vmul.f32 %v11034_v35, %v3942_v44  ;;  %4677 = vrot.lane.b32.xlu0 %v4525_v25, %s9145_s17 }
 0x540   :  { %4462 = vst.msk [vmem:[#allocation3 + $0xc8] sm:$0xff] %vm33_vm0, %v11233_v31  ;;  %4461 = vst.msk [vmem:[#allocation3 + $0xc0] sm:$0xff] %vm33_vm0, %v11235_v32  ;;  %vm4144_vm2 = vcmp.ge.f32.partialorder %v3937_v22, 0.0  ;;  %v4209_v38 = vmul.f32 %v11034_v35, %v3937_v22  ;;  %v8946_v39 = vpop.f32.mrb[30].mxu0 }
 0x541   :  { %v4274_v43 = vsel %vm4145_vm1, %v3942_v44, %v4210_v34  ;;  %v3952_v45 = vadd.f32 %v8946_v39, %v11028_v27  ;;  %v3946_v46 = vpop.f32.mrb[31].mxu0  ;;  %v4528_v47 = vld [vmem:[#allocation2 + $0x141] sm:$0xff] }
 0x542   :  { %4338 = vst.msk [vmem:[#allocation2 + $0x171] sm:$0xff] %vm33_vm0, %v4274_v43  ;;  %v4273_v14 = vsel %vm4144_vm2, %v3937_v22, %v4209_v38  ;;  %v3947_v58 = vadd.f32 %v11028_v27, %v3946_v46  ;;  %4683 = vrot.lane.b32.xlu1 %v4528_v47, %s9145_s17  ;;  %v4527_v53 = vld [vmem:[#allocation2 + $0x139] sm:$0xff]  ;;  %v4533_v43 = vld [vmem:[#allocation2 + $0x1b1] sm:$0xff] }
 0x543   :  { %v11250_v56 = vld [vmem:[#allocation2 + $0x140] sm:$0xff]  ;;  %v11252_v10 = vld [vmem:[#allocation2 + $0x138] sm:$0xff]  ;;  %4337 = vst.msk [vmem:[#allocation2 + $0x169] sm:$0xff] %vm33_vm0, %v4273_v14  ;;  %vm4147_vm13 = vcmp.ge.f32.partialorder %v3952_v45, 0.0  ;;  %v4212_v1 = vmul.f32 %v11034_v35, %v3952_v45  ;;  %4681 = vrot.lane.b32.xlu0 %v4527_v53, %s9145_s17 }
 0x544   :  { %4464 = vst.msk [vmem:[#allocation3 + $0xd8] sm:$0xff] %vm33_vm0, %v11250_v56  ;;  %4463 = vst.msk [vmem:[#allocation3 + $0xd0] sm:$0xff] %vm33_vm0, %v11252_v10  ;;  %vm4146_vm14 = vcmp.ge.f32.partialorder %v3947_v58, 0.0  ;;  %v4211_v61 = vmul.f32 %v11034_v35, %v3947_v58  ;;  %v8949_v62 = vpop.f32.mrb[32].mxu0 }
 0x545   :  { %v4276_v63 = vsel %vm4147_vm13, %v3952_v45, %v4212_v1  ;;  %v3962_v6 = vadd.f32 %v8949_v62, %v11028_v27  ;;  %v3956_v7 = vpop.f32.mrb[33].mxu0  ;;  %v4530_v24 = vld [vmem:[#allocation2 + $0x159] sm:$0xff] }
 0x546   :  { %4340 = vst.msk [vmem:[#allocation2 + $0x189] sm:$0xff] %vm33_vm0, %v4276_v63  ;;  %v4275_v28 = vsel %vm4146_vm14, %v3947_v58, %v4211_v61  ;;  %v3957_v36 = vadd.f32 %v11028_v27, %v3956_v7  ;;  %4687 = vrot.lane.b32.xlu1 %v4530_v24, %s9145_s17  ;;  %v4529_v41 = vld [vmem:[#allocation2 + $0x151] sm:$0xff] }
 0x547   :  { %v11267_v52 = vld [vmem:[#allocation2 + $0x158] sm:$0xff]  ;;  %v11269_v57 = vld [vmem:[#allocation2 + $0x150] sm:$0xff]  ;;  %4339 = vst.msk [vmem:[#allocation2 + $0x181] sm:$0xff] %vm33_vm0, %v4275_v28  ;;  %vm4149_vm15 = vcmp.ge.f32.partialorder %v3962_v6, 0.0  ;;  %v4214_v60 = vmul.f32 %v11034_v35, %v3962_v6  ;;  %4685 = vrot.lane.b32.xlu0 %v4529_v41, %s9145_s17 }
 0x548   :  { %4466 = vst.msk [vmem:[#allocation3 + $0xe8] sm:$0xff] %vm33_vm0, %v11267_v52  ;;  %4465 = vst.msk [vmem:[#allocation3 + $0xe0] sm:$0xff] %vm33_vm0, %v11269_v57  ;;  %vm4148_vm1 = vcmp.ge.f32.partialorder %v3957_v36, 0.0  ;;  %v4213_v0 = vmul.f32 %v11034_v35, %v3957_v36  ;;  %v8952_v33 = vpop.f32.mrb[34].mxu0 }
 0x549   :  { %v4278_v29 = vsel %vm4149_vm15, %v3962_v6, %v4214_v60  ;;  %v3972_v49 = vadd.f32 %v8952_v33, %v11028_v27  ;;  %v3966_v4 = vpop.f32.mrb[35].mxu0  ;;  %v4532_v44 = vld [vmem:[#allocation2 + $0x171] sm:$0xff] }
 0x54a   :  { %4342 = vst.msk [vmem:[#allocation2 + $0x1d1] sm:$0xff] %vm33_vm0, %v4278_v29  ;;  %v4277_v8 = vsel %vm4148_vm1, %v3957_v36, %v4213_v0  ;;  %v3967_v13 = vadd.f32 %v11028_v27, %v3966_v4  ;;  %4691 = vrot.lane.b32.xlu1 %v4532_v44, %s9145_s17  ;;  %v4531_v17 = vld [vmem:[#allocation2 + $0x169] sm:$0xff] }
 0x54b   :  { %v11283_v22 = vld [vmem:[#allocation2 + $0x170] sm:$0xff]  ;;  %v11285_v25 = vld [vmem:[#allocation2 + $0x168] sm:$0xff]  ;;  %4341 = vst.msk [vmem:[#allocation2 + $0x1c9] sm:$0xff] %vm33_vm0, %v4277_v8  ;;  %vm4151_vm2 = vcmp.ge.f32.partialorder %v3972_v49, 0.0  ;;  %v4216_v34 = vmul.f32 %v11034_v35, %v3972_v49  ;;  %4689 = vrot.lane.b32.xlu0 %v4531_v17, %s9145_s17 }
 0x54c   :  { %4468 = vst.msk [vmem:[#allocation3 + $0xf8] sm:$0xff] %vm33_vm0, %v11283_v22  ;;  %4467 = vst.msk [vmem:[#allocation3 + $0xf0] sm:$0xff] %vm33_vm0, %v11285_v25  ;;  %vm4150_vm13 = vcmp.ge.f32.partialorder %v3967_v13, 0.0  ;;  %v4215_v38 = vmul.f32 %v11034_v35, %v3967_v13  ;;  %v8955_v39 = vpop.f32.mrb[36].mxu0 }
 0x54d   :  { %v4280_v45 = vsel %vm4151_vm2, %v3972_v49, %v4216_v34  ;;  %v3982_v46 = vadd.f32 %v8955_v39, %v11028_v27  ;;  %v3976_v47 = vpop.f32.mrb[37].mxu0 }
 0x54e   :  { %4344 = vst.msk [vmem:[#allocation2 + $0x1e9] sm:$0xff] %vm33_vm0, %v4280_v45  ;;  %v4279_v51 = vsel %vm4150_vm13, %v3967_v13, %v4215_v38  ;;  %v3977_v14 = vadd.f32 %v11028_v27, %v3976_v47  ;;  %4695 = vrot.lane.b32.xlu1 %v4534_v37, %s9145_s17 }
 0x54f   :  { %4343 = vst.msk [vmem:[#allocation2 + $0x1e1] sm:$0xff] %vm33_vm0, %v4279_v51  ;;  %vm4153_vm14 = vcmp.ge.f32.partialorder %v3982_v46, 0.0  ;;  %v4218_v58 = vmul.f32 %v11034_v35, %v3982_v46  ;;  %4693 = vrot.lane.b32.xlu0 %v4533_v43, %s9145_s17 }
 0x550   :  { %vm4152_vm15 = vcmp.ge.f32.partialorder %v3977_v14, 0.0  ;;  %v4217_v53 = vmul.f32 %v11034_v35, %v3977_v14  ;;  %v8958_v1 = vpop.f32.mrb[38].mxu0 }
 0x551   :  { %v4282_v61 = vsel %vm4153_vm14, %v3982_v46, %v4218_v58  ;;  %v3992_v62 = vadd.f32 %v8958_v1, %v11028_v27  ;;  %v3986_v63 = vpop.f32.mrb[39].mxu0  ;;  %v4536_v6 = vld [vmem:[#allocation2 + $0x1d1] sm:$0xff] }
 0x552   :  { %4346 = vst.msk [vmem:[#allocation2 + $0x201] sm:$0xff] %vm33_vm0, %v4282_v61  ;;  %v4281_v7 = vsel %vm4152_vm15, %v3977_v14, %v4217_v53  ;;  %v3987_v24 = vadd.f32 %v11028_v27, %v3986_v63  ;;  %4699 = vrot.lane.b32.xlu1 %v4536_v6, %s9145_s17  ;;  %v4535_v28 = vld [vmem:[#allocation2 + $0x1c9] sm:$0xff] }
 0x553   :  { %v11307_v36 = vld [vmem:[#allocation2 + $0x1d0] sm:$0xff]  ;;  %v11309_v41 = vld [vmem:[#allocation2 + $0x1c8] sm:$0xff]  ;;  %4345 = vst.msk [vmem:[#allocation2 + $0x1f9] sm:$0xff] %vm33_vm0, %v4281_v7  ;;  %vm4155_vm1 = vcmp.ge.f32.partialorder %v3992_v62, 0.0  ;;  %v4220_v60 = vmul.f32 %v11034_v35, %v3992_v62  ;;  %4697 = vrot.lane.b32.xlu0 %v4535_v28, %s9145_s17 }
 0x554   :  { %4472 = vst.msk [vmem:[#allocation3 + $0x118] sm:$0xff] %vm33_vm0, %v11307_v36  ;;  %4471 = vst.msk [vmem:[#allocation3 + $0x110] sm:$0xff] %vm33_vm0, %v11309_v41  ;;  %vm4154_vm2 = vcmp.ge.f32.partialorder %v3987_v24, 0.0  ;;  %v4219_v0 = vmul.f32 %v11034_v35, %v3987_v24  ;;  %v8961_v33 = vpop.f32.mrb[40].mxu0 }
 0x555   :  { %v4284_v29 = vsel %vm4155_vm1, %v3992_v62, %v4220_v60  ;;  %v4002_v49 = vadd.f32 %v8961_v33, %v11028_v27  ;;  %v3996_v4 = vpop.f32.mrb[41].mxu0  ;;  %v4538_v44 = vld [vmem:[#allocation2 + $0x1e9] sm:$0xff] }
 0x556   :  { %4348 = vst.msk [vmem:[#allocation2 + $0x219] sm:$0xff] %vm33_vm0, %v4284_v29  ;;  %v4283_v8 = vsel %vm4154_vm2, %v3987_v24, %v4219_v0  ;;  %v3997_v13 = vadd.f32 %v11028_v27, %v3996_v4  ;;  %4703 = vrot.lane.b32.xlu1 %v4538_v44, %s9145_s17  ;;  %v4537_v17 = vld [vmem:[#allocation2 + $0x1e1] sm:$0xff] }
 0x557   :  { %v11323_v34 = vld [vmem:[#allocation2 + $0x1e8] sm:$0xff]  ;;  %v11325_v37 = vld [vmem:[#allocation2 + $0x1e0] sm:$0xff]  ;;  %4347 = vst.msk [vmem:[#allocation2 + $0x211] sm:$0xff] %vm33_vm0, %v4283_v8  ;;  %vm4157_vm13 = vcmp.ge.f32.partialorder %v4002_v49, 0.0  ;;  %v4222_v38 = vmul.f32 %v11034_v35, %v4002_v49  ;;  %4701 = vrot.lane.b32.xlu0 %v4537_v17, %s9145_s17 }
 0x558   :  { %4474 = vst.msk [vmem:[#allocation3 + $0x128] sm:$0xff] %vm33_vm0, %v11323_v34  ;;  %4473 = vst.msk [vmem:[#allocation3 + $0x120] sm:$0xff] %vm33_vm0, %v11325_v37  ;;  %vm4156_vm14 = vcmp.ge.f32.partialorder %v3997_v13, 0.0  ;;  %v4221_v39 = vmul.f32 %v11034_v35, %v3997_v13  ;;  %v8964_v43 = vpop.f32.mrb[42].mxu0 }
 0x559   :  { %v4286_v45 = vsel %vm4157_vm13, %v4002_v49, %v4222_v38  ;;  %v4012_v46 = vadd.f32 %v8964_v43, %v11028_v27  ;;  %v4006_v47 = vpop.f32.mrb[43].mxu0  ;;  %v4540_v51 = vld [vmem:[#allocation2 + $0x201] sm:$0xff] }
 0x55a   :  { %4350 = vst.msk [vmem:[#allocation2 + $0x231] sm:$0xff] %vm33_vm0, %v4286_v45  ;;  %v4285_v14 = vsel %vm4156_vm14, %v3997_v13, %v4221_v39  ;;  %v4007_v58 = vadd.f32 %v11028_v27, %v4006_v47  ;;  %4707 = vrot.lane.b32.xlu1 %v4540_v51, %s9145_s17  ;;  %v4539_v53 = vld [vmem:[#allocation2 + $0x1f9] sm:$0xff] }
 0x55b   :  { %v11339_v1 = vld [vmem:[#allocation2 + $0x200] sm:$0xff]  ;;  %v11341_v61 = vld [vmem:[#allocation2 + $0x1f8] sm:$0xff]  ;;  %4349 = vst.msk [vmem:[#allocation2 + $0x229] sm:$0xff] %vm33_vm0, %v4285_v14  ;;  %vm4159_vm15 = vcmp.ge.f32.partialorder %v4012_v46, 0.0  ;;  %v4224_v62 = vmul.f32 %v11034_v35, %v4012_v46  ;;  %4705 = vrot.lane.b32.xlu0 %v4539_v53, %s9145_s17 }
 0x55c   :  { %4476 = vst.msk [vmem:[#allocation3 + $0x138] sm:$0xff] %vm33_vm0, %v11339_v1  ;;  %4475 = vst.msk [vmem:[#allocation3 + $0x130] sm:$0xff] %vm33_vm0, %v11341_v61  ;;  %vm4158_vm1 = vcmp.ge.f32.partialorder %v4007_v58, 0.0  ;;  %v4223_v63 = vmul.f32 %v11034_v35, %v4007_v58  ;;  %v8967_v6 = vpop.f32.mrb[44].mxu0 }
 0x55d   :  { %v4288_v7 = vsel %vm4159_vm15, %v4012_v46, %v4224_v62  ;;  %v4022_v24 = vadd.f32 %v8967_v6, %v11028_v27  ;;  %v4016_v28 = vpop.f32.mrb[45].mxu0  ;;  %v4542_v60 = vld [vmem:[#allocation2 + $0x219] sm:$0xff] }
 0x55e   :  { %4352 = vst.msk [vmem:[#allocation2 + $0x249] sm:$0xff] %vm33_vm0, %v4288_v7  ;;  %v4287_v0 = vsel %vm4158_vm1, %v4007_v58, %v4223_v63  ;;  %v4017_v33 = vadd.f32 %v11028_v27, %v4016_v28  ;;  %4711 = vrot.lane.b32.xlu1 %v4542_v60, %s9145_s17  ;;  %v4541_v29 = vld [vmem:[#allocation2 + $0x211] sm:$0xff] }
 0x55f   :  { %v11355_v49 = vld [vmem:[#allocation2 + $0x218] sm:$0xff]  ;;  %v11357_v4 = vld [vmem:[#allocation2 + $0x210] sm:$0xff]  ;;  %4351 = vst.msk [vmem:[#allocation2 + $0x241] sm:$0xff] %vm33_vm0, %v4287_v0  ;;  %vm4161_vm2 = vcmp.ge.f32.partialorder %v4022_v24, 0.0  ;;  %v4226_v44 = vmul.f32 %v11034_v35, %v4022_v24  ;;  %4709 = vrot.lane.b32.xlu0 %v4541_v29, %s9145_s17 }
 0x560   :  { %4478 = vst.msk [vmem:[#allocation3 + $0x148] sm:$0xff] %vm33_vm0, %v11355_v49  ;;  %4477 = vst.msk [vmem:[#allocation3 + $0x140] sm:$0xff] %vm33_vm0, %v11357_v4  ;;  %vm4160_vm13 = vcmp.ge.f32.partialorder %v4017_v33, 0.0  ;;  %v4225_v8 = vmul.f32 %v11034_v35, %v4017_v33  ;;  %v8970_v13 = vpop.f32.mrb[46].mxu0 }
 0x561   :  { %v4290_v17 = vsel %vm4161_vm2, %v4022_v24, %v4226_v44  ;;  %v4032_v38 = vadd.f32 %v8970_v13, %v11028_v27  ;;  %v4026_v39 = vpop.f32.mrb[47].mxu0  ;;  %v4544_v43 = vld [vmem:[#allocation2 + $0x231] sm:$0xff] }
 0x562   :  { %4354 = vst.msk [vmem:[#allocation2 + $0x261] sm:$0xff] %vm33_vm0, %v4290_v17  ;;  %v4289_v45 = vsel %vm4160_vm13, %v4017_v33, %v4225_v8  ;;  %v4027_v46 = vadd.f32 %v11028_v27, %v4026_v39  ;;  %4715 = vrot.lane.b32.xlu1 %v4544_v43, %s9145_s17  ;;  %v4543_v47 = vld [vmem:[#allocation2 + $0x229] sm:$0xff] }
 0x563   :  { %v11371_v51 = vld [vmem:[#allocation2 + $0x230] sm:$0xff]  ;;  %v11373_v14 = vld [vmem:[#allocation2 + $0x228] sm:$0xff]  ;;  %4353 = vst.msk [vmem:[#allocation2 + $0x259] sm:$0xff] %vm33_vm0, %v4289_v45  ;;  %vm4163_vm14 = vcmp.ge.f32.partialorder %v4032_v38, 0.0  ;;  %v4228_v58 = vmul.f32 %v11034_v35, %v4032_v38  ;;  %4713 = vrot.lane.b32.xlu0 %v4543_v47, %s9145_s17 }
 0x564   :  { %4480 = vst.msk [vmem:[#allocation3 + $0x158] sm:$0xff] %vm33_vm0, %v11371_v51  ;;  %4479 = vst.msk [vmem:[#allocation3 + $0x150] sm:$0xff] %vm33_vm0, %v11373_v14  ;;  %vm4162_vm15 = vcmp.ge.f32.partialorder %v4027_v46, 0.0  ;;  %v4227_v53 = vmul.f32 %v11034_v35, %v4027_v46  ;;  %v8973_v62 = vpop.f32.mrb[48].mxu0 }
 0x565   :  { %v4292_v63 = vsel %vm4163_vm14, %v4032_v38, %v4228_v58  ;;  %v4042_v6 = vadd.f32 %v8973_v62, %v11028_v27  ;;  %v4036_v7 = vpop.f32.mrb[49].mxu0  ;;  %v4546_v24 = vld [vmem:[#allocation2 + $0x249] sm:$0xff] }
 0x566   :  { %4356 = vst.msk [vmem:[#allocation2 + $0x279] sm:$0xff] %vm33_vm0, %v4292_v63  ;;  %v4291_v28 = vsel %vm4162_vm15, %v4027_v46, %v4227_v53  ;;  %v4037_v60 = vadd.f32 %v11028_v27, %v4036_v7  ;;  %4719 = vrot.lane.b32.xlu1 %v4546_v24, %s9145_s17  ;;  %v4545_v0 = vld [vmem:[#allocation2 + $0x241] sm:$0xff] }
 0x567   :  { %v11387_v33 = vld [vmem:[#allocation2 + $0x248] sm:$0xff]  ;;  %v11389_v29 = vld [vmem:[#allocation2 + $0x240] sm:$0xff]  ;;  %4355 = vst.msk [vmem:[#allocation2 + $0x271] sm:$0xff] %vm33_vm0, %v4291_v28  ;;  %vm4165_vm1 = vcmp.ge.f32.partialorder %v4042_v6, 0.0  ;;  %v4230_v44 = vmul.f32 %v11034_v35, %v4042_v6  ;;  %4717 = vrot.lane.b32.xlu0 %v4545_v0, %s9145_s17 }
 0x568   :  { %4482 = vst.msk [vmem:[#allocation3 + $0x168] sm:$0xff] %vm33_vm0, %v11387_v33  ;;  %4481 = vst.msk [vmem:[#allocation3 + $0x160] sm:$0xff] %vm33_vm0, %v11389_v29  ;;  %vm4164_vm2 = vcmp.ge.f32.partialorder %v4037_v60, 0.0  ;;  %v4229_v8 = vmul.f32 %v11034_v35, %v4037_v60  ;;  %v8976_v13 = vpop.f32.mrb[50].mxu0 }
 0x569   :  { %v4294_v17 = vsel %vm4165_vm1, %v4042_v6, %v4230_v44  ;;  %v4052_v38 = vadd.f32 %v8976_v13, %v11028_v27  ;;  %v4046_v39 = vpop.f32.mrb[51].mxu0  ;;  %v4548_v43 = vld [vmem:[#allocation2 + $0x261] sm:$0xff] }
 0x56a   :  { %4358 = vst.msk [vmem:[#allocation2 + $0x291] sm:$0xff] %vm33_vm0, %v4294_v17  ;;  %v4293_v45 = vsel %vm4164_vm2, %v4037_v60, %v4229_v8  ;;  %v4047_v46 = vadd.f32 %v11028_v27, %v4046_v39  ;;  %4723 = vrot.lane.b32.xlu1 %v4548_v43, %s9145_s17  ;;  %v4547_v47 = vld [vmem:[#allocation2 + $0x259] sm:$0xff] }
 0x56b   :  { %v11403_v58 = vld [vmem:[#allocation2 + $0x260] sm:$0xff]  ;;  %v11405_v53 = vld [vmem:[#allocation2 + $0x258] sm:$0xff]  ;;  %4357 = vst.msk [vmem:[#allocation2 + $0x289] sm:$0xff] %vm33_vm0, %v4293_v45  ;;  %vm4167_vm13 = vcmp.ge.f32.partialorder %v4052_v38, 0.0  ;;  %v4232_v62 = vmul.f32 %v11034_v35, %v4052_v38  ;;  %4721 = vrot.lane.b32.xlu0 %v4547_v47, %s9145_s17 }
 0x56c   :  { %4484 = vst.msk [vmem:[#allocation3 + $0x178] sm:$0xff] %vm33_vm0, %v11403_v58  ;;  %4483 = vst.msk [vmem:[#allocation3 + $0x170] sm:$0xff] %vm33_vm0, %v11405_v53  ;;  %vm4166_vm14 = vcmp.ge.f32.partialorder %v4047_v46, 0.0  ;;  %v4231_v63 = vmul.f32 %v11034_v35, %v4047_v46  ;;  %v8979_v6 = vpop.f32.mrb[52].mxu0  ;;  %v11434_v45 = vld [vmem:[%s13388_s3] ss:$0 sm:$0xff] }
 0x56d   :  { %v4296_v7 = vsel %vm4167_vm13, %v4052_v38, %v4232_v62  ;;  %v4062_v24 = vadd.f32 %v8979_v6, %v11028_v27  ;;  %v4056_v28 = vpop.f32.mrb[53].mxu0  ;;  %v4550_v60 = vld [vmem:[#allocation2 + $0x279] sm:$0xff] }
 0x56e   :  { %4360 = vst.msk [vmem:[#allocation2 + $0x2a9] sm:$0xff] %vm33_vm0, %v4296_v7  ;;  %v4295_v0 = vsel %vm4166_vm14, %v4047_v46, %v4231_v63  ;;  %v4057_v44 = vadd.f32 %v11028_v27, %v4056_v28  ;;  %4727 = vrot.lane.b32.xlu1 %v4550_v60, %s9145_s17  ;;  %v4549_v8 = vld [vmem:[#allocation2 + $0x271] sm:$0xff] }
 0x56f   :  { %v11419_v13 = vld [vmem:[#allocation2 + $0x278] sm:$0xff]  ;;  %v11421_v17 = vld [vmem:[#allocation2 + $0x270] sm:$0xff]  ;;  %4359 = vst.msk [vmem:[#allocation2 + $0x2a1] sm:$0xff] %vm33_vm0, %v4295_v0  ;;  %vm4169_vm15 = vcmp.ge.f32.partialorder %v4062_v24, 0.0  ;;  %v4234_v38 = vmul.f32 %v11034_v35, %v4062_v24  ;;  %4725 = vrot.lane.b32.xlu0 %v4549_v8, %s9145_s17 }
 0x570   :  { %4486 = vst.msk [vmem:[#allocation3 + $0x188] sm:$0xff] %vm33_vm0, %v11419_v13  ;;  %4485 = vst.msk [vmem:[#allocation3 + $0x180] sm:$0xff] %vm33_vm0, %v11421_v17  ;;  %vm4168_vm1 = vcmp.ge.f32.partialorder %v4057_v44, 0.0  ;;  %v4233_v27 = vmul.f32 %v11034_v35, %v4057_v44  ;;  %v8982_v39 = vpop.f32.mrb[54].mxu0 }
 0x571   :  { %v4298_v43 = vsel %vm4169_vm15, %v4062_v24, %v4234_v38  ;;  %v4072_v46 = vadd.f32 %v11434_v45, %v8982_v39  ;;  %v4066_v47 = vpop.f32.mrb[55].mxu0  ;;  %v4552_v62 = vld [vmem:[#allocation2 + $0x291] sm:$0xff] }
 0x572   :  { %4362 = vst.msk [vmem:[#allocation2 + $0x2c1] sm:$0xff] %vm33_vm0, %v4298_v43  ;;  %v4297_v63 = vsel %vm4168_vm1, %v4057_v44, %v4233_v27  ;;  %v4067_v6 = vadd.f32 %v11434_v45, %v4066_v47  ;;  %4731 = vrot.lane.b32.xlu1 %v4552_v62, %s9145_s17  ;;  %v4551_v7 = vld [vmem:[#allocation2 + $0x289] sm:$0xff] }
 0x573   :  { %v11440_v28 = vld [vmem:[#allocation2 + $0x290] sm:$0xff]  ;;  %v11442_v24 = vld [vmem:[#allocation2 + $0x288] sm:$0xff]  ;;  %4361 = vst.msk [vmem:[#allocation2 + $0x2b9] sm:$0xff] %vm33_vm0, %v4297_v63  ;;  %vm4171_vm2 = vcmp.ge.f32.partialorder %v4072_v46, 0.0  ;;  %v4236_v60 = vmul.f32 %v11034_v35, %v4072_v46  ;;  %4729 = vrot.lane.b32.xlu0 %v4551_v7, %s9145_s17 }
 0x574   :  { %4488 = vst.msk [vmem:[#allocation3 + $0x198] sm:$0xff] %vm33_vm0, %v11440_v28  ;;  %4487 = vst.msk [vmem:[#allocation3 + $0x190] sm:$0xff] %vm33_vm0, %v11442_v24  ;;  %vm4170_vm13 = vcmp.ge.f32.partialorder %v4067_v6, 0.0  ;;  %v4235_v0 = vmul.f32 %v11034_v35, %v4067_v6  ;;  %v8985_v44 = vpop.f32.mrb[56].mxu0 }
 0x575   :  { %v4300_v8 = vsel %vm4171_vm2, %v4072_v46, %v4236_v60  ;;  %v4082_v38 = vadd.f32 %v11434_v45, %v8985_v44  ;;  %v4076_v27 = vpop.f32.mrb[57].mxu0  ;;  %v4554_v39 = vld [vmem:[#allocation2 + $0x2a9] sm:$0xff] }
 0x576   :  { %4364 = vst.msk [vmem:[#allocation2 + $0x2d9] sm:$0xff] %vm33_vm0, %v4300_v8  ;;  %v4299_v43 = vsel %vm4170_vm13, %v4067_v6, %v4235_v0  ;;  %v4077_v47 = vadd.f32 %v11434_v45, %v4076_v27  ;;  %4735 = vrot.lane.b32.xlu1 %v4554_v39, %s9145_s17  ;;  %v4553_v62 = vld [vmem:[#allocation2 + $0x2a1] sm:$0xff] }
 0x577   :  { %v11456_v63 = vld [vmem:[#allocation2 + $0x2a8] sm:$0xff]  ;;  %v11458_v7 = vld [vmem:[#allocation2 + $0x2a0] sm:$0xff]  ;;  %4363 = vst.msk [vmem:[#allocation2 + $0x2d1] sm:$0xff] %vm33_vm0, %v4299_v43  ;;  %vm4173_vm14 = vcmp.ge.f32.partialorder %v4082_v38, 0.0  ;;  %v4238_v46 = vmul.f32 %v11034_v35, %v4082_v38  ;;  %4733 = vrot.lane.b32.xlu0 %v4553_v62, %s9145_s17 }
 0x578   :  { %13419 = vst [vmem:[#allocation7_spill] sm:$0xff] %v11456_v63  ;;  %13420 = vst [vmem:[#allocation8_spill] sm:$0xff] %v11458_v7  ;;  %vm4172_vm15 = vcmp.ge.f32.partialorder %v4077_v47, 0.0  ;;  %v4237_v6 = vmul.f32 %v11034_v35, %v4077_v47  ;;  %v8988_v60 = vpop.f32.mrb[58].mxu0 }
 0x579   :  { %4490 = vst.msk [vmem:[#allocation3 + $0x1a8] sm:$0xff] %vm33_vm0, %v11456_v63  ;;  %4489 = vst.msk [vmem:[#allocation3 + $0x1a0] sm:$0xff] %vm33_vm0, %v11458_v7  ;;  %v4302_v0 = vsel %vm4173_vm14, %v4082_v38, %v4238_v46  ;;  %v4092_v44 = vadd.f32 %v11434_v45, %v8988_v60  ;;  %v4086_v8 = vpop.f32.mrb[59].mxu0  ;;  %v4556_v27 = vld [vmem:[#allocation2 + $0x2c1] sm:$0xff] }
 0x57a   :  { %4366 = vst.msk [vmem:[#allocation2 + $0x2f1] sm:$0xff] %vm33_vm0, %v4302_v0  ;;  %v4301_v39 = vsel %vm4172_vm15, %v4077_v47, %v4237_v6  ;;  %v4087_v43 = vadd.f32 %v11434_v45, %v4086_v8  ;;  %4739 = vrot.lane.b32.xlu1 %v4556_v27, %s9145_s17  ;;  %v4555_v62 = vld [vmem:[#allocation2 + $0x2b9] sm:$0xff] }
 0x57b   :  { %v11472_v63 = vld [vmem:[#allocation2 + $0x2c0] sm:$0xff]  ;;  %v11474_v7 = vld [vmem:[#allocation2 + $0x2b8] sm:$0xff]  ;;  %4365 = vst.msk [vmem:[#allocation2 + $0x2e9] sm:$0xff] %vm33_vm0, %v4301_v39  ;;  %vm4175_vm1 = vcmp.ge.f32.partialorder %v4092_v44, 0.0  ;;  %v4240_v38 = vmul.f32 %v11034_v35, %v4092_v44  ;;  %4737 = vrot.lane.b32.xlu0 %v4555_v62, %s9145_s17 }
 0x57c   :  { %13421 = vst [vmem:[#allocation9_spill] sm:$0xff] %v11472_v63  ;;  %13422 = vst [vmem:[#allocation10_spill] sm:$0xff] %v11474_v7  ;;  %vm4174_vm2 = vcmp.ge.f32.partialorder %v4087_v43, 0.0  ;;  %v4239_v47 = vmul.f32 %v11034_v35, %v4087_v43  ;;  %v8991_v46 = vpop.f32.mrb[60].mxu0 }
 0x57d   :  { %4492 = vst.msk [vmem:[#allocation3 + $0x1b8] sm:$0xff] %vm33_vm0, %v11472_v63  ;;  %4491 = vst.msk [vmem:[#allocation3 + $0x1b0] sm:$0xff] %vm33_vm0, %v11474_v7  ;;  %v4304_v6 = vsel %vm4175_vm1, %v4092_v44, %v4240_v38  ;;  %v4102_v60 = vadd.f32 %v11434_v45, %v8991_v46  ;;  %v4096_v0 = vpop.f32.mrb[61].mxu0  ;;  %v4558_v8 = vld [vmem:[#allocation2 + $0x2d9] sm:$0xff] }
 0x57e   :  { %4368 = vst.msk [vmem:[#allocation2 + $0x309] sm:$0xff] %vm33_vm0, %v4304_v6  ;;  %v4303_v27 = vsel %vm4174_vm2, %v4087_v43, %v4239_v47  ;;  %v4097_v39 = vadd.f32 %v11434_v45, %v4096_v0  ;;  %4743 = vrot.lane.b32.xlu1 %v4558_v8, %s9145_s17  ;;  %v4557_v62 = vld [vmem:[#allocation2 + $0x2d1] sm:$0xff] }
 0x57f   :  { %v11488_v63 = vld [vmem:[#allocation2 + $0x2d8] sm:$0xff]  ;;  %v11490_v7 = vld [vmem:[#allocation2 + $0x2d0] sm:$0xff]  ;;  %4367 = vst.msk [vmem:[#allocation2 + $0x301] sm:$0xff] %vm33_vm0, %v4303_v27  ;;  %vm4177_vm13 = vcmp.ge.f32.partialorder %v4102_v60, 0.0  ;;  %v4242_v44 = vmul.f32 %v11034_v35, %v4102_v60  ;;  %4741 = vrot.lane.b32.xlu0 %v4557_v62, %s9145_s17 }
 0x580   :  { %4494 = vst.msk [vmem:[#allocation3 + $0x1c8] sm:$0xff] %vm33_vm0, %v11488_v63  ;;  %4493 = vst.msk [vmem:[#allocation3 + $0x1c0] sm:$0xff] %vm33_vm0, %v11490_v7  ;;  %vm4176_vm14 = vcmp.ge.f32.partialorder %v4097_v39, 0.0  ;;  %v4241_v43 = vmul.f32 %v11034_v35, %v4097_v39 }
 0x581   :  { %v4306_v38 = vsel %vm4177_vm13, %v4102_v60, %v4242_v44  ;;  %v4560_v47 = vld [vmem:[#allocation2 + $0x2f1] sm:$0xff] }
 0x582   :  { %4370 = vst.msk [vmem:[#allocation2 + $0x321] sm:$0xff] %vm33_vm0, %v4306_v38  ;;  %v4305_v46 = vsel %vm4176_vm14, %v4097_v39, %v4241_v43  ;;  %4747 = vrot.lane.b32.xlu1 %v4560_v47, %s9145_s17  ;;  %v4559_v6 = vld [vmem:[#allocation2 + $0x2e9] sm:$0xff] }
 0x583   :  { %v11502_v0 = vld [vmem:[#allocation2 + $0x2f0] sm:$0xff]  ;;  %v11504_v8 = vld [vmem:[#allocation2 + $0x2e8] sm:$0xff]  ;;  %4369 = vst.msk [vmem:[#allocation2 + $0x319] sm:$0xff] %vm33_vm0, %v4305_v46  ;;  %4745 = vrot.lane.b32.xlu0 %v4559_v6, %s9145_s17 }
 0x584   :  { %13423 = vst [vmem:[#allocation11_spill] sm:$0xff] %v11502_v0  ;;  %13424 = vst [vmem:[#allocation12_spill] sm:$0xff] %v11504_v8  ;;  %v4636_v60 = vpop.permute.xlu1 %4635 }
 0x585   :  { %4496 = vst.msk [vmem:[#allocation3 + $0x1d8] sm:$0xff] %vm33_vm0, %v11502_v0  ;;  %4495 = vst.msk [vmem:[#allocation3 + $0x1d0] sm:$0xff] %vm33_vm0, %v11504_v8  ;;  %v4634_v27 = vpop.permute.xlu0 %4633  ;;  %v4562_v39 = vld [vmem:[#allocation2 + $0x309] sm:$0xff]  ;;  %v4926_v0 = vld [vmem:[#allocation2 + $0x21a] sm:$0xff] }
 0x586   :  { %4824 = vst.msk [vmem:[#allocation3 + $0x18] sm:$0xff] %vm698_vm3, %v4636_v60  ;;  %4823 = vst.msk [vmem:[#allocation3 + $0x10] sm:$0xff] %vm698_vm3, %v4634_v27  ;;  %4751 = vrot.lane.b32.xlu1 %v4562_v39, %s9145_s17  ;;  %v4561_v62 = vld [vmem:[#allocation2 + $0x301] sm:$0xff]  ;;  %v4886_v39 = vld [vmem:[#allocation2 + $0xa] sm:$0xff] }
 0x587   :  { %v11515_v44 = vld [vmem:[#allocation2 + $0x308] sm:$0xff]  ;;  %v11517_v43 = vld [vmem:[#allocation2 + $0x300] sm:$0xff]  ;;  %4749 = vrot.lane.b32.xlu0 %v4561_v62, %s9145_s17 }
 0x588   :  { %13425 = vst [vmem:[#allocation13_spill] sm:$0xff] %v11515_v44  ;;  %13426 = vst [vmem:[#allocation14_spill] sm:$0xff] %v11517_v43  ;;  %v4640_v38 = vpop.permute.xlu1 %4639 }
 0x589   :  { %4498 = vst.msk [vmem:[#allocation3 + $0x1e8] sm:$0xff] %vm33_vm0, %v11515_v44  ;;  %4497 = vst.msk [vmem:[#allocation3 + $0x1e0] sm:$0xff] %vm33_vm0, %v11517_v43  ;;  %v4638_v47 = vpop.permute.xlu0 %4637  ;;  %v4564_v46 = vld [vmem:[#allocation2 + $0x321] sm:$0xff] }
 0x58a   :  { %4826 = vst.msk [vmem:[#allocation3 + $0x28] sm:$0xff] %vm698_vm3, %v4640_v38  ;;  %4825 = vst.msk [vmem:[#allocation3 + $0x20] sm:$0xff] %vm698_vm3, %v4638_v47  ;;  %4755 = vrot.lane.b32.xlu1 %v4564_v46, %s9145_s17  ;;  %v4563_v6 = vld [vmem:[#allocation2 + $0x319] sm:$0xff]  ;;  %v4885_v38 = vld [vmem:[#allocation2 + $0x2] sm:$0xff] }
 0x58b   :  { %v11527_v60 = vld [vmem:[#allocation2 + $0x320] sm:$0xff]  ;;  %v11529_v27 = vld [vmem:[#allocation2 + $0x318] sm:$0xff]  ;;  %4753 = vrot.lane.b32.xlu0 %v4563_v6, %s9145_s17 }
 0x58c   :  { %13427 = vst [vmem:[#allocation15_spill] sm:$0xff] %v11527_v60  ;;  %13428 = vst [vmem:[#allocation16_spill] sm:$0xff] %v11529_v27  ;;  %v4644_v62 = vpop.permute.xlu1 %4643  ;;  %v4888_v43 = vld [vmem:[#allocation2 + $0x22] sm:$0xff] }
 0x58d   :  { %4500 = vst.msk [vmem:[#allocation3 + $0x1f8] sm:$0xff] %vm33_vm0, %v11527_v60  ;;  %4499 = vst.msk [vmem:[#allocation3 + $0x1f0] sm:$0xff] %vm33_vm0, %v11529_v27  ;;  %v4642_v47 = vpop.permute.xlu0 %4641  ;;  %v4887_v27 = vld [vmem:[#allocation2 + $0x1a] sm:$0xff] }
 0x58e   :  { %4828 = vst.msk [vmem:[#allocation3 + $0x38] sm:$0xff] %vm698_vm3, %v4644_v62  ;;  %4827 = vst.msk [vmem:[#allocation3 + $0x30] sm:$0xff] %vm698_vm3, %v4642_v47  ;;  %5015 = vrot.lane.b32.xlu1 %v4886_v39, %s9146_s16  ;;  %v4890_v60 = vld [vmem:[#allocation2 + $0x3a] sm:$0xff]  ;;  %v4889_v39 = vld [vmem:[#allocation2 + $0x32] sm:$0xff] }
 0x58f   :  { %5013 = vrot.lane.b32.xlu0 %v4885_v38, %s9146_s16 }
 0x590   :  { %v4648_v46 = vpop.permute.xlu1 %4647 }
 0x591   :  { %4830 = vst.msk [vmem:[#allocation3 + $0x48] sm:$0xff] %vm698_vm3, %v4648_v46  ;;  %v4646_v6 = vpop.permute.xlu0 %4645 }
 0x592   :  { %4829 = vst.msk [vmem:[#allocation3 + $0x40] sm:$0xff] %vm698_vm3, %v4646_v6  ;;  %5019 = vrot.lane.b32.xlu1 %v4888_v43, %s9146_s16  ;;  %v4892_v43 = vld [vmem:[#allocation2 + $0x52] sm:$0xff] }
 0x593   :  { %5017 = vrot.lane.b32.xlu0 %v4887_v27, %s9146_s16  ;;  %v4891_v27 = vld [vmem:[#allocation2 + $0x4a] sm:$0xff] }
 0x594   :  { %v4652_v62 = vpop.permute.xlu1 %4651 }
 0x595   :  { %4832 = vst.msk [vmem:[#allocation3 + $0x58] sm:$0xff] %vm698_vm3, %v4652_v62  ;;  %v4650_v47 = vpop.permute.xlu0 %4649 }
 0x596   :  { %4831 = vst.msk [vmem:[#allocation3 + $0x50] sm:$0xff] %vm698_vm3, %v4650_v47  ;;  %5023 = vrot.lane.b32.xlu1 %v4890_v60, %s9146_s16  ;;  %v4894_v60 = vld [vmem:[#allocation2 + $0x6a] sm:$0xff]  ;;  %v4893_v47 = vld [vmem:[#allocation2 + $0x62] sm:$0xff] }
 0x597   :  { %5021 = vrot.lane.b32.xlu0 %v4889_v39, %s9146_s16 }
 0x598   :  { %v4656_v38 = vpop.permute.xlu1 %4655 }
 0x599   :  { %4834 = vst.msk [vmem:[#allocation3 + $0x68] sm:$0xff] %vm698_vm3, %v4656_v38  ;;  %v4654_v46 = vpop.permute.xlu0 %4653 }
 0x59a   :  { %4833 = vst.msk [vmem:[#allocation3 + $0x60] sm:$0xff] %vm698_vm3, %v4654_v46  ;;  %5027 = vrot.lane.b32.xlu1 %v4892_v43, %s9146_s16  ;;  %v4896_v46 = vld [vmem:[#allocation2 + $0x82] sm:$0xff]  ;;  %v4895_v43 = vld [vmem:[#allocation2 + $0x7a] sm:$0xff] }
 0x59b   :  { %5025 = vrot.lane.b32.xlu0 %v4891_v27, %s9146_s16 }
 0x59c   :  { %v4660_v6 = vpop.permute.xlu1 %4659 }
 0x59d   :  { %4836 = vst.msk [vmem:[#allocation3 + $0x78] sm:$0xff] %vm698_vm3, %v4660_v6  ;;  %v4658_v62 = vpop.permute.xlu0 %4657 }
 0x59e   :  { %4835 = vst.msk [vmem:[#allocation3 + $0x70] sm:$0xff] %vm698_vm3, %v4658_v62  ;;  %5031 = vrot.lane.b32.xlu1 %v4894_v60, %s9146_s16  ;;  %v4898_v62 = vld [vmem:[#allocation2 + $0x9a] sm:$0xff]  ;;  %v4897_v60 = vld [vmem:[#allocation2 + $0x92] sm:$0xff] }
 0x59f   :  { %5029 = vrot.lane.b32.xlu0 %v4893_v47, %s9146_s16 }
 0x5a0   :  { %v4664_v39 = vpop.permute.xlu1 %4663 }
 0x5a1   :  { %4838 = vst.msk [vmem:[#allocation3 + $0x88] sm:$0xff] %vm698_vm3, %v4664_v39  ;;  %v4662_v38 = vpop.permute.xlu0 %4661 }
 0x5a2   :  { %4837 = vst.msk [vmem:[#allocation3 + $0x80] sm:$0xff] %vm698_vm3, %v4662_v38  ;;  %5035 = vrot.lane.b32.xlu1 %v4896_v46, %s9146_s16  ;;  %v4900_v38 = vld [vmem:[#allocation2 + $0xb2] sm:$0xff]  ;;  %v4899_v46 = vld [vmem:[#allocation2 + $0xaa] sm:$0xff] }
 0x5a3   :  { %5033 = vrot.lane.b32.xlu0 %v4895_v43, %s9146_s16 }
 0x5a4   :  { %v4668_v27 = vpop.permute.xlu1 %4667 }
 0x5a5   :  { %4840 = vst.msk [vmem:[#allocation3 + $0x98] sm:$0xff] %vm698_vm3, %v4668_v27  ;;  %v4666_v6 = vpop.permute.xlu0 %4665 }
 0x5a6   :  { %4839 = vst.msk [vmem:[#allocation3 + $0x90] sm:$0xff] %vm698_vm3, %v4666_v6  ;;  %5039 = vrot.lane.b32.xlu1 %v4898_v62, %s9146_s16  ;;  %v4902_v6 = vld [vmem:[#allocation2 + $0xca] sm:$0xff]  ;;  %v4901_v62 = vld [vmem:[#allocation2 + $0xc2] sm:$0xff] }
 0x5a7   :  { %5037 = vrot.lane.b32.xlu0 %v4897_v60, %s9146_s16 }
 0x5a8   :  { %v4672_v47 = vpop.permute.xlu1 %4671 }
 0x5a9   :  { %4842 = vst.msk [vmem:[#allocation3 + $0xa8] sm:$0xff] %vm698_vm3, %v4672_v47  ;;  %v4670_v39 = vpop.permute.xlu0 %4669 }
 0x5aa   :  { %4841 = vst.msk [vmem:[#allocation3 + $0xa0] sm:$0xff] %vm698_vm3, %v4670_v39  ;;  %5043 = vrot.lane.b32.xlu1 %v4900_v38, %s9146_s16  ;;  %v4904_v39 = vld [vmem:[#allocation2 + $0xe2] sm:$0xff]  ;;  %v4903_v38 = vld [vmem:[#allocation2 + $0xda] sm:$0xff] }
 0x5ab   :  { %5041 = vrot.lane.b32.xlu0 %v4899_v46, %s9146_s16 }
 0x5ac   :  { %v4676_v43 = vpop.permute.xlu1 %4675 }
 0x5ad   :  { %4844 = vst.msk [vmem:[#allocation3 + $0xb8] sm:$0xff] %vm698_vm3, %v4676_v43  ;;  %v4674_v27 = vpop.permute.xlu0 %4673 }
 0x5ae   :  { %4843 = vst.msk [vmem:[#allocation3 + $0xb0] sm:$0xff] %vm698_vm3, %v4674_v27  ;;  %5047 = vrot.lane.b32.xlu1 %v4902_v6, %s9146_s16  ;;  %v4906_v27 = vld [vmem:[#allocation2 + $0xfa] sm:$0xff]  ;;  %v4905_v6 = vld [vmem:[#allocation2 + $0xf2] sm:$0xff] }
 0x5af   :  { %5045 = vrot.lane.b32.xlu0 %v4901_v62, %s9146_s16 }
 0x5b0   :  { %v4680_v60 = vpop.permute.xlu1 %4679 }
 0x5b1   :  { %4846 = vst.msk [vmem:[#allocation3 + $0xc8] sm:$0xff] %vm698_vm3, %v4680_v60  ;;  %v4678_v47 = vpop.permute.xlu0 %4677 }
 0x5b2   :  { %4845 = vst.msk [vmem:[#allocation3 + $0xc0] sm:$0xff] %vm698_vm3, %v4678_v47  ;;  %5051 = vrot.lane.b32.xlu1 %v4904_v39, %s9146_s16  ;;  %v4908_v47 = vld [vmem:[#allocation2 + $0x112] sm:$0xff]  ;;  %v4907_v39 = vld [vmem:[#allocation2 + $0x10a] sm:$0xff] }
 0x5b3   :  { %5049 = vrot.lane.b32.xlu0 %v4903_v38, %s9146_s16 }
 0x5b4   :  { %v4684_v46 = vpop.permute.xlu1 %4683 }
 0x5b5   :  { %4848 = vst.msk [vmem:[#allocation3 + $0xd8] sm:$0xff] %vm698_vm3, %v4684_v46  ;;  %v4682_v43 = vpop.permute.xlu0 %4681 }
 0x5b6   :  { %4847 = vst.msk [vmem:[#allocation3 + $0xd0] sm:$0xff] %vm698_vm3, %v4682_v43  ;;  %5055 = vrot.lane.b32.xlu1 %v4906_v27, %s9146_s16  ;;  %v4910_v43 = vld [vmem:[#allocation2 + $0x12a] sm:$0xff]  ;;  %v4909_v27 = vld [vmem:[#allocation2 + $0x122] sm:$0xff] }
 0x5b7   :  { %5053 = vrot.lane.b32.xlu0 %v4905_v6, %s9146_s16 }
 0x5b8   :  { %v4688_v62 = vpop.permute.xlu1 %4687 }
 0x5b9   :  { %4850 = vst.msk [vmem:[#allocation3 + $0xe8] sm:$0xff] %vm698_vm3, %v4688_v62  ;;  %v4686_v60 = vpop.permute.xlu0 %4685 }
 0x5ba   :  { %4849 = vst.msk [vmem:[#allocation3 + $0xe0] sm:$0xff] %vm698_vm3, %v4686_v60  ;;  %5059 = vrot.lane.b32.xlu1 %v4908_v47, %s9146_s16  ;;  %v4912_v60 = vld [vmem:[#allocation2 + $0x142] sm:$0xff]  ;;  %v4911_v47 = vld [vmem:[#allocation2 + $0x13a] sm:$0xff] }
 0x5bb   :  { %5057 = vrot.lane.b32.xlu0 %v4907_v39, %s9146_s16 }
 0x5bc   :  { %v4692_v38 = vpop.permute.xlu1 %4691 }
 0x5bd   :  { %4852 = vst.msk [vmem:[#allocation3 + $0xf8] sm:$0xff] %vm698_vm3, %v4692_v38  ;;  %v4690_v46 = vpop.permute.xlu0 %4689 }
 0x5be   :  { %4851 = vst.msk [vmem:[#allocation3 + $0xf0] sm:$0xff] %vm698_vm3, %v4690_v46  ;;  %5063 = vrot.lane.b32.xlu1 %v4910_v43, %s9146_s16  ;;  %v4914_v46 = vld [vmem:[#allocation2 + $0x15a] sm:$0xff]  ;;  %v4913_v43 = vld [vmem:[#allocation2 + $0x152] sm:$0xff] }
 0x5bf   :  { %5061 = vrot.lane.b32.xlu0 %v4909_v27, %s9146_s16 }
 0x5c0   :  { %v4696_v6 = vpop.permute.xlu1 %4695 }
 0x5c1   :  { %4854 = vst.msk [vmem:[#allocation3 + $0x108] sm:$0xff] %vm698_vm3, %v4696_v6  ;;  %v4694_v62 = vpop.permute.xlu0 %4693 }
 0x5c2   :  { %4853 = vst.msk [vmem:[#allocation3 + $0x100] sm:$0xff] %vm698_vm3, %v4694_v62  ;;  %5067 = vrot.lane.b32.xlu1 %v4912_v60, %s9146_s16  ;;  %v4916_v62 = vld [vmem:[#allocation2 + $0x172] sm:$0xff]  ;;  %v4915_v60 = vld [vmem:[#allocation2 + $0x16a] sm:$0xff] }
 0x5c3   :  { %5065 = vrot.lane.b32.xlu0 %v4911_v47, %s9146_s16  ;;  %v4918_v47 = vld [vmem:[#allocation2 + $0x1ba] sm:$0xff] }
 0x5c4   :  { %v4700_v39 = vpop.permute.xlu1 %4699 }
 0x5c5   :  { %4856 = vst.msk [vmem:[#allocation3 + $0x118] sm:$0xff] %vm698_vm3, %v4700_v39  ;;  %v4698_v38 = vpop.permute.xlu0 %4697 }
 0x5c6   :  { %4855 = vst.msk [vmem:[#allocation3 + $0x110] sm:$0xff] %vm698_vm3, %v4698_v38  ;;  %5071 = vrot.lane.b32.xlu1 %v4914_v46, %s9146_s16  ;;  %v4917_v38 = vld [vmem:[#allocation2 + $0x1b2] sm:$0xff] }
 0x5c7   :  { %5069 = vrot.lane.b32.xlu0 %v4913_v43, %s9146_s16 }
 0x5c8   :  { %v4704_v27 = vpop.permute.xlu1 %4703 }
 0x5c9   :  { %4858 = vst.msk [vmem:[#allocation3 + $0x128] sm:$0xff] %vm698_vm3, %v4704_v27  ;;  %v4702_v6 = vpop.permute.xlu0 %4701 }
 0x5ca   :  { %4857 = vst.msk [vmem:[#allocation3 + $0x120] sm:$0xff] %vm698_vm3, %v4702_v6  ;;  %5075 = vrot.lane.b32.xlu1 %v4916_v62, %s9146_s16  ;;  %v4920_v6 = vld [vmem:[#allocation2 + $0x1d2] sm:$0xff]  ;;  %v4919_v62 = vld [vmem:[#allocation2 + $0x1ca] sm:$0xff] }
 0x5cb   :  { %5073 = vrot.lane.b32.xlu0 %v4915_v60, %s9146_s16 }
 0x5cc   :  { %v4708_v39 = vpop.permute.xlu1 %4707 }
 0x5cd   :  { %4860 = vst.msk [vmem:[#allocation3 + $0x138] sm:$0xff] %vm698_vm3, %v4708_v39  ;;  %v4706_v46 = vpop.permute.xlu0 %4705 }
 0x5ce   :  { %4859 = vst.msk [vmem:[#allocation3 + $0x130] sm:$0xff] %vm698_vm3, %v4706_v46  ;;  %5079 = vrot.lane.b32.xlu1 %v4918_v47, %s9146_s16  ;;  %v4922_v46 = vld [vmem:[#allocation2 + $0x1ea] sm:$0xff]  ;;  %v4921_v47 = vld [vmem:[#allocation2 + $0x1e2] sm:$0xff] }
 0x5cf   :  { %5077 = vrot.lane.b32.xlu0 %v4917_v38, %s9146_s16  ;;  %v8994_v38 = vpop.f32.mrb[62].mxu0 }
 0x5d0   :  { %v4712_v43 = vpop.permute.xlu1 %4711  ;;  %v4106_v44 = vpop.f32.mrb[63].mxu0 }
 0x5d1   :  { %4862 = vst.msk [vmem:[#allocation3 + $0x148] sm:$0xff] %vm698_vm3, %v4712_v43  ;;  %v4710_v27 = vpop.permute.xlu0 %4709 }
 0x5d2   :  { %4861 = vst.msk [vmem:[#allocation3 + $0x140] sm:$0xff] %vm698_vm3, %v4710_v27  ;;  %5083 = vrot.lane.b32.xlu1 %v4920_v6, %s9146_s16  ;;  %v4112_v27 = vadd.f32 %v11434_v45, %v8994_v38 }
 0x5d3   :  { %5081 = vrot.lane.b32.xlu0 %v4919_v62, %s9146_s16  ;;  %v4924_v62 = vld [vmem:[#allocation2 + $0x202] sm:$0xff] }
 0x5d4   :  { %v4716_v60 = vpop.permute.xlu1 %4715  ;;  %vm4179_vm15 = vcmp.ge.f32.partialorder %v4112_v27, 0.0 }
 0x5d5   :  { %4864 = vst.msk [vmem:[#allocation3 + $0x158] sm:$0xff] %vm698_vm3, %v4716_v60  ;;  %v4714_v39 = vpop.permute.xlu0 %4713  ;;  %v4923_v60 = vld [vmem:[#allocation2 + $0x1fa] sm:$0xff] }
 0x5d6   :  { %4863 = vst.msk [vmem:[#allocation3 + $0x150] sm:$0xff] %vm698_vm3, %v4714_v39  ;;  %5087 = vrot.lane.b32.xlu1 %v4922_v46, %s9146_s16  ;;  %v4244_v39 = vmul.f32 %v11034_v35, %v4112_v27  ;;  %v4107_v46 = vadd.f32 %v11434_v45, %v4106_v44  ;;  %v4928_v44 = vld [vmem:[#allocation2 + $0x232] sm:$0xff] }
 0x5d7   :  { %5085 = vrot.lane.b32.xlu0 %v4921_v47, %s9146_s16 }
 0x5d8   :  { %v4720_v43 = vpop.permute.xlu1 %4719  ;;  %v4308_v8 = vsel %vm4179_vm15, %v4112_v27, %v4244_v39  ;;  %vm4178_vm1 = vcmp.ge.f32.partialorder %v4107_v46, 0.0  ;;  %v4243_v38 = vmul.f32 %v11034_v35, %v4107_v46  ;;  %v4929_v39 = vld [vmem:[#allocation2 + $0x242] sm:$0xff] }
 0x5d9   :  { %4866 = vst.msk [vmem:[#allocation3 + $0x168] sm:$0xff] %vm698_vm3, %v4720_v43  ;;  %v4718_v6 = vpop.permute.xlu0 %4717 }
 0x5da   :  { %4865 = vst.msk [vmem:[#allocation3 + $0x160] sm:$0xff] %vm698_vm3, %v4718_v6  ;;  %5091 = vrot.lane.b32.xlu1 %v4924_v62, %s9146_s16  ;;  %v4925_v6 = vld [vmem:[#allocation2 + $0x212] sm:$0xff]  ;;  %v4307_v62 = vsel %vm4178_vm1, %v4107_v46, %v4243_v38  ;;  %v4932_v38 = vld [vmem:[#allocation2 + $0x262] sm:$0xff] }
 0x5db   :  { %5089 = vrot.lane.b32.xlu0 %v4923_v60, %s9146_s16  ;;  %4372 = vst.msk [vmem:[#allocation2 + $0x339] sm:$0xff] %vm33_vm0, %v4308_v8  ;;  %4371 = vst.msk [vmem:[#allocation2 + $0x331] sm:$0xff] %vm33_vm0, %v4307_v62  ;;  %v4927_v8 = vld [vmem:[#allocation2 + $0x22a] sm:$0xff] }
 0x5dc   :  { %v4724_v47 = vpop.permute.xlu1 %4723  ;;  %v4930_v60 = vld [vmem:[#allocation2 + $0x24a] sm:$0xff] }
 0x5dd   :  { %4868 = vst.msk [vmem:[#allocation3 + $0x178] sm:$0xff] %vm698_vm3, %v4724_v47  ;;  %v4722_v43 = vpop.permute.xlu0 %4721 }
 0x5de   :  { %4867 = vst.msk [vmem:[#allocation3 + $0x170] sm:$0xff] %vm698_vm3, %v4722_v43  ;;  %5095 = vrot.lane.b32.xlu1 %v4926_v0, %s9146_s16  ;;  %v4931_v43 = vld [vmem:[#allocation2 + $0x25a] sm:$0xff] }
 0x5df   :  { %5093 = vrot.lane.b32.xlu0 %v4925_v6, %s9146_s16 }
 0x5e0   :  { %v4728_v45 = vpop.permute.xlu1 %4727 }
 0x5e1   :  { %4870 = vst.msk [vmem:[#allocation3 + $0x188] sm:$0xff] %vm698_vm3, %v4728_v45  ;;  %v4726_v35 = vpop.permute.xlu0 %4725  ;;  %v4934_v45 = vld [vmem:[#allocation2 + $0x27a] sm:$0xff] }
 0x5e2   :  { %4869 = vst.msk [vmem:[#allocation3 + $0x180] sm:$0xff] %vm698_vm3, %v4726_v35  ;;  %5099 = vrot.lane.b32.xlu1 %v4928_v44, %s9146_s16  ;;  %v4933_v35 = vld [vmem:[#allocation2 + $0x272] sm:$0xff] }
 0x5e3   :  { %5097 = vrot.lane.b32.xlu0 %v4927_v8, %s9146_s16 }
 0x5e4   :  { %v4732_v27 = vpop.permute.xlu1 %4731 }
 0x5e5   :  { %4872 = vst.msk [vmem:[#allocation3 + $0x198] sm:$0xff] %vm698_vm3, %v4732_v27  ;;  %v4730_v0 = vpop.permute.xlu0 %4729  ;;  %v4936_v27 = vld [vmem:[#allocation2 + $0x292] sm:$0xff] }
 0x5e6   :  { %4871 = vst.msk [vmem:[#allocation3 + $0x190] sm:$0xff] %vm698_vm3, %v4730_v0  ;;  %5103 = vrot.lane.b32.xlu1 %v4930_v60, %s9146_s16  ;;  %v4935_v0 = vld [vmem:[#allocation2 + $0x28a] sm:$0xff] }
 0x5e7   :  { %5101 = vrot.lane.b32.xlu0 %v4929_v39, %s9146_s16 }
 0x5e8   :  { %v4736_v46 = vpop.permute.xlu1 %4735 }
 0x5e9   :  { %4874 = vst.msk [vmem:[#allocation3 + $0x1a8] sm:$0xff] %vm698_vm3, %v4736_v46  ;;  %v4734_v47 = vpop.permute.xlu0 %4733  ;;  %v4938_v46 = vld [vmem:[#allocation2 + $0x2aa] sm:$0xff] }
 0x5ea   :  { %4873 = vst.msk [vmem:[#allocation3 + $0x1a0] sm:$0xff] %vm698_vm3, %v4734_v47  ;;  %5107 = vrot.lane.b32.xlu1 %v4932_v38, %s9146_s16  ;;  %v4937_v47 = vld [vmem:[#allocation2 + $0x2a2] sm:$0xff] }
 0x5eb   :  { %5105 = vrot.lane.b32.xlu0 %v4931_v43, %s9146_s16 }
 0x5ec   :  { %v4740_v6 = vpop.permute.xlu1 %4739 }
 0x5ed   :  { %4876 = vst.msk [vmem:[#allocation3 + $0x1b8] sm:$0xff] %vm698_vm3, %v4740_v6  ;;  %v4738_v62 = vpop.permute.xlu0 %4737  ;;  %v4940_v6 = vld [vmem:[#allocation2 + $0x2c2] sm:$0xff] }
 0x5ee   :  { %4875 = vst.msk [vmem:[#allocation3 + $0x1b0] sm:$0xff] %vm698_vm3, %v4738_v62  ;;  %5111 = vrot.lane.b32.xlu1 %v4934_v45, %s9146_s16  ;;  %v4939_v62 = vld [vmem:[#allocation2 + $0x2ba] sm:$0xff] }
 0x5ef   :  { %5109 = vrot.lane.b32.xlu0 %v4933_v35, %s9146_s16 }
 0x5f0   :  { %v4744_v44 = vpop.permute.xlu1 %4743 }
 0x5f1   :  { %4878 = vst.msk [vmem:[#allocation3 + $0x1c8] sm:$0xff] %vm698_vm3, %v4744_v44  ;;  %v4742_v8 = vpop.permute.xlu0 %4741  ;;  %v4942_v44 = vld [vmem:[#allocation2 + $0x2da] sm:$0xff] }
 0x5f2   :  { %4877 = vst.msk [vmem:[#allocation3 + $0x1c0] sm:$0xff] %vm698_vm3, %v4742_v8  ;;  %5115 = vrot.lane.b32.xlu1 %v4936_v27, %s9146_s16  ;;  %v4941_v8 = vld [vmem:[#allocation2 + $0x2d2] sm:$0xff] }
 0x5f3   :  { %5113 = vrot.lane.b32.xlu0 %v4935_v0, %s9146_s16 }
 0x5f4   :  { %v4748_v60 = vpop.permute.xlu1 %4747 }
 0x5f5   :  { %4880 = vst.msk [vmem:[#allocation3 + $0x1d8] sm:$0xff] %vm698_vm3, %v4748_v60  ;;  %v4746_v39 = vpop.permute.xlu0 %4745  ;;  %v4944_v60 = vld [vmem:[#allocation2 + $0x2f2] sm:$0xff] }
 0x5f6   :  { %4879 = vst.msk [vmem:[#allocation3 + $0x1d0] sm:$0xff] %vm698_vm3, %v4746_v39  ;;  %5119 = vrot.lane.b32.xlu1 %v4938_v46, %s9146_s16  ;;  %v4943_v39 = vld [vmem:[#allocation2 + $0x2ea] sm:$0xff] }
 0x5f7   :  { %5117 = vrot.lane.b32.xlu0 %v4937_v47, %s9146_s16 }
 0x5f8   :  { %v4752_v38 = vpop.permute.xlu1 %4751 }
 0x5f9   :  { %4882 = vst.msk [vmem:[#allocation3 + $0x1e8] sm:$0xff] %vm698_vm3, %v4752_v38  ;;  %v4750_v43 = vpop.permute.xlu0 %4749  ;;  %v4946_v38 = vld [vmem:[#allocation2 + $0x30a] sm:$0xff] }
 0x5fa   :  { %4881 = vst.msk [vmem:[#allocation3 + $0x1e0] sm:$0xff] %vm698_vm3, %v4750_v43  ;;  %5123 = vrot.lane.b32.xlu1 %v4940_v6, %s9146_s16  ;;  %v4945_v43 = vld [vmem:[#allocation2 + $0x302] sm:$0xff] }
 0x5fb   :  { %5121 = vrot.lane.b32.xlu0 %v4939_v62, %s9146_s16 }
 0x5fc   :  { %v4756_v45 = vpop.permute.xlu1 %4755 }
 0x5fd   :  { %4884 = vst.msk [vmem:[#allocation3 + $0x1f8] sm:$0xff] %vm698_vm3, %v4756_v45  ;;  %v4754_v35 = vpop.permute.xlu0 %4753  ;;  %v4948_v45 = vld [vmem:[#allocation2 + $0x322] sm:$0xff] }
 0x5fe   :  { %4883 = vst.msk [vmem:[#allocation3 + $0x1f0] sm:$0xff] %vm698_vm3, %v4754_v35  ;;  %5127 = vrot.lane.b32.xlu1 %v4942_v44, %s9146_s16  ;;  %v4947_v35 = vld [vmem:[#allocation2 + $0x31a] sm:$0xff] }
 0x5ff   :  { %5125 = vrot.lane.b32.xlu0 %v4941_v8, %s9146_s16 }
 0x600   :  { %v5016_v27 = vpop.permute.xlu1 %5015 }
 0x601   :  { %5206 = vst.msk [vmem:[#allocation3 + $0x8] sm:$0xff] %vm1083_vm4, %v5016_v27  ;;  %v5014_v0 = vpop.permute.xlu0 %5013 }
 0x602   :  { %5205 = vst.msk [vmem:[#allocation3] sm:$0xff] %vm1083_vm4, %v5014_v0  ;;  %5131 = vrot.lane.b32.xlu1 %v4944_v60, %s9146_s16 }
 0x603   :  { %5129 = vrot.lane.b32.xlu0 %v4943_v39, %s9146_s16 }
 0x604   :  { %v5020_v46 = vpop.permute.xlu1 %5019 }
 0x605   :  { %5208 = vst.msk [vmem:[#allocation3 + $0x18] sm:$0xff] %vm1083_vm4, %v5020_v46  ;;  %v5018_v47 = vpop.permute.xlu0 %5017 }
 0x606   :  { %5207 = vst.msk [vmem:[#allocation3 + $0x10] sm:$0xff] %vm1083_vm4, %v5018_v47  ;;  %5135 = vrot.lane.b32.xlu1 %v4946_v38, %s9146_s16 }
 0x607   :  { %5133 = vrot.lane.b32.xlu0 %v4945_v43, %s9146_s16 }
 0x608   :  { %v5024_v6 = vpop.permute.xlu1 %5023 }
 0x609   :  { %5210 = vst.msk [vmem:[#allocation3 + $0x28] sm:$0xff] %vm1083_vm4, %v5024_v6  ;;  %v5022_v62 = vpop.permute.xlu0 %5021 }
 0x60a   :  { %5209 = vst.msk [vmem:[#allocation3 + $0x20] sm:$0xff] %vm1083_vm4, %v5022_v62  ;;  %5139 = vrot.lane.b32.xlu1 %v4948_v45, %s9146_s16 }
 0x60b   :  { %5137 = vrot.lane.b32.xlu0 %v4947_v35, %s9146_s16 }
 0x60c   :  { %v5028_v44 = vpop.permute.xlu1 %5027 }
 0x60d   :  { %5212 = vst.msk [vmem:[#allocation3 + $0x38] sm:$0xff] %vm1083_vm4, %v5028_v44  ;;  %v5026_v8 = vpop.permute.xlu0 %5025 }
 0x60e   :  { %5211 = vst.msk [vmem:[#allocation3 + $0x30] sm:$0xff] %vm1083_vm4, %v5026_v8  ;;  %5399 = vrot.lane.b32.xlu1 %v11057_v16, %s9147_s25 }
 0x60f   :  { %5397 = vrot.lane.b32.xlu0 %v11059_v19, %s9147_s25 }
 0x610   :  { %v5032_v27 = vpop.permute.xlu1 %5031 }
 0x611   :  { %5214 = vst.msk [vmem:[#allocation3 + $0x48] sm:$0xff] %vm1083_vm4, %v5032_v27  ;;  %v5030_v0 = vpop.permute.xlu0 %5029  ;;  %v13433_v27 = vld [vmem:[#allocation11_spill] sm:$0xff] }
 0x612   :  { %5213 = vst.msk [vmem:[#allocation3 + $0x40] sm:$0xff] %vm1083_vm4, %v5030_v0  ;;  %5403 = vrot.lane.b32.xlu1 %v11073_v15, %s9147_s25  ;;  %v13434_v0 = vld [vmem:[#allocation12_spill] sm:$0xff] }
 0x613   :  { %5401 = vrot.lane.b32.xlu0 %v11075_v59, %s9147_s25 }
 0x614   :  { %v5036_v60 = vpop.permute.xlu1 %5035 }
 0x615   :  { %5216 = vst.msk [vmem:[#allocation3 + $0x58] sm:$0xff] %vm1083_vm4, %v5036_v60  ;;  %v5034_v39 = vpop.permute.xlu0 %5033 }
 0x616   :  { %5215 = vst.msk [vmem:[#allocation3 + $0x50] sm:$0xff] %vm1083_vm4, %v5034_v39  ;;  %5407 = vrot.lane.b32.xlu1 %v11089_v18, %s9147_s25 }
 0x617   :  { %5405 = vrot.lane.b32.xlu0 %v11091_v21, %s9147_s25 }
 0x618   :  { %v5040_v16 = vpop.permute.xlu1 %5039 }
 0x619   :  { %5218 = vst.msk [vmem:[#allocation3 + $0x68] sm:$0xff] %vm1083_vm4, %v5040_v16  ;;  %v5038_v19 = vpop.permute.xlu0 %5037 }
 0x61a   :  { %5217 = vst.msk [vmem:[#allocation3 + $0x60] sm:$0xff] %vm1083_vm4, %v5038_v19  ;;  %5411 = vrot.lane.b32.xlu1 %v11105_v40, %s9147_s25 }
 0x61b   :  { %5409 = vrot.lane.b32.xlu0 %v11107_v42, %s9147_s25 }
 0x61c   :  { %v5044_v15 = vpop.permute.xlu1 %5043 }
 0x61d   :  { %5220 = vst.msk [vmem:[#allocation3 + $0x78] sm:$0xff] %vm1083_vm4, %v5044_v15  ;;  %v5042_v59 = vpop.permute.xlu0 %5041  ;;  %v13437_v15 = vld [vmem:[#allocation15_spill] sm:$0xff] }
 0x61e   :  { %5219 = vst.msk [vmem:[#allocation3 + $0x70] sm:$0xff] %vm1083_vm4, %v5042_v59  ;;  %5415 = vrot.lane.b32.xlu1 %v11121_v54, %s9147_s25  ;;  %v13438_v59 = vld [vmem:[#allocation16_spill] sm:$0xff] }
 0x61f   :  { %5413 = vrot.lane.b32.xlu0 %v11123_v55, %s9147_s25 }
 0x620   :  { %v5048_v18 = vpop.permute.xlu1 %5047 }
 0x621   :  { %5222 = vst.msk [vmem:[#allocation3 + $0x88] sm:$0xff] %vm1083_vm4, %v5048_v18  ;;  %v5046_v21 = vpop.permute.xlu0 %5045 }
 0x622   :  { %5221 = vst.msk [vmem:[#allocation3 + $0x80] sm:$0xff] %vm1083_vm4, %v5046_v21  ;;  %5419 = vrot.lane.b32.xlu1 %v11137_v11, %s9147_s25 }
 0x623   :  { %5417 = vrot.lane.b32.xlu0 %v11139_v12, %s9147_s25 }
 0x624   :  { %v5052_v40 = vpop.permute.xlu1 %5051 }
 0x625   :  { %5224 = vst.msk [vmem:[#allocation3 + $0x98] sm:$0xff] %vm1083_vm4, %v5052_v40  ;;  %v5050_v42 = vpop.permute.xlu0 %5049  ;;  %v5332_v40 = vld [vmem:[#allocation2 + $0x338] sm:$0xff] }
 0x626   :  { %5223 = vst.msk [vmem:[#allocation3 + $0x90] sm:$0xff] %vm1083_vm4, %v5050_v42  ;;  %5423 = vrot.lane.b32.xlu1 %v11153_v23, %s9147_s25  ;;  %v5331_v42 = vld [vmem:[#allocation2 + $0x330] sm:$0xff] }
 0x627   :  { %5421 = vrot.lane.b32.xlu0 %v11155_v20, %s9147_s25 }
 0x628   :  { %v5056_v54 = vpop.permute.xlu1 %5055 }
 0x629   :  { %5226 = vst.msk [vmem:[#allocation3 + $0xa8] sm:$0xff] %vm1083_vm4, %v5056_v54  ;;  %v5054_v55 = vpop.permute.xlu0 %5053 }
 0x62a   :  { %5225 = vst.msk [vmem:[#allocation3 + $0xa0] sm:$0xff] %vm1083_vm4, %v5054_v55  ;;  %5427 = vrot.lane.b32.xlu1 %v11169_v26, %s9147_s25 }
 0x62b   :  { %5425 = vrot.lane.b32.xlu0 %v11171_v30, %s9147_s25 }
 0x62c   :  { %v5060_v11 = vpop.permute.xlu1 %5059 }
 0x62d   :  { %5228 = vst.msk [vmem:[#allocation3 + $0xb8] sm:$0xff] %vm1083_vm4, %v5060_v11  ;;  %v5058_v12 = vpop.permute.xlu0 %5057  ;;  %v5654_v11 = vld [vmem:[#allocation2 + $0x21] sm:$0xff] }
 0x62e   :  { %5227 = vst.msk [vmem:[#allocation3 + $0xb0] sm:$0xff] %vm1083_vm4, %v5058_v12  ;;  %5431 = vrot.lane.b32.xlu1 %v11185_v48, %s9147_s25  ;;  %v5653_v12 = vld [vmem:[#allocation2 + $0x19] sm:$0xff] }
 0x62f   :  { %5429 = vrot.lane.b32.xlu0 %v11187_v50, %s9147_s25 }
 0x630   :  { %v5064_v23 = vpop.permute.xlu1 %5063 }
 0x631   :  { %5230 = vst.msk [vmem:[#allocation3 + $0xc8] sm:$0xff] %vm1083_vm4, %v5064_v23  ;;  %v5062_v20 = vpop.permute.xlu0 %5061 }
 0x632   :  { %5229 = vst.msk [vmem:[#allocation3 + $0xc0] sm:$0xff] %vm1083_vm4, %v5062_v20  ;;  %5435 = vrot.lane.b32.xlu1 %v11201_v2, %s9147_s25 }
 0x633   :  { %5433 = vrot.lane.b32.xlu0 %v11203_v3, %s9147_s25 }
 0x634   :  { %v5068_v26 = vpop.permute.xlu1 %5067 }
 0x635   :  { %5232 = vst.msk [vmem:[#allocation3 + $0xd8] sm:$0xff] %vm1083_vm4, %v5068_v26  ;;  %v5066_v30 = vpop.permute.xlu0 %5065  ;;  %v11863_v26 = vld [vmem:[#allocation2 + $0x39] sm:$0xff] }
 0x636   :  { %5231 = vst.msk [vmem:[#allocation3 + $0xd0] sm:$0xff] %vm1083_vm4, %v5066_v30  ;;  %5439 = vrot.lane.b32.xlu1 %v11217_v5, %s9147_s25  ;;  %v11868_v30 = vld [vmem:[#allocation2 + $0x31] sm:$0xff] }
 0x637   :  { %5437 = vrot.lane.b32.xlu0 %v11219_v9, %s9147_s25 }
 0x638   :  { %v5072_v48 = vpop.permute.xlu1 %5071 }
 0x639   :  { %5234 = vst.msk [vmem:[#allocation3 + $0xe8] sm:$0xff] %vm1083_vm4, %v5072_v48  ;;  %v5070_v50 = vpop.permute.xlu0 %5069 }
 0x63a   :  { %5233 = vst.msk [vmem:[#allocation3 + $0xe0] sm:$0xff] %vm1083_vm4, %v5070_v50  ;;  %5443 = vrot.lane.b32.xlu1 %v11233_v31, %s9147_s25 }
 0x63b   :  { %5441 = vrot.lane.b32.xlu0 %v11235_v32, %s9147_s25 }
 0x63c   :  { %v5076_v2 = vpop.permute.xlu1 %5075 }
 0x63d   :  { %5236 = vst.msk [vmem:[#allocation3 + $0xf8] sm:$0xff] %vm1083_vm4, %v5076_v2  ;;  %v5074_v3 = vpop.permute.xlu0 %5073  ;;  %v11873_v2 = vld [vmem:[#allocation2 + $0x51] sm:$0xff] }
 0x63e   :  { %5235 = vst.msk [vmem:[#allocation3 + $0xf0] sm:$0xff] %vm1083_vm4, %v5074_v3  ;;  %5447 = vrot.lane.b32.xlu1 %v11250_v56, %s9147_s25  ;;  %v11878_v3 = vld [vmem:[#allocation2 + $0x49] sm:$0xff] }
 0x63f   :  { %5445 = vrot.lane.b32.xlu0 %v11252_v10, %s9147_s25 }
 0x640   :  { %v5080_v5 = vpop.permute.xlu1 %5079 }
 0x641   :  { %5238 = vst.msk [vmem:[#allocation3 + $0x108] sm:$0xff] %vm1083_vm4, %v5080_v5  ;;  %v5078_v9 = vpop.permute.xlu0 %5077 }
 0x642   :  { %5237 = vst.msk [vmem:[#allocation3 + $0x100] sm:$0xff] %vm1083_vm4, %v5078_v9  ;;  %5451 = vrot.lane.b32.xlu1 %v11267_v52, %s9147_s25  ;;  %v5300_v52 = vld [vmem:[#allocation2 + $0x188] sm:$0xff] }
 0x643   :  { %5449 = vrot.lane.b32.xlu0 %v11269_v57, %s9147_s25  ;;  %v5299_v57 = vld [vmem:[#allocation2 + $0x180] sm:$0xff] }
 0x644   :  { %v5084_v31 = vpop.permute.xlu1 %5083 }
 0x645   :  { %5240 = vst.msk [vmem:[#allocation3 + $0x118] sm:$0xff] %vm1083_vm4, %v5084_v31  ;;  %v5082_v32 = vpop.permute.xlu0 %5081  ;;  %v11883_v31 = vld [vmem:[#allocation2 + $0x69] sm:$0xff] }
 0x646   :  { %5239 = vst.msk [vmem:[#allocation3 + $0x110] sm:$0xff] %vm1083_vm4, %v5082_v32  ;;  %5455 = vrot.lane.b32.xlu1 %v11283_v22, %s9147_s25  ;;  %v11888_v32 = vld [vmem:[#allocation2 + $0x61] sm:$0xff] }
 0x647   :  { %5453 = vrot.lane.b32.xlu0 %v11285_v25, %s9147_s25 }
 0x648   :  { %v5088_v56 = vpop.permute.xlu1 %5087 }
 0x649   :  { %5242 = vst.msk [vmem:[#allocation3 + $0x128] sm:$0xff] %vm1083_vm4, %v5088_v56  ;;  %v5086_v10 = vpop.permute.xlu0 %5085 }
 0x64a   :  { %5241 = vst.msk [vmem:[#allocation3 + $0x120] sm:$0xff] %vm1083_vm4, %v5086_v10  ;;  %5459 = vrot.lane.b32.xlu1 %v5300_v52, %s9147_s25  ;;  %v11893_v52 = vld [vmem:[#allocation2 + $0x81] sm:$0xff] }
 0x64b   :  { %5457 = vrot.lane.b32.xlu0 %v5299_v57, %s9147_s25  ;;  %v11898_v57 = vld [vmem:[#allocation2 + $0x79] sm:$0xff] }
 0x64c   :  { %v5092_v46 = vpop.permute.xlu1 %5091 }
 0x64d   :  { %5244 = vst.msk [vmem:[#allocation3 + $0x138] sm:$0xff] %vm1083_vm4, %v5092_v46  ;;  %v5090_v47 = vpop.permute.xlu0 %5089 }
 0x64e   :  { %5243 = vst.msk [vmem:[#allocation3 + $0x130] sm:$0xff] %vm1083_vm4, %v5090_v47  ;;  %5463 = vrot.lane.b32.xlu1 %v11307_v36, %s9147_s25 }
 0x64f   :  { %5461 = vrot.lane.b32.xlu0 %v11309_v41, %s9147_s25 }
 0x650   :  { %v5096_v22 = vpop.permute.xlu1 %5095 }
 0x651   :  { %5246 = vst.msk [vmem:[#allocation3 + $0x148] sm:$0xff] %vm1083_vm4, %v5096_v22  ;;  %v5094_v25 = vpop.permute.xlu0 %5093  ;;  %v5664_v22 = vld [vmem:[#allocation2 + $0x99] sm:$0xff] }
 0x652   :  { %5245 = vst.msk [vmem:[#allocation3 + $0x140] sm:$0xff] %vm1083_vm4, %v5094_v25  ;;  %5467 = vrot.lane.b32.xlu1 %v11323_v34, %s9147_s25  ;;  %v5663_v25 = vld [vmem:[#allocation2 + $0x91] sm:$0xff] }
 0x653   :  { %5465 = vrot.lane.b32.xlu0 %v11325_v37, %s9147_s25 }
 0x654   :  { %v5100_v38 = vpop.permute.xlu1 %5099 }
 0x655   :  { %5248 = vst.msk [vmem:[#allocation3 + $0x158] sm:$0xff] %vm1083_vm4, %v5100_v38  ;;  %v5098_v43 = vpop.permute.xlu0 %5097 }
 0x656   :  { %5247 = vst.msk [vmem:[#allocation3 + $0x150] sm:$0xff] %vm1083_vm4, %v5098_v43  ;;  %5471 = vrot.lane.b32.xlu1 %v11339_v1, %s9147_s25 }
 0x657   :  { %5469 = vrot.lane.b32.xlu0 %v11341_v61, %s9147_s25 }
 0x658   :  { %v5104_v36 = vpop.permute.xlu1 %5103 }
 0x659   :  { %5250 = vst.msk [vmem:[#allocation3 + $0x168] sm:$0xff] %vm1083_vm4, %v5104_v36  ;;  %v5102_v41 = vpop.permute.xlu0 %5101  ;;  %v5666_v36 = vld [vmem:[#allocation2 + $0xb1] sm:$0xff] }
 0x65a   :  { %5249 = vst.msk [vmem:[#allocation3 + $0x160] sm:$0xff] %vm1083_vm4, %v5102_v41  ;;  %5475 = vrot.lane.b32.xlu1 %v11355_v49, %s9147_s25  ;;  %v5665_v41 = vld [vmem:[#allocation2 + $0xa9] sm:$0xff] }
 0x65b   :  { %5473 = vrot.lane.b32.xlu0 %v11357_v4, %s9147_s25 }
 0x65c   :  { %v5108_v34 = vpop.permute.xlu1 %5107 }
 0x65d   :  { %5252 = vst.msk [vmem:[#allocation3 + $0x178] sm:$0xff] %vm1083_vm4, %v5108_v34  ;;  %v5106_v37 = vpop.permute.xlu0 %5105 }
 0x65e   :  { %5251 = vst.msk [vmem:[#allocation3 + $0x170] sm:$0xff] %vm1083_vm4, %v5106_v37  ;;  %5479 = vrot.lane.b32.xlu1 %v11371_v51, %s9147_s25 }
 0x65f   :  { %5477 = vrot.lane.b32.xlu0 %v11373_v14, %s9147_s25 }
 0x660   :  { %v5112_v1 = vpop.permute.xlu1 %5111 }
 0x661   :  { %5254 = vst.msk [vmem:[#allocation3 + $0x188] sm:$0xff] %vm1083_vm4, %v5112_v1  ;;  %v5110_v61 = vpop.permute.xlu0 %5109  ;;  %v5668_v1 = vld [vmem:[#allocation2 + $0xc9] sm:$0xff] }
 0x662   :  { %5253 = vst.msk [vmem:[#allocation3 + $0x180] sm:$0xff] %vm1083_vm4, %v5110_v61  ;;  %5483 = vrot.lane.b32.xlu1 %v11387_v33, %s9147_s25  ;;  %v5667_v61 = vld [vmem:[#allocation2 + $0xc1] sm:$0xff] }
 0x663   :  { %5481 = vrot.lane.b32.xlu0 %v11389_v29, %s9147_s25 }
 0x664   :  { %v5116_v49 = vpop.permute.xlu1 %5115 }
 0x665   :  { %5256 = vst.msk [vmem:[#allocation3 + $0x198] sm:$0xff] %vm1083_vm4, %v5116_v49  ;;  %v5114_v4 = vpop.permute.xlu0 %5113 }
 0x666   :  { %5255 = vst.msk [vmem:[#allocation3 + $0x190] sm:$0xff] %vm1083_vm4, %v5114_v4  ;;  %5487 = vrot.lane.b32.xlu1 %v11403_v58, %s9147_s25 }
 0x667   :  { %5485 = vrot.lane.b32.xlu0 %v11405_v53, %s9147_s25 }
 0x668   :  { %v5120_v51 = vpop.permute.xlu1 %5119 }
 0x669   :  { %5258 = vst.msk [vmem:[#allocation3 + $0x1a8] sm:$0xff] %vm1083_vm4, %v5120_v51  ;;  %v5118_v14 = vpop.permute.xlu0 %5117  ;;  %v5670_v51 = vld [vmem:[#allocation2 + $0xe1] sm:$0xff] }
 0x66a   :  { %5257 = vst.msk [vmem:[#allocation3 + $0x1a0] sm:$0xff] %vm1083_vm4, %v5118_v14  ;;  %5491 = vrot.lane.b32.xlu1 %v11419_v13, %s9147_s25  ;;  %v13429_v13 = vld [vmem:[#allocation7_spill] sm:$0xff] }
 0x66b   :  { %5489 = vrot.lane.b32.xlu0 %v11421_v17, %s9147_s25  ;;  %v13430_v17 = vld [vmem:[#allocation8_spill] sm:$0xff]  ;;  %v5669_v14 = vld [vmem:[#allocation2 + $0xd9] sm:$0xff] }
 0x66c   :  { %v5124_v33 = vpop.permute.xlu1 %5123 }
 0x66d   :  { %5260 = vst.msk [vmem:[#allocation3 + $0x1b8] sm:$0xff] %vm1083_vm4, %v5124_v33  ;;  %v5122_v29 = vpop.permute.xlu0 %5121 }
 0x66e   :  { %5259 = vst.msk [vmem:[#allocation3 + $0x1b0] sm:$0xff] %vm1083_vm4, %v5122_v29  ;;  %5495 = vrot.lane.b32.xlu1 %v11440_v28, %s9147_s25  ;;  %v13431_v28 = vld [vmem:[#allocation9_spill] sm:$0xff] }
 0x66f   :  { %5493 = vrot.lane.b32.xlu0 %v11442_v24, %s9147_s25  ;;  %v13432_v24 = vld [vmem:[#allocation10_spill] sm:$0xff] }
 0x670   :  { %v5128_v58 = vpop.permute.xlu1 %5127 }
 0x671   :  { %5262 = vst.msk [vmem:[#allocation3 + $0x1c8] sm:$0xff] %vm1083_vm4, %v5128_v58  ;;  %v5126_v53 = vpop.permute.xlu0 %5125  ;;  %v5672_v58 = vld [vmem:[#allocation2 + $0xf9] sm:$0xff] }
 0x672   :  { %5261 = vst.msk [vmem:[#allocation3 + $0x1c0] sm:$0xff] %vm1083_vm4, %v5126_v53  ;;  %5499 = vrot.lane.b32.xlu1 %v13429_v13, %s9147_s25  ;;  %v5671_v53 = vld [vmem:[#allocation2 + $0xf1] sm:$0xff] }
 0x673   :  { %5497 = vrot.lane.b32.xlu0 %v13430_v17, %s9147_s25 }
 0x674   :  { %v5132_v6 = vpop.permute.xlu1 %5131 }
 0x675   :  { %5264 = vst.msk [vmem:[#allocation3 + $0x1d8] sm:$0xff] %vm1083_vm4, %v5132_v6  ;;  %v5130_v62 = vpop.permute.xlu0 %5129  ;;  %v5674_v6 = vld [vmem:[#allocation2 + $0x111] sm:$0xff] }
 0x676   :  { %5263 = vst.msk [vmem:[#allocation3 + $0x1d0] sm:$0xff] %vm1083_vm4, %v5130_v62  ;;  %5503 = vrot.lane.b32.xlu1 %v13431_v28, %s9147_s25  ;;  %v5673_v62 = vld [vmem:[#allocation2 + $0x109] sm:$0xff] }
 0x677   :  { %5501 = vrot.lane.b32.xlu0 %v13432_v24, %s9147_s25 }
 0x678   :  { %v5136_v45 = vpop.permute.xlu1 %5135 }
 0x679   :  { %5266 = vst.msk [vmem:[#allocation3 + $0x1e8] sm:$0xff] %vm1083_vm4, %v5136_v45  ;;  %v5134_v35 = vpop.permute.xlu0 %5133  ;;  %v5676_v45 = vld [vmem:[#allocation2 + $0x129] sm:$0xff] }
 0x67a   :  { %5265 = vst.msk [vmem:[#allocation3 + $0x1e0] sm:$0xff] %vm1083_vm4, %v5134_v35  ;;  %5507 = vrot.lane.b32.xlu1 %v11488_v63, %s9147_s25  ;;  %v13435_v63 = vld [vmem:[#allocation13_spill] sm:$0xff]  ;;  %v5675_v35 = vld [vmem:[#allocation2 + $0x121] sm:$0xff] }
 0x67b   :  { %5505 = vrot.lane.b32.xlu0 %v11490_v7, %s9147_s25  ;;  %v13436_v7 = vld [vmem:[#allocation14_spill] sm:$0xff] }
 0x67c   :  { %v5140_v44 = vpop.permute.xlu1 %5139 }
 0x67d   :  { %5268 = vst.msk [vmem:[#allocation3 + $0x1f8] sm:$0xff] %vm1083_vm4, %v5140_v44  ;;  %v5138_v8 = vpop.permute.xlu0 %5137 }
 0x67e   :  { %5267 = vst.msk [vmem:[#allocation3 + $0x1f0] sm:$0xff] %vm1083_vm4, %v5138_v8  ;;  %5511 = vrot.lane.b32.xlu1 %v13433_v27, %s9147_s25  ;;  %v5678_v27 = vld [vmem:[#allocation2 + $0x141] sm:$0xff] }
 0x67f   :  { %5509 = vrot.lane.b32.xlu0 %v13434_v0, %s9147_s25  ;;  %v5677_v0 = vld [vmem:[#allocation2 + $0x139] sm:$0xff] }
 0x680   :  { %v5400_v60 = vpop.permute.xlu1 %5399 }
 0x681   :  { %5590 = vst.msk [vmem:[#allocation3 + $0x8] sm:$0xff] %vm1468_vm5, %v5400_v60  ;;  %v5398_v39 = vpop.permute.xlu0 %5397 }
 0x682   :  { %5589 = vst.msk [vmem:[#allocation3] sm:$0xff] %vm1468_vm5, %v5398_v39  ;;  %5515 = vrot.lane.b32.xlu1 %v13435_v63, %s9147_s25  ;;  %v5680_v63 = vld [vmem:[#allocation2 + $0x159] sm:$0xff] }
 0x683   :  { %5513 = vrot.lane.b32.xlu0 %v13436_v7, %s9147_s25  ;;  %v5679_v7 = vld [vmem:[#allocation2 + $0x151] sm:$0xff] }
 0x684   :  { %v5404_v16 = vpop.permute.xlu1 %5403 }
 0x685   :  { %5592 = vst.msk [vmem:[#allocation3 + $0x18] sm:$0xff] %vm1468_vm5, %v5404_v16  ;;  %v5402_v19 = vpop.permute.xlu0 %5401 }
 0x686   :  { %5591 = vst.msk [vmem:[#allocation3 + $0x10] sm:$0xff] %vm1468_vm5, %v5402_v19  ;;  %5519 = vrot.lane.b32.xlu1 %v13437_v15, %s9147_s25  ;;  %v5682_v15 = vld [vmem:[#allocation2 + $0x171] sm:$0xff] }
 0x687   :  { %5517 = vrot.lane.b32.xlu0 %v13438_v59, %s9147_s25  ;;  %v5681_v59 = vld [vmem:[#allocation2 + $0x169] sm:$0xff] }
 0x688   :  { %v5408_v18 = vpop.permute.xlu1 %5407 }
 0x689   :  { %5594 = vst.msk [vmem:[#allocation3 + $0x28] sm:$0xff] %vm1468_vm5, %v5408_v18  ;;  %v5406_v21 = vpop.permute.xlu0 %5405 }
 0x68a   :  { %5593 = vst.msk [vmem:[#allocation3 + $0x20] sm:$0xff] %vm1468_vm5, %v5406_v21  ;;  %5523 = vrot.lane.b32.xlu1 %v5332_v40, %s9147_s25  ;;  %v5684_v40 = vld [vmem:[#allocation2 + $0x189] sm:$0xff] }
 0x68b   :  { %5521 = vrot.lane.b32.xlu0 %v5331_v42, %s9147_s25  ;;  %v5683_v42 = vld [vmem:[#allocation2 + $0x181] sm:$0xff] }
 0x68c   :  { %v5412_v54 = vpop.permute.xlu1 %5411 }
 0x68d   :  { %5596 = vst.msk [vmem:[#allocation3 + $0x38] sm:$0xff] %vm1468_vm5, %v5412_v54  ;;  %v5410_v55 = vpop.permute.xlu0 %5409 }
 0x68e   :  { %5595 = vst.msk [vmem:[#allocation3 + $0x30] sm:$0xff] %vm1468_vm5, %v5410_v55  ;;  %5783 = vrot.lane.b32.xlu1 %v5654_v11, %s9148_s26  ;;  %v5686_v11 = vld [vmem:[#allocation2 + $0x1d1] sm:$0xff] }
 0x68f   :  { %5781 = vrot.lane.b32.xlu0 %v5653_v12, %s9148_s26  ;;  %v5685_v12 = vld [vmem:[#allocation2 + $0x1c9] sm:$0xff] }
 0x690   :  { %v5416_v23 = vpop.permute.xlu1 %5415 }
 0x691   :  { %5598 = vst.msk [vmem:[#allocation3 + $0x48] sm:$0xff] %vm1468_vm5, %v5416_v23  ;;  %v5414_v20 = vpop.permute.xlu0 %5413 }
 0x692   :  { %5597 = vst.msk [vmem:[#allocation3 + $0x40] sm:$0xff] %vm1468_vm5, %v5414_v20  ;;  %5787 = vrot.lane.b32.xlu1 %v11863_v26, %s9148_s26 }
 0x693   :  { %5785 = vrot.lane.b32.xlu0 %v11868_v30, %s9148_s26 }
 0x694   :  { %v5420_v48 = vpop.permute.xlu1 %5419 }
 0x695   :  { %5600 = vst.msk [vmem:[#allocation3 + $0x58] sm:$0xff] %vm1468_vm5, %v5420_v48  ;;  %v5418_v50 = vpop.permute.xlu0 %5417  ;;  %v5688_v48 = vld [vmem:[#allocation2 + $0x1e9] sm:$0xff] }
 0x696   :  { %5599 = vst.msk [vmem:[#allocation3 + $0x50] sm:$0xff] %vm1468_vm5, %v5418_v50  ;;  %5791 = vrot.lane.b32.xlu1 %v11873_v2, %s9148_s26  ;;  %v5687_v50 = vld [vmem:[#allocation2 + $0x1e1] sm:$0xff] }
 0x697   :  { %5789 = vrot.lane.b32.xlu0 %v11878_v3, %s9148_s26 }
 0x698   :  { %v5424_v5 = vpop.permute.xlu1 %5423 }
 0x699   :  { %5602 = vst.msk [vmem:[#allocation3 + $0x68] sm:$0xff] %vm1468_vm5, %v5424_v5  ;;  %v5422_v9 = vpop.permute.xlu0 %5421 }
 0x69a   :  { %5601 = vst.msk [vmem:[#allocation3 + $0x60] sm:$0xff] %vm1468_vm5, %v5422_v9  ;;  %5795 = vrot.lane.b32.xlu1 %v11883_v31, %s9148_s26 }
 0x69b   :  { %5793 = vrot.lane.b32.xlu0 %v11888_v32, %s9148_s26 }
 0x69c   :  { %v5428_v56 = vpop.permute.xlu1 %5427 }
 0x69d   :  { %5604 = vst.msk [vmem:[#allocation3 + $0x78] sm:$0xff] %vm1468_vm5, %v5428_v56  ;;  %v5426_v10 = vpop.permute.xlu0 %5425  ;;  %v5690_v56 = vld [vmem:[#allocation2 + $0x201] sm:$0xff] }
 0x69e   :  { %5603 = vst.msk [vmem:[#allocation3 + $0x70] sm:$0xff] %vm1468_vm5, %v5426_v10  ;;  %5799 = vrot.lane.b32.xlu1 %v11893_v52, %s9148_s26  ;;  %v5689_v10 = vld [vmem:[#allocation2 + $0x1f9] sm:$0xff] }
 0x69f   :  { %5797 = vrot.lane.b32.xlu0 %v11898_v57, %s9148_s26 }
 0x6a0   :  { %v5432_v46 = vpop.permute.xlu1 %5431 }
 0x6a1   :  { %5606 = vst.msk [vmem:[#allocation3 + $0x88] sm:$0xff] %vm1468_vm5, %v5432_v46  ;;  %v5430_v47 = vpop.permute.xlu0 %5429 }
 0x6a2   :  { %5605 = vst.msk [vmem:[#allocation3 + $0x80] sm:$0xff] %vm1468_vm5, %v5430_v47  ;;  %5803 = vrot.lane.b32.xlu1 %v5664_v22, %s9148_s26  ;;  %v5692_v22 = vld [vmem:[#allocation2 + $0x219] sm:$0xff] }
 0x6a3   :  { %5801 = vrot.lane.b32.xlu0 %v5663_v25, %s9148_s26  ;;  %v5691_v25 = vld [vmem:[#allocation2 + $0x211] sm:$0xff] }
 0x6a4   :  { %v5436_v38 = vpop.permute.xlu1 %5435 }
 0x6a5   :  { %5608 = vst.msk [vmem:[#allocation3 + $0x98] sm:$0xff] %vm1468_vm5, %v5436_v38  ;;  %v5434_v43 = vpop.permute.xlu0 %5433 }
 0x6a6   :  { %5607 = vst.msk [vmem:[#allocation3 + $0x90] sm:$0xff] %vm1468_vm5, %v5434_v43  ;;  %5807 = vrot.lane.b32.xlu1 %v5666_v36, %s9148_s26  ;;  %v5694_v36 = vld [vmem:[#allocation2 + $0x231] sm:$0xff] }
 0x6a7   :  { %5805 = vrot.lane.b32.xlu0 %v5665_v41, %s9148_s26  ;;  %v5693_v41 = vld [vmem:[#allocation2 + $0x229] sm:$0xff] }
 0x6a8   :  { %v5440_v34 = vpop.permute.xlu1 %5439 }
 0x6a9   :  { %5610 = vst.msk [vmem:[#allocation3 + $0xa8] sm:$0xff] %vm1468_vm5, %v5440_v34  ;;  %v5438_v37 = vpop.permute.xlu0 %5437 }
 0x6aa   :  { %5609 = vst.msk [vmem:[#allocation3 + $0xa0] sm:$0xff] %vm1468_vm5, %v5438_v37  ;;  %5811 = vrot.lane.b32.xlu1 %v5668_v1, %s9148_s26  ;;  %v5696_v1 = vld [vmem:[#allocation2 + $0x249] sm:$0xff] }
 0x6ab   :  { %5809 = vrot.lane.b32.xlu0 %v5667_v61, %s9148_s26  ;;  %v5695_v61 = vld [vmem:[#allocation2 + $0x241] sm:$0xff] }
 0x6ac   :  { %v5444_v49 = vpop.permute.xlu1 %5443 }
 0x6ad   :  { %5612 = vst.msk [vmem:[#allocation3 + $0xb8] sm:$0xff] %vm1468_vm5, %v5444_v49  ;;  %v5442_v4 = vpop.permute.xlu0 %5441 }
 0x6ae   :  { %5611 = vst.msk [vmem:[#allocation3 + $0xb0] sm:$0xff] %vm1468_vm5, %v5442_v4  ;;  %5815 = vrot.lane.b32.xlu1 %v5670_v51, %s9148_s26  ;;  %v5698_v51 = vld [vmem:[#allocation2 + $0x261] sm:$0xff] }
 0x6af   :  { %5813 = vrot.lane.b32.xlu0 %v5669_v14, %s9148_s26  ;;  %v5697_v14 = vld [vmem:[#allocation2 + $0x259] sm:$0xff] }
 0x6b0   :  { %v5448_v33 = vpop.permute.xlu1 %5447 }
 0x6b1   :  { %5614 = vst.msk [vmem:[#allocation3 + $0xc8] sm:$0xff] %vm1468_vm5, %v5448_v33  ;;  %v5446_v29 = vpop.permute.xlu0 %5445 }
 0x6b2   :  { %5613 = vst.msk [vmem:[#allocation3 + $0xc0] sm:$0xff] %vm1468_vm5, %v5446_v29  ;;  %5819 = vrot.lane.b32.xlu1 %v5672_v58, %s9148_s26  ;;  %v5700_v58 = vld [vmem:[#allocation2 + $0x279] sm:$0xff] }
 0x6b3   :  { %5817 = vrot.lane.b32.xlu0 %v5671_v53, %s9148_s26  ;;  %v5699_v53 = vld [vmem:[#allocation2 + $0x271] sm:$0xff] }
 0x6b4   :  { %v5452_v13 = vpop.permute.xlu1 %5451 }
 0x6b5   :  { %5616 = vst.msk [vmem:[#allocation3 + $0xd8] sm:$0xff] %vm1468_vm5, %v5452_v13  ;;  %v5450_v17 = vpop.permute.xlu0 %5449 }
 0x6b6   :  { %5615 = vst.msk [vmem:[#allocation3 + $0xd0] sm:$0xff] %vm1468_vm5, %v5450_v17  ;;  %5823 = vrot.lane.b32.xlu1 %v5674_v6, %s9148_s26  ;;  %v5702_v6 = vld [vmem:[#allocation2 + $0x291] sm:$0xff] }
 0x6b7   :  { %5821 = vrot.lane.b32.xlu0 %v5673_v62, %s9148_s26  ;;  %v5701_v62 = vld [vmem:[#allocation2 + $0x289] sm:$0xff] }
 0x6b8   :  { %v5456_v28 = vpop.permute.xlu1 %5455 }
 0x6b9   :  { %5618 = vst.msk [vmem:[#allocation3 + $0xe8] sm:$0xff] %vm1468_vm5, %v5456_v28  ;;  %v5454_v24 = vpop.permute.xlu0 %5453 }
 0x6ba   :  { %5617 = vst.msk [vmem:[#allocation3 + $0xe0] sm:$0xff] %vm1468_vm5, %v5454_v24  ;;  %5827 = vrot.lane.b32.xlu1 %v5676_v45, %s9148_s26  ;;  %v5704_v45 = vld [vmem:[#allocation2 + $0x2a9] sm:$0xff] }
 0x6bb   :  { %5825 = vrot.lane.b32.xlu0 %v5675_v35, %s9148_s26  ;;  %v5703_v35 = vld [vmem:[#allocation2 + $0x2a1] sm:$0xff] }
 0x6bc   :  { %v5460_v44 = vpop.permute.xlu1 %5459 }
 0x6bd   :  { %5620 = vst.msk [vmem:[#allocation3 + $0xf8] sm:$0xff] %vm1468_vm5, %v5460_v44  ;;  %v5458_v8 = vpop.permute.xlu0 %5457 }
 0x6be   :  { %5619 = vst.msk [vmem:[#allocation3 + $0xf0] sm:$0xff] %vm1468_vm5, %v5458_v8  ;;  %5831 = vrot.lane.b32.xlu1 %v5678_v27, %s9148_s26  ;;  %v5706_v27 = vld [vmem:[#allocation2 + $0x2c1] sm:$0xff] }
 0x6bf   :  { %5829 = vrot.lane.b32.xlu0 %v5677_v0, %s9148_s26  ;;  %v5705_v0 = vld [vmem:[#allocation2 + $0x2b9] sm:$0xff] }
 0x6c0   :  { %v5464_v60 = vpop.permute.xlu1 %5463 }
 0x6c1   :  { %5622 = vst.msk [vmem:[#allocation3 + $0x108] sm:$0xff] %vm1468_vm5, %v5464_v60  ;;  %v5462_v39 = vpop.permute.xlu0 %5461 }
 0x6c2   :  { %5621 = vst.msk [vmem:[#allocation3 + $0x100] sm:$0xff] %vm1468_vm5, %v5462_v39  ;;  %5835 = vrot.lane.b32.xlu1 %v5680_v63, %s9148_s26  ;;  %v5708_v63 = vld [vmem:[#allocation2 + $0x2d9] sm:$0xff] }
 0x6c3   :  { %5833 = vrot.lane.b32.xlu0 %v5679_v7, %s9148_s26  ;;  %v5707_v7 = vld [vmem:[#allocation2 + $0x2d1] sm:$0xff] }
 0x6c4   :  { %v5468_v16 = vpop.permute.xlu1 %5467 }
 0x6c5   :  { %5624 = vst.msk [vmem:[#allocation3 + $0x118] sm:$0xff] %vm1468_vm5, %v5468_v16  ;;  %v5466_v19 = vpop.permute.xlu0 %5465 }
 0x6c6   :  { %5623 = vst.msk [vmem:[#allocation3 + $0x110] sm:$0xff] %vm1468_vm5, %v5466_v19  ;;  %5839 = vrot.lane.b32.xlu1 %v5682_v15, %s9148_s26  ;;  %v5710_v15 = vld [vmem:[#allocation2 + $0x2f1] sm:$0xff] }
 0x6c7   :  { %5837 = vrot.lane.b32.xlu0 %v5681_v59, %s9148_s26  ;;  %v5709_v59 = vld [vmem:[#allocation2 + $0x2e9] sm:$0xff] }
 0x6c8   :  { %v5472_v18 = vpop.permute.xlu1 %5471 }
 0x6c9   :  { %5626 = vst.msk [vmem:[#allocation3 + $0x128] sm:$0xff] %vm1468_vm5, %v5472_v18  ;;  %v5470_v21 = vpop.permute.xlu0 %5469 }
 0x6ca   :  { %5625 = vst.msk [vmem:[#allocation3 + $0x120] sm:$0xff] %vm1468_vm5, %v5470_v21  ;;  %5843 = vrot.lane.b32.xlu1 %v5684_v40, %s9148_s26  ;;  %v5712_v40 = vld [vmem:[#allocation2 + $0x309] sm:$0xff] }
 0x6cb   :  { %5841 = vrot.lane.b32.xlu0 %v5683_v42, %s9148_s26  ;;  %v5711_v42 = vld [vmem:[#allocation2 + $0x301] sm:$0xff] }
 0x6cc   :  { %v5476_v54 = vpop.permute.xlu1 %5475 }
 0x6cd   :  { %5628 = vst.msk [vmem:[#allocation3 + $0x138] sm:$0xff] %vm1468_vm5, %v5476_v54  ;;  %v5474_v55 = vpop.permute.xlu0 %5473 }
 0x6ce   :  { %5627 = vst.msk [vmem:[#allocation3 + $0x130] sm:$0xff] %vm1468_vm5, %v5474_v55  ;;  %5847 = vrot.lane.b32.xlu1 %v5686_v11, %s9148_s26  ;;  %v5714_v11 = vld [vmem:[#allocation2 + $0x321] sm:$0xff] }
 0x6cf   :  { %5845 = vrot.lane.b32.xlu0 %v5685_v12, %s9148_s26  ;;  %v5713_v12 = vld [vmem:[#allocation2 + $0x319] sm:$0xff] }
 0x6d0   :  { %v5480_v23 = vpop.permute.xlu1 %5479 }
 0x6d1   :  { %5630 = vst.msk [vmem:[#allocation3 + $0x148] sm:$0xff] %vm1468_vm5, %v5480_v23  ;;  %v5478_v20 = vpop.permute.xlu0 %5477 }
 0x6d2   :  { %5629 = vst.msk [vmem:[#allocation3 + $0x140] sm:$0xff] %vm1468_vm5, %v5478_v20  ;;  %5851 = vrot.lane.b32.xlu1 %v5688_v48, %s9148_s26  ;;  %v5716_v48 = vld [vmem:[#allocation2 + $0x339] sm:$0xff] }
 0x6d3   :  { %5849 = vrot.lane.b32.xlu0 %v5687_v50, %s9148_s26  ;;  %v5715_v50 = vld [vmem:[#allocation2 + $0x331] sm:$0xff] }
 0x6d4   :  { %v5484_v5 = vpop.permute.xlu1 %5483 }
 0x6d5   :  { %5632 = vst.msk [vmem:[#allocation3 + $0x158] sm:$0xff] %vm1468_vm5, %v5484_v5  ;;  %v5482_v9 = vpop.permute.xlu0 %5481 }
 0x6d6   :  { %5631 = vst.msk [vmem:[#allocation3 + $0x150] sm:$0xff] %vm1468_vm5, %v5482_v9  ;;  %5855 = vrot.lane.b32.xlu1 %v5690_v56, %s9148_s26  ;;  %v6038_v56 = vld [vmem:[#allocation2 + $0x22] sm:$0xff] }
 0x6d7   :  { %5853 = vrot.lane.b32.xlu0 %v5689_v10, %s9148_s26  ;;  %v6037_v10 = vld [vmem:[#allocation2 + $0x1a] sm:$0xff] }
 0x6d8   :  { %v5488_v46 = vpop.permute.xlu1 %5487 }
 0x6d9   :  { %5634 = vst.msk [vmem:[#allocation3 + $0x168] sm:$0xff] %vm1468_vm5, %v5488_v46  ;;  %v5486_v47 = vpop.permute.xlu0 %5485 }
 0x6da   :  { %5633 = vst.msk [vmem:[#allocation3 + $0x160] sm:$0xff] %vm1468_vm5, %v5486_v47  ;;  %5859 = vrot.lane.b32.xlu1 %v5692_v22, %s9148_s26  ;;  %v12015_v22 = vld [vmem:[#allocation2 + $0x3a] sm:$0xff] }
 0x6db   :  { %5857 = vrot.lane.b32.xlu0 %v5691_v25, %s9148_s26  ;;  %v12020_v25 = vld [vmem:[#allocation2 + $0x32] sm:$0xff] }
 0x6dc   :  { %v5492_v38 = vpop.permute.xlu1 %5491 }
 0x6dd   :  { %5636 = vst.msk [vmem:[#allocation3 + $0x178] sm:$0xff] %vm1468_vm5, %v5492_v38  ;;  %v5490_v43 = vpop.permute.xlu0 %5489 }
 0x6de   :  { %5635 = vst.msk [vmem:[#allocation3 + $0x170] sm:$0xff] %vm1468_vm5, %v5490_v43  ;;  %5863 = vrot.lane.b32.xlu1 %v5694_v36, %s9148_s26  ;;  %v12025_v36 = vld [vmem:[#allocation2 + $0x52] sm:$0xff] }
 0x6df   :  { %5861 = vrot.lane.b32.xlu0 %v5693_v41, %s9148_s26  ;;  %v12030_v41 = vld [vmem:[#allocation2 + $0x4a] sm:$0xff] }
 0x6e0   :  { %v5496_v34 = vpop.permute.xlu1 %5495 }
 0x6e1   :  { %5638 = vst.msk [vmem:[#allocation3 + $0x188] sm:$0xff] %vm1468_vm5, %v5496_v34  ;;  %v5494_v37 = vpop.permute.xlu0 %5493 }
 0x6e2   :  { %5637 = vst.msk [vmem:[#allocation3 + $0x180] sm:$0xff] %vm1468_vm5, %v5494_v37  ;;  %5867 = vrot.lane.b32.xlu1 %v5696_v1, %s9148_s26  ;;  %v12035_v1 = vld [vmem:[#allocation2 + $0x6a] sm:$0xff] }
 0x6e3   :  { %5865 = vrot.lane.b32.xlu0 %v5695_v61, %s9148_s26  ;;  %v12040_v61 = vld [vmem:[#allocation2 + $0x62] sm:$0xff] }
 0x6e4   :  { %v5500_v49 = vpop.permute.xlu1 %5499 }
 0x6e5   :  { %5640 = vst.msk [vmem:[#allocation3 + $0x198] sm:$0xff] %vm1468_vm5, %v5500_v49  ;;  %v5498_v4 = vpop.permute.xlu0 %5497 }
 0x6e6   :  { %5639 = vst.msk [vmem:[#allocation3 + $0x190] sm:$0xff] %vm1468_vm5, %v5498_v4  ;;  %5871 = vrot.lane.b32.xlu1 %v5698_v51, %s9148_s26  ;;  %v12045_v51 = vld [vmem:[#allocation2 + $0x82] sm:$0xff] }
 0x6e7   :  { %5869 = vrot.lane.b32.xlu0 %v5697_v14, %s9148_s26  ;;  %v12050_v14 = vld [vmem:[#allocation2 + $0x7a] sm:$0xff] }
 0x6e8   :  { %v5504_v33 = vpop.permute.xlu1 %5503 }
 0x6e9   :  { %5642 = vst.msk [vmem:[#allocation3 + $0x1a8] sm:$0xff] %vm1468_vm5, %v5504_v33  ;;  %v5502_v29 = vpop.permute.xlu0 %5501 }
 0x6ea   :  { %5641 = vst.msk [vmem:[#allocation3 + $0x1a0] sm:$0xff] %vm1468_vm5, %v5502_v29  ;;  %5875 = vrot.lane.b32.xlu1 %v5700_v58, %s9148_s26  ;;  %v12055_v58 = vld [vmem:[#allocation2 + $0x9a] sm:$0xff] }
 0x6eb   :  { %5873 = vrot.lane.b32.xlu0 %v5699_v53, %s9148_s26  ;;  %v12060_v53 = vld [vmem:[#allocation2 + $0x92] sm:$0xff] }
 0x6ec   :  { %v5508_v13 = vpop.permute.xlu1 %5507 }
 0x6ed   :  { %5644 = vst.msk [vmem:[#allocation3 + $0x1b8] sm:$0xff] %vm1468_vm5, %v5508_v13  ;;  %v5506_v17 = vpop.permute.xlu0 %5505 }
 0x6ee   :  { %5643 = vst.msk [vmem:[#allocation3 + $0x1b0] sm:$0xff] %vm1468_vm5, %v5506_v17  ;;  %5879 = vrot.lane.b32.xlu1 %v5702_v6, %s9148_s26  ;;  %v12065_v6 = vld [vmem:[#allocation2 + $0xb2] sm:$0xff] }
 0x6ef   :  { %5877 = vrot.lane.b32.xlu0 %v5701_v62, %s9148_s26  ;;  %v12070_v62 = vld [vmem:[#allocation2 + $0xaa] sm:$0xff] }
 0x6f0   :  { %v5512_v28 = vpop.permute.xlu1 %5511 }
 0x6f1   :  { %5646 = vst.msk [vmem:[#allocation3 + $0x1c8] sm:$0xff] %vm1468_vm5, %v5512_v28  ;;  %v5510_v24 = vpop.permute.xlu0 %5509 }
 0x6f2   :  { %5645 = vst.msk [vmem:[#allocation3 + $0x1c0] sm:$0xff] %vm1468_vm5, %v5510_v24  ;;  %5883 = vrot.lane.b32.xlu1 %v5704_v45, %s9148_s26  ;;  %v12075_v45 = vld [vmem:[#allocation2 + $0xca] sm:$0xff] }
 0x6f3   :  { %5881 = vrot.lane.b32.xlu0 %v5703_v35, %s9148_s26  ;;  %v12080_v35 = vld [vmem:[#allocation2 + $0xc2] sm:$0xff] }
 0x6f4   :  { %v5516_v44 = vpop.permute.xlu1 %5515 }
 0x6f5   :  { %5648 = vst.msk [vmem:[#allocation3 + $0x1d8] sm:$0xff] %vm1468_vm5, %v5516_v44  ;;  %v5514_v8 = vpop.permute.xlu0 %5513 }
 0x6f6   :  { %5647 = vst.msk [vmem:[#allocation3 + $0x1d0] sm:$0xff] %vm1468_vm5, %v5514_v8  ;;  %5887 = vrot.lane.b32.xlu1 %v5706_v27, %s9148_s26  ;;  %v12085_v27 = vld [vmem:[#allocation2 + $0xe2] sm:$0xff] }
 0x6f7   :  { %5885 = vrot.lane.b32.xlu0 %v5705_v0, %s9148_s26  ;;  %v12090_v0 = vld [vmem:[#allocation2 + $0xda] sm:$0xff] }
 0x6f8   :  { %v5520_v60 = vpop.permute.xlu1 %5519 }
 0x6f9   :  { %5650 = vst.msk [vmem:[#allocation3 + $0x1e8] sm:$0xff] %vm1468_vm5, %v5520_v60  ;;  %v5518_v39 = vpop.permute.xlu0 %5517 }
 0x6fa   :  { %5649 = vst.msk [vmem:[#allocation3 + $0x1e0] sm:$0xff] %vm1468_vm5, %v5518_v39  ;;  %5891 = vrot.lane.b32.xlu1 %v5708_v63, %s9148_s26  ;;  %v12095_v63 = vld [vmem:[#allocation2 + $0xfa] sm:$0xff] }
 0x6fb   :  { %5889 = vrot.lane.b32.xlu0 %v5707_v7, %s9148_s26  ;;  %v12100_v7 = vld [vmem:[#allocation2 + $0xf2] sm:$0xff] }
 0x6fc   :  { %v5524_v16 = vpop.permute.xlu1 %5523 }
 0x6fd   :  { %5652 = vst.msk [vmem:[#allocation3 + $0x1f8] sm:$0xff] %vm1468_vm5, %v5524_v16  ;;  %v5522_v19 = vpop.permute.xlu0 %5521 }
 0x6fe   :  { %5651 = vst.msk [vmem:[#allocation3 + $0x1f0] sm:$0xff] %vm1468_vm5, %v5522_v19  ;;  %5895 = vrot.lane.b32.xlu1 %v5710_v15, %s9148_s26  ;;  %v12105_v15 = vld [vmem:[#allocation2 + $0x112] sm:$0xff] }
 0x6ff   :  { %5893 = vrot.lane.b32.xlu0 %v5709_v59, %s9148_s26  ;;  %v12110_v59 = vld [vmem:[#allocation2 + $0x10a] sm:$0xff] }
 0x700   :  { %v5784_v18 = vpop.permute.xlu1 %5783 }
 0x701   :  { %5974 = vst.msk [vmem:[#allocation3 + $0x8] sm:$0xff] %vm1853_vm6, %v5784_v18  ;;  %v5782_v21 = vpop.permute.xlu0 %5781 }
 0x702   :  { %5973 = vst.msk [vmem:[#allocation3] sm:$0xff] %vm1853_vm6, %v5782_v21  ;;  %5899 = vrot.lane.b32.xlu1 %v5712_v40, %s9148_s26  ;;  %v12115_v40 = vld [vmem:[#allocation2 + $0x12a] sm:$0xff] }
 0x703   :  { %5897 = vrot.lane.b32.xlu0 %v5711_v42, %s9148_s26  ;;  %v12120_v42 = vld [vmem:[#allocation2 + $0x122] sm:$0xff] }
 0x704   :  { %v5788_v54 = vpop.permute.xlu1 %5787 }
 0x705   :  { %5976 = vst.msk [vmem:[#allocation3 + $0x18] sm:$0xff] %vm1853_vm6, %v5788_v54  ;;  %v5786_v55 = vpop.permute.xlu0 %5785 }
 0x706   :  { %5975 = vst.msk [vmem:[#allocation3 + $0x10] sm:$0xff] %vm1853_vm6, %v5786_v55  ;;  %5903 = vrot.lane.b32.xlu1 %v5714_v11, %s9148_s26  ;;  %v12125_v11 = vld [vmem:[#allocation2 + $0x142] sm:$0xff] }
 0x707   :  { %5901 = vrot.lane.b32.xlu0 %v5713_v12, %s9148_s26  ;;  %v12130_v12 = vld [vmem:[#allocation2 + $0x13a] sm:$0xff] }
 0x708   :  { %v5792_v23 = vpop.permute.xlu1 %5791 }
 0x709   :  { %5978 = vst.msk [vmem:[#allocation3 + $0x28] sm:$0xff] %vm1853_vm6, %v5792_v23  ;;  %v5790_v20 = vpop.permute.xlu0 %5789 }
 0x70a   :  { %5977 = vst.msk [vmem:[#allocation3 + $0x20] sm:$0xff] %vm1853_vm6, %v5790_v20  ;;  %5907 = vrot.lane.b32.xlu1 %v5716_v48, %s9148_s26  ;;  %v12135_v48 = vld [vmem:[#allocation2 + $0x15a] sm:$0xff] }
 0x70b   :  { %5905 = vrot.lane.b32.xlu0 %v5715_v50, %s9148_s26  ;;  %v12140_v50 = vld [vmem:[#allocation2 + $0x152] sm:$0xff] }
 0x70c   :  { %v5796_v5 = vpop.permute.xlu1 %5795 }
 0x70d   :  { %5980 = vst.msk [vmem:[#allocation3 + $0x38] sm:$0xff] %vm1853_vm6, %v5796_v5  ;;  %v5794_v9 = vpop.permute.xlu0 %5793 }
 0x70e   :  { %5979 = vst.msk [vmem:[#allocation3 + $0x30] sm:$0xff] %vm1853_vm6, %v5794_v9  ;;  %6167 = vrot.lane.b32.xlu1 %v6038_v56, %s9149_s27  ;;  %v12145_v56 = vld [vmem:[#allocation2 + $0x172] sm:$0xff] }
 0x70f   :  { %6165 = vrot.lane.b32.xlu0 %v6037_v10, %s9149_s27  ;;  %v12150_v10 = vld [vmem:[#allocation2 + $0x16a] sm:$0xff] }
 0x710   :  { %v5800_v46 = vpop.permute.xlu1 %5799 }
 0x711   :  { %5982 = vst.msk [vmem:[#allocation3 + $0x48] sm:$0xff] %vm1853_vm6, %v5800_v46  ;;  %v5798_v47 = vpop.permute.xlu0 %5797 }
 0x712   :  { %5981 = vst.msk [vmem:[#allocation3 + $0x40] sm:$0xff] %vm1853_vm6, %v5798_v47  ;;  %6171 = vrot.lane.b32.xlu1 %v12015_v22, %s9149_s27 }
 0x713   :  { %6169 = vrot.lane.b32.xlu0 %v12020_v25, %s9149_s27 }
 0x714   :  { %v5804_v38 = vpop.permute.xlu1 %5803 }
 0x715   :  { %5984 = vst.msk [vmem:[#allocation3 + $0x58] sm:$0xff] %vm1853_vm6, %v5804_v38  ;;  %v5802_v43 = vpop.permute.xlu0 %5801  ;;  %v12155_v38 = vld [vmem:[#allocation2 + $0x18a] sm:$0xff] }
 0x716   :  { %5983 = vst.msk [vmem:[#allocation3 + $0x50] sm:$0xff] %vm1853_vm6, %v5802_v43  ;;  %6175 = vrot.lane.b32.xlu1 %v12025_v36, %s9149_s27  ;;  %v12160_v43 = vld [vmem:[#allocation2 + $0x182] sm:$0xff] }
 0x717   :  { %6173 = vrot.lane.b32.xlu0 %v12030_v41, %s9149_s27 }
 0x718   :  { %v5808_v34 = vpop.permute.xlu1 %5807 }
 0x719   :  { %5986 = vst.msk [vmem:[#allocation3 + $0x68] sm:$0xff] %vm1853_vm6, %v5808_v34  ;;  %v5806_v37 = vpop.permute.xlu0 %5805 }
 0x71a   :  { %5985 = vst.msk [vmem:[#allocation3 + $0x60] sm:$0xff] %vm1853_vm6, %v5806_v37  ;;  %6179 = vrot.lane.b32.xlu1 %v12035_v1, %s9149_s27 }
 0x71b   :  { %6177 = vrot.lane.b32.xlu0 %v12040_v61, %s9149_s27 }
 0x71c   :  { %v5812_v49 = vpop.permute.xlu1 %5811 }
 0x71d   :  { %5988 = vst.msk [vmem:[#allocation3 + $0x78] sm:$0xff] %vm1853_vm6, %v5812_v49  ;;  %v5810_v4 = vpop.permute.xlu0 %5809  ;;  %v6070_v49 = vld [vmem:[#allocation2 + $0x1d2] sm:$0xff] }
 0x71e   :  { %5987 = vst.msk [vmem:[#allocation3 + $0x70] sm:$0xff] %vm1853_vm6, %v5810_v4  ;;  %6183 = vrot.lane.b32.xlu1 %v12045_v51, %s9149_s27  ;;  %v6069_v4 = vld [vmem:[#allocation2 + $0x1ca] sm:$0xff] }
 0x71f   :  { %6181 = vrot.lane.b32.xlu0 %v12050_v14, %s9149_s27 }
 0x720   :  { %v5816_v33 = vpop.permute.xlu1 %5815 }
 0x721   :  { %5990 = vst.msk [vmem:[#allocation3 + $0x88] sm:$0xff] %vm1853_vm6, %v5816_v33  ;;  %v5814_v29 = vpop.permute.xlu0 %5813 }
 0x722   :  { %5989 = vst.msk [vmem:[#allocation3 + $0x80] sm:$0xff] %vm1853_vm6, %v5814_v29  ;;  %6187 = vrot.lane.b32.xlu1 %v12055_v58, %s9149_s27 }
 0x723   :  { %6185 = vrot.lane.b32.xlu0 %v12060_v53, %s9149_s27 }
 0x724   :  { %v5820_v13 = vpop.permute.xlu1 %5819 }
 0x725   :  { %5992 = vst.msk [vmem:[#allocation3 + $0x98] sm:$0xff] %vm1853_vm6, %v5820_v13  ;;  %v5818_v17 = vpop.permute.xlu0 %5817  ;;  %v12169_v13 = vld [vmem:[#allocation2 + $0x1ea] sm:$0xff] }
 0x726   :  { %5991 = vst.msk [vmem:[#allocation3 + $0x90] sm:$0xff] %vm1853_vm6, %v5818_v17  ;;  %6191 = vrot.lane.b32.xlu1 %v12065_v6, %s9149_s27  ;;  %v12174_v17 = vld [vmem:[#allocation2 + $0x1e2] sm:$0xff] }
 0x727   :  { %6189 = vrot.lane.b32.xlu0 %v12070_v62, %s9149_s27 }
 0x728   :  { %v5824_v28 = vpop.permute.xlu1 %5823 }
 0x729   :  { %5994 = vst.msk [vmem:[#allocation3 + $0xa8] sm:$0xff] %vm1853_vm6, %v5824_v28  ;;  %v5822_v24 = vpop.permute.xlu0 %5821 }
 0x72a   :  { %5993 = vst.msk [vmem:[#allocation3 + $0xa0] sm:$0xff] %vm1853_vm6, %v5822_v24  ;;  %6195 = vrot.lane.b32.xlu1 %v12075_v45, %s9149_s27 }
 0x72b   :  { %6193 = vrot.lane.b32.xlu0 %v12080_v35, %s9149_s27 }
 0x72c   :  { %v5828_v44 = vpop.permute.xlu1 %5827 }
 0x72d   :  { %5996 = vst.msk [vmem:[#allocation3 + $0xb8] sm:$0xff] %vm1853_vm6, %v5828_v44  ;;  %v5826_v8 = vpop.permute.xlu0 %5825  ;;  %v6074_v44 = vld [vmem:[#allocation2 + $0x202] sm:$0xff] }
 0x72e   :  { %5995 = vst.msk [vmem:[#allocation3 + $0xb0] sm:$0xff] %vm1853_vm6, %v5826_v8  ;;  %6199 = vrot.lane.b32.xlu1 %v12085_v27, %s9149_s27  ;;  %v6073_v8 = vld [vmem:[#allocation2 + $0x1fa] sm:$0xff] }
 0x72f   :  { %6197 = vrot.lane.b32.xlu0 %v12090_v0, %s9149_s27 }
 0x730   :  { %v5832_v60 = vpop.permute.xlu1 %5831 }
 0x731   :  { %5998 = vst.msk [vmem:[#allocation3 + $0xc8] sm:$0xff] %vm1853_vm6, %v5832_v60  ;;  %v5830_v39 = vpop.permute.xlu0 %5829 }
 0x732   :  { %5997 = vst.msk [vmem:[#allocation3 + $0xc0] sm:$0xff] %vm1853_vm6, %v5830_v39  ;;  %6203 = vrot.lane.b32.xlu1 %v12095_v63, %s9149_s27 }
 0x733   :  { %6201 = vrot.lane.b32.xlu0 %v12100_v7, %s9149_s27 }
 0x734   :  { %v5836_v16 = vpop.permute.xlu1 %5835 }
 0x735   :  { %6000 = vst.msk [vmem:[#allocation3 + $0xd8] sm:$0xff] %vm1853_vm6, %v5836_v16  ;;  %v5834_v19 = vpop.permute.xlu0 %5833  ;;  %v6076_v16 = vld [vmem:[#allocation2 + $0x21a] sm:$0xff] }
 0x736   :  { %5999 = vst.msk [vmem:[#allocation3 + $0xd0] sm:$0xff] %vm1853_vm6, %v5834_v19  ;;  %6207 = vrot.lane.b32.xlu1 %v12105_v15, %s9149_s27  ;;  %v6075_v19 = vld [vmem:[#allocation2 + $0x212] sm:$0xff] }
 0x737   :  { %6205 = vrot.lane.b32.xlu0 %v12110_v59, %s9149_s27 }
 0x738   :  { %v5840_v18 = vpop.permute.xlu1 %5839 }
 0x739   :  { %6002 = vst.msk [vmem:[#allocation3 + $0xe8] sm:$0xff] %vm1853_vm6, %v5840_v18  ;;  %v5838_v21 = vpop.permute.xlu0 %5837 }
 0x73a   :  { %6001 = vst.msk [vmem:[#allocation3 + $0xe0] sm:$0xff] %vm1853_vm6, %v5838_v21  ;;  %6211 = vrot.lane.b32.xlu1 %v12115_v40, %s9149_s27 }
 0x73b   :  { %6209 = vrot.lane.b32.xlu0 %v12120_v42, %s9149_s27 }
 0x73c   :  { %v5844_v54 = vpop.permute.xlu1 %5843 }
 0x73d   :  { %6004 = vst.msk [vmem:[#allocation3 + $0xf8] sm:$0xff] %vm1853_vm6, %v5844_v54  ;;  %v5842_v55 = vpop.permute.xlu0 %5841  ;;  %v6078_v54 = vld [vmem:[#allocation2 + $0x232] sm:$0xff] }
 0x73e   :  { %6003 = vst.msk [vmem:[#allocation3 + $0xf0] sm:$0xff] %vm1853_vm6, %v5842_v55  ;;  %6215 = vrot.lane.b32.xlu1 %v12125_v11, %s9149_s27  ;;  %v6077_v55 = vld [vmem:[#allocation2 + $0x22a] sm:$0xff] }
 0x73f   :  { %6213 = vrot.lane.b32.xlu0 %v12130_v12, %s9149_s27 }
 0x740   :  { %v5848_v23 = vpop.permute.xlu1 %5847 }
 0x741   :  { %6006 = vst.msk [vmem:[#allocation3 + $0x108] sm:$0xff] %vm1853_vm6, %v5848_v23  ;;  %v5846_v20 = vpop.permute.xlu0 %5845 }
 0x742   :  { %6005 = vst.msk [vmem:[#allocation3 + $0x100] sm:$0xff] %vm1853_vm6, %v5846_v20  ;;  %6219 = vrot.lane.b32.xlu1 %v12135_v48, %s9149_s27 }
 0x743   :  { %6217 = vrot.lane.b32.xlu0 %v12140_v50, %s9149_s27 }
 0x744   :  { %v5852_v5 = vpop.permute.xlu1 %5851 }
 0x745   :  { %6008 = vst.msk [vmem:[#allocation3 + $0x118] sm:$0xff] %vm1853_vm6, %v5852_v5  ;;  %v5850_v9 = vpop.permute.xlu0 %5849  ;;  %v6080_v5 = vld [vmem:[#allocation2 + $0x24a] sm:$0xff] }
 0x746   :  { %6007 = vst.msk [vmem:[#allocation3 + $0x110] sm:$0xff] %vm1853_vm6, %v5850_v9  ;;  %6223 = vrot.lane.b32.xlu1 %v12145_v56, %s9149_s27  ;;  %v6079_v9 = vld [vmem:[#allocation2 + $0x242] sm:$0xff] }
 0x747   :  { %6221 = vrot.lane.b32.xlu0 %v12150_v10, %s9149_s27 }
 0x748   :  { %v5856_v46 = vpop.permute.xlu1 %5855 }
 0x749   :  { %6010 = vst.msk [vmem:[#allocation3 + $0x128] sm:$0xff] %vm1853_vm6, %v5856_v46  ;;  %v5854_v47 = vpop.permute.xlu0 %5853 }
 0x74a   :  { %6009 = vst.msk [vmem:[#allocation3 + $0x120] sm:$0xff] %vm1853_vm6, %v5854_v47  ;;  %6227 = vrot.lane.b32.xlu1 %v12155_v38, %s9149_s27 }
 0x74b   :  { %6225 = vrot.lane.b32.xlu0 %v12160_v43, %s9149_s27 }
 0x74c   :  { %v5860_v34 = vpop.permute.xlu1 %5859 }
 0x74d   :  { %6012 = vst.msk [vmem:[#allocation3 + $0x138] sm:$0xff] %vm1853_vm6, %v5860_v34  ;;  %v5858_v37 = vpop.permute.xlu0 %5857  ;;  %v6082_v34 = vld [vmem:[#allocation2 + $0x262] sm:$0xff] }
 0x74e   :  { %6011 = vst.msk [vmem:[#allocation3 + $0x130] sm:$0xff] %vm1853_vm6, %v5858_v37  ;;  %6231 = vrot.lane.b32.xlu1 %v6070_v49, %s9149_s27  ;;  %v6081_v37 = vld [vmem:[#allocation2 + $0x25a] sm:$0xff] }
 0x74f   :  { %6229 = vrot.lane.b32.xlu0 %v6069_v4, %s9149_s27 }
 0x750   :  { %v5864_v33 = vpop.permute.xlu1 %5863 }
 0x751   :  { %6014 = vst.msk [vmem:[#allocation3 + $0x148] sm:$0xff] %vm1853_vm6, %v5864_v33  ;;  %v5862_v29 = vpop.permute.xlu0 %5861  ;;  %v6084_v33 = vld [vmem:[#allocation2 + $0x27a] sm:$0xff] }
 0x752   :  { %6013 = vst.msk [vmem:[#allocation3 + $0x140] sm:$0xff] %vm1853_vm6, %v5862_v29  ;;  %6235 = vrot.lane.b32.xlu1 %v12169_v13, %s9149_s27  ;;  %v6083_v29 = vld [vmem:[#allocation2 + $0x272] sm:$0xff] }
 0x753   :  { %6233 = vrot.lane.b32.xlu0 %v12174_v17, %s9149_s27 }
 0x754   :  { %v5868_v28 = vpop.permute.xlu1 %5867 }
 0x755   :  { %6016 = vst.msk [vmem:[#allocation3 + $0x158] sm:$0xff] %vm1853_vm6, %v5868_v28  ;;  %v5866_v24 = vpop.permute.xlu0 %5865 }
 0x756   :  { %6015 = vst.msk [vmem:[#allocation3 + $0x150] sm:$0xff] %vm1853_vm6, %v5866_v24  ;;  %6239 = vrot.lane.b32.xlu1 %v6074_v44, %s9149_s27  ;;  %v6086_v44 = vld [vmem:[#allocation2 + $0x292] sm:$0xff] }
 0x757   :  { %6237 = vrot.lane.b32.xlu0 %v6073_v8, %s9149_s27  ;;  %v7637_v8 = vld [vmem:[%s13387_s2] sm:$0xff] }
 0x758   :  { %v5872_v60 = vpop.permute.xlu1 %5871 }
 0x759   :  { %6018 = vst.msk [vmem:[#allocation3 + $0x168] sm:$0xff] %vm1853_vm6, %v5872_v60  ;;  %v5870_v39 = vpop.permute.xlu0 %5869  ;;  %v7638_v60 = vld [vmem:[%s13387_s2 + $0x8] sm:$0xff] }
 0x75a   :  { %6017 = vst.msk [vmem:[#allocation3 + $0x160] sm:$0xff] %vm1853_vm6, %v5870_v39  ;;  %6243 = vrot.lane.b32.xlu1 %v6076_v16, %s9149_s27  ;;  %v6085_v39 = vld [vmem:[#allocation2 + $0x28a] sm:$0xff]  ;;  %v9109_v16 = vpack.c.bf16 %v7638_v60, %v7637_v8 }
 0x75b   :  { %6241 = vrot.lane.b32.xlu0 %v6075_v19, %s9149_s27 }
 0x75c   :  { %v5876_v18 = vpop.permute.xlu1 %5875  ;;  %9110 = vmatprep.subr.bf16.mxu1 %v9109_v16 }
 0x75d   :  { %6020 = vst.msk [vmem:[#allocation3 + $0x178] sm:$0xff] %vm1853_vm6, %v5876_v18  ;;  %v5874_v21 = vpop.permute.xlu0 %5873  ;;  %9112 = vmatpush3.bf16.msra.mxu1 %v9109_v16 }
 0x75e   :  { %6019 = vst.msk [vmem:[#allocation3 + $0x170] sm:$0xff] %vm1853_vm6, %v5874_v21  ;;  %6247 = vrot.lane.b32.xlu1 %v6078_v54, %s9149_s27  ;;  %v6422_v21 = vld [vmem:[#allocation2 + $0x38] sm:$0xff]  ;;  %v7639_v54 = vld [vmem:[%s13387_s2 + $0x10] sm:$0xff] }
 0x75f   :  { %6245 = vrot.lane.b32.xlu0 %v6077_v55, %s9149_s27  ;;  %v7640_v55 = vld [vmem:[%s13387_s2 + $0x18] sm:$0xff] }
 0x760   :  { %v5880_v23 = vpop.permute.xlu1 %5879 }
 0x761   :  { %6022 = vst.msk [vmem:[#allocation3 + $0x188] sm:$0xff] %vm1853_vm6, %v5880_v23  ;;  %v5878_v20 = vpop.permute.xlu0 %5877  ;;  %v6421_v23 = vld [vmem:[#allocation2 + $0x30] sm:$0xff] }
 0x762   :  { %6021 = vst.msk [vmem:[#allocation3 + $0x180] sm:$0xff] %vm1853_vm6, %v5878_v20  ;;  %6251 = vrot.lane.b32.xlu1 %v6080_v5, %s9149_s27  ;;  %v9113_v20 = vpack.c.bf16 %v7640_v55, %v7639_v54 }
 0x763   :  { %6249 = vrot.lane.b32.xlu0 %v6079_v9, %s9149_s27 }
 0x764   :  { %v5884_v46 = vpop.permute.xlu1 %5883  ;;  %9114 = vmatprep.subr.bf16.mxu1 %v9113_v20 }
 0x765   :  { %6024 = vst.msk [vmem:[#allocation3 + $0x198] sm:$0xff] %vm1853_vm6, %v5884_v46  ;;  %v5882_v47 = vpop.permute.xlu0 %5881  ;;  %9116 = vmatpush3.bf16.msra.mxu1 %v9113_v20  ;;  %v7641_v46 = vld [vmem:[%s13387_s2 + $0x20] sm:$0xf]  ;;  %s8750_s2 = sld [smem:[#allocation4 + $0x1]] }
 0x766   :  { %6023 = vst.msk [vmem:[#allocation3 + $0x190] sm:$0xff] %vm1853_vm6, %v5882_v47  ;;  %6255 = vrot.lane.b32.xlu1 %v6082_v34, %s9149_s27  ;;  %9003 = vmatprep.subr.msk.mxu1 %vm3726_vm10, %v7641_v46 }
 0x767   :  { %6253 = vrot.lane.b32.xlu0 %v6081_v37, %s9149_s27 }
 0x768   :  { %v5888_v49 = vpop.permute.xlu1 %5887 }
 0x769   :  { %6026 = vst.msk [vmem:[#allocation3 + $0x1a8] sm:$0xff] %vm1853_vm6, %v5888_v49  ;;  %v5886_v4 = vpop.permute.xlu0 %5885  ;;  %9004 = vmatpush3.msk.msra.mxu1 %vm3726_vm10, %v7641_v46  ;;  %v6424_v49 = vld [vmem:[#allocation2 + $0x50] sm:$0xff]  ;;  %v6431_v46 = vld [vmem:[#allocation2 + $0xa8] sm:$0xff] }
 0x76a   :  { %6025 = vst.msk [vmem:[#allocation3 + $0x1a0] sm:$0xff] %vm1853_vm6, %v5886_v4  ;;  %6259 = vrot.lane.b32.xlu1 %v6084_v33, %s9149_s27 }
 0x76b   :  { %6257 = vrot.lane.b32.xlu0 %v6083_v29, %s9149_s27 }
 0x76c   :  { %v5892_v28 = vpop.permute.xlu1 %5891 }
 0x76d   :  { %6028 = vst.msk [vmem:[#allocation3 + $0x1b8] sm:$0xff] %vm1853_vm6, %v5892_v28  ;;  %v5890_v24 = vpop.permute.xlu0 %5889 }
 0x76e   :  { %6027 = vst.msk [vmem:[#allocation3 + $0x1b0] sm:$0xff] %vm1853_vm6, %v5890_v24  ;;  %6263 = vrot.lane.b32.xlu1 %v6086_v44, %s9149_s27 }
 0x76f   :  { %6261 = vrot.lane.b32.xlu0 %v6085_v39, %s9149_s27 }
 0x770   :  { %v5896_v19 = vpop.permute.xlu1 %5895 }
 0x771   :  { %6030 = vst.msk [vmem:[#allocation3 + $0x1c8] sm:$0xff] %vm1853_vm6, %v5896_v19  ;;  %v5894_v18 = vpop.permute.xlu0 %5893 }
 0x772   :  { %6029 = vst.msk [vmem:[#allocation3 + $0x1c0] sm:$0xff] %vm1853_vm6, %v5894_v18  ;;  %6551 = vrot.lane.b32.xlu1 %v6422_v21, %s9150_s28 }
 0x773   :  { %6549 = vrot.lane.b32.xlu0 %v6421_v23, %s9150_s28 }
 0x774   :  { %v5900_v5 = vpop.permute.xlu1 %5899 }
 0x775   :  { %6032 = vst.msk [vmem:[#allocation3 + $0x1d8] sm:$0xff] %vm1853_vm6, %v5900_v5  ;;  %v5898_v9 = vpop.permute.xlu0 %5897 }
 0x776   :  { %6031 = vst.msk [vmem:[#allocation3 + $0x1d0] sm:$0xff] %vm1853_vm6, %v5898_v9  ;;  %6935 = vrot.lane.b32.xlu1 %v11863_v26, %s9151_s29  ;;  %v6432_v9 = vld [vmem:[#allocation2 + $0xb0] sm:$0xff] }
 0x777   :  { %6933 = vrot.lane.b32.xlu0 %v11868_v30, %s9151_s29  ;;  %v6423_v30 = vld [vmem:[#allocation2 + $0x48] sm:$0xff] }
 0x778   :  { %v5904_v47 = vpop.permute.xlu1 %5903 }
 0x779   :  { %6034 = vst.msk [vmem:[#allocation3 + $0x1e8] sm:$0xff] %vm1853_vm6, %v5904_v47  ;;  %v5902_v34 = vpop.permute.xlu0 %5901 }
 0x77a   :  { %6033 = vst.msk [vmem:[#allocation3 + $0x1e0] sm:$0xff] %vm1853_vm6, %v5902_v34  ;;  %7319 = vrot.lane.b32.xlu1 %v12015_v22, %s9152_s1 }
 0x77b   :  { %7317 = vrot.lane.b32.xlu0 %v12020_v25, %s9152_s1 }
 0x77c   :  { %v5908_v26 = vpop.permute.xlu1 %5907 }
 0x77d   :  { %6036 = vst.msk [vmem:[#allocation3 + $0x1f8] sm:$0xff] %vm1853_vm6, %v5908_v26  ;;  %v5906_v37 = vpop.permute.xlu0 %5905 }
 0x77e   :  { %6035 = vst.msk [vmem:[#allocation3 + $0x1f0] sm:$0xff] %vm1853_vm6, %v5906_v37  ;;  %6555 = vrot.lane.b32.xlu1 %v6424_v49, %s9150_s28 }
 0x77f   :  { %6553 = vrot.lane.b32.xlu0 %v6423_v30, %s9150_s28 }
 0x780   :  { %v6168_v4 = vpop.permute.xlu1 %6167 }
 0x781   :  { %6358 = vst.msk [vmem:[#allocation3 + $0x8] sm:$0xff] %vm2238_vm7, %v6168_v4  ;;  %v6166_v33 = vpop.permute.xlu0 %6165  ;;  %v6434_v4 = vld [vmem:[#allocation2 + $0xc8] sm:$0xff] }
 0x782   :  { %6357 = vst.msk [vmem:[#allocation3] sm:$0xff] %vm2238_vm7, %v6166_v33  ;;  %6939 = vrot.lane.b32.xlu1 %v11873_v2, %s9151_s29  ;;  %v6426_v2 = vld [vmem:[#allocation2 + $0x68] sm:$0xff]  ;;  %v6433_v33 = vld [vmem:[#allocation2 + $0xc0] sm:$0xff] }
 0x783   :  { %6937 = vrot.lane.b32.xlu0 %v11878_v3, %s9151_s29  ;;  %v6425_v3 = vld [vmem:[#allocation2 + $0x60] sm:$0xff] }
 0x784   :  { %v6172_v22 = vpop.permute.xlu1 %6171 }
 0x785   :  { %6360 = vst.msk [vmem:[#allocation3 + $0x18] sm:$0xff] %vm2238_vm7, %v6172_v22  ;;  %v6170_v25 = vpop.permute.xlu0 %6169 }
 0x786   :  { %6359 = vst.msk [vmem:[#allocation3 + $0x10] sm:$0xff] %vm2238_vm7, %v6170_v25  ;;  %7323 = vrot.lane.b32.xlu1 %v12025_v36, %s9152_s1 }
 0x787   :  { %7321 = vrot.lane.b32.xlu0 %v12030_v41, %s9152_s1 }
 0x788   :  { %v6176_v29 = vpop.permute.xlu1 %6175 }
 0x789   :  { %6362 = vst.msk [vmem:[#allocation3 + $0x28] sm:$0xff] %vm2238_vm7, %v6176_v29  ;;  %v6174_v28 = vpop.permute.xlu0 %6173 }
 0x78a   :  { %6361 = vst.msk [vmem:[#allocation3 + $0x20] sm:$0xff] %vm2238_vm7, %v6174_v28  ;;  %6559 = vrot.lane.b32.xlu1 %v6426_v2, %s9150_s28 }
 0x78b   :  { %6557 = vrot.lane.b32.xlu0 %v6425_v3, %s9150_s28 }
 0x78c   :  { %v6180_v24 = vpop.permute.xlu1 %6179 }
 0x78d   :  { %6364 = vst.msk [vmem:[#allocation3 + $0x38] sm:$0xff] %vm2238_vm7, %v6180_v24  ;;  %v6178_v44 = vpop.permute.xlu0 %6177  ;;  %v6436_v24 = vld [vmem:[#allocation2 + $0xe0] sm:$0xff] }
 0x78e   :  { %6363 = vst.msk [vmem:[#allocation3 + $0x30] sm:$0xff] %vm2238_vm7, %v6178_v44  ;;  %6943 = vrot.lane.b32.xlu1 %v11883_v31, %s9151_s29  ;;  %v6428_v31 = vld [vmem:[#allocation2 + $0x80] sm:$0xff]  ;;  %v6435_v44 = vld [vmem:[#allocation2 + $0xd8] sm:$0xff] }
 0x78f   :  { %6941 = vrot.lane.b32.xlu0 %v11888_v32, %s9151_s29  ;;  %v6427_v32 = vld [vmem:[#allocation2 + $0x78] sm:$0xff] }
 0x790   :  { %v6184_v36 = vpop.permute.xlu1 %6183 }
 0x791   :  { %6366 = vst.msk [vmem:[#allocation3 + $0x48] sm:$0xff] %vm2238_vm7, %v6184_v36  ;;  %v6182_v41 = vpop.permute.xlu0 %6181 }
 0x792   :  { %6365 = vst.msk [vmem:[#allocation3 + $0x40] sm:$0xff] %vm2238_vm7, %v6182_v41  ;;  %7327 = vrot.lane.b32.xlu1 %v12035_v1, %s9152_s1 }
 0x793   :  { %7325 = vrot.lane.b32.xlu0 %v12040_v61, %s9152_s1 }
 0x794   :  { %v6188_v8 = vpop.permute.xlu1 %6187 }
 0x795   :  { %6368 = vst.msk [vmem:[#allocation3 + $0x58] sm:$0xff] %vm2238_vm7, %v6188_v8  ;;  %v6186_v60 = vpop.permute.xlu0 %6185 }
 0x796   :  { %6367 = vst.msk [vmem:[#allocation3 + $0x50] sm:$0xff] %vm2238_vm7, %v6186_v60  ;;  %6563 = vrot.lane.b32.xlu1 %v6428_v31, %s9150_s28 }
 0x797   :  { %6561 = vrot.lane.b32.xlu0 %v6427_v32, %s9150_s28 }
 0x798   :  { %v6192_v39 = vpop.permute.xlu1 %6191 }
 0x799   :  { %6370 = vst.msk [vmem:[#allocation3 + $0x68] sm:$0xff] %vm2238_vm7, %v6192_v39  ;;  %v6190_v16 = vpop.permute.xlu0 %6189  ;;  %v6438_v39 = vld [vmem:[#allocation2 + $0xf8] sm:$0xff] }
 0x79a   :  { %6369 = vst.msk [vmem:[#allocation3 + $0x60] sm:$0xff] %vm2238_vm7, %v6190_v16  ;;  %6947 = vrot.lane.b32.xlu1 %v11893_v52, %s9151_s29  ;;  %v6430_v52 = vld [vmem:[#allocation2 + $0x98] sm:$0xff]  ;;  %v6437_v16 = vld [vmem:[#allocation2 + $0xf0] sm:$0xff] }
 0x79b   :  { %6945 = vrot.lane.b32.xlu0 %v11898_v57, %s9151_s29  ;;  %v6429_v57 = vld [vmem:[#allocation2 + $0x90] sm:$0xff] }
 0x79c   :  { %v6196_v1 = vpop.permute.xlu1 %6195 }
 0x79d   :  { %6372 = vst.msk [vmem:[#allocation3 + $0x78] sm:$0xff] %vm2238_vm7, %v6196_v1  ;;  %v6194_v61 = vpop.permute.xlu0 %6193 }
 0x79e   :  { %6371 = vst.msk [vmem:[#allocation3 + $0x70] sm:$0xff] %vm2238_vm7, %v6194_v61  ;;  %7331 = vrot.lane.b32.xlu1 %v12045_v51, %s9152_s1  ;;  %v6814_v51 = vld [vmem:[#allocation2 + $0x99] sm:$0xff] }
 0x79f   :  { %7329 = vrot.lane.b32.xlu0 %v12050_v14, %s9152_s1  ;;  %v6813_v14 = vld [vmem:[#allocation2 + $0x91] sm:$0xff] }
 0x7a0   :  { %v6200_v19 = vpop.permute.xlu1 %6199 }
 0x7a1   :  { %6374 = vst.msk [vmem:[#allocation3 + $0x88] sm:$0xff] %vm2238_vm7, %v6200_v19  ;;  %v6198_v18 = vpop.permute.xlu0 %6197 }
 0x7a2   :  { %6373 = vst.msk [vmem:[#allocation3 + $0x80] sm:$0xff] %vm2238_vm7, %v6198_v18  ;;  %6567 = vrot.lane.b32.xlu1 %v6430_v52, %s9150_s28 }
 0x7a3   :  { %6565 = vrot.lane.b32.xlu0 %v6429_v57, %s9150_s28 }
 0x7a4   :  { %v6204_v21 = vpop.permute.xlu1 %6203 }
 0x7a5   :  { %6376 = vst.msk [vmem:[#allocation3 + $0x98] sm:$0xff] %vm2238_vm7, %v6204_v21  ;;  %v6202_v54 = vpop.permute.xlu0 %6201  ;;  %v6440_v21 = vld [vmem:[#allocation2 + $0x110] sm:$0xff] }
 0x7a6   :  { %6375 = vst.msk [vmem:[#allocation3 + $0x90] sm:$0xff] %vm2238_vm7, %v6202_v54  ;;  %6951 = vrot.lane.b32.xlu1 %v6814_v51, %s9151_s29  ;;  %v6439_v54 = vld [vmem:[#allocation2 + $0x108] sm:$0xff] }
 0x7a7   :  { %6949 = vrot.lane.b32.xlu0 %v6813_v14, %s9151_s29 }
 0x7a8   :  { %v6208_v55 = vpop.permute.xlu1 %6207 }
 0x7a9   :  { %6378 = vst.msk [vmem:[#allocation3 + $0xa8] sm:$0xff] %vm2238_vm7, %v6208_v55  ;;  %v6206_v23 = vpop.permute.xlu0 %6205 }
 0x7aa   :  { %6377 = vst.msk [vmem:[#allocation3 + $0xa0] sm:$0xff] %vm2238_vm7, %v6206_v23  ;;  %7335 = vrot.lane.b32.xlu1 %v12055_v58, %s9152_s1  ;;  %v6816_v58 = vld [vmem:[#allocation2 + $0xb1] sm:$0xff] }
 0x7ab   :  { %7333 = vrot.lane.b32.xlu0 %v12060_v53, %s9152_s1  ;;  %v6815_v53 = vld [vmem:[#allocation2 + $0xa9] sm:$0xff] }
 0x7ac   :  { %v6212_v20 = vpop.permute.xlu1 %6211 }
 0x7ad   :  { %6380 = vst.msk [vmem:[#allocation3 + $0xb8] sm:$0xff] %vm2238_vm7, %v6212_v20  ;;  %v6210_v5 = vpop.permute.xlu0 %6209 }
 0x7ae   :  { %6379 = vst.msk [vmem:[#allocation3 + $0xb0] sm:$0xff] %vm2238_vm7, %v6210_v5  ;;  %6571 = vrot.lane.b32.xlu1 %v6432_v9, %s9150_s28  ;;  %v6442_v9 = vld [vmem:[#allocation2 + $0x128] sm:$0xff] }
 0x7af   :  { %6569 = vrot.lane.b32.xlu0 %v6431_v46, %s9150_s28  ;;  %v6441_v46 = vld [vmem:[#allocation2 + $0x120] sm:$0xff] }
 0x7b0   :  { %v6216_v47 = vpop.permute.xlu1 %6215 }
 0x7b1   :  { %6382 = vst.msk [vmem:[#allocation3 + $0xc8] sm:$0xff] %vm2238_vm7, %v6216_v47  ;;  %v6214_v34 = vpop.permute.xlu0 %6213 }
 0x7b2   :  { %6381 = vst.msk [vmem:[#allocation3 + $0xc0] sm:$0xff] %vm2238_vm7, %v6214_v34  ;;  %6955 = vrot.lane.b32.xlu1 %v6816_v58, %s9151_s29 }
 0x7b3   :  { %6953 = vrot.lane.b32.xlu0 %v6815_v53, %s9151_s29 }
 0x7b4   :  { %v6220_v26 = vpop.permute.xlu1 %6219 }
 0x7b5   :  { %6384 = vst.msk [vmem:[#allocation3 + $0xd8] sm:$0xff] %vm2238_vm7, %v6220_v26  ;;  %v6218_v37 = vpop.permute.xlu0 %6217 }
 0x7b6   :  { %6383 = vst.msk [vmem:[#allocation3 + $0xd0] sm:$0xff] %vm2238_vm7, %v6218_v37  ;;  %7339 = vrot.lane.b32.xlu1 %v12065_v6, %s9152_s1  ;;  %v6818_v6 = vld [vmem:[#allocation2 + $0xc9] sm:$0xff] }
 0x7b7   :  { %7337 = vrot.lane.b32.xlu0 %v12070_v62, %s9152_s1  ;;  %v6817_v62 = vld [vmem:[#allocation2 + $0xc1] sm:$0xff] }
 0x7b8   :  { %v6224_v49 = vpop.permute.xlu1 %6223 }
 0x7b9   :  { %6386 = vst.msk [vmem:[#allocation3 + $0xe8] sm:$0xff] %vm2238_vm7, %v6224_v49  ;;  %v6222_v30 = vpop.permute.xlu0 %6221  ;;  %v6444_v49 = vld [vmem:[#allocation2 + $0x140] sm:$0xff] }
 0x7ba   :  { %6385 = vst.msk [vmem:[#allocation3 + $0xe0] sm:$0xff] %vm2238_vm7, %v6222_v30  ;;  %6575 = vrot.lane.b32.xlu1 %v6434_v4, %s9150_s28  ;;  %v6443_v4 = vld [vmem:[#allocation2 + $0x138] sm:$0xff] }
 0x7bb   :  { %6573 = vrot.lane.b32.xlu0 %v6433_v33, %s9150_s28 }
 0x7bc   :  { %v6228_v22 = vpop.permute.xlu1 %6227 }
 0x7bd   :  { %6388 = vst.msk [vmem:[#allocation3 + $0xf8] sm:$0xff] %vm2238_vm7, %v6228_v22  ;;  %v6226_v25 = vpop.permute.xlu0 %6225  ;;  %v6828_v22 = vld [vmem:[#allocation2 + $0x141] sm:$0xff] }
 0x7be   :  { %6387 = vst.msk [vmem:[#allocation3 + $0xf0] sm:$0xff] %vm2238_vm7, %v6226_v25  ;;  %6959 = vrot.lane.b32.xlu1 %v6818_v6, %s9151_s29  ;;  %v6827_v25 = vld [vmem:[#allocation2 + $0x139] sm:$0xff] }
 0x7bf   :  { %6957 = vrot.lane.b32.xlu0 %v6817_v62, %s9151_s29 }
 0x7c0   :  { %v6232_v29 = vpop.permute.xlu1 %6231 }
 0x7c1   :  { %6390 = vst.msk [vmem:[#allocation3 + $0x108] sm:$0xff] %vm2238_vm7, %v6232_v29  ;;  %v6230_v28 = vpop.permute.xlu0 %6229 }
 0x7c2   :  { %6389 = vst.msk [vmem:[#allocation3 + $0x100] sm:$0xff] %vm2238_vm7, %v6230_v28  ;;  %7343 = vrot.lane.b32.xlu1 %v12075_v45, %s9152_s1  ;;  %v6820_v45 = vld [vmem:[#allocation2 + $0xe1] sm:$0xff] }
 0x7c3   :  { %7341 = vrot.lane.b32.xlu0 %v12080_v35, %s9152_s1  ;;  %v6819_v35 = vld [vmem:[#allocation2 + $0xd9] sm:$0xff] }
 0x7c4   :  { %v6236_v2 = vpop.permute.xlu1 %6235 }
 0x7c5   :  { %6392 = vst.msk [vmem:[#allocation3 + $0x118] sm:$0xff] %vm2238_vm7, %v6236_v2  ;;  %v6234_v3 = vpop.permute.xlu0 %6233  ;;  %v6446_v2 = vld [vmem:[#allocation2 + $0x158] sm:$0xff] }
 0x7c6   :  { %6391 = vst.msk [vmem:[#allocation3 + $0x110] sm:$0xff] %vm2238_vm7, %v6234_v3  ;;  %6579 = vrot.lane.b32.xlu1 %v6436_v24, %s9150_s28  ;;  %v6445_v24 = vld [vmem:[#allocation2 + $0x150] sm:$0xff] }
 0x7c7   :  { %6577 = vrot.lane.b32.xlu0 %v6435_v44, %s9150_s28 }
 0x7c8   :  { %v6240_v36 = vpop.permute.xlu1 %6239 }
 0x7c9   :  { %6394 = vst.msk [vmem:[#allocation3 + $0x128] sm:$0xff] %vm2238_vm7, %v6240_v36  ;;  %v6238_v41 = vpop.permute.xlu0 %6237  ;;  %v6830_v36 = vld [vmem:[#allocation2 + $0x159] sm:$0xff] }
 0x7ca   :  { %6393 = vst.msk [vmem:[#allocation3 + $0x120] sm:$0xff] %vm2238_vm7, %v6238_v41  ;;  %6963 = vrot.lane.b32.xlu1 %v6820_v45, %s9151_s29  ;;  %v6829_v41 = vld [vmem:[#allocation2 + $0x151] sm:$0xff] }
 0x7cb   :  { %6961 = vrot.lane.b32.xlu0 %v6819_v35, %s9151_s29 }
 0x7cc   :  { %v6244_v8 = vpop.permute.xlu1 %6243 }
 0x7cd   :  { %6396 = vst.msk [vmem:[#allocation3 + $0x138] sm:$0xff] %vm2238_vm7, %v6244_v8  ;;  %v6242_v60 = vpop.permute.xlu0 %6241 }
 0x7ce   :  { %6395 = vst.msk [vmem:[#allocation3 + $0x130] sm:$0xff] %vm2238_vm7, %v6242_v60  ;;  %7347 = vrot.lane.b32.xlu1 %v12085_v27, %s9152_s1  ;;  %v6822_v27 = vld [vmem:[#allocation2 + $0xf9] sm:$0xff] }
 0x7cf   :  { %7345 = vrot.lane.b32.xlu0 %v12090_v0, %s9152_s1  ;;  %v6821_v0 = vld [vmem:[#allocation2 + $0xf1] sm:$0xff] }
 0x7d0   :  { %v6248_v31 = vpop.permute.xlu1 %6247 }
 0x7d1   :  { %6398 = vst.msk [vmem:[#allocation3 + $0x148] sm:$0xff] %vm2238_vm7, %v6248_v31  ;;  %v6246_v32 = vpop.permute.xlu0 %6245  ;;  %v6448_v31 = vld [vmem:[#allocation2 + $0x170] sm:$0xff] }
 0x7d2   :  { %6397 = vst.msk [vmem:[#allocation3 + $0x140] sm:$0xff] %vm2238_vm7, %v6246_v32  ;;  %6583 = vrot.lane.b32.xlu1 %v6438_v39, %s9150_s28  ;;  %v6447_v39 = vld [vmem:[#allocation2 + $0x168] sm:$0xff] }
 0x7d3   :  { %6581 = vrot.lane.b32.xlu0 %v6437_v16, %s9150_s28 }
 0x7d4   :  { %v6252_v1 = vpop.permute.xlu1 %6251 }
 0x7d5   :  { %6400 = vst.msk [vmem:[#allocation3 + $0x158] sm:$0xff] %vm2238_vm7, %v6252_v1  ;;  %v6250_v61 = vpop.permute.xlu0 %6249  ;;  %v6832_v1 = vld [vmem:[#allocation2 + $0x171] sm:$0xff] }
 0x7d6   :  { %6399 = vst.msk [vmem:[#allocation3 + $0x150] sm:$0xff] %vm2238_vm7, %v6250_v61  ;;  %6967 = vrot.lane.b32.xlu1 %v6822_v27, %s9151_s29  ;;  %v6831_v61 = vld [vmem:[#allocation2 + $0x169] sm:$0xff] }
 0x7d7   :  { %6965 = vrot.lane.b32.xlu0 %v6821_v0, %s9151_s29 }
 0x7d8   :  { %v6256_v19 = vpop.permute.xlu1 %6255 }
 0x7d9   :  { %6402 = vst.msk [vmem:[#allocation3 + $0x168] sm:$0xff] %vm2238_vm7, %v6256_v19  ;;  %v6254_v18 = vpop.permute.xlu0 %6253 }
 0x7da   :  { %6401 = vst.msk [vmem:[#allocation3 + $0x160] sm:$0xff] %vm2238_vm7, %v6254_v18  ;;  %7351 = vrot.lane.b32.xlu1 %v12095_v63, %s9152_s1  ;;  %v6824_v63 = vld [vmem:[#allocation2 + $0x111] sm:$0xff] }
 0x7db   :  { %7349 = vrot.lane.b32.xlu0 %v12100_v7, %s9152_s1  ;;  %v6823_v7 = vld [vmem:[#allocation2 + $0x109] sm:$0xff] }
 0x7dc   :  { %v6260_v52 = vpop.permute.xlu1 %6259 }
 0x7dd   :  { %6404 = vst.msk [vmem:[#allocation3 + $0x178] sm:$0xff] %vm2238_vm7, %v6260_v52  ;;  %v6258_v57 = vpop.permute.xlu0 %6257  ;;  %v6450_v52 = vld [vmem:[#allocation2 + $0x188] sm:$0xff] }
 0x7de   :  { %6403 = vst.msk [vmem:[#allocation3 + $0x170] sm:$0xff] %vm2238_vm7, %v6258_v57  ;;  %6587 = vrot.lane.b32.xlu1 %v6440_v21, %s9150_s28  ;;  %v6449_v21 = vld [vmem:[#allocation2 + $0x180] sm:$0xff] }
 0x7df   :  { %6585 = vrot.lane.b32.xlu0 %v6439_v54, %s9150_s28 }
 0x7e0   :  { %v6264_v51 = vpop.permute.xlu1 %6263 }
 0x7e1   :  { %6406 = vst.msk [vmem:[#allocation3 + $0x188] sm:$0xff] %vm2238_vm7, %v6264_v51  ;;  %v6262_v14 = vpop.permute.xlu0 %6261  ;;  %v6834_v51 = vld [vmem:[#allocation2 + $0x189] sm:$0xff] }
 0x7e2   :  { %6405 = vst.msk [vmem:[#allocation3 + $0x180] sm:$0xff] %vm2238_vm7, %v6262_v14  ;;  %6971 = vrot.lane.b32.xlu1 %v6824_v63, %s9151_s29  ;;  %v6833_v14 = vld [vmem:[#allocation2 + $0x181] sm:$0xff] }
 0x7e3   :  { %6969 = vrot.lane.b32.xlu0 %v6823_v7, %s9151_s29 }
 0x7e4   :  { %v6552_v55 = vpop.permute.xlu1 %6551 }
 0x7e5   :  { %6742 = vst.msk [vmem:[#allocation3 + $0x8] sm:$0xff] %vm2624_vm8, %v6552_v55  ;;  %v6550_v23 = vpop.permute.xlu0 %6549  ;;  %v6452_v55 = vld [vmem:[#allocation2 + $0x1a0] sm:$0xff] }
 0x7e6   :  { %6741 = vst.msk [vmem:[#allocation3] sm:$0xff] %vm2624_vm8, %v6550_v23  ;;  %7355 = vrot.lane.b32.xlu1 %v12105_v15, %s9152_s1  ;;  %v6826_v15 = vld [vmem:[#allocation2 + $0x129] sm:$0xff] }
 0x7e7   :  { %7353 = vrot.lane.b32.xlu0 %v12110_v59, %s9152_s1  ;;  %v6825_v59 = vld [vmem:[#allocation2 + $0x121] sm:$0xff] }
 0x7e8   :  { %v6936_v20 = vpop.permute.xlu1 %6935 }
 0x7e9   :  { %7126 = vst.msk [vmem:[#allocation3 + $0x8] sm:$0xff] %vm3009_vm9, %v6936_v20  ;;  %v6934_v5 = vpop.permute.xlu0 %6933  ;;  %v6451_v20 = vld [vmem:[#allocation2 + $0x198] sm:$0xff] }
 0x7ea   :  { %7125 = vst.msk [vmem:[#allocation3] sm:$0xff] %vm3009_vm9, %v6934_v5  ;;  %6591 = vrot.lane.b32.xlu1 %v6442_v9, %s9150_s28 }
 0x7eb   :  { %6589 = vrot.lane.b32.xlu0 %v6441_v46, %s9150_s28 }
 0x7ec   :  { %v7320_v47 = vpop.permute.xlu1 %7319 }
 0x7ed   :  { %7510 = vst.msk [vmem:[#allocation3 + $0x8] sm:$0xff] %vm3394_vm11, %v7320_v47  ;;  %v7318_v34 = vpop.permute.xlu0 %7317  ;;  %v6835_v47 = vld [vmem:[#allocation2 + $0x199] sm:$0xff] }
 0x7ee   :  { %7509 = vst.msk [vmem:[#allocation3] sm:$0xff] %vm3394_vm11, %v7318_v34  ;;  %6975 = vrot.lane.b32.xlu1 %v6826_v15, %s9151_s29  ;;  %v7220_v15 = vld [vmem:[#allocation2 + $0x1a2] sm:$0xff] }
 0x7ef   :  { %6973 = vrot.lane.b32.xlu0 %v6825_v59, %s9151_s29 }
 0x7f0   :  { %v6556_v58 = vpop.permute.xlu1 %6555 }
 0x7f1   :  { %6744 = vst.msk [vmem:[#allocation3 + $0x18] sm:$0xff] %vm2624_vm8, %v6556_v58  ;;  %v6554_v53 = vpop.permute.xlu0 %6553  ;;  %v7219_v58 = vld [vmem:[#allocation2 + $0x19a] sm:$0xff] }
 0x7f2   :  { %6743 = vst.msk [vmem:[#allocation3 + $0x10] sm:$0xff] %vm2624_vm8, %v6554_v53  ;;  %7359 = vrot.lane.b32.xlu1 %v12115_v40, %s9152_s1 }
 0x7f3   :  { %7357 = vrot.lane.b32.xlu0 %v12120_v42, %s9152_s1 }
 0x7f4   :  { %v6940_v26 = vpop.permute.xlu1 %6939  ;;  %v7574_v33 = vld [vmem:[#allocation3 + $0x8] sm:$0xff] }
 0x7f5   :  { %7128 = vst.msk [vmem:[#allocation3 + $0x18] sm:$0xff] %vm3009_vm9, %v6940_v26  ;;  %v6938_v37 = vpop.permute.xlu0 %6937  ;;  %v7573_v30 = vld [vmem:[#allocation3] sm:$0xff] }
 0x7f6   :  { %7127 = vst.msk [vmem:[#allocation3 + $0x10] sm:$0xff] %vm3009_vm9, %v6938_v37  ;;  %6595 = vrot.lane.b32.xlu1 %v6444_v49, %s9150_s28  ;;  %9005 = vmatprep.mubr.msk.f32.mxu1 %vm3533_vm12, %v7573_v30  ;;  %v6454_v49 = vld [vmem:[#allocation2 + $0x1e8] sm:$0xff] }
 0x7f7   :  { %6593 = vrot.lane.b32.xlu0 %v6443_v4, %s9150_s28  ;;  %9006 = vmatmul.mubr.msk.f32.vlgmr.msra.gmra.mrb[0].mxu1 %vm3533_vm12, %v7574_v33  ;;  %v6453_v4 = vld [vmem:[#allocation2 + $0x1e0] sm:$0xff] }
 0x7f8   :  { %v7324_v40 = vpop.permute.xlu1 %7323 }
 0x7f9   :  { %7512 = vst.msk [vmem:[#allocation3 + $0x18] sm:$0xff] %vm3394_vm11, %v7324_v40  ;;  %v7322_v42 = vpop.permute.xlu0 %7321 }
 0x7fa   :  { %7511 = vst.msk [vmem:[#allocation3 + $0x10] sm:$0xff] %vm3394_vm11, %v7322_v42  ;;  %6979 = vrot.lane.b32.xlu1 %v6828_v22, %s9151_s29  ;;  %v6838_v22 = vld [vmem:[#allocation2 + $0x1e9] sm:$0xff] }
 0x7fb   :  { %6977 = vrot.lane.b32.xlu0 %v6827_v25, %s9151_s29  ;;  %v6837_v25 = vld [vmem:[#allocation2 + $0x1e1] sm:$0xff] }
 0x7fc   :  { %v6560_v6 = vpop.permute.xlu1 %6559 }
 0x7fd   :  { %6746 = vst.msk [vmem:[#allocation3 + $0x28] sm:$0xff] %vm2624_vm8, %v6560_v6  ;;  %v6558_v62 = vpop.permute.xlu0 %6557 }
 0x7fe   :  { %6745 = vst.msk [vmem:[#allocation3 + $0x20] sm:$0xff] %vm2624_vm8, %v6558_v62  ;;  %7363 = vrot.lane.b32.xlu1 %v12125_v11, %s9152_s1 }
 0x7ff   :  { %7361 = vrot.lane.b32.xlu0 %v12130_v12, %s9152_s1 }
 0x800   :  { %v6944_v29 = vpop.permute.xlu1 %6943  ;;  %v7576_v44 = vld [vmem:[#allocation3 + $0x18] sm:$0xff] }
 0x801   :  { %7130 = vst.msk [vmem:[#allocation3 + $0x28] sm:$0xff] %vm3009_vm9, %v6944_v29  ;;  %v6942_v28 = vpop.permute.xlu0 %6941  ;;  %v7575_v3 = vld [vmem:[#allocation3 + $0x10] sm:$0xff] }
 0x802   :  { %7129 = vst.msk [vmem:[#allocation3 + $0x20] sm:$0xff] %vm3009_vm9, %v6942_v28  ;;  %6599 = vrot.lane.b32.xlu1 %v6446_v2, %s9150_s28  ;;  %9008 = vmatprep.mubr.msk.f32.mxu1 %vm3533_vm12, %v7575_v3  ;;  %v6456_v2 = vld [vmem:[#allocation2 + $0x200] sm:$0xff] }
 0x803   :  { %6597 = vrot.lane.b32.xlu0 %v6445_v24, %s9150_s28  ;;  %9009 = vmatmul.mubr.msk.f32.gmra.mrb[2].mxu1 %vm3533_vm12, %v7576_v44  ;;  %v6455_v24 = vld [vmem:[#allocation2 + $0x1f8] sm:$0xff] }
 0x804   :  { %v7328_v11 = vpop.permute.xlu1 %7327 }
 0x805   :  { %7514 = vst.msk [vmem:[#allocation3 + $0x28] sm:$0xff] %vm3394_vm11, %v7328_v11  ;;  %v7326_v12 = vpop.permute.xlu0 %7325  ;;  %v6840_v11 = vld [vmem:[#allocation2 + $0x201] sm:$0xff] }
 0x806   :  { %7513 = vst.msk [vmem:[#allocation3 + $0x20] sm:$0xff] %vm3394_vm11, %v7326_v12  ;;  %6983 = vrot.lane.b32.xlu1 %v6830_v36, %s9151_s29  ;;  %v6839_v12 = vld [vmem:[#allocation2 + $0x1f9] sm:$0xff] }
 0x807   :  { %6981 = vrot.lane.b32.xlu0 %v6829_v41, %s9151_s29 }
 0x808   :  { %v6564_v45 = vpop.permute.xlu1 %6563 }
 0x809   :  { %6748 = vst.msk [vmem:[#allocation3 + $0x38] sm:$0xff] %vm2624_vm8, %v6564_v45  ;;  %v6562_v35 = vpop.permute.xlu0 %6561  ;;  %v7224_v45 = vld [vmem:[#allocation2 + $0x202] sm:$0xff] }
 0x80a   :  { %6747 = vst.msk [vmem:[#allocation3 + $0x30] sm:$0xff] %vm2624_vm8, %v6562_v35  ;;  %7367 = vrot.lane.b32.xlu1 %v12135_v48, %s9152_s1  ;;  %v7223_v35 = vld [vmem:[#allocation2 + $0x1fa] sm:$0xff] }
 0x80b   :  { %7365 = vrot.lane.b32.xlu0 %v12140_v50, %s9152_s1 }
 0x80c   :  { %v6948_v8 = vpop.permute.xlu1 %6947  ;;  %v7578_v16 = vld [vmem:[#allocation3 + $0x28] sm:$0xff] }
 0x80d   :  { %7132 = vst.msk [vmem:[#allocation3 + $0x38] sm:$0xff] %vm3009_vm9, %v6948_v8  ;;  %v6946_v60 = vpop.permute.xlu0 %6945  ;;  %v7577_v32 = vld [vmem:[#allocation3 + $0x20] sm:$0xff] }
 0x80e   :  { %7131 = vst.msk [vmem:[#allocation3 + $0x30] sm:$0xff] %vm3009_vm9, %v6946_v60  ;;  %6603 = vrot.lane.b32.xlu1 %v6448_v31, %s9150_s28  ;;  %9011 = vmatprep.mubr.msk.f32.mxu1 %vm3533_vm12, %v7577_v32  ;;  %v6458_v31 = vld [vmem:[#allocation2 + $0x218] sm:$0xff] }
 0x80f   :  { %6601 = vrot.lane.b32.xlu0 %v6447_v39, %s9150_s28  ;;  %9012 = vmatmul.mubr.msk.f32.gmra.mrb[4].mxu1 %vm3533_vm12, %v7578_v16  ;;  %v6457_v39 = vld [vmem:[#allocation2 + $0x210] sm:$0xff] }
 0x810   :  { %v7332_v48 = vpop.permute.xlu1 %7331 }
 0x811   :  { %7516 = vst.msk [vmem:[#allocation3 + $0x38] sm:$0xff] %vm3394_vm11, %v7332_v48  ;;  %v7330_v50 = vpop.permute.xlu0 %7329 }
 0x812   :  { %7515 = vst.msk [vmem:[#allocation3 + $0x30] sm:$0xff] %vm3394_vm11, %v7330_v50  ;;  %6987 = vrot.lane.b32.xlu1 %v6832_v1, %s9151_s29  ;;  %v6842_v1 = vld [vmem:[#allocation2 + $0x219] sm:$0xff] }
 0x813   :  { %6985 = vrot.lane.b32.xlu0 %v6831_v61, %s9151_s29  ;;  %v6841_v61 = vld [vmem:[#allocation2 + $0x211] sm:$0xff] }
 0x814   :  { %v6568_v27 = vpop.permute.xlu1 %6567 }
 0x815   :  { %6750 = vst.msk [vmem:[#allocation3 + $0x48] sm:$0xff] %vm2624_vm8, %v6568_v27  ;;  %v6566_v0 = vpop.permute.xlu0 %6565 }
 0x816   :  { %6749 = vst.msk [vmem:[#allocation3 + $0x40] sm:$0xff] %vm2624_vm8, %v6566_v0  ;;  %7371 = vrot.lane.b32.xlu1 %v12145_v56, %s9152_s1 }
 0x817   :  { %7369 = vrot.lane.b32.xlu0 %v12150_v10, %s9152_s1 }
 0x818   :  { %v6952_v19 = vpop.permute.xlu1 %6951  ;;  %v7580_v54 = vld [vmem:[#allocation3 + $0x38] sm:$0xff] }
 0x819   :  { %7134 = vst.msk [vmem:[#allocation3 + $0x48] sm:$0xff] %vm3009_vm9, %v6952_v19  ;;  %v6950_v18 = vpop.permute.xlu0 %6949  ;;  %v7579_v57 = vld [vmem:[#allocation3 + $0x30] sm:$0xff]  ;;  %v7226_v19 = vld [vmem:[#allocation2 + $0x21a] sm:$0xff] }
 0x81a   :  { %7133 = vst.msk [vmem:[#allocation3 + $0x40] sm:$0xff] %vm3009_vm9, %v6950_v18  ;;  %6607 = vrot.lane.b32.xlu1 %v6450_v52, %s9150_s28  ;;  %9014 = vmatprep.mubr.msk.f32.mxu1 %vm3533_vm12, %v7579_v57  ;;  %v7225_v18 = vld [vmem:[#allocation2 + $0x212] sm:$0xff] }
 0x81b   :  { %6605 = vrot.lane.b32.xlu0 %v6449_v21, %s9150_s28  ;;  %9015 = vmatmul.mubr.msk.f32.gmra.mrb[6].mxu1 %vm3533_vm12, %v7580_v54  ;;  %v6460_v21 = vld [vmem:[#allocation2 + $0x230] sm:$0xff] }
 0x81c   :  { %v7336_v56 = vpop.permute.xlu1 %7335 }
 0x81d   :  { %7518 = vst.msk [vmem:[#allocation3 + $0x48] sm:$0xff] %vm3394_vm11, %v7336_v56  ;;  %v7334_v10 = vpop.permute.xlu0 %7333  ;;  %v6459_v56 = vld [vmem:[#allocation2 + $0x228] sm:$0xff] }
 0x81e   :  { %7517 = vst.msk [vmem:[#allocation3 + $0x40] sm:$0xff] %vm3394_vm11, %v7334_v10  ;;  %6991 = vrot.lane.b32.xlu1 %v6834_v51, %s9151_s29 }
 0x81f   :  { %6989 = vrot.lane.b32.xlu0 %v6833_v14, %s9151_s29 }
 0x820   :  { %v6572_v63 = vpop.permute.xlu1 %6571 }
 0x821   :  { %6752 = vst.msk [vmem:[#allocation3 + $0x58] sm:$0xff] %vm2624_vm8, %v6572_v63  ;;  %v6570_v7 = vpop.permute.xlu0 %6569  ;;  %v6844_v63 = vld [vmem:[#allocation2 + $0x231] sm:$0xff] }
 0x822   :  { %6751 = vst.msk [vmem:[#allocation3 + $0x50] sm:$0xff] %vm2624_vm8, %v6570_v7  ;;  %7375 = vrot.lane.b32.xlu1 %v12155_v38, %s9152_s1  ;;  %v6836_v38 = vld [vmem:[#allocation2 + $0x1a1] sm:$0xff]  ;;  %v6843_v7 = vld [vmem:[#allocation2 + $0x229] sm:$0xff] }
 0x823   :  { %7373 = vrot.lane.b32.xlu0 %v12160_v43, %s9152_s1 }
 0x824   :  { %v6956_v23 = vpop.permute.xlu1 %6955  ;;  %v7582_v46 = vld [vmem:[#allocation3 + $0x48] sm:$0xff] }
 0x825   :  { %7136 = vst.msk [vmem:[#allocation3 + $0x58] sm:$0xff] %vm3009_vm9, %v6956_v23  ;;  %v6954_v5 = vpop.permute.xlu0 %6953  ;;  %v7581_v9 = vld [vmem:[#allocation3 + $0x40] sm:$0xff] }
 0x826   :  { %7135 = vst.msk [vmem:[#allocation3 + $0x50] sm:$0xff] %vm3009_vm9, %v6954_v5  ;;  %6611 = vrot.lane.b32.xlu1 %v6452_v55, %s9150_s28  ;;  %9017 = vmatprep.mubr.msk.f32.mxu1 %vm3533_vm12, %v7581_v9  ;;  %v7227_v5 = vld [vmem:[#allocation2 + $0x22a] sm:$0xff] }
 0x827   :  { %6609 = vrot.lane.b32.xlu0 %v6451_v20, %s9150_s28  ;;  %9018 = vmatmul.mubr.msk.f32.gmra.mrb[8].mxu1 %vm3533_vm12, %v7582_v46  ;;  %v7228_v20 = vld [vmem:[#allocation2 + $0x232] sm:$0xff] }
 0x828   :  { %v7340_v43 = vpop.permute.xlu1 %7339 }
 0x829   :  { %7520 = vst.msk [vmem:[#allocation3 + $0x58] sm:$0xff] %vm3394_vm11, %v7340_v43  ;;  %v7338_v34 = vpop.permute.xlu0 %7337 }
 0x82a   :  { %7519 = vst.msk [vmem:[#allocation3 + $0x50] sm:$0xff] %vm3394_vm11, %v7338_v34  ;;  %6995 = vrot.lane.b32.xlu1 %v6836_v38, %s9151_s29  ;;  %v6462_v38 = vld [vmem:[#allocation2 + $0x248] sm:$0xff] }
 0x82b   :  { %6993 = vrot.lane.b32.xlu0 %v6835_v47, %s9151_s29  ;;  %v6461_v47 = vld [vmem:[#allocation2 + $0x240] sm:$0xff] }
 0x82c   :  { %v6576_v59 = vpop.permute.xlu1 %6575 }
 0x82d   :  { %6754 = vst.msk [vmem:[#allocation3 + $0x68] sm:$0xff] %vm2624_vm8, %v6576_v59  ;;  %v6574_v53 = vpop.permute.xlu0 %6573 }
 0x82e   :  { %6753 = vst.msk [vmem:[#allocation3 + $0x60] sm:$0xff] %vm2624_vm8, %v6574_v53  ;;  %7379 = vrot.lane.b32.xlu1 %v7220_v15, %s9152_s1  ;;  %v6845_v53 = vld [vmem:[#allocation2 + $0x241] sm:$0xff] }
 0x82f   :  { %7377 = vrot.lane.b32.xlu0 %v7219_v58, %s9152_s1  ;;  %v6846_v58 = vld [vmem:[#allocation2 + $0x249] sm:$0xff] }
 0x830   :  { %v6960_v26 = vpop.permute.xlu1 %6959  ;;  %v7584_v33 = vld [vmem:[#allocation3 + $0x58] sm:$0xff] }
 0x831   :  { %7138 = vst.msk [vmem:[#allocation3 + $0x68] sm:$0xff] %vm3009_vm9, %v6960_v26  ;;  %v6958_v37 = vpop.permute.xlu0 %6957  ;;  %v7583_v30 = vld [vmem:[#allocation3 + $0x50] sm:$0xff] }
 0x832   :  { %7137 = vst.msk [vmem:[#allocation3 + $0x60] sm:$0xff] %vm3009_vm9, %v6958_v37  ;;  %6615 = vrot.lane.b32.xlu1 %v6454_v49, %s9150_s28  ;;  %9020 = vmatprep.mubr.msk.f32.mxu1 %vm3533_vm12, %v7583_v30  ;;  %v7230_v49 = vld [vmem:[#allocation2 + $0x24a] sm:$0xff]  ;;  %v7229_v30 = vld [vmem:[#allocation2 + $0x242] sm:$0xff] }
 0x833   :  { %6613 = vrot.lane.b32.xlu0 %v6453_v4, %s9150_s28  ;;  %9021 = vmatmul.mubr.msk.f32.gmra.mrb[10].mxu1 %vm3533_vm12, %v7584_v33 }
 0x834   :  { %v7344_v40 = vpop.permute.xlu1 %7343 }
 0x835   :  { %7522 = vst.msk [vmem:[#allocation3 + $0x68] sm:$0xff] %vm3394_vm11, %v7344_v40  ;;  %v7342_v42 = vpop.permute.xlu0 %7341  ;;  %v6464_v40 = vld [vmem:[#allocation2 + $0x260] sm:$0xff] }
 0x836   :  { %7521 = vst.msk [vmem:[#allocation3 + $0x60] sm:$0xff] %vm3394_vm11, %v7342_v42  ;;  %6999 = vrot.lane.b32.xlu1 %v6838_v22, %s9151_s29  ;;  %v6463_v22 = vld [vmem:[#allocation2 + $0x258] sm:$0xff] }
 0x837   :  { %6997 = vrot.lane.b32.xlu0 %v6837_v25, %s9151_s29 }
 0x838   :  { %v6580_v6 = vpop.permute.xlu1 %6579 }
 0x839   :  { %6756 = vst.msk [vmem:[#allocation3 + $0x78] sm:$0xff] %vm2624_vm8, %v6580_v6  ;;  %v6578_v62 = vpop.permute.xlu0 %6577 }
 0x83a   :  { %6755 = vst.msk [vmem:[#allocation3 + $0x70] sm:$0xff] %vm2624_vm8, %v6578_v62  ;;  %7383 = vrot.lane.b32.xlu1 %v12169_v13, %s9152_s1 }
 0x83b   :  { %7381 = vrot.lane.b32.xlu0 %v12174_v17, %s9152_s1 }
 0x83c   :  { %v6964_v29 = vpop.permute.xlu1 %6963  ;;  %v7586_v44 = vld [vmem:[#allocation3 + $0x68] sm:$0xff] }
 0x83d   :  { %7140 = vst.msk [vmem:[#allocation3 + $0x78] sm:$0xff] %vm3009_vm9, %v6964_v29  ;;  %v6962_v28 = vpop.permute.xlu0 %6961  ;;  %v7585_v3 = vld [vmem:[#allocation3 + $0x60] sm:$0xff] }
 0x83e   :  { %7139 = vst.msk [vmem:[#allocation3 + $0x70] sm:$0xff] %vm3009_vm9, %v6962_v28  ;;  %6619 = vrot.lane.b32.xlu1 %v6456_v2, %s9150_s28  ;;  %9023 = vmatprep.mubr.msk.f32.mxu1 %vm3533_vm12, %v7585_v3  ;;  %v6848_v29 = vld [vmem:[#allocation2 + $0x261] sm:$0xff]  ;;  %v6847_v28 = vld [vmem:[#allocation2 + $0x259] sm:$0xff] }
 0x83f   :  { %6617 = vrot.lane.b32.xlu0 %v6455_v24, %s9150_s28  ;;  %9024 = vmatmul.mubr.msk.f32.gmra.mrb[12].mxu1 %vm3533_vm12, %v7586_v44  ;;  %v7232_v24 = vld [vmem:[#allocation2 + $0x262] sm:$0xff]  ;;  %v7231_v44 = vld [vmem:[#allocation2 + $0x25a] sm:$0xff] }
 0x840   :  { %v7348_v13 = vpop.permute.xlu1 %7347 }
 0x841   :  { %7524 = vst.msk [vmem:[#allocation3 + $0x78] sm:$0xff] %vm3394_vm11, %v7348_v13  ;;  %v7346_v17 = vpop.permute.xlu0 %7345 }
 0x842   :  { %7523 = vst.msk [vmem:[#allocation3 + $0x70] sm:$0xff] %vm3394_vm11, %v7346_v17  ;;  %7003 = vrot.lane.b32.xlu1 %v6840_v11, %s9151_s29  ;;  %v6466_v11 = vld [vmem:[#allocation2 + $0x278] sm:$0xff] }
 0x843   :  { %7001 = vrot.lane.b32.xlu0 %v6839_v12, %s9151_s29 }
 0x844   :  { %v6584_v36 = vpop.permute.xlu1 %6583 }
 0x845   :  { %6758 = vst.msk [vmem:[#allocation3 + $0x88] sm:$0xff] %vm2624_vm8, %v6584_v36  ;;  %v6582_v41 = vpop.permute.xlu0 %6581  ;;  %v6465_v36 = vld [vmem:[#allocation2 + $0x270] sm:$0xff] }
 0x846   :  { %6757 = vst.msk [vmem:[#allocation3 + $0x80] sm:$0xff] %vm2624_vm8, %v6582_v41  ;;  %7387 = vrot.lane.b32.xlu1 %v7224_v45, %s9152_s1 }
 0x847   :  { %7385 = vrot.lane.b32.xlu0 %v7223_v35, %s9152_s1 }
 0x848   :  { %v6968_v8 = vpop.permute.xlu1 %6967  ;;  %v7588_v16 = vld [vmem:[#allocation3 + $0x78] sm:$0xff] }
 0x849   :  { %7142 = vst.msk [vmem:[#allocation3 + $0x88] sm:$0xff] %vm3009_vm9, %v6968_v8  ;;  %v6966_v60 = vpop.permute.xlu0 %6965  ;;  %v7587_v32 = vld [vmem:[#allocation3 + $0x70] sm:$0xff]  ;;  %v6850_v8 = vld [vmem:[#allocation2 + $0x279] sm:$0xff] }
 0x84a   :  { %7141 = vst.msk [vmem:[#allocation3 + $0x80] sm:$0xff] %vm3009_vm9, %v6966_v60  ;;  %6623 = vrot.lane.b32.xlu1 %v6458_v31, %s9150_s28  ;;  %9026 = vmatprep.mubr.msk.f32.mxu1 %vm3533_vm12, %v7587_v32  ;;  %v6849_v60 = vld [vmem:[#allocation2 + $0x271] sm:$0xff] }
 0x84b   :  { %6621 = vrot.lane.b32.xlu0 %v6457_v39, %s9150_s28  ;;  %9027 = vmatmul.mubr.msk.f32.gmra.mrb[14].mxu1 %vm3533_vm12, %v7588_v16  ;;  %v7234_v39 = vld [vmem:[#allocation2 + $0x27a] sm:$0xff]  ;;  %v7233_v16 = vld [vmem:[#allocation2 + $0x272] sm:$0xff] }
 0x84c   :  { %v7352_v48 = vpop.permute.xlu1 %7351 }
 0x84d   :  { %7526 = vst.msk [vmem:[#allocation3 + $0x88] sm:$0xff] %vm3394_vm11, %v7352_v48  ;;  %v7350_v50 = vpop.permute.xlu0 %7349 }
 0x84e   :  { %7525 = vst.msk [vmem:[#allocation3 + $0x80] sm:$0xff] %vm3394_vm11, %v7350_v50  ;;  %7007 = vrot.lane.b32.xlu1 %v6842_v1, %s9151_s29  ;;  %v6468_v1 = vld [vmem:[#allocation2 + $0x290] sm:$0xff] }
 0x84f   :  { %7005 = vrot.lane.b32.xlu0 %v6841_v61, %s9151_s29 }
 0x850   :  { %v6588_v27 = vpop.permute.xlu1 %6587 }
 0x851   :  { %6760 = vst.msk [vmem:[#allocation3 + $0x98] sm:$0xff] %vm2624_vm8, %v6588_v27  ;;  %v6586_v0 = vpop.permute.xlu0 %6585  ;;  %v6467_v27 = vld [vmem:[#allocation2 + $0x288] sm:$0xff] }
 0x852   :  { %6759 = vst.msk [vmem:[#allocation3 + $0x90] sm:$0xff] %vm2624_vm8, %v6586_v0  ;;  %7391 = vrot.lane.b32.xlu1 %v7226_v19, %s9152_s1 }
 0x853   :  { %7389 = vrot.lane.b32.xlu0 %v7225_v18, %s9152_s1 }
 0x854   :  { %v6972_v52 = vpop.permute.xlu1 %6971  ;;  %v7590_v10 = vld [vmem:[#allocation3 + $0x88] sm:$0xff] }
 0x855   :  { %7144 = vst.msk [vmem:[#allocation3 + $0x98] sm:$0xff] %vm3009_vm9, %v6972_v52  ;;  %v6970_v57 = vpop.permute.xlu0 %6969  ;;  %v7589_v54 = vld [vmem:[#allocation3 + $0x80] sm:$0xff]  ;;  %v6852_v52 = vld [vmem:[#allocation2 + $0x291] sm:$0xff] }
 0x856   :  { %7143 = vst.msk [vmem:[#allocation3 + $0x90] sm:$0xff] %vm3009_vm9, %v6970_v57  ;;  %6627 = vrot.lane.b32.xlu1 %v6460_v21, %s9150_s28  ;;  %9029 = vmatprep.mubr.msk.f32.mxu1 %vm3533_vm12, %v7589_v54  ;;  %v6851_v57 = vld [vmem:[#allocation2 + $0x289] sm:$0xff] }
 0x857   :  { %6625 = vrot.lane.b32.xlu0 %v6459_v56, %s9150_s28  ;;  %9030 = vmatmul.mubr.msk.f32.gmra.mrb[16].mxu1 %vm3533_vm12, %v7590_v10  ;;  %v7236_v56 = vld [vmem:[#allocation2 + $0x292] sm:$0xff]  ;;  %v7235_v10 = vld [vmem:[#allocation2 + $0x28a] sm:$0xff] }
 0x858   :  { %v7356_v51 = vpop.permute.xlu1 %7355 }
 0x859   :  { %7528 = vst.msk [vmem:[#allocation3 + $0x98] sm:$0xff] %vm3394_vm11, %v7356_v51  ;;  %v7354_v14 = vpop.permute.xlu0 %7353 }
 0x85a   :  { %7527 = vst.msk [vmem:[#allocation3 + $0x90] sm:$0xff] %vm3394_vm11, %v7354_v14  ;;  %7011 = vrot.lane.b32.xlu1 %v6844_v63, %s9151_s29  ;;  %v6470_v63 = vld [vmem:[#allocation2 + $0x2a8] sm:$0xff] }
 0x85b   :  { %7009 = vrot.lane.b32.xlu0 %v6843_v7, %s9151_s29 }
 0x85c   :  { %v6592_v55 = vpop.permute.xlu1 %6591 }
 0x85d   :  { %6762 = vst.msk [vmem:[#allocation3 + $0xa8] sm:$0xff] %vm2624_vm8, %v6592_v55  ;;  %v6590_v23 = vpop.permute.xlu0 %6589  ;;  %v6469_v55 = vld [vmem:[#allocation2 + $0x2a0] sm:$0xff] }
 0x85e   :  { %6761 = vst.msk [vmem:[#allocation3 + $0xa0] sm:$0xff] %vm2624_vm8, %v6590_v23  ;;  %7395 = vrot.lane.b32.xlu1 %v7228_v20, %s9152_s1 }
 0x85f   :  { %7393 = vrot.lane.b32.xlu0 %v7227_v5, %s9152_s1 }
 0x860   :  { %v6976_v9 = vpop.permute.xlu1 %6975  ;;  %v7592_v34 = vld [vmem:[#allocation3 + $0x98] sm:$0xff] }
 0x861   :  { %7146 = vst.msk [vmem:[#allocation3 + $0xa8] sm:$0xff] %vm3009_vm9, %v6976_v9  ;;  %v6974_v46 = vpop.permute.xlu0 %6973  ;;  %v7591_v43 = vld [vmem:[#allocation3 + $0x90] sm:$0xff] }
 0x862   :  { %7145 = vst.msk [vmem:[#allocation3 + $0xa0] sm:$0xff] %vm3009_vm9, %v6974_v46  ;;  %6631 = vrot.lane.b32.xlu1 %v6462_v38, %s9150_s28  ;;  %9032 = vmatprep.mubr.msk.f32.mxu1 %vm3533_vm12, %v7591_v43  ;;  %v6854_v9 = vld [vmem:[#allocation2 + $0x2a9] sm:$0xff]  ;;  %v6853_v46 = vld [vmem:[#allocation2 + $0x2a1] sm:$0xff] }
 0x863   :  { %6629 = vrot.lane.b32.xlu0 %v6461_v47, %s9150_s28  ;;  %9033 = vmatmul.mubr.msk.f32.gmra.mrb[18].mxu1 %vm3533_vm12, %v7592_v34  ;;  %v6087_v47 = vld [vmem:[#allocation2 + $0x2a2] sm:$0xff] }
 0x864   :  { %v7360_v15 = vpop.permute.xlu1 %7359 }
 0x865   :  { %7530 = vst.msk [vmem:[#allocation3 + $0xa8] sm:$0xff] %vm3394_vm11, %v7360_v15  ;;  %v7358_v59 = vpop.permute.xlu0 %7357 }
 0x866   :  { %7529 = vst.msk [vmem:[#allocation3 + $0xa0] sm:$0xff] %vm3394_vm11, %v7358_v59  ;;  %7015 = vrot.lane.b32.xlu1 %v6846_v58, %s9151_s29  ;;  %v6088_v59 = vld [vmem:[#allocation2 + $0x2aa] sm:$0xff] }
 0x867   :  { %7013 = vrot.lane.b32.xlu0 %v6845_v53, %s9151_s29 }
 0x868   :  { %v6596_v26 = vpop.permute.xlu1 %6595 }
 0x869   :  { %6764 = vst.msk [vmem:[#allocation3 + $0xb8] sm:$0xff] %vm2624_vm8, %v6596_v26  ;;  %v6594_v37 = vpop.permute.xlu0 %6593 }
 0x86a   :  { %6763 = vst.msk [vmem:[#allocation3 + $0xb0] sm:$0xff] %vm2624_vm8, %v6594_v37  ;;  %7399 = vrot.lane.b32.xlu1 %v7230_v49, %s9152_s1  ;;  %v6472_v49 = vld [vmem:[#allocation2 + $0x2c0] sm:$0xff] }
 0x86b   :  { %7397 = vrot.lane.b32.xlu0 %v7229_v30, %s9152_s1  ;;  %v6471_v30 = vld [vmem:[#allocation2 + $0x2b8] sm:$0xff] }
 0x86c   :  { %v6980_v4 = vpop.permute.xlu1 %6979  ;;  %v7594_v25 = vld [vmem:[#allocation3 + $0xa8] sm:$0xff] }
 0x86d   :  { %7148 = vst.msk [vmem:[#allocation3 + $0xb8] sm:$0xff] %vm3009_vm9, %v6980_v4  ;;  %v6978_v33 = vpop.permute.xlu0 %6977  ;;  %v7593_v42 = vld [vmem:[#allocation3 + $0xa0] sm:$0xff] }
 0x86e   :  { %7147 = vst.msk [vmem:[#allocation3 + $0xb0] sm:$0xff] %vm3009_vm9, %v6978_v33  ;;  %6635 = vrot.lane.b32.xlu1 %v6464_v40, %s9150_s28  ;;  %9035 = vmatprep.mubr.msk.f32.mxu1 %vm3533_vm12, %v7593_v42  ;;  %v6856_v40 = vld [vmem:[#allocation2 + $0x2c1] sm:$0xff]  ;;  %v6855_v42 = vld [vmem:[#allocation2 + $0x2b9] sm:$0xff] }
 0x86f   :  { %6633 = vrot.lane.b32.xlu0 %v6463_v22, %s9150_s28  ;;  %9036 = vmatmul.mubr.msk.f32.gmra.mrb[20].mxu1 %vm3533_vm12, %v7594_v25 }
 0x870   :  { %v7364_v6 = vpop.permute.xlu1 %7363 }
 0x871   :  { %7532 = vst.msk [vmem:[#allocation3 + $0xb8] sm:$0xff] %vm3394_vm11, %v7364_v6  ;;  %v7362_v62 = vpop.permute.xlu0 %7361 }
 0x872   :  { %7531 = vst.msk [vmem:[#allocation3 + $0xb0] sm:$0xff] %vm3394_vm11, %v7362_v62  ;;  %7019 = vrot.lane.b32.xlu1 %v6848_v29, %s9151_s29  ;;  %v6089_v62 = vld [vmem:[#allocation2 + $0x2ba] sm:$0xff] }
 0x873   :  { %7017 = vrot.lane.b32.xlu0 %v6847_v28, %s9151_s29 }
 0x874   :  { %v6600_v2 = vpop.permute.xlu1 %6599 }
 0x875   :  { %6766 = vst.msk [vmem:[#allocation3 + $0xc8] sm:$0xff] %vm2624_vm8, %v6600_v2  ;;  %v6598_v3 = vpop.permute.xlu0 %6597 }
 0x876   :  { %6765 = vst.msk [vmem:[#allocation3 + $0xc0] sm:$0xff] %vm2624_vm8, %v6598_v3  ;;  %7403 = vrot.lane.b32.xlu1 %v7232_v24, %s9152_s1  ;;  %v6090_v3 = vld [vmem:[#allocation2 + $0x2c2] sm:$0xff] }
 0x877   :  { %7401 = vrot.lane.b32.xlu0 %v7231_v44, %s9152_s1 }
 0x878   :  { %v6984_v13 = vpop.permute.xlu1 %6983  ;;  %v7596_v41 = vld [vmem:[#allocation3 + $0xb8] sm:$0xff] }
 0x879   :  { %7150 = vst.msk [vmem:[#allocation3 + $0xc8] sm:$0xff] %vm3009_vm9, %v6984_v13  ;;  %v6982_v17 = vpop.permute.xlu0 %6981  ;;  %v7595_v12 = vld [vmem:[#allocation3 + $0xb0] sm:$0xff]  ;;  %v6474_v13 = vld [vmem:[#allocation2 + $0x2d8] sm:$0xff] }
 0x87a   :  { %7149 = vst.msk [vmem:[#allocation3 + $0xc0] sm:$0xff] %vm3009_vm9, %v6982_v17  ;;  %6639 = vrot.lane.b32.xlu1 %v6466_v11, %s9150_s28  ;;  %9038 = vmatprep.mubr.msk.f32.mxu1 %vm3533_vm12, %v7595_v12  ;;  %v6473_v17 = vld [vmem:[#allocation2 + $0x2d0] sm:$0xff] }
 0x87b   :  { %6637 = vrot.lane.b32.xlu0 %v6465_v36, %s9150_s28  ;;  %9039 = vmatmul.mubr.msk.f32.gmra.mrb[22].mxu1 %vm3533_vm12, %v7596_v41  ;;  %v6858_v36 = vld [vmem:[#allocation2 + $0x2d9] sm:$0xff] }
 0x87c   :  { %v7368_v45 = vpop.permute.xlu1 %7367 }
 0x87d   :  { %7534 = vst.msk [vmem:[#allocation3 + $0xc8] sm:$0xff] %vm3394_vm11, %v7368_v45  ;;  %v7366_v35 = vpop.permute.xlu0 %7365  ;;  %v6857_v45 = vld [vmem:[#allocation2 + $0x2d1] sm:$0xff] }
 0x87e   :  { %7533 = vst.msk [vmem:[#allocation3 + $0xc0] sm:$0xff] %vm3394_vm11, %v7366_v35  ;;  %7023 = vrot.lane.b32.xlu1 %v6850_v8, %s9151_s29 }
 0x87f   :  { %7021 = vrot.lane.b32.xlu0 %v6849_v60, %s9151_s29 }
 0x880   :  { %v6604_v31 = vpop.permute.xlu1 %6603 }
 0x881   :  { %6768 = vst.msk [vmem:[#allocation3 + $0xd8] sm:$0xff] %vm2624_vm8, %v6604_v31  ;;  %v6602_v32 = vpop.permute.xlu0 %6601  ;;  %v6091_v31 = vld [vmem:[#allocation2 + $0x2d2] sm:$0xff] }
 0x882   :  { %6767 = vst.msk [vmem:[#allocation3 + $0xd0] sm:$0xff] %vm2624_vm8, %v6602_v32  ;;  %7407 = vrot.lane.b32.xlu1 %v7234_v39, %s9152_s1 }
 0x883   :  { %7405 = vrot.lane.b32.xlu0 %v7233_v16, %s9152_s1  ;;  %v6092_v16 = vld [vmem:[#allocation2 + $0x2da] sm:$0xff] }
 0x884   :  { %v6988_v48 = vpop.permute.xlu1 %6987  ;;  %v7598_v0 = vld [vmem:[#allocation3 + $0xc8] sm:$0xff] }
 0x885   :  { %7152 = vst.msk [vmem:[#allocation3 + $0xd8] sm:$0xff] %vm3009_vm9, %v6988_v48  ;;  %v6986_v50 = vpop.permute.xlu0 %6985  ;;  %v7597_v61 = vld [vmem:[#allocation3 + $0xc0] sm:$0xff] }
 0x886   :  { %7151 = vst.msk [vmem:[#allocation3 + $0xd0] sm:$0xff] %vm3009_vm9, %v6986_v50  ;;  %6643 = vrot.lane.b32.xlu1 %v6468_v1, %s9150_s28  ;;  %9041 = vmatprep.mubr.msk.f32.mxu1 %vm3533_vm12, %v7597_v61  ;;  %v6476_v1 = vld [vmem:[#allocation2 + $0x2f0] sm:$0xff] }
 0x887   :  { %6641 = vrot.lane.b32.xlu0 %v6467_v27, %s9150_s28  ;;  %9042 = vmatmul.mubr.msk.f32.gmra.mrb[24].mxu1 %vm3533_vm12, %v7598_v0  ;;  %v6475_v27 = vld [vmem:[#allocation2 + $0x2e8] sm:$0xff] }
 0x888   :  { %v7372_v19 = vpop.permute.xlu1 %7371 }
 0x889   :  { %7536 = vst.msk [vmem:[#allocation3 + $0xd8] sm:$0xff] %vm3394_vm11, %v7372_v19  ;;  %v7370_v18 = vpop.permute.xlu0 %7369 }
 0x88a   :  { %7535 = vst.msk [vmem:[#allocation3 + $0xd0] sm:$0xff] %vm3394_vm11, %v7370_v18  ;;  %7027 = vrot.lane.b32.xlu1 %v6852_v52, %s9151_s29  ;;  %v6860_v52 = vld [vmem:[#allocation2 + $0x2f1] sm:$0xff] }
 0x88b   :  { %7025 = vrot.lane.b32.xlu0 %v6851_v57, %s9151_s29  ;;  %v6859_v57 = vld [vmem:[#allocation2 + $0x2e9] sm:$0xff] }
 0x88c   :  { %v6608_v21 = vpop.permute.xlu1 %6607 }
 0x88d   :  { %6770 = vst.msk [vmem:[#allocation3 + $0xe8] sm:$0xff] %vm2624_vm8, %v6608_v21  ;;  %v6606_v54 = vpop.permute.xlu0 %6605 }
 0x88e   :  { %6769 = vst.msk [vmem:[#allocation3 + $0xe0] sm:$0xff] %vm2624_vm8, %v6606_v54  ;;  %7411 = vrot.lane.b32.xlu1 %v7236_v56, %s9152_s1  ;;  %v12646_v54 = vld [vmem:[%s13388_s3 + $0x1] ss:$0 sm:$0xff] }
 0x88f   :  { %7409 = vrot.lane.b32.xlu0 %v7235_v10, %s9152_s1  ;;  %v6093_v10 = vld [vmem:[#allocation2 + $0x2ea] sm:$0xff] }
 0x890   :  { %v6992_v51 = vpop.permute.xlu1 %6991  ;;  %v7600_v23 = vld [vmem:[#allocation3 + $0xd8] sm:$0xff] }
 0x891   :  { %7154 = vst.msk [vmem:[#allocation3 + $0xe8] sm:$0xff] %vm3009_vm9, %v6992_v51  ;;  %v6990_v14 = vpop.permute.xlu0 %6989  ;;  %v7599_v7 = vld [vmem:[#allocation3 + $0xd0] sm:$0xff] }
 0x892   :  { %7153 = vst.msk [vmem:[#allocation3 + $0xe0] sm:$0xff] %vm3009_vm9, %v6990_v14  ;;  %6647 = vrot.lane.b32.xlu1 %v6470_v63, %s9150_s28  ;;  %9044 = vmatprep.mubr.msk.f32.mxu1 %vm3533_vm12, %v7599_v7  ;;  %v12651_v14 = vstv %s8750_s2 }
 0x893   :  { %6645 = vrot.lane.b32.xlu0 %v6469_v55, %s9150_s28  ;;  %9045 = vmatmul.mubr.msk.f32.gmra.mrb[26].mxu1 %vm3533_vm12, %v7600_v23 }
 0x894   :  { %v7376_v20 = vpop.permute.xlu1 %7375 }
 0x895   :  { %7538 = vst.msk [vmem:[#allocation3 + $0xe8] sm:$0xff] %vm3394_vm11, %v7376_v20  ;;  %v7374_v5 = vpop.permute.xlu0 %7373 }
 0x896   :  { %7537 = vst.msk [vmem:[#allocation3 + $0xe0] sm:$0xff] %vm3394_vm11, %v7374_v5  ;;  %7031 = vrot.lane.b32.xlu1 %v6854_v9, %s9151_s29  ;;  %v8422_v5 = vld [vmem:[%s13385_s0 + $0x8] sm:$0xff] }
 0x897   :  { %7029 = vrot.lane.b32.xlu0 %v6853_v46, %s9151_s29  ;;  %v6094_v46 = vld [vmem:[#allocation2 + $0x2f2] sm:$0xff] }
 0x898   :  { %v6612_v38 = vpop.permute.xlu1 %6611 }
 0x899   :  { %6772 = vst.msk [vmem:[#allocation3 + $0xf8] sm:$0xff] %vm2624_vm8, %v6612_v38  ;;  %v6610_v43 = vpop.permute.xlu0 %6609 }
 0x89a   :  { %6771 = vst.msk [vmem:[#allocation3 + $0xf0] sm:$0xff] %vm2624_vm8, %v6610_v43  ;;  %6265 = vrot.lane.b32.xlu1 %v6087_v47, %s9149_s27 }
 0x89b   :  { %7413 = vrot.lane.b32.xlu0 %v6087_v47, %s9152_s1  ;;  %v8421_v47 = vld [vmem:[%s13385_s0] sm:$0xff] }
 0x89c   :  { %v6996_v34 = vpop.permute.xlu1 %6995  ;;  %v7602_v53 = vld [vmem:[#allocation3 + $0xe8] sm:$0xff] }
 0x89d   :  { %7156 = vst.msk [vmem:[#allocation3 + $0xf8] sm:$0xff] %vm3009_vm9, %v6996_v34  ;;  %v6994_v15 = vpop.permute.xlu0 %6993  ;;  %v7601_v58 = vld [vmem:[#allocation3 + $0xe0] sm:$0xff] }
 0x89e   :  { %7155 = vst.msk [vmem:[#allocation3 + $0xf0] sm:$0xff] %vm3009_vm9, %v6994_v15  ;;  %6267 = vrot.lane.b32.xlu1 %v6088_v59, %s9149_s27  ;;  %9047 = vmatprep.mubr.msk.f32.mxu1 %vm3533_vm12, %v7601_v58 }
 0x89f   :  { %7415 = vrot.lane.b32.xlu0 %v6088_v59, %s9152_s1  ;;  %9048 = vmatmul.mubr.msk.f32.gmra.mrb[28].mxu1 %vm3533_vm12, %v7602_v53 }
 0x8a0   :  { %v7380_v26 = vpop.permute.xlu1 %7379 }
 0x8a1   :  { %7540 = vst.msk [vmem:[#allocation3 + $0xf8] sm:$0xff] %vm3394_vm11, %v7380_v26  ;;  %v7378_v37 = vpop.permute.xlu0 %7377 }
 0x8a2   :  { %7539 = vst.msk [vmem:[#allocation3 + $0xf0] sm:$0xff] %vm3394_vm11, %v7378_v37  ;;  %6651 = vrot.lane.b32.xlu1 %v6472_v49, %s9150_s28  ;;  %v6478_v49 = vld [vmem:[#allocation2 + $0x308] sm:$0xff] }
 0x8a3   :  { %6649 = vrot.lane.b32.xlu0 %v6471_v30, %s9150_s28  ;;  %v6477_v30 = vld [vmem:[#allocation2 + $0x300] sm:$0xff] }
 0x8a4   :  { %v6616_v4 = vpop.permute.xlu1 %6615 }
 0x8a5   :  { %6774 = vst.msk [vmem:[#allocation3 + $0x108] sm:$0xff] %vm2624_vm8, %v6616_v4  ;;  %v6614_v33 = vpop.permute.xlu0 %6613 }
 0x8a6   :  { %6773 = vst.msk [vmem:[#allocation3 + $0x100] sm:$0xff] %vm2624_vm8, %v6614_v33  ;;  %7035 = vrot.lane.b32.xlu1 %v6856_v40, %s9151_s29  ;;  %v6862_v40 = vld [vmem:[#allocation2 + $0x309] sm:$0xff] }
 0x8a7   :  { %7033 = vrot.lane.b32.xlu0 %v6855_v42, %s9151_s29 }
 0x8a8   :  { %v7000_v22 = vpop.permute.xlu1 %6999  ;;  %v7604_v25 = vld [vmem:[#allocation3 + $0xf8] sm:$0xff] }
 0x8a9   :  { %7158 = vst.msk [vmem:[#allocation3 + $0x108] sm:$0xff] %vm3009_vm9, %v7000_v22  ;;  %v6998_v6 = vpop.permute.xlu0 %6997  ;;  %v7603_v29 = vld [vmem:[#allocation3 + $0xf0] sm:$0xff]  ;;  %v6861_v22 = vld [vmem:[#allocation2 + $0x301] sm:$0xff] }
 0x8aa   :  { %7157 = vst.msk [vmem:[#allocation3 + $0x100] sm:$0xff] %vm3009_vm9, %v6998_v6  ;;  %6269 = vrot.lane.b32.xlu1 %v6089_v62, %s9149_s27  ;;  %9050 = vmatprep.mubr.msk.f32.mxu1 %vm3533_vm12, %v7603_v29 }
 0x8ab   :  { %7417 = vrot.lane.b32.xlu0 %v6089_v62, %s9152_s1  ;;  %9051 = vmatmul.mubr.msk.f32.gmra.mrb[30].mxu1 %vm3533_vm12, %v7604_v25 }
 0x8ac   :  { %v7384_v28 = vpop.permute.xlu1 %7383 }
 0x8ad   :  { %7542 = vst.msk [vmem:[#allocation3 + $0x108] sm:$0xff] %vm3394_vm11, %v7384_v28  ;;  %v7382_v2 = vpop.permute.xlu0 %7381 }
 0x8ae   :  { %7541 = vst.msk [vmem:[#allocation3 + $0x100] sm:$0xff] %vm3394_vm11, %v7382_v2  ;;  %6271 = vrot.lane.b32.xlu1 %v6090_v3, %s9149_s27  ;;  %v8424_v2 = vld [vmem:[%s13385_s0 + $0x18] sm:$0xff] }
 0x8af   :  { %7419 = vrot.lane.b32.xlu0 %v6090_v3, %s9152_s1 }
 0x8b0   :  { %v6620_v24 = vpop.permute.xlu1 %6619 }
 0x8b1   :  { %6776 = vst.msk [vmem:[#allocation3 + $0x118] sm:$0xff] %vm2624_vm8, %v6620_v24  ;;  %v6618_v44 = vpop.permute.xlu0 %6617  ;;  %v6095_v24 = vld [vmem:[#allocation2 + $0x302] sm:$0xff] }
 0x8b2   :  { %6775 = vst.msk [vmem:[#allocation3 + $0x110] sm:$0xff] %vm2624_vm8, %v6618_v44  ;;  %6655 = vrot.lane.b32.xlu1 %v6474_v13, %s9150_s28 }
 0x8b3   :  { %6653 = vrot.lane.b32.xlu0 %v6473_v17, %s9150_s28  ;;  %v8423_v17 = vld [vmem:[%s13385_s0 + $0x10] sm:$0xff] }
 0x8b4   :  { %v7004_v11 = vpop.permute.xlu1 %7003  ;;  %v7606_v35 = vld [vmem:[#allocation3 + $0x108] sm:$0xff] }
 0x8b5   :  { %7160 = vst.msk [vmem:[#allocation3 + $0x118] sm:$0xff] %vm3009_vm9, %v7004_v11  ;;  %v7002_v12 = vpop.permute.xlu0 %7001  ;;  %v7605_v41 = vld [vmem:[#allocation3 + $0x100] sm:$0xff] }
 0x8b6   :  { %7159 = vst.msk [vmem:[#allocation3 + $0x110] sm:$0xff] %vm3009_vm9, %v7002_v12  ;;  %7039 = vrot.lane.b32.xlu1 %v6858_v36, %s9151_s29  ;;  %9053 = vmatprep.mubr.msk.f32.mxu1 %vm3533_vm12, %v7605_v41 }
 0x8b7   :  { %7037 = vrot.lane.b32.xlu0 %v6857_v45, %s9151_s29  ;;  %9054 = vmatmul.mubr.msk.f32.gmra.mrb[32].mxu1 %vm3533_vm12, %v7606_v35 }
 0x8b8   :  { %v7388_v8 = vpop.permute.xlu1 %7387 }
 0x8b9   :  { %7544 = vst.msk [vmem:[#allocation3 + $0x118] sm:$0xff] %vm3394_vm11, %v7388_v8  ;;  %v7386_v60 = vpop.permute.xlu0 %7385 }
 0x8ba   :  { %7543 = vst.msk [vmem:[#allocation3 + $0x110] sm:$0xff] %vm3394_vm11, %v7386_v60  ;;  %6273 = vrot.lane.b32.xlu1 %v6091_v31, %s9149_s27  ;;  %v6096_v60 = vld [vmem:[#allocation2 + $0x30a] sm:$0xff] }
 0x8bb   :  { %7421 = vrot.lane.b32.xlu0 %v6091_v31, %s9152_s1 }
 0x8bc   :  { %v6624_v32 = vpop.permute.xlu1 %6623 }
 0x8bd   :  { %6778 = vst.msk [vmem:[#allocation3 + $0x128] sm:$0xff] %vm2624_vm8, %v6624_v32  ;;  %v6622_v39 = vpop.permute.xlu0 %6621 }
 0x8be   :  { %6777 = vst.msk [vmem:[#allocation3 + $0x120] sm:$0xff] %vm2624_vm8, %v6622_v39  ;;  %6275 = vrot.lane.b32.xlu1 %v6092_v16, %s9149_s27  ;;  %v6480_v39 = vld [vmem:[#allocation2 + $0x320] sm:$0xff] }
 0x8bf   :  { %7423 = vrot.lane.b32.xlu0 %v6092_v16, %s9152_s1 }
 0x8c0   :  { %v7008_v48 = vpop.permute.xlu1 %7007  ;;  %v7608_v0 = vld [vmem:[#allocation3 + $0x118] sm:$0xff] }
 0x8c1   :  { %7162 = vst.msk [vmem:[#allocation3 + $0x128] sm:$0xff] %vm3009_vm9, %v7008_v48  ;;  %v7006_v50 = vpop.permute.xlu0 %7005  ;;  %v7607_v61 = vld [vmem:[#allocation3 + $0x110] sm:$0xff]  ;;  %v6479_v48 = vld [vmem:[#allocation2 + $0x318] sm:$0xff] }
 0x8c2   :  { %7161 = vst.msk [vmem:[#allocation3 + $0x120] sm:$0xff] %vm3009_vm9, %v7006_v50  ;;  %6659 = vrot.lane.b32.xlu1 %v6476_v1, %s9150_s28  ;;  %9056 = vmatprep.mubr.msk.f32.mxu1 %vm3533_vm12, %v7607_v61 }
 0x8c3   :  { %6657 = vrot.lane.b32.xlu0 %v6475_v27, %s9150_s28  ;;  %9057 = vmatmul.mubr.msk.f32.gmra.mrb[34].mxu1 %vm3533_vm12, %v7608_v0 }
 0x8c4   :  { %v7392_v19 = vpop.permute.xlu1 %7391 }
 0x8c5   :  { %7546 = vst.msk [vmem:[#allocation3 + $0x128] sm:$0xff] %vm3394_vm11, %v7392_v19  ;;  %v7390_v18 = vpop.permute.xlu0 %7389  ;;  %v8426_v19 = vld [vmem:[%s13385_s0 + $0x28] sm:$0xff] }
 0x8c6   :  { %7545 = vst.msk [vmem:[#allocation3 + $0x120] sm:$0xff] %vm3394_vm11, %v7390_v18  ;;  %7043 = vrot.lane.b32.xlu1 %v6860_v52, %s9151_s29  ;;  %v6864_v52 = vld [vmem:[#allocation2 + $0x321] sm:$0xff] }
 0x8c7   :  { %7041 = vrot.lane.b32.xlu0 %v6859_v57, %s9151_s29 }
 0x8c8   :  { %v6628_v21 = vpop.permute.xlu1 %6627 }
 0x8c9   :  { %6780 = vst.msk [vmem:[#allocation3 + $0x138] sm:$0xff] %vm2624_vm8, %v6628_v21  ;;  %v6626_v56 = vpop.permute.xlu0 %6625 }
 0x8ca   :  { %6779 = vst.msk [vmem:[#allocation3 + $0x130] sm:$0xff] %vm2624_vm8, %v6626_v56  ;;  %6277 = vrot.lane.b32.xlu1 %v6093_v10, %s9149_s27  ;;  %v9007_v51 = vpop.f32.mrb[0].mxu1  ;;  %v8425_v56 = vld [vmem:[%s13385_s0 + $0x20] sm:$0xff] }
 0x8cb   :  { %v7914_v63 = vadd.f32 %v9007_v51, %v12646_v54  ;;  %v7908_v7 = vpop.f32.mrb[1].mxu1  ;;  %7425 = vrot.lane.b32.xlu0 %v6093_v10, %s9152_s1  ;;  %v6863_v10 = vld [vmem:[#allocation2 + $0x319] sm:$0xff] }
 0x8cc   :  { %v7909_v55 = vadd.f32 %v12646_v54, %v7908_v7  ;;  %v7012_v23 = vpop.permute.xlu1 %7011  ;;  %v7610_v34 = vld [vmem:[#allocation3 + $0x128] sm:$0xff] }
 0x8cd   :  { %vm8229_vm3 = vcmp.ge.f32.partialorder %v7914_v63, 0.0  ;;  %v8294_v20 = vmul.f32 %v12651_v14, %v7914_v63  ;;  %7164 = vst.msk [vmem:[#allocation3 + $0x138] sm:$0xff] %vm3009_vm9, %v7012_v23  ;;  %v7010_v9 = vpop.permute.xlu0 %7009  ;;  %v7609_v38 = vld [vmem:[#allocation3 + $0x120] sm:$0xff] }
 0x8ce   :  { %vm8228_vm4 = vcmp.ge.f32.partialorder %v7909_v55, 0.0  ;;  %v8293_v43 = vmul.f32 %v12651_v14, %v7909_v55  ;;  %7163 = vst.msk [vmem:[#allocation3 + $0x130] sm:$0xff] %vm3009_vm9, %v7010_v9  ;;  %6279 = vrot.lane.b32.xlu1 %v6094_v46, %s9149_s27  ;;  %9059 = vmatprep.mubr.msk.f32.mxu1 %vm3533_vm12, %v7609_v38  ;;  %v6097_v9 = vld [vmem:[#allocation2 + $0x31a] sm:$0xff] }
 0x8cf   :  { %v8358_v15 = vsel %vm8229_vm3, %v7914_v63, %v8294_v20  ;;  %7427 = vrot.lane.b32.xlu0 %v6094_v46, %s9152_s1  ;;  %9060 = vmatmul.mubr.msk.f32.gmra.mrb[36].mxu1 %vm3533_vm12, %v7610_v34 }
 0x8d0   :  { %v8486_v59 = vadd.f32 %v8422_v5, %v8358_v15  ;;  %v8357_v58 = vsel %vm8228_vm4, %v7909_v55, %v8293_v43  ;;  %v7396_v53 = vpop.permute.xlu1 %7395  ;;  %v6098_v43 = vld [vmem:[#allocation2 + $0x322] sm:$0xff] }
 0x8d1   :  { %v8485_v26 = vadd.f32 %v8421_v47, %v8357_v58  ;;  %7548 = vst.msk [vmem:[#allocation3 + $0x138] sm:$0xff] %vm3394_vm11, %v7396_v53  ;;  %v7394_v37 = vpop.permute.xlu0 %7393 }
 0x8d2   :  { %8550 = vst.msk [vmem:[%s13390_s5 + $0x8] sm:$0xff] %vm33_vm0, %v8486_v59  ;;  %6663 = vrot.lane.b32.xlu1 %v6478_v49, %s9150_s28  ;;  %v6482_v49 = vld [vmem:[#allocation2 + $0x338] sm:$0xff] }
 0x8d3   :  { %7547 = vst.msk [vmem:[#allocation3 + $0x130] sm:$0xff] %vm3394_vm11, %v7394_v37  ;;  %6661 = vrot.lane.b32.xlu0 %v6477_v30, %s9150_s28 }
 0x8d4   :  { %8549 = vst.msk [vmem:[%s13390_s5] sm:$0xff] %vm33_vm0, %v8485_v26  ;;  %v6632_v4 = vpop.permute.xlu1 %6631  ;;  %v8428_v26 = vld [vmem:[%s13385_s0 + $0x38] sm:$0xff] }
 0x8d5   :  { %6782 = vst.msk [vmem:[#allocation3 + $0x148] sm:$0xff] %vm2624_vm8, %v6632_v4  ;;  %v6630_v33 = vpop.permute.xlu0 %6629 }
 0x8d6   :  { %6781 = vst.msk [vmem:[#allocation3 + $0x140] sm:$0xff] %vm2624_vm8, %v6630_v33  ;;  %7047 = vrot.lane.b32.xlu1 %v6862_v40, %s9151_s29  ;;  %v9010_v42 = vpop.f32.mrb[2].mxu1  ;;  %v8427_v33 = vld [vmem:[%s13385_s0 + $0x30] sm:$0xff] }
 0x8d7   :  { %v7924_v25 = vadd.f32 %v9010_v42, %v12646_v54  ;;  %7045 = vrot.lane.b32.xlu0 %v6861_v22, %s9151_s29  ;;  %v7918_v6 = vpop.f32.mrb[3].mxu1  ;;  %v6481_v40 = vld [vmem:[#allocation2 + $0x330] sm:$0xff] }
 0x8d8   :  { %v7919_v62 = vadd.f32 %v12646_v54, %v7918_v6  ;;  %v7016_v29 = vpop.permute.xlu1 %7015  ;;  %v7612_v11 = vld [vmem:[#allocation3 + $0x138] sm:$0xff] }
 0x8d9   :  { %vm8231_vm5 = vcmp.ge.f32.partialorder %v7924_v25, 0.0  ;;  %v8296_v28 = vmul.f32 %v12651_v14, %v7924_v25  ;;  %7166 = vst.msk [vmem:[#allocation3 + $0x148] sm:$0xff] %vm3009_vm9, %v7016_v29  ;;  %v7014_v3 = vpop.permute.xlu0 %7013 }
 0x8da   :  { %v7611_v44 = vld [vmem:[#allocation3 + $0x130] sm:$0xff]  ;;  %vm8230_vm6 = vcmp.ge.f32.partialorder %v7919_v62, 0.0  ;;  %v8295_v13 = vmul.f32 %v12651_v14, %v7919_v62  ;;  %7165 = vst.msk [vmem:[#allocation3 + $0x140] sm:$0xff] %vm3009_vm9, %v7014_v3  ;;  %6281 = vrot.lane.b32.xlu1 %v6095_v24, %s9149_s27 }
 0x8db   :  { %9062 = vmatprep.mubr.msk.f32.mxu1 %vm3533_vm12, %v7611_v44  ;;  %v8360_v12 = vsel %vm8231_vm5, %v7924_v25, %v8296_v28  ;;  %7429 = vrot.lane.b32.xlu0 %v6095_v24, %s9152_s1  ;;  %v6865_v3 = vld [vmem:[#allocation2 + $0x331] sm:$0xff] }
 0x8dc   :  { %9063 = vmatmul.mubr.msk.f32.gmra.mrb[38].mxu1 %vm3533_vm12, %v7612_v11  ;;  %v8488_v36 = vadd.f32 %v8424_v2, %v8360_v12  ;;  %v8359_v41 = vsel %vm8230_vm6, %v7919_v62, %v8295_v13  ;;  %v7400_v45 = vpop.permute.xlu1 %7399  ;;  %v6866_v2 = vld [vmem:[#allocation2 + $0x339] sm:$0xff] }
 0x8dd   :  { %v8487_v35 = vadd.f32 %v8423_v17, %v8359_v41  ;;  %7550 = vst.msk [vmem:[#allocation3 + $0x148] sm:$0xff] %vm3394_vm11, %v7400_v45  ;;  %v7398_v8 = vpop.permute.xlu0 %7397  ;;  %v6099_v13 = vld [vmem:[#allocation2 + $0x332] sm:$0xff] }
 0x8de   :  { %8552 = vst.msk [vmem:[%s13390_s5 + $0x18] sm:$0xff] %vm33_vm0, %v8488_v36  ;;  %6283 = vrot.lane.b32.xlu1 %v6096_v60, %s9149_s27 }
 0x8df   :  { %7549 = vst.msk [vmem:[#allocation3 + $0x140] sm:$0xff] %vm3394_vm11, %v7398_v8  ;;  %7431 = vrot.lane.b32.xlu0 %v6096_v60, %s9152_s1  ;;  %v6100_v60 = vld [vmem:[#allocation2 + $0x33a] sm:$0xff] }
 0x8e0   :  { %8551 = vst.msk [vmem:[%s13390_s5 + $0x10] sm:$0xff] %vm33_vm0, %v8487_v35  ;;  %v6636_v31 = vpop.permute.xlu1 %6635  ;;  %v8430_v35 = vld [vmem:[%s13385_s0 + $0x48] sm:$0xff] }
 0x8e1   :  { %6784 = vst.msk [vmem:[#allocation3 + $0x158] sm:$0xff] %vm2624_vm8, %v6636_v31  ;;  %v6634_v32 = vpop.permute.xlu0 %6633 }
 0x8e2   :  { %6783 = vst.msk [vmem:[#allocation3 + $0x150] sm:$0xff] %vm2624_vm8, %v6634_v32  ;;  %6667 = vrot.lane.b32.xlu1 %v6480_v39, %s9150_s28  ;;  %v9013_v16 = vpop.f32.mrb[4].mxu1  ;;  %v8429_v39 = vld [vmem:[%s13385_s0 + $0x40] sm:$0xff] }
 0x8e3   :  { %v7934_v50 = vadd.f32 %v9013_v16, %v12646_v54  ;;  %6665 = vrot.lane.b32.xlu0 %v6479_v48, %s9150_s28  ;;  %v7928_v1 = vpop.f32.mrb[5].mxu1 }
 0x8e4   :  { %v7929_v61 = vadd.f32 %v12646_v54, %v7928_v1  ;;  %v7020_v27 = vpop.permute.xlu1 %7019  ;;  %v7614_v51 = vld [vmem:[#allocation3 + $0x148] sm:$0xff] }
 0x8e5   :  { %vm8233_vm10 = vcmp.ge.f32.partialorder %v7934_v50, 0.0  ;;  %v8298_v0 = vmul.f32 %v12651_v14, %v7934_v50  ;;  %7168 = vst.msk [vmem:[#allocation3 + $0x158] sm:$0xff] %vm3009_vm9, %v7020_v27  ;;  %v7018_v18 = vpop.permute.xlu0 %7017 }
 0x8e6   :  { %v7613_v57 = vld [vmem:[#allocation3 + $0x140] sm:$0xff]  ;;  %vm8232_vm2 = vcmp.ge.f32.partialorder %v7929_v61, 0.0  ;;  %v8297_v21 = vmul.f32 %v12651_v14, %v7929_v61  ;;  %7167 = vst.msk [vmem:[#allocation3 + $0x150] sm:$0xff] %vm3009_vm9, %v7018_v18  ;;  %7051 = vrot.lane.b32.xlu1 %v6864_v52, %s9151_s29  ;;  %v6868_v52 = vld [vmem:[#allocation2 + $0x351] sm:$0xff] }
 0x8e7   :  { %9065 = vmatprep.mubr.msk.f32.mxu1 %vm3533_vm12, %v7613_v57  ;;  %v8362_v63 = vsel %vm8233_vm10, %v7934_v50, %v8298_v0  ;;  %7049 = vrot.lane.b32.xlu0 %v6863_v10, %s9151_s29  ;;  %v6484_v50 = vld [vmem:[#allocation2 + $0x350] sm:$0xff]  ;;  %v6483_v0 = vld [vmem:[#allocation2 + $0x348] sm:$0xff] }
 0x8e8   :  { %9066 = vmatmul.mubr.msk.f32.gmra.mrb[40].mxu1 %vm3533_vm12, %v7614_v51  ;;  %v8490_v7 = vadd.f32 %v8426_v19, %v8362_v63  ;;  %v8361_v55 = vsel %vm8232_vm2, %v7929_v61, %v8297_v21  ;;  %v7404_v23 = vpop.permute.xlu1 %7403  ;;  %v6867_v21 = vld [vmem:[#allocation2 + $0x349] sm:$0xff] }
 0x8e9   :  { %v8489_v20 = vadd.f32 %v8425_v56, %v8361_v55  ;;  %7552 = vst.msk [vmem:[#allocation3 + $0x158] sm:$0xff] %vm3394_vm11, %v7404_v23  ;;  %v7402_v5 = vpop.permute.xlu0 %7401 }
 0x8ea   :  { %8554 = vst.msk [vmem:[%s13390_s5 + $0x28] sm:$0xff] %vm33_vm0, %v8490_v7  ;;  %6285 = vrot.lane.b32.xlu1 %v6097_v9, %s9149_s27  ;;  %v7252_v7 = vld [vmem:[#allocation2 + $0x352] sm:$0xff] }
 0x8eb   :  { %7551 = vst.msk [vmem:[#allocation3 + $0x150] sm:$0xff] %vm3394_vm11, %v7402_v5  ;;  %7433 = vrot.lane.b32.xlu0 %v6097_v9, %s9152_s1  ;;  %v8432_v9 = vld [vmem:[%s13385_s0 + $0x58] sm:$0xff] }
 0x8ec   :  { %8553 = vst.msk [vmem:[%s13390_s5 + $0x20] sm:$0xff] %vm33_vm0, %v8489_v20  ;;  %v6640_v46 = vpop.permute.xlu1 %6639  ;;  %v7251_v20 = vld [vmem:[#allocation2 + $0x34a] sm:$0xff] }
 0x8ed   :  { %6786 = vst.msk [vmem:[#allocation3 + $0x168] sm:$0xff] %vm2624_vm8, %v6640_v46  ;;  %v6638_v38 = vpop.permute.xlu0 %6637 }
 0x8ee   :  { %6785 = vst.msk [vmem:[#allocation3 + $0x160] sm:$0xff] %vm2624_vm8, %v6638_v38  ;;  %6287 = vrot.lane.b32.xlu1 %v6098_v43, %s9149_s27  ;;  %v9016_v47 = vpop.f32.mrb[6].mxu1 }
 0x8ef   :  { %v7944_v34 = vadd.f32 %v9016_v47, %v12646_v54  ;;  %7435 = vrot.lane.b32.xlu0 %v6098_v43, %s9152_s1  ;;  %v7938_v15 = vpop.f32.mrb[7].mxu1  ;;  %v8431_v47 = vld [vmem:[%s13385_s0 + $0x50] sm:$0xff] }
 0x8f0   :  { %v7939_v59 = vadd.f32 %v12646_v54, %v7938_v15  ;;  %v7024_v58 = vpop.permute.xlu1 %7023  ;;  %v7616_v42 = vld [vmem:[#allocation3 + $0x158] sm:$0xff] }
 0x8f1   :  { %vm8235_vm13 = vcmp.ge.f32.partialorder %v7944_v34, 0.0  ;;  %v8300_v53 = vmul.f32 %v12651_v14, %v7944_v34  ;;  %7170 = vst.msk [vmem:[#allocation3 + $0x168] sm:$0xff] %vm3009_vm9, %v7024_v58  ;;  %v7022_v37 = vpop.permute.xlu0 %7021 }
 0x8f2   :  { %v7615_v30 = vld [vmem:[#allocation3 + $0x150] sm:$0xff]  ;;  %vm8234_vm14 = vcmp.ge.f32.partialorder %v7939_v59, 0.0  ;;  %v8299_v4 = vmul.f32 %v12651_v14, %v7939_v59  ;;  %7169 = vst.msk [vmem:[#allocation3 + $0x160] sm:$0xff] %vm3009_vm9, %v7022_v37  ;;  %6671 = vrot.lane.b32.xlu1 %v6482_v49, %s9150_s28 }
 0x8f3   :  { %9068 = vmatprep.mubr.msk.f32.mxu1 %vm3533_vm12, %v7615_v30  ;;  %v8364_v22 = vsel %vm8235_vm13, %v7944_v34, %v8300_v53  ;;  %6669 = vrot.lane.b32.xlu0 %v6481_v40, %s9150_s28 }
 0x8f4   :  { %9069 = vmatmul.mubr.msk.f32.gmra.mrb[42].mxu1 %vm3533_vm12, %v7616_v42  ;;  %v8492_v25 = vadd.f32 %v8428_v26, %v8364_v22  ;;  %v8363_v6 = vsel %vm8234_vm14, %v7939_v59, %v8299_v4  ;;  %v7408_v62 = vpop.permute.xlu1 %7407 }
 0x8f5   :  { %v8491_v29 = vadd.f32 %v8427_v33, %v8363_v6  ;;  %7554 = vst.msk [vmem:[#allocation3 + $0x168] sm:$0xff] %vm3394_vm11, %v7408_v62  ;;  %v7406_v28 = vpop.permute.xlu0 %7405  ;;  %v8434_v6 = vld [vmem:[%s13385_s0 + $0x68] sm:$0xff] }
 0x8f6   :  { %8556 = vst.msk [vmem:[%s13390_s5 + $0x38] sm:$0xff] %vm33_vm0, %v8492_v25  ;;  %7055 = vrot.lane.b32.xlu1 %v6866_v2, %s9151_s29  ;;  %v8433_v2 = vld [vmem:[%s13385_s0 + $0x60] sm:$0xff] }
 0x8f7   :  { %7553 = vst.msk [vmem:[#allocation3 + $0x160] sm:$0xff] %vm3394_vm11, %v7406_v28  ;;  %7053 = vrot.lane.b32.xlu0 %v6865_v3, %s9151_s29 }
 0x8f8   :  { %8555 = vst.msk [vmem:[%s13390_s5 + $0x30] sm:$0xff] %vm33_vm0, %v8491_v29  ;;  %v6644_v24 = vpop.permute.xlu1 %6643 }
 0x8f9   :  { %6788 = vst.msk [vmem:[#allocation3 + $0x178] sm:$0xff] %vm2624_vm8, %v6644_v24  ;;  %v6642_v44 = vpop.permute.xlu0 %6641 }
 0x8fa   :  { %6787 = vst.msk [vmem:[#allocation3 + $0x170] sm:$0xff] %vm2624_vm8, %v6642_v44  ;;  %6289 = vrot.lane.b32.xlu1 %v6099_v13, %s9149_s27  ;;  %v9019_v17 = vpop.f32.mrb[8].mxu1 }
 0x8fb   :  { %v7954_v11 = vadd.f32 %v9019_v17, %v12646_v54  ;;  %7437 = vrot.lane.b32.xlu0 %v6099_v13, %s9152_s1  ;;  %v7948_v12 = vpop.f32.mrb[9].mxu1 }
 0x8fc   :  { %v7949_v36 = vadd.f32 %v12646_v54, %v7948_v12  ;;  %v7028_v41 = vpop.permute.xlu1 %7027  ;;  %v7618_v16 = vld [vmem:[#allocation3 + $0x168] sm:$0xff] }
 0x8fd   :  { %vm8237_vm15 = vcmp.ge.f32.partialorder %v7954_v11, 0.0  ;;  %v8302_v45 = vmul.f32 %v12651_v14, %v7954_v11  ;;  %7172 = vst.msk [vmem:[#allocation3 + $0x178] sm:$0xff] %vm3009_vm9, %v7028_v41  ;;  %v7026_v8 = vpop.permute.xlu0 %7025 }
 0x8fe   :  { %v7617_v31 = vld [vmem:[#allocation3 + $0x160] sm:$0xff]  ;;  %vm8236_vm1 = vcmp.ge.f32.partialorder %v7949_v36, 0.0  ;;  %v8301_v32 = vmul.f32 %v12651_v14, %v7949_v36  ;;  %7171 = vst.msk [vmem:[#allocation3 + $0x170] sm:$0xff] %vm3009_vm9, %v7026_v8  ;;  %6291 = vrot.lane.b32.xlu1 %v6100_v60, %s9149_s27 }
 0x8ff   :  { %9071 = vmatprep.mubr.msk.f32.mxu1 %vm3533_vm12, %v7617_v31  ;;  %v8366_v48 = vsel %vm8237_vm15, %v7954_v11, %v8302_v45  ;;  %7439 = vrot.lane.b32.xlu0 %v6100_v60, %s9152_s1 }
 0x900   :  { %9072 = vmatmul.mubr.msk.f32.gmra.mrb[44].mxu1 %vm3533_vm12, %v7618_v16  ;;  %v8494_v1 = vadd.f32 %v8430_v35, %v8366_v48  ;;  %v8365_v61 = vsel %vm8236_vm1, %v7949_v36, %v8301_v32  ;;  %v7412_v27 = vpop.permute.xlu1 %7411 }
 0x901   :  { %v8493_v19 = vadd.f32 %v8429_v39, %v8365_v61  ;;  %7556 = vst.msk [vmem:[#allocation3 + $0x178] sm:$0xff] %vm3394_vm11, %v7412_v27  ;;  %v7410_v18 = vpop.permute.xlu0 %7409  ;;  %v8436_v39 = vld [vmem:[%s13385_s0 + $0x78] sm:$0xff] }
 0x902   :  { %8558 = vst.msk [vmem:[%s13390_s5 + $0x48] sm:$0xff] %vm33_vm0, %v8494_v1  ;;  %6675 = vrot.lane.b32.xlu1 %v6484_v50, %s9150_s28  ;;  %v8435_v50 = vld [vmem:[%s13385_s0 + $0x70] sm:$0xff] }
 0x903   :  { %7555 = vst.msk [vmem:[#allocation3 + $0x170] sm:$0xff] %vm3394_vm11, %v7410_v18  ;;  %6673 = vrot.lane.b32.xlu0 %v6483_v0, %s9150_s28 }
 0x904   :  { %8557 = vst.msk [vmem:[%s13390_s5 + $0x40] sm:$0xff] %vm33_vm0, %v8493_v19  ;;  %v6648_v57 = vpop.permute.xlu1 %6647 }
 0x905   :  { %6790 = vst.msk [vmem:[#allocation3 + $0x188] sm:$0xff] %vm2624_vm8, %v6648_v57  ;;  %v6646_v56 = vpop.permute.xlu0 %6645 }
 0x906   :  { %6789 = vst.msk [vmem:[#allocation3 + $0x180] sm:$0xff] %vm2624_vm8, %v6646_v56  ;;  %v9022_v10 = vpop.f32.mrb[10].mxu1  ;;  %7059 = vrot.lane.b32.xlu1 %v6868_v52, %s9151_s29 }
 0x907   :  { %v7964_v51 = vadd.f32 %v9022_v10, %v12646_v54  ;;  %7057 = vrot.lane.b32.xlu0 %v6867_v21, %s9151_s29  ;;  %v7958_v63 = vpop.f32.mrb[11].mxu1 }
 0x908   :  { %v7959_v55 = vadd.f32 %v12646_v54, %v7958_v63  ;;  %v7032_v23 = vpop.permute.xlu1 %7031  ;;  %v7620_v34 = vld [vmem:[#allocation3 + $0x178] sm:$0xff] }
 0x909   :  { %vm8239_vm3 = vcmp.ge.f32.partialorder %v7964_v51, 0.0  ;;  %v8304_v5 = vmul.f32 %v12651_v14, %v7964_v51  ;;  %7174 = vst.msk [vmem:[#allocation3 + $0x188] sm:$0xff] %vm3009_vm9, %v7032_v23  ;;  %v7030_v46 = vpop.permute.xlu0 %7029 }
 0x90a   :  { %v7619_v38 = vld [vmem:[#allocation3 + $0x170] sm:$0xff]  ;;  %vm8238_vm4 = vcmp.ge.f32.partialorder %v7959_v55, 0.0  ;;  %v8303_v43 = vmul.f32 %v12651_v14, %v7959_v55  ;;  %7173 = vst.msk [vmem:[#allocation3 + $0x180] sm:$0xff] %vm3009_vm9, %v7030_v46  ;;  %7443 = vrot.lane.b32.xlu1 %v7252_v7, %s9152_s1  ;;  %v8437_v46 = vld [vmem:[%s13385_s0 + $0x80] sm:$0xff] }
 0x90b   :  { %9074 = vmatprep.mubr.msk.f32.mxu1 %vm3533_vm12, %v7619_v38  ;;  %v8368_v15 = vsel %vm8239_vm3, %v7964_v51, %v8304_v5  ;;  %7441 = vrot.lane.b32.xlu0 %v7251_v20, %s9152_s1  ;;  %v8438_v20 = vld [vmem:[%s13385_s0 + $0x88] sm:$0xff] }
 0x90c   :  { %9075 = vmatmul.mubr.msk.f32.gmra.mrb[46].mxu1 %vm3533_vm12, %v7620_v34  ;;  %v8496_v59 = vadd.f32 %v8432_v9, %v8368_v15  ;;  %v8367_v58 = vsel %vm8238_vm4, %v7959_v55, %v8303_v43  ;;  %v6266_v53 = vpop.permute.xlu1 %6265 }
 0x90d   :  { %v8495_v26 = vadd.f32 %v8431_v47, %v8367_v58  ;;  %6407 = vst.msk [vmem:[#allocation3 + $0x190] sm:$0xff] %vm2238_vm7, %v6266_v53  ;;  %v7414_v37 = vpop.permute.xlu0 %7413 }
 0x90e   :  { %8560 = vst.msk [vmem:[%s13390_s5 + $0x58] sm:$0xff] %vm33_vm0, %v8496_v59 }
 0x90f   :  { %7557 = vst.msk [vmem:[#allocation3 + $0x180] sm:$0xff] %vm3394_vm11, %v7414_v37 }
 0x910   :  { %8559 = vst.msk [vmem:[%s13390_s5 + $0x50] sm:$0xff] %vm33_vm0, %v8495_v26  ;;  %v6268_v49 = vpop.permute.xlu1 %6267 }
 0x911   :  { %6408 = vst.msk [vmem:[#allocation3 + $0x198] sm:$0xff] %vm2238_vm7, %v6268_v49  ;;  %v7416_v30 = vpop.permute.xlu0 %7415 }
 0x912   :  { %7558 = vst.msk [vmem:[#allocation3 + $0x188] sm:$0xff] %vm3394_vm11, %v7416_v30  ;;  %v9025_v4 = vpop.f32.mrb[12].mxu1 }
 0x913   :  { %v7974_v33 = vadd.f32 %v9025_v4, %v12646_v54  ;;  %v7968_v40 = vpop.f32.mrb[13].mxu1 }
 0x914   :  { %v7969_v42 = vadd.f32 %v12646_v54, %v7968_v40  ;;  %v6652_v22 = vpop.permute.xlu1 %6651 }
 0x915   :  { %vm8241_vm5 = vcmp.ge.f32.partialorder %v7974_v33, 0.0  ;;  %v8306_v25 = vmul.f32 %v12651_v14, %v7974_v33  ;;  %6792 = vst.msk [vmem:[#allocation3 + $0x198] sm:$0xff] %vm2624_vm8, %v6652_v22  ;;  %v6650_v62 = vpop.permute.xlu0 %6649 }
 0x916   :  { %v7621_v29 = vld [vmem:[#allocation3 + $0x180] sm:$0xff]  ;;  %vm8240_vm6 = vcmp.ge.f32.partialorder %v7969_v42, 0.0  ;;  %v8305_v28 = vmul.f32 %v12651_v14, %v7969_v42  ;;  %6791 = vst.msk [vmem:[#allocation3 + $0x190] sm:$0xff] %vm2624_vm8, %v6650_v62  ;;  %v8439_v62 = vld [vmem:[%s13385_s0 + $0x90] sm:$0xff] }
 0x917   :  { %9077 = vmatprep.mubr.msk.f32.mxu1 %vm3533_vm12, %v7621_v29  ;;  %v8370_v3 = vsel %vm8241_vm5, %v7974_v33, %v8306_v25 }
 0x918   :  { %v8498_v24 = vadd.f32 %v8434_v6, %v8370_v3  ;;  %v8369_v44 = vsel %vm8240_vm6, %v7969_v42, %v8305_v28  ;;  %v7036_v13 = vpop.permute.xlu1 %7035  ;;  %v8440_v42 = vld [vmem:[%s13385_s0 + $0x98] sm:$0xff] }
 0x919   :  { %v8497_v17 = vadd.f32 %v8433_v2, %v8369_v44  ;;  %7176 = vst.msk [vmem:[#allocation3 + $0x198] sm:$0xff] %vm3009_vm9, %v7036_v13  ;;  %v7034_v11 = vpop.permute.xlu0 %7033  ;;  %v7622_v12 = vld [vmem:[#allocation3 + $0x188] sm:$0xff] }
 0x91a   :  { %8562 = vst.msk [vmem:[%s13390_s5 + $0x68] sm:$0xff] %vm33_vm0, %v8498_v24  ;;  %9078 = vmatmul.mubr.msk.f32.gmra.mrb[48].mxu1 %vm3533_vm12, %v7622_v12 }
 0x91b   :  { %7175 = vst.msk [vmem:[#allocation3 + $0x190] sm:$0xff] %vm3009_vm9, %v7034_v11 }
 0x91c   :  { %8561 = vst.msk [vmem:[%s13390_s5 + $0x60] sm:$0xff] %vm33_vm0, %v8497_v17  ;;  %v6270_v36 = vpop.permute.xlu1 %6269 }
 0x91d   :  { %6409 = vst.msk [vmem:[#allocation3 + $0x1a0] sm:$0xff] %vm2238_vm7, %v6270_v36  ;;  %v7418_v41 = vpop.permute.xlu0 %7417 }
 0x91e   :  { %7559 = vst.msk [vmem:[#allocation3 + $0x190] sm:$0xff] %vm3394_vm11, %v7418_v41  ;;  %v9028_v45 = vpop.f32.mrb[14].mxu1 }
 0x91f   :  { %v7984_v35 = vadd.f32 %v9028_v45, %v12646_v54  ;;  %v7978_v8 = vpop.f32.mrb[15].mxu1 }
 0x920   :  { %v7979_v60 = vadd.f32 %v12646_v54, %v7978_v8  ;;  %v6272_v31 = vpop.permute.xlu1 %6271  ;;  %v8442_v8 = vld [vmem:[%s13385_s0 + $0xa8] sm:$0xff] }
 0x921   :  { %vm8243_vm10 = vcmp.ge.f32.partialorder %v7984_v35, 0.0  ;;  %v8308_v32 = vmul.f32 %v12651_v14, %v7984_v35  ;;  %6410 = vst.msk [vmem:[#allocation3 + $0x1a8] sm:$0xff] %vm2238_vm7, %v6272_v31  ;;  %v7420_v16 = vpop.permute.xlu0 %7419 }
 0x922   :  { %vm8242_vm2 = vcmp.ge.f32.partialorder %v7979_v60, 0.0  ;;  %v8307_v48 = vmul.f32 %v12651_v14, %v7979_v60  ;;  %7560 = vst.msk [vmem:[#allocation3 + $0x198] sm:$0xff] %vm3394_vm11, %v7420_v16 }
 0x923   :  { %v8372_v1 = vsel %vm8243_vm10, %v7984_v35, %v8308_v32 }
 0x924   :  { %v8500_v61 = vadd.f32 %v8436_v39, %v8372_v1  ;;  %v8371_v27 = vsel %vm8242_vm2, %v7979_v60, %v8307_v48  ;;  %v6656_v0 = vpop.permute.xlu1 %6655  ;;  %v8441_v39 = vld [vmem:[%s13385_s0 + $0xa0] sm:$0xff] }
 0x925   :  { %v8499_v19 = vadd.f32 %v8435_v50, %v8371_v27  ;;  %6794 = vst.msk [vmem:[#allocation3 + $0x1a8] sm:$0xff] %vm2624_vm8, %v6656_v0  ;;  %v6654_v18 = vpop.permute.xlu0 %6653  ;;  %v7623_v52 = vld [vmem:[#allocation3 + $0x190] sm:$0xff] }
 0x926   :  { %8564 = vst.msk [vmem:[%s13390_s5 + $0x78] sm:$0xff] %vm33_vm0, %v8500_v61  ;;  %9080 = vmatprep.mubr.msk.f32.mxu1 %vm3533_vm12, %v7623_v52 }
 0x927   :  { %6793 = vst.msk [vmem:[#allocation3 + $0x1a0] sm:$0xff] %vm2624_vm8, %v6654_v18 }
 0x928   :  { %8563 = vst.msk [vmem:[%s13390_s5 + $0x70] sm:$0xff] %vm33_vm0, %v8499_v19  ;;  %v7040_v57 = vpop.permute.xlu1 %7039 }
 0x929   :  { %7178 = vst.msk [vmem:[#allocation3 + $0x1a8] sm:$0xff] %vm3009_vm9, %v7040_v57  ;;  %v7038_v21 = vpop.permute.xlu0 %7037  ;;  %v7624_v56 = vld [vmem:[#allocation3 + $0x198] sm:$0xff] }
 0x92a   :  { %7177 = vst.msk [vmem:[#allocation3 + $0x1a0] sm:$0xff] %vm3009_vm9, %v7038_v21  ;;  %v9031_v10 = vpop.f32.mrb[16].mxu1  ;;  %9081 = vmatmul.mubr.msk.f32.gmra.mrb[50].mxu1 %vm3533_vm12, %v7624_v56 }
 0x92b   :  { %v7994_v51 = vadd.f32 %v9031_v10, %v12646_v54  ;;  %v7988_v63 = vpop.f32.mrb[17].mxu1 }
 0x92c   :  { %v7989_v7 = vadd.f32 %v12646_v54, %v7988_v63  ;;  %v6274_v55 = vpop.permute.xlu1 %6273  ;;  %v8444_v63 = vld [vmem:[%s13385_s0 + $0xb8] sm:$0xff] }
 0x92d   :  { %vm8245_vm13 = vcmp.ge.f32.partialorder %v7994_v51, 0.0  ;;  %v8310_v23 = vmul.f32 %v12651_v14, %v7994_v51  ;;  %6411 = vst.msk [vmem:[#allocation3 + $0x1b0] sm:$0xff] %vm2238_vm7, %v6274_v55  ;;  %v7422_v5 = vpop.permute.xlu0 %7421 }
 0x92e   :  { %vm8244_vm14 = vcmp.ge.f32.partialorder %v7989_v7, 0.0  ;;  %v8309_v9 = vmul.f32 %v12651_v14, %v7989_v7  ;;  %7561 = vst.msk [vmem:[#allocation3 + $0x1a0] sm:$0xff] %vm3394_vm11, %v7422_v5 }
 0x92f   :  { %v8374_v38 = vsel %vm8245_vm13, %v7994_v51, %v8310_v23  ;;  %v8443_v23 = vld [vmem:[%s13385_s0 + $0xb0] sm:$0xff] }
 0x930   :  { %v8502_v43 = vadd.f32 %v8438_v20, %v8374_v38  ;;  %v8373_v47 = vsel %vm8244_vm14, %v7989_v7, %v8309_v9  ;;  %v6276_v34 = vpop.permute.xlu1 %6275 }
 0x931   :  { %v8501_v15 = vadd.f32 %v8437_v46, %v8373_v47  ;;  %6412 = vst.msk [vmem:[#allocation3 + $0x1b8] sm:$0xff] %vm2238_vm7, %v6276_v34  ;;  %v7424_v59 = vpop.permute.xlu0 %7423 }
 0x932   :  { %8566 = vst.msk [vmem:[%s13390_s5 + $0x88] sm:$0xff] %vm33_vm0, %v8502_v43 }
 0x933   :  { %7562 = vst.msk [vmem:[#allocation3 + $0x1a8] sm:$0xff] %vm3394_vm11, %v7424_v59 }
 0x934   :  { %8565 = vst.msk [vmem:[%s13390_s5 + $0x80] sm:$0xff] %vm33_vm0, %v8501_v15  ;;  %v6660_v58 = vpop.permute.xlu1 %6659 }
 0x935   :  { %6796 = vst.msk [vmem:[#allocation3 + $0x1b8] sm:$0xff] %vm2624_vm8, %v6660_v58  ;;  %v6658_v53 = vpop.permute.xlu0 %6657  ;;  %v7625_v26 = vld [vmem:[#allocation3 + $0x1a0] sm:$0xff] }
 0x936   :  { %6795 = vst.msk [vmem:[#allocation3 + $0x1b0] sm:$0xff] %vm2624_vm8, %v6658_v53  ;;  %v9034_v37 = vpop.f32.mrb[18].mxu1  ;;  %9083 = vmatprep.mubr.msk.f32.mxu1 %vm3533_vm12, %v7625_v26 }
 0x937   :  { %v8004_v49 = vadd.f32 %v9034_v37, %v12646_v54  ;;  %v7998_v30 = vpop.f32.mrb[19].mxu1 }
 0x938   :  { %v7999_v4 = vadd.f32 %v12646_v54, %v7998_v30  ;;  %v7044_v33 = vpop.permute.xlu1 %7043 }
 0x939   :  { %vm8247_vm15 = vcmp.ge.f32.partialorder %v8004_v49, 0.0  ;;  %v8312_v40 = vmul.f32 %v12651_v14, %v8004_v49  ;;  %7180 = vst.msk [vmem:[#allocation3 + $0x1b8] sm:$0xff] %vm3009_vm9, %v7044_v33  ;;  %v7042_v22 = vpop.permute.xlu0 %7041 }
 0x93a   :  { %v7626_v25 = vld [vmem:[#allocation3 + $0x1a8] sm:$0xff]  ;;  %vm8246_vm1 = vcmp.ge.f32.partialorder %v7999_v4, 0.0  ;;  %v8311_v6 = vmul.f32 %v12651_v14, %v7999_v4  ;;  %7179 = vst.msk [vmem:[#allocation3 + $0x1b0] sm:$0xff] %vm3009_vm9, %v7042_v22 }
 0x93b   :  { %9084 = vmatmul.mubr.msk.f32.gmra.mrb[52].mxu1 %vm3533_vm12, %v7626_v25  ;;  %v8376_v29 = vsel %vm8247_vm15, %v8004_v49, %v8312_v40 }
 0x93c   :  { %v8504_v28 = vadd.f32 %v8440_v42, %v8376_v29  ;;  %v8375_v2 = vsel %vm8246_vm1, %v7999_v4, %v8311_v6  ;;  %v6278_v3 = vpop.permute.xlu1 %6277  ;;  %v8446_v4 = vld [vmem:[%s13385_s0 + $0xc8] sm:$0xff]  ;;  %v8445_v42 = vld [vmem:[%s13385_s0 + $0xc0] sm:$0xff] }
 0x93d   :  { %v8503_v24 = vadd.f32 %v8439_v62, %v8375_v2  ;;  %6413 = vst.msk [vmem:[#allocation3 + $0x1c0] sm:$0xff] %vm2238_vm7, %v6278_v3  ;;  %v7426_v44 = vpop.permute.xlu0 %7425 }
 0x93e   :  { %8568 = vst.msk [vmem:[%s13390_s5 + $0x98] sm:$0xff] %vm33_vm0, %v8504_v28 }
 0x93f   :  { %7563 = vst.msk [vmem:[#allocation3 + $0x1b0] sm:$0xff] %vm3394_vm11, %v7426_v44 }
 0x940   :  { %8567 = vst.msk [vmem:[%s13390_s5 + $0x90] sm:$0xff] %vm33_vm0, %v8503_v24  ;;  %v6280_v13 = vpop.permute.xlu1 %6279 }
 0x941   :  { %6414 = vst.msk [vmem:[#allocation3 + $0x1c8] sm:$0xff] %vm2238_vm7, %v6280_v13  ;;  %v7428_v17 = vpop.permute.xlu0 %7427 }
 0x942   :  { %7564 = vst.msk [vmem:[#allocation3 + $0x1b8] sm:$0xff] %vm3394_vm11, %v7428_v17  ;;  %v9037_v11 = vpop.f32.mrb[20].mxu1 }
 0x943   :  { %v8014_v12 = vadd.f32 %v9037_v11, %v12646_v54  ;;  %v8008_v36 = vpop.f32.mrb[21].mxu1 }
 0x944   :  { %v8009_v41 = vadd.f32 %v12646_v54, %v8008_v36  ;;  %v6664_v45 = vpop.permute.xlu1 %6663 }
 0x945   :  { %vm8249_vm3 = vcmp.ge.f32.partialorder %v8014_v12, 0.0  ;;  %v8314_v35 = vmul.f32 %v12651_v14, %v8014_v12  ;;  %6798 = vst.msk [vmem:[#allocation3 + $0x1c8] sm:$0xff] %vm2624_vm8, %v6664_v45  ;;  %v6662_v60 = vpop.permute.xlu0 %6661 }
 0x946   :  { %v7627_v31 = vld [vmem:[#allocation3 + $0x1b0] sm:$0xff]  ;;  %vm8248_vm4 = vcmp.ge.f32.partialorder %v8009_v41, 0.0  ;;  %v8313_v32 = vmul.f32 %v12651_v14, %v8009_v41  ;;  %6797 = vst.msk [vmem:[#allocation3 + $0x1c0] sm:$0xff] %vm2624_vm8, %v6662_v60 }
 0x947   :  { %9086 = vmatprep.mubr.msk.f32.mxu1 %vm3533_vm12, %v7627_v31  ;;  %v8378_v16 = vsel %vm8249_vm3, %v8014_v12, %v8314_v35  ;;  %v8447_v60 = vld [vmem:[%s13385_s0 + $0xd0] sm:$0xff] }
 0x948   :  { %v8506_v48 = vadd.f32 %v8442_v8, %v8378_v16  ;;  %v8377_v50 = vsel %vm8248_vm4, %v8009_v41, %v8313_v32  ;;  %v7048_v1 = vpop.permute.xlu1 %7047  ;;  %v8448_v41 = vld [vmem:[%s13385_s0 + $0xd8] sm:$0xff] }
 0x949   :  { %v8505_v61 = vadd.f32 %v8441_v39, %v8377_v50  ;;  %7182 = vst.msk [vmem:[#allocation3 + $0x1c8] sm:$0xff] %vm3009_vm9, %v7048_v1  ;;  %v7046_v27 = vpop.permute.xlu0 %7045  ;;  %v7628_v0 = vld [vmem:[#allocation3 + $0x1b8] sm:$0xff] }
 0x94a   :  { %8570 = vst.msk [vmem:[%s13390_s5 + $0xa8] sm:$0xff] %vm33_vm0, %v8506_v48  ;;  %9087 = vmatmul.mubr.msk.f32.gmra.mrb[54].mxu1 %vm3533_vm12, %v7628_v0 }
 0x94b   :  { %7181 = vst.msk [vmem:[#allocation3 + $0x1c0] sm:$0xff] %vm3009_vm9, %v7046_v27 }
 0x94c   :  { %8569 = vst.msk [vmem:[%s13390_s5 + $0xa0] sm:$0xff] %vm33_vm0, %v8505_v61  ;;  %v6282_v19 = vpop.permute.xlu1 %6281 }
 0x94d   :  { %6415 = vst.msk [vmem:[#allocation3 + $0x1d0] sm:$0xff] %vm2238_vm7, %v6282_v19  ;;  %v7430_v18 = vpop.permute.xlu0 %7429 }
 0x94e   :  { %7565 = vst.msk [vmem:[#allocation3 + $0x1c0] sm:$0xff] %vm3394_vm11, %v7430_v18  ;;  %v9040_v52 = vpop.f32.mrb[22].mxu1 }
 0x94f   :  { %v8024_v57 = vadd.f32 %v9040_v52, %v12646_v54  ;;  %v8018_v21 = vpop.f32.mrb[23].mxu1 }
 0x950   :  { %v8019_v56 = vadd.f32 %v12646_v54, %v8018_v21  ;;  %v6284_v10 = vpop.permute.xlu1 %6283  ;;  %v8450_v21 = vld [vmem:[%s13385_s0 + $0xe8] sm:$0xff] }
 0x951   :  { %vm8251_vm5 = vcmp.ge.f32.partialorder %v8024_v57, 0.0  ;;  %v8316_v51 = vmul.f32 %v12651_v14, %v8024_v57  ;;  %6416 = vst.msk [vmem:[#allocation3 + $0x1d8] sm:$0xff] %vm2238_vm7, %v6284_v10  ;;  %v7432_v7 = vpop.permute.xlu0 %7431 }
 0x952   :  { %vm8250_vm6 = vcmp.ge.f32.partialorder %v8019_v56, 0.0  ;;  %v8315_v55 = vmul.f32 %v12651_v14, %v8019_v56  ;;  %7566 = vst.msk [vmem:[#allocation3 + $0x1c8] sm:$0xff] %vm3394_vm11, %v7432_v7 }
 0x953   :  { %v8380_v20 = vsel %vm8251_vm5, %v8024_v57, %v8316_v51 }
 0x954   :  { %v8508_v5 = vadd.f32 %v8444_v63, %v8380_v20  ;;  %v8379_v9 = vsel %vm8250_vm6, %v8019_v56, %v8315_v55  ;;  %v6668_v46 = vpop.permute.xlu1 %6667  ;;  %v8449_v63 = vld [vmem:[%s13385_s0 + $0xe0] sm:$0xff] }
 0x955   :  { %v8507_v38 = vadd.f32 %v8443_v23, %v8379_v9  ;;  %6800 = vst.msk [vmem:[#allocation3 + $0x1d8] sm:$0xff] %vm2624_vm8, %v6668_v46  ;;  %v6666_v43 = vpop.permute.xlu0 %6665  ;;  %v7629_v47 = vld [vmem:[#allocation3 + $0x1c0] sm:$0xff] }
 0x956   :  { %8572 = vst.msk [vmem:[%s13390_s5 + $0xb8] sm:$0xff] %vm33_vm0, %v8508_v5  ;;  %9089 = vmatprep.mubr.msk.f32.mxu1 %vm3533_vm12, %v7629_v47  ;;  %v13075_v47 = vld [vmem:[%s13388_s3 + $0x1] ss:$0 sm:$0xff] }
 0x957   :  { %6799 = vst.msk [vmem:[#allocation3 + $0x1d0] sm:$0xff] %vm2624_vm8, %v6666_v43 }
 0x958   :  { %8571 = vst.msk [vmem:[%s13390_s5 + $0xb0] sm:$0xff] %vm33_vm0, %v8507_v38  ;;  %v7052_v34 = vpop.permute.xlu1 %7051 }
 0x959   :  { %7184 = vst.msk [vmem:[#allocation3 + $0x1d8] sm:$0xff] %vm3009_vm9, %v7052_v34  ;;  %v7050_v15 = vpop.permute.xlu0 %7049  ;;  %v7630_v59 = vld [vmem:[#allocation3 + $0x1c8] sm:$0xff] }
 0x95a   :  { %7183 = vst.msk [vmem:[#allocation3 + $0x1d0] sm:$0xff] %vm3009_vm9, %v7050_v15  ;;  %v9043_v58 = vpop.f32.mrb[24].mxu1  ;;  %9090 = vmatmul.mubr.msk.f32.gmra.mrb[56].mxu1 %vm3533_vm12, %v7630_v59 }
 0x95b   :  { %v8034_v53 = vadd.f32 %v9043_v58, %v12646_v54  ;;  %v8028_v26 = vpop.f32.mrb[25].mxu1 }
 0x95c   :  { %v8029_v37 = vadd.f32 %v12646_v54, %v8028_v26  ;;  %v6286_v49 = vpop.permute.xlu1 %6285 }
 0x95d   :  { %vm8253_vm10 = vcmp.ge.f32.partialorder %v8034_v53, 0.0  ;;  %v8318_v30 = vmul.f32 %v12651_v14, %v8034_v53  ;;  %6417 = vst.msk [vmem:[#allocation3 + $0x1e0] sm:$0xff] %vm2238_vm7, %v6286_v49  ;;  %v7434_v33 = vpop.permute.xlu0 %7433 }
 0x95e   :  { %vm8252_vm2 = vcmp.ge.f32.partialorder %v8029_v37, 0.0  ;;  %v8317_v40 = vmul.f32 %v12651_v14, %v8029_v37  ;;  %7567 = vst.msk [vmem:[#allocation3 + $0x1d0] sm:$0xff] %vm3394_vm11, %v7434_v33 }
 0x95f   :  { %v8382_v22 = vsel %vm8253_vm10, %v8034_v53, %v8318_v30  ;;  %v8452_v53 = vld [vmem:[%s13385_s0 + $0xf8] sm:$0xff] }
 0x960   :  { %v8510_v25 = vadd.f32 %v8446_v4, %v8382_v22  ;;  %v8381_v6 = vsel %vm8252_vm2, %v8029_v37, %v8317_v40  ;;  %v6288_v62 = vpop.permute.xlu1 %6287  ;;  %v8451_v37 = vld [vmem:[%s13385_s0 + $0xf0] sm:$0xff] }
 0x961   :  { %v8509_v29 = vadd.f32 %v8445_v42, %v8381_v6  ;;  %6418 = vst.msk [vmem:[#allocation3 + $0x1e8] sm:$0xff] %vm2238_vm7, %v6288_v62  ;;  %v7436_v28 = vpop.permute.xlu0 %7435 }
 0x962   :  { %8574 = vst.msk [vmem:[%s13390_s5 + $0xc8] sm:$0xff] %vm33_vm0, %v8510_v25 }
 0x963   :  { %7568 = vst.msk [vmem:[#allocation3 + $0x1d8] sm:$0xff] %vm3394_vm11, %v7436_v28  ;;  %v8454_v28 = vld [vmem:[%s13385_s0 + $0x108] sm:$0xff] }
 0x964   :  { %8573 = vst.msk [vmem:[%s13390_s5 + $0xc0] sm:$0xff] %vm33_vm0, %v8509_v29  ;;  %v6672_v2 = vpop.permute.xlu1 %6671 }
 0x965   :  { %6802 = vst.msk [vmem:[#allocation3 + $0x1e8] sm:$0xff] %vm2624_vm8, %v6672_v2  ;;  %v6670_v3 = vpop.permute.xlu0 %6669  ;;  %v7631_v24 = vld [vmem:[#allocation3 + $0x1d0] sm:$0xff] }
 0x966   :  { %6801 = vst.msk [vmem:[#allocation3 + $0x1e0] sm:$0xff] %vm2624_vm8, %v6670_v3  ;;  %v9046_v44 = vpop.f32.mrb[26].mxu1  ;;  %9092 = vmatprep.mubr.msk.f32.mxu1 %vm3533_vm12, %v7631_v24  ;;  %v8453_v3 = vld [vmem:[%s13385_s0 + $0x100] sm:$0xff] }
 0x967   :  { %v8044_v13 = vadd.f32 %v9046_v44, %v12646_v54  ;;  %v8038_v17 = vpop.f32.mrb[27].mxu1 }
 0x968   :  { %v8039_v11 = vadd.f32 %v12646_v54, %v8038_v17  ;;  %v7056_v12 = vpop.permute.xlu1 %7055 }
 0x969   :  { %vm8255_vm13 = vcmp.ge.f32.partialorder %v8044_v13, 0.0  ;;  %v8320_v36 = vmul.f32 %v12651_v14, %v8044_v13  ;;  %7186 = vst.msk [vmem:[#allocation3 + $0x1e8] sm:$0xff] %vm3009_vm9, %v7056_v12  ;;  %v7054_v45 = vpop.permute.xlu0 %7053 }
 0x96a   :  { %v7632_v35 = vld [vmem:[#allocation3 + $0x1d8] sm:$0xff]  ;;  %vm8254_vm14 = vcmp.ge.f32.partialorder %v8039_v11, 0.0  ;;  %v8319_v8 = vmul.f32 %v12651_v14, %v8039_v11  ;;  %7185 = vst.msk [vmem:[#allocation3 + $0x1e0] sm:$0xff] %vm3009_vm9, %v7054_v45 }
 0x96b   :  { %9093 = vmatmul.mubr.msk.f32.gmra.mrb[58].mxu1 %vm3533_vm12, %v7632_v35  ;;  %v8384_v31 = vsel %vm8255_vm13, %v8044_v13, %v8320_v36  ;;  %v8456_v35 = vld [vmem:[%s13385_s0 + $0x118] sm:$0xff] }
 0x96c   :  { %v8512_v32 = vadd.f32 %v8448_v41, %v8384_v31  ;;  %v8383_v39 = vsel %vm8254_vm14, %v8039_v11, %v8319_v8  ;;  %v6290_v16 = vpop.permute.xlu1 %6289 }
 0x96d   :  { %v8511_v48 = vadd.f32 %v8447_v60, %v8383_v39  ;;  %6419 = vst.msk [vmem:[#allocation3 + $0x1f0] sm:$0xff] %vm2238_vm7, %v6290_v16  ;;  %v7438_v50 = vpop.permute.xlu0 %7437  ;;  %v8455_v60 = vld [vmem:[%s13385_s0 + $0x110] sm:$0xff] }
 0x96e   :  { %8576 = vst.msk [vmem:[%s13390_s5 + $0xd8] sm:$0xff] %vm33_vm0, %v8512_v32 }
 0x96f   :  { %7569 = vst.msk [vmem:[#allocation3 + $0x1e0] sm:$0xff] %vm3394_vm11, %v7438_v50 }
 0x970   :  { %8575 = vst.msk [vmem:[%s13390_s5 + $0xd0] sm:$0xff] %vm33_vm0, %v8511_v48  ;;  %v6292_v1 = vpop.permute.xlu1 %6291 }
 0x971   :  { %6420 = vst.msk [vmem:[#allocation3 + $0x1f8] sm:$0xff] %vm2238_vm7, %v6292_v1  ;;  %v7440_v61 = vpop.permute.xlu0 %7439 }
 0x972   :  { %7570 = vst.msk [vmem:[#allocation3 + $0x1e8] sm:$0xff] %vm3394_vm11, %v7440_v61  ;;  %v9049_v27 = vpop.f32.mrb[28].mxu1 }
 0x973   :  { %v8054_v0 = vadd.f32 %v9049_v27, %v12646_v54  ;;  %v8048_v19 = vpop.f32.mrb[29].mxu1 }
 0x974   :  { %v8049_v18 = vadd.f32 %v12646_v54, %v8048_v19  ;;  %v6676_v52 = vpop.permute.xlu1 %6675 }
 0x975   :  { %vm8257_vm15 = vcmp.ge.f32.partialorder %v8054_v0, 0.0  ;;  %v8322_v57 = vmul.f32 %v12651_v14, %v8054_v0  ;;  %v6674_v56 = vpop.permute.xlu0 %6673  ;;  %6804 = vst.msk [vmem:[#allocation3 + $0x1f8] sm:$0xff] %vm2624_vm8, %v6676_v52 }
 0x976   :  { %v7633_v10 = vld [vmem:[#allocation3 + $0x1e0] sm:$0xff]  ;;  %vm8256_vm7 = vcmp.ge.f32.partialorder %v8049_v18, 0.0  ;;  %v8321_v51 = vmul.f32 %v12651_v14, %v8049_v18  ;;  %6803 = vst.msk [vmem:[#allocation3 + $0x1f0] sm:$0xff] %vm2624_vm8, %v6674_v56 }
 0x977   :  { %9095 = vmatprep.mubr.msk.f32.mxu1 %vm3533_vm12, %v7633_v10  ;;  %v8386_v54 = vsel %vm8257_vm15, %v8054_v0, %v8322_v57  ;;  %v8458_v0 = vld [vmem:[%s13385_s0 + $0x128] sm:$0xff] }
 0x978   :  { %v8514_v7 = vadd.f32 %v8450_v21, %v8386_v54  ;;  %v8385_v55 = vsel %vm8256_vm7, %v8049_v18, %v8321_v51  ;;  %v7060_v23 = vpop.permute.xlu1 %7059  ;;  %v8457_v18 = vld [vmem:[%s13385_s0 + $0x120] sm:$0xff] }
 0x979   :  { %v8513_v20 = vadd.f32 %v8449_v63, %v8385_v55  ;;  %v7058_v5 = vpop.permute.xlu0 %7057  ;;  %7188 = vst.msk [vmem:[#allocation3 + $0x1f8] sm:$0xff] %vm3009_vm9, %v7060_v23  ;;  %v7634_v9 = vld [vmem:[#allocation3 + $0x1e8] sm:$0xff]  ;;  %v8460_v55 = vld [vmem:[%s13385_s0 + $0x138] sm:$0xff] }
 0x97a   :  { %8578 = vst.msk [vmem:[%s13390_s5 + $0xe8] sm:$0xff] %vm33_vm0, %v8514_v7  ;;  %9096 = vmatmul.mubr.msk.f32.gmra.mrb[60].mxu1 %vm3533_vm12, %v7634_v9 }
 0x97b   :  { %7187 = vst.msk [vmem:[#allocation3 + $0x1f0] sm:$0xff] %vm3009_vm9, %v7058_v5 }
 0x97c   :  { %8577 = vst.msk [vmem:[%s13390_s5 + $0xe0] sm:$0xff] %vm33_vm0, %v8513_v20  ;;  %v7444_v46 = vpop.permute.xlu1 %7443  ;;  %v8459_v20 = vld [vmem:[%s13385_s0 + $0x130] sm:$0xff] }
 0x97d   :  { %v7442_v38 = vpop.permute.xlu0 %7441  ;;  %7572 = vst.msk [vmem:[#allocation3 + $0x1f8] sm:$0xff] %vm3394_vm11, %v7444_v46 }
 0x97e   :  { %7571 = vst.msk [vmem:[#allocation3 + $0x1f0] sm:$0xff] %vm3394_vm11, %v7442_v38  ;;  %v9052_v43 = vpop.f32.mrb[30].mxu1 }
 0x97f   :  { %v8064_v34 = vadd.f32 %v13075_v47, %v9052_v43  ;;  %v8058_v15 = vpop.f32.mrb[31].mxu1 }
 0x980   :  { %v8059_v59 = vadd.f32 %v13075_v47, %v8058_v15 }
 0x981   :  { %vm8259_vm8 = vcmp.ge.f32.partialorder %v8064_v34, 0.0  ;;  %v8324_v58 = vmul.f32 %v12651_v14, %v8064_v34 }
 0x982   :  { %vm8258_vm9 = vcmp.ge.f32.partialorder %v8059_v59, 0.0  ;;  %v8323_v26 = vmul.f32 %v12651_v14, %v8059_v59 }
 0x983   :  { %v8388_v49 = vsel %vm8259_vm8, %v8064_v34, %v8324_v58 }
 0x984   :  { %v8516_v30 = vadd.f32 %v8452_v53, %v8388_v49  ;;  %v8387_v4 = vsel %vm8258_vm9, %v8059_v59, %v8323_v26  ;;  %v7636_v33 = vld [vmem:[#allocation3 + $0x1f8] sm:$0xff]  ;;  %v8462_v53 = vld [vmem:[%s13385_s0 + $0x148] sm:$0xff] }
 0x985   :  { %v8515_v40 = vadd.f32 %v8451_v37, %v8387_v4  ;;  %v7635_v42 = vld [vmem:[#allocation3 + $0x1f0] sm:$0xff]  ;;  %v8461_v37 = vld [vmem:[%s13385_s0 + $0x140] sm:$0xff] }
 0x986   :  { %8580 = vst.msk [vmem:[%s13390_s5 + $0xf8] sm:$0xff] %vm33_vm0, %v8516_v30  ;;  %9098 = vmatprep.mubr.msk.f32.mxu1 %vm3533_vm12, %v7635_v42 }
 0x987   :  { %8579 = vst.msk [vmem:[%s13390_s5 + $0xf0] sm:$0xff] %vm33_vm0, %v8515_v40  ;;  %9099 = vmatmul.mubr.msk.f32.gmra.mrb[62].mxu1 %vm3533_vm12, %v7636_v33 }
 0x98a   :  { %v9055_v22 = vpop.f32.mrb[32].mxu1 }
 0x98b   :  { %v8074_v25 = vadd.f32 %v13075_v47, %v9055_v22  ;;  %v8068_v6 = vpop.f32.mrb[33].mxu1 }
 0x98c   :  { %v8069_v62 = vadd.f32 %v13075_v47, %v8068_v6 }
 0x98d   :  { %vm8261_vm11 = vcmp.ge.f32.partialorder %v8074_v25, 0.0  ;;  %v8326_v29 = vmul.f32 %v12651_v14, %v8074_v25 }
 0x98e   :  { %vm8260_vm1 = vcmp.ge.f32.partialorder %v8069_v62, 0.0  ;;  %v8325_v2 = vmul.f32 %v12651_v14, %v8069_v62 }
 0x98f   :  { %v8390_v24 = vsel %vm8261_vm11, %v8074_v25, %v8326_v29 }
 0x990   :  { %v8518_v44 = vadd.f32 %v8454_v28, %v8390_v24  ;;  %v8389_v13 = vsel %vm8260_vm1, %v8069_v62, %v8325_v2  ;;  %v8464_v62 = vld [vmem:[%s13385_s0 + $0x158] sm:$0xff]  ;;  %v8463_v28 = vld [vmem:[%s13385_s0 + $0x150] sm:$0xff] }
 0x991   :  { %v8517_v17 = vadd.f32 %v8453_v3, %v8389_v13 }
 0x992   :  { %8582 = vst.msk [vmem:[%s13390_s5 + $0x108] sm:$0xff] %vm33_vm0, %v8518_v44 }
 0x993   :  { %8581 = vst.msk [vmem:[%s13390_s5 + $0x100] sm:$0xff] %vm33_vm0, %v8517_v17 }
 0x996   :  { %v9058_v11 = vpop.f32.mrb[34].mxu1 }
 0x997   :  { %v8084_v12 = vadd.f32 %v13075_v47, %v9058_v11  ;;  %v8078_v36 = vpop.f32.mrb[35].mxu1 }
 0x998   :  { %v8079_v41 = vadd.f32 %v13075_v47, %v8078_v36 }
 0x999   :  { %vm8263_vm12 = vcmp.ge.f32.partialorder %v8084_v12, 0.0  ;;  %v8328_v45 = vmul.f32 %v12651_v14, %v8084_v12 }
 0x99a   :  { %vm8262_vm3 = vcmp.ge.f32.partialorder %v8079_v41, 0.0  ;;  %v8327_v8 = vmul.f32 %v12651_v14, %v8079_v41 }
 0x99b   :  { %v8392_v31 = vsel %vm8263_vm12, %v8084_v12, %v8328_v45 }
 0x99c   :  { %v8520_v32 = vadd.f32 %v8456_v35, %v8392_v31  ;;  %v8391_v39 = vsel %vm8262_vm3, %v8079_v41, %v8327_v8  ;;  %v8466_v41 = vld [vmem:[%s13385_s0 + $0x168] sm:$0xff]  ;;  %v8465_v35 = vld [vmem:[%s13385_s0 + $0x160] sm:$0xff] }
 0x99d   :  { %v8519_v16 = vadd.f32 %v8455_v60, %v8391_v39 }
 0x99e   :  { %8584 = vst.msk [vmem:[%s13390_s5 + $0x118] sm:$0xff] %vm33_vm0, %v8520_v32 }
 0x99f   :  { %8583 = vst.msk [vmem:[%s13390_s5 + $0x110] sm:$0xff] %vm33_vm0, %v8519_v16 }
 0x9a2   :  { %v9061_v48 = vpop.f32.mrb[36].mxu1 }
 0x9a3   :  { %v8094_v50 = vadd.f32 %v13075_v47, %v9061_v48  ;;  %v8088_v1 = vpop.f32.mrb[37].mxu1 }
 0x9a4   :  { %v8089_v61 = vadd.f32 %v13075_v47, %v8088_v1 }
 0x9a5   :  { %vm8265_vm4 = vcmp.ge.f32.partialorder %v8094_v50, 0.0  ;;  %v8330_v27 = vmul.f32 %v12651_v14, %v8094_v50 }
 0x9a6   :  { %vm8264_vm5 = vcmp.ge.f32.partialorder %v8089_v61, 0.0  ;;  %v8329_v19 = vmul.f32 %v12651_v14, %v8089_v61 }
 0x9a7   :  { %v8394_v52 = vsel %vm8265_vm4, %v8094_v50, %v8330_v27 }
 0x9a8   :  { %v8522_v57 = vadd.f32 %v8458_v0, %v8394_v52  ;;  %v8393_v21 = vsel %vm8264_vm5, %v8089_v61, %v8329_v19  ;;  %v8468_v61 = vld [vmem:[%s13385_s0 + $0x178] sm:$0xff]  ;;  %v8467_v0 = vld [vmem:[%s13385_s0 + $0x170] sm:$0xff] }
 0x9a9   :  { %v8521_v56 = vadd.f32 %v8457_v18, %v8393_v21 }
 0x9aa   :  { %8586 = vst.msk [vmem:[%s13390_s5 + $0x128] sm:$0xff] %vm33_vm0, %v8522_v57 }
 0x9ab   :  { %8585 = vst.msk [vmem:[%s13390_s5 + $0x120] sm:$0xff] %vm33_vm0, %v8521_v56 }
 0x9af   :  { %v9064_v10 = vpop.f32.mrb[38].mxu1 }
 0x9b0   :  { %v8104_v51 = vadd.f32 %v13075_v47, %v9064_v10  ;;  %v8098_v63 = vpop.f32.mrb[39].mxu1 }
 0x9b1   :  { %v8099_v54 = vadd.f32 %v13075_v47, %v8098_v63 }
 0x9b2   :  { %vm8267_vm6 = vcmp.ge.f32.partialorder %v8104_v51, 0.0  ;;  %v8332_v7 = vmul.f32 %v12651_v14, %v8104_v51 }
 0x9b3   :  { %vm8266_vm10 = vcmp.ge.f32.partialorder %v8099_v54, 0.0  ;;  %v8331_v23 = vmul.f32 %v12651_v14, %v8099_v54 }
 0x9b4   :  { %v8396_v5 = vsel %vm8267_vm6, %v8104_v51, %v8332_v7 }
 0x9b5   :  { %v8524_v9 = vadd.f32 %v8460_v55, %v8396_v5  ;;  %v8395_v46 = vsel %vm8266_vm10, %v8099_v54, %v8331_v23  ;;  %v8470_v54 = vld [vmem:[%s13385_s0 + $0x188] sm:$0xff]  ;;  %v8469_v55 = vld [vmem:[%s13385_s0 + $0x180] sm:$0xff] }
 0x9b6   :  { %v8523_v38 = vadd.f32 %v8459_v20, %v8395_v46 }
 0x9b7   :  { %8588 = vst.msk [vmem:[%s13390_s5 + $0x138] sm:$0xff] %vm33_vm0, %v8524_v9 }
 0x9b8   :  { %8587 = vst.msk [vmem:[%s13390_s5 + $0x130] sm:$0xff] %vm33_vm0, %v8523_v38 }
 0x9bb   :  { %v9067_v43 = vpop.f32.mrb[40].mxu1 }
 0x9bc   :  { %v8114_v34 = vadd.f32 %v13075_v47, %v9067_v43  ;;  %v8108_v15 = vpop.f32.mrb[41].mxu1 }
 0x9bd   :  { %v8109_v59 = vadd.f32 %v13075_v47, %v8108_v15 }
 0x9be   :  { %vm8269_vm2 = vcmp.ge.f32.partialorder %v8114_v34, 0.0  ;;  %v8334_v58 = vmul.f32 %v12651_v14, %v8114_v34 }
 0x9bf   :  { %vm8268_vm13 = vcmp.ge.f32.partialorder %v8109_v59, 0.0  ;;  %v8333_v26 = vmul.f32 %v12651_v14, %v8109_v59 }
 0x9c0   :  { %v8398_v49 = vsel %vm8269_vm2, %v8114_v34, %v8334_v58 }
 0x9c1   :  { %v8526_v30 = vadd.f32 %v8462_v53, %v8398_v49  ;;  %v8397_v4 = vsel %vm8268_vm13, %v8109_v59, %v8333_v26  ;;  %v8472_v59 = vld [vmem:[%s13385_s0 + $0x198] sm:$0xff]  ;;  %v8471_v53 = vld [vmem:[%s13385_s0 + $0x190] sm:$0xff] }
 0x9c2   :  { %v8525_v33 = vadd.f32 %v8461_v37, %v8397_v4 }
 0x9c3   :  { %8590 = vst.msk [vmem:[%s13390_s5 + $0x148] sm:$0xff] %vm33_vm0, %v8526_v30 }
 0x9c4   :  { %8589 = vst.msk [vmem:[%s13390_s5 + $0x140] sm:$0xff] %vm33_vm0, %v8525_v33 }
 0x9c7   :  { %v9070_v40 = vpop.f32.mrb[42].mxu1 }
 0x9c8   :  { %v8124_v42 = vadd.f32 %v13075_v47, %v9070_v40  ;;  %v8118_v22 = vpop.f32.mrb[43].mxu1 }
 0x9c9   :  { %v8119_v25 = vadd.f32 %v13075_v47, %v8118_v22 }
 0x9ca   :  { %vm8271_vm14 = vcmp.ge.f32.partialorder %v8124_v42, 0.0  ;;  %v8336_v6 = vmul.f32 %v12651_v14, %v8124_v42 }
 0x9cb   :  { %vm8270_vm15 = vcmp.ge.f32.partialorder %v8119_v25, 0.0  ;;  %v8335_v29 = vmul.f32 %v12651_v14, %v8119_v25 }
 0x9cc   :  { %v8400_v2 = vsel %vm8271_vm14, %v8124_v42, %v8336_v6 }
 0x9cd   :  { %v8528_v3 = vadd.f32 %v8464_v62, %v8400_v2  ;;  %v8399_v24 = vsel %vm8270_vm15, %v8119_v25, %v8335_v29  ;;  %v8474_v25 = vld [vmem:[%s13385_s0 + $0x1a8] sm:$0xff]  ;;  %v8473_v62 = vld [vmem:[%s13385_s0 + $0x1a0] sm:$0xff] }
 0x9ce   :  { %v8527_v44 = vadd.f32 %v8463_v28, %v8399_v24 }
 0x9cf   :  { %8592 = vst.msk [vmem:[%s13390_s5 + $0x158] sm:$0xff] %vm33_vm0, %v8528_v3 }
 0x9d0   :  { %8591 = vst.msk [vmem:[%s13390_s5 + $0x150] sm:$0xff] %vm33_vm0, %v8527_v44 }
 0x9d3   :  { %v9073_v13 = vpop.f32.mrb[44].mxu1 }
 0x9d4   :  { %v8134_v17 = vadd.f32 %v13075_v47, %v9073_v13  ;;  %v8128_v11 = vpop.f32.mrb[45].mxu1 }
 0x9d5   :  { %v8129_v12 = vadd.f32 %v13075_v47, %v8128_v11 }
 0x9d6   :  { %vm8273_vm7 = vcmp.ge.f32.partialorder %v8134_v17, 0.0  ;;  %v8338_v36 = vmul.f32 %v12651_v14, %v8134_v17 }
 0x9d7   :  { %vm8272_vm8 = vcmp.ge.f32.partialorder %v8129_v12, 0.0  ;;  %v8337_v45 = vmul.f32 %v12651_v14, %v8129_v12 }
 0x9d8   :  { %v8402_v8 = vsel %vm8273_vm7, %v8134_v17, %v8338_v36 }
 0x9d9   :  { %v8530_v60 = vadd.f32 %v8466_v41, %v8402_v8  ;;  %v8401_v31 = vsel %vm8272_vm8, %v8129_v12, %v8337_v45  ;;  %v8476_v12 = vld [vmem:[%s13385_s0 + $0x1b8] sm:$0xff]  ;;  %v8475_v41 = vld [vmem:[%s13385_s0 + $0x1b0] sm:$0xff] }
 0x9da   :  { %v8529_v32 = vadd.f32 %v8465_v35, %v8401_v31 }
 0x9db   :  { %8594 = vst.msk [vmem:[%s13390_s5 + $0x168] sm:$0xff] %vm33_vm0, %v8530_v60 }
 0x9dc   :  { %8593 = vst.msk [vmem:[%s13390_s5 + $0x160] sm:$0xff] %vm33_vm0, %v8529_v32 }
 0x9df   :  { %v9076_v39 = vpop.f32.mrb[46].mxu1 }
 0x9e0   :  { %v8144_v16 = vadd.f32 %v13075_v47, %v9076_v39  ;;  %v8138_v48 = vpop.f32.mrb[47].mxu1 }
 0x9e1   :  { %v8139_v50 = vadd.f32 %v13075_v47, %v8138_v48 }
 0x9e2   :  { %vm8275_vm9 = vcmp.ge.f32.partialorder %v8144_v16, 0.0  ;;  %v8340_v1 = vmul.f32 %v12651_v14, %v8144_v16 }
 0x9e3   :  { %vm8274_vm11 = vcmp.ge.f32.partialorder %v8139_v50, 0.0  ;;  %v8339_v27 = vmul.f32 %v12651_v14, %v8139_v50 }
 0x9e4   :  { %v8404_v19 = vsel %vm8275_vm9, %v8144_v16, %v8340_v1 }
 0x9e5   :  { %v8532_v18 = vadd.f32 %v8468_v61, %v8404_v19  ;;  %v8403_v52 = vsel %vm8274_vm11, %v8139_v50, %v8339_v27  ;;  %v8478_v50 = vld [vmem:[%s13385_s0 + $0x1c8] sm:$0xff]  ;;  %v8477_v61 = vld [vmem:[%s13385_s0 + $0x1c0] sm:$0xff] }
 0x9e6   :  { %v8531_v57 = vadd.f32 %v8467_v0, %v8403_v52 }
 0x9e7   :  { %8596 = vst.msk [vmem:[%s13390_s5 + $0x178] sm:$0xff] %vm33_vm0, %v8532_v18 }
 0x9e8   :  { %8595 = vst.msk [vmem:[%s13390_s5 + $0x170] sm:$0xff] %vm33_vm0, %v8531_v57 }
 0x9ed   :  { %v9079_v21 = vpop.f32.mrb[48].mxu1 }
 0x9ee   :  { %v8154_v56 = vadd.f32 %v13075_v47, %v9079_v21  ;;  %v8148_v10 = vpop.f32.mrb[49].mxu1 }
 0x9ef   :  { %v8149_v51 = vadd.f32 %v13075_v47, %v8148_v10 }
 0x9f0   :  { %vm8277_vm1 = vcmp.ge.f32.partialorder %v8154_v56, 0.0  ;;  %v8342_v63 = vmul.f32 %v12651_v14, %v8154_v56 }
 0x9f1   :  { %vm8276_vm12 = vcmp.ge.f32.partialorder %v8149_v51, 0.0  ;;  %v8341_v7 = vmul.f32 %v12651_v14, %v8149_v51 }
 0x9f2   :  { %v8406_v23 = vsel %vm8277_vm1, %v8154_v56, %v8342_v63 }
 0x9f3   :  { %v8534_v20 = vadd.f32 %v8470_v54, %v8406_v23  ;;  %v8405_v5 = vsel %vm8276_vm12, %v8149_v51, %v8341_v7  ;;  %v8480_v51 = vld [vmem:[%s13385_s0 + $0x1d8] sm:$0xff]  ;;  %v8479_v54 = vld [vmem:[%s13385_s0 + $0x1d0] sm:$0xff] }
 0x9f4   :  { %v8533_v9 = vadd.f32 %v8469_v55, %v8405_v5 }
 0x9f5   :  { %8598 = vst.msk [vmem:[%s13390_s5 + $0x188] sm:$0xff] %vm33_vm0, %v8534_v20 }
 0x9f6   :  { %8597 = vst.msk [vmem:[%s13390_s5 + $0x180] sm:$0xff] %vm33_vm0, %v8533_v9 }
 0x9fd   :  { %v9082_v46 = vpop.f32.mrb[50].mxu1 }
 0x9fe   :  { %v8164_v38 = vadd.f32 %v13075_v47, %v9082_v46  ;;  %v8158_v43 = vpop.f32.mrb[51].mxu1 }
 0x9ff   :  { %v8159_v34 = vadd.f32 %v13075_v47, %v8158_v43 }
 0xa00   :  { %vm8279_vm3 = vcmp.ge.f32.partialorder %v8164_v38, 0.0  ;;  %v8344_v15 = vmul.f32 %v12651_v14, %v8164_v38 }
 0xa01   :  { %vm8278_vm4 = vcmp.ge.f32.partialorder %v8159_v34, 0.0  ;;  %v8343_v58 = vmul.f32 %v12651_v14, %v8159_v34 }
 0xa02   :  { %v8408_v26 = vsel %vm8279_vm3, %v8164_v38, %v8344_v15 }
 0xa03   :  { %v8536_v37 = vadd.f32 %v8472_v59, %v8408_v26  ;;  %v8407_v49 = vsel %vm8278_vm4, %v8159_v34, %v8343_v58  ;;  %v8482_v34 = vld [vmem:[%s13385_s0 + $0x1e8] sm:$0xff]  ;;  %v8481_v59 = vld [vmem:[%s13385_s0 + $0x1e0] sm:$0xff] }
 0xa04   :  { %v8535_v30 = vadd.f32 %v8471_v53, %v8407_v49 }
 0xa05   :  { %8600 = vst.msk [vmem:[%s13390_s5 + $0x198] sm:$0xff] %vm33_vm0, %v8536_v37 }
 0xa06   :  { %8599 = vst.msk [vmem:[%s13390_s5 + $0x190] sm:$0xff] %vm33_vm0, %v8535_v30 }
 0xa0e   :  { %v9085_v4 = vpop.f32.mrb[52].mxu1 }
 0xa0f   :  { %v8174_v33 = vadd.f32 %v13075_v47, %v9085_v4  ;;  %v8168_v40 = vpop.f32.mrb[53].mxu1 }
 0xa10   :  { %v8169_v42 = vadd.f32 %v13075_v47, %v8168_v40 }
 0xa11   :  { %vm8281_vm5 = vcmp.ge.f32.partialorder %v8174_v33, 0.0  ;;  %v8346_v22 = vmul.f32 %v12651_v14, %v8174_v33 }
 0xa12   :  { %vm8280_vm6 = vcmp.ge.f32.partialorder %v8169_v42, 0.0  ;;  %v8345_v6 = vmul.f32 %v12651_v14, %v8169_v42 }
 0xa13   :  { %v8410_v29 = vsel %vm8281_vm5, %v8174_v33, %v8346_v22 }
 0xa14   :  { %v8538_v28 = vadd.f32 %v8474_v25, %v8410_v29  ;;  %v8409_v2 = vsel %vm8280_vm6, %v8169_v42, %v8345_v6  ;;  %v8484_v42 = vld [vmem:[%s13385_s0 + $0x1f8] sm:$0xff]  ;;  %v8483_v25 = vld [vmem:[%s13385_s0 + $0x1f0] sm:$0xff] }
 0xa15   :  { %v8537_v3 = vadd.f32 %v8473_v62, %v8409_v2 }
 0xa16   :  { %8602 = vst.msk [vmem:[%s13390_s5 + $0x1a8] sm:$0xff] %vm33_vm0, %v8538_v28 }
 0xa17   :  { %8601 = vst.msk [vmem:[%s13390_s5 + $0x1a0] sm:$0xff] %vm33_vm0, %v8537_v3 }
 0xa1d   :  { %v9088_v24 = vpop.f32.mrb[54].mxu1 }
 0xa1e   :  { %v8184_v44 = vadd.f32 %v13075_v47, %v9088_v24  ;;  %v8178_v13 = vpop.f32.mrb[55].mxu1 }
 0xa1f   :  { %v8179_v17 = vadd.f32 %v13075_v47, %v8178_v13 }
 0xa20   :  { %vm8283_vm10 = vcmp.ge.f32.partialorder %v8184_v44, 0.0  ;;  %v8348_v11 = vmul.f32 %v12651_v14, %v8184_v44 }
 0xa21   :  { %vm8282_vm2 = vcmp.ge.f32.partialorder %v8179_v17, 0.0  ;;  %v8347_v36 = vmul.f32 %v12651_v14, %v8179_v17 }
 0xa22   :  { %v8412_v45 = vsel %vm8283_vm10, %v8184_v44, %v8348_v11 }
 0xa23   :  { %v8540_v35 = vadd.f32 %v8476_v12, %v8412_v45  ;;  %v8411_v8 = vsel %vm8282_vm2, %v8179_v17, %v8347_v36 }
 0xa24   :  { %v8539_v60 = vadd.f32 %v8475_v41, %v8411_v8 }
 0xa25   :  { %8604 = vst.msk [vmem:[%s13390_s5 + $0x1b8] sm:$0xff] %vm33_vm0, %v8540_v35 }
 0xa26   :  { %8603 = vst.msk [vmem:[%s13390_s5 + $0x1b0] sm:$0xff] %vm33_vm0, %v8539_v60 }
 0xa2d   :  { %v9091_v31 = vpop.f32.mrb[56].mxu1 }
 0xa2e   :  { %v8194_v32 = vadd.f32 %v13075_v47, %v9091_v31  ;;  %v8188_v39 = vpop.f32.mrb[57].mxu1 }
 0xa2f   :  { %v8189_v16 = vadd.f32 %v13075_v47, %v8188_v39 }
 0xa30   :  { %vm8285_vm13 = vcmp.ge.f32.partialorder %v8194_v32, 0.0  ;;  %v8350_v48 = vmul.f32 %v12651_v14, %v8194_v32 }
 0xa31   :  { %vm8284_vm14 = vcmp.ge.f32.partialorder %v8189_v16, 0.0  ;;  %v8349_v1 = vmul.f32 %v12651_v14, %v8189_v16 }
 0xa32   :  { %v8414_v27 = vsel %vm8285_vm13, %v8194_v32, %v8350_v48 }
 0xa33   :  { %v8542_v0 = vadd.f32 %v8478_v50, %v8414_v27  ;;  %v8413_v19 = vsel %vm8284_vm14, %v8189_v16, %v8349_v1 }
 0xa34   :  { %v8541_v18 = vadd.f32 %v8477_v61, %v8413_v19 }
 0xa35   :  { %8606 = vst.msk [vmem:[%s13390_s5 + $0x1c8] sm:$0xff] %vm33_vm0, %v8542_v0 }
 0xa36   :  { %8605 = vst.msk [vmem:[%s13390_s5 + $0x1c0] sm:$0xff] %vm33_vm0, %v8541_v18 }
 0xa3e   :  { %v9094_v52 = vpop.f32.mrb[58].mxu1 }
 0xa3f   :  { %v8204_v57 = vadd.f32 %v13075_v47, %v9094_v52  ;;  %v8198_v21 = vpop.f32.mrb[59].mxu1 }
 0xa40   :  { %v8199_v56 = vadd.f32 %v13075_v47, %v8198_v21 }
 0xa41   :  { %vm8287_vm15 = vcmp.ge.f32.partialorder %v8204_v57, 0.0  ;;  %v8352_v10 = vmul.f32 %v12651_v14, %v8204_v57 }
 0xa42   :  { %vm8286_vm7 = vcmp.ge.f32.partialorder %v8199_v56, 0.0  ;;  %v8351_v63 = vmul.f32 %v12651_v14, %v8199_v56 }
 0xa43   :  { %v8416_v7 = vsel %vm8287_vm15, %v8204_v57, %v8352_v10 }
 0xa44   :  { %v8544_v55 = vadd.f32 %v8480_v51, %v8416_v7  ;;  %v8415_v23 = vsel %vm8286_vm7, %v8199_v56, %v8351_v63 }
 0xa45   :  { %v8543_v20 = vadd.f32 %v8479_v54, %v8415_v23 }
 0xa46   :  { %8608 = vst.msk [vmem:[%s13390_s5 + $0x1d8] sm:$0xff] %vm33_vm0, %v8544_v55 }
 0xa47   :  { %8607 = vst.msk [vmem:[%s13390_s5 + $0x1d0] sm:$0xff] %vm33_vm0, %v8543_v20 }
 0xa4d   :  { %v9097_v5 = vpop.f32.mrb[60].mxu1 }
 0xa4e   :  { %v8214_v9 = vadd.f32 %v13075_v47, %v9097_v5  ;;  %v8208_v46 = vpop.f32.mrb[61].mxu1 }
 0xa4f   :  { %v8209_v38 = vadd.f32 %v13075_v47, %v8208_v46 }
 0xa50   :  { %vm8289_vm8 = vcmp.ge.f32.partialorder %v8214_v9, 0.0  ;;  %v8354_v43 = vmul.f32 %v12651_v14, %v8214_v9 }
 0xa51   :  { %vm8288_vm9 = vcmp.ge.f32.partialorder %v8209_v38, 0.0  ;;  %v8353_v15 = vmul.f32 %v12651_v14, %v8209_v38 }
 0xa52   :  { %v8418_v58 = vsel %vm8289_vm8, %v8214_v9, %v8354_v43 }
 0xa53   :  { %v8546_v53 = vadd.f32 %v8482_v34, %v8418_v58  ;;  %v8417_v26 = vsel %vm8288_vm9, %v8209_v38, %v8353_v15 }
 0xa54   :  { %v8545_v37 = vadd.f32 %v8481_v59, %v8417_v26 }
 0xa55   :  { %8610 = vst.msk [vmem:[%s13390_s5 + $0x1e8] sm:$0xff] %vm33_vm0, %v8546_v53 }
 0xa56   :  { %8609 = vst.msk [vmem:[%s13390_s5 + $0x1e0] sm:$0xff] %vm33_vm0, %v8545_v37 }
 0xa5a   :  { %v9100_v49 = vpop.f32.mrb[62].mxu1 }
 0xa5b   :  { %v8224_v30 = vadd.f32 %v13075_v47, %v9100_v49  ;;  %v8218_v4 = vpop.f32.mrb[63].mxu1 }
 0xa5c   :  { %v8219_v33 = vadd.f32 %v13075_v47, %v8218_v4 }
 0xa5d   :  { %vm8291_vm11 = vcmp.ge.f32.partialorder %v8224_v30, 0.0  ;;  %v8356_v40 = vmul.f32 %v12651_v14, %v8224_v30 }
 0xa5e   :  { %vm8290_vm1 = vcmp.ge.f32.partialorder %v8219_v33, 0.0  ;;  %v8355_v22 = vmul.f32 %v12651_v14, %v8219_v33 }
 0xa5f   :  { %v8420_v6 = vsel %vm8291_vm11, %v8224_v30, %v8356_v40 }
 0xa60   :  { %v8548_v62 = vadd.f32 %v8484_v42, %v8420_v6  ;;  %v8419_v29 = vsel %vm8290_vm1, %v8219_v33, %v8355_v22 }
 0xa61   :  { %v8547_v28 = vadd.f32 %v8483_v25, %v8419_v29 }
 0xa62   :  { %8612 = vst.msk [vmem:[%s13390_s5 + $0x1f8] sm:$0xff] %vm33_vm0, %v8548_v62 }
 0xa63   :  { %8611 = vst.msk [vmem:[%s13390_s5 + $0x1f0] sm:$0xff] %vm33_vm0, %v8547_v28 }
 0xa64   :  { %8617 = vsyncpa [#allocation5], 1 }

</bundles_post_ra>
